<compile_context>
chip_gen: v5e
topology: v5e:2x2
jax: 0.10.0
libtpu: 0.0.40
codegen_flags: <defaults>
</compile_context>

<pallas_src>
import functools

import jax
import jax.numpy as jnp
from jax.experimental import pallas as pl
from jax.experimental.pallas import tpu as pltpu


# ----------------------------- Pallas kernel --------------------------------
def lstm_fc_kernel(x_ref,        # (B, S, I)
                   wih0_ref,     # (I,  4*HP)   layer-0 input weights (gate-tiled)
                   whh0_ref,     # (HP, 4*HP)   layer-0 recurrent weights
                   b0_ref,       # (1,  4*HP)   b_ih0 + b_hh0
                   wcat1_ref,    # (2*HP, 4*HP) layer-1 [W_ih1; W_hh1] stacked
                   b1_ref,       # (1,  4*HP)   b_ih1 + b_hh1
                   wfc_ref,      # (HP, OP)     FC weight (padded)
                   bfc_ref,      # (1,  OP)     FC bias (padded)
                   out_ref):     # (B,  OP)
    B, S, _ = x_ref.shape
    HP = whh0_ref.shape[0]       # padded hidden width per gate (multiple of 128)

    # Hoist all loads out of the unrolled loop.
    x = x_ref[...]               # (B, S, I) -- tiny, lives in vregs/VMEM
    wih0 = wih0_ref[...]
    whh0 = whh0_ref[...]
    b0 = b0_ref[...]
    wcat1 = wcat1_ref[...]
    b1 = b1_ref[...]

    def gates(z, c_prev):
        # PyTorch gate order [i, f, g, o]; each gate occupies a full 128-lane tile,
        # so every slice below is a whole-vreg pick (no cross-lane relayout).
        i_g = jax.nn.sigmoid(z[:, 0 * HP:1 * HP])
        f_g = jax.nn.sigmoid(z[:, 1 * HP:2 * HP])
        g_g = jnp.tanh(z[:, 2 * HP:3 * HP])
        o_g = jax.nn.sigmoid(z[:, 3 * HP:4 * HP])
        c_new = f_g * c_prev + i_g * g_g
        h_new = o_g * jnp.tanh(c_new)
        return h_new, c_new

    h1 = jnp.zeros((B, HP), jnp.float32)
    c1 = jnp.zeros((B, HP), jnp.float32)
    h2 = jnp.zeros((B, HP), jnp.float32)
    c2 = jnp.zeros((B, HP), jnp.float32)

    # Fully unrolled over the static sequence length: all slices are static and
    # the scheduler sees the complete cross-step dependence graph.
    for t in range(S):
        x_t = x[:, t, :]                                        # (B, I) static slice
        # layer 0: x-projection is recurrence-independent (overlappable);
        # only h1 @ whh0 sits on the serial critical path.
        z0 = (jnp.dot(x_t, wih0, preferred_element_type=jnp.float32)
              + jnp.dot(h1, whh0, preferred_element_type=jnp.float32)
              + b0)
        h1, c1 = gates(z0, c1)

        # layer 1: single fused matmul on the lane-aligned concat [h1, h2].
        xh1 = jnp.concatenate([h1, h2], axis=-1)                # (B, 2*HP)
        z1 = jnp.dot(xh1, wcat1, preferred_element_type=jnp.float32) + b1
        h2, c2 = gates(z1, c2)

    # FC on the last timestep's top-layer hidden state (lane-dense store).
    out_ref[...] = (jnp.dot(h2, wfc_ref[...], preferred_element_type=jnp.float32)
                    + bfc_ref[...])


# ------------------------------- wrapper -------------------------------------
def _round_up(n, m):
    return ((n + m - 1) // m) * m


def prepare_params(raw, hidden_size, output_size):
    """Scatter PyTorch-layout LSTM/FC weights into the padded gate-tiled layout.

    raw: wih0 (I,4H), whh0 (H,4H), b0 (4H,), wih1 (H,4H), whh1 (H,4H), b1 (4H,),
         wfc (H,O), bfc (O,)   -- gate order [i, f, g, o], biases pre-summed.
    """
    H = hidden_size
    HP = _round_up(H, 128)
    OP = _round_up(output_size, 128)

    def gate_pad_cols(w_t):                       # (K, 4H) -> (K, 4*HP)
        K = w_t.shape[0]
        out = jnp.zeros((K, 4 * HP), jnp.float32)
        for k in range(4):
            out = out.at[:, k * HP:k * HP + H].set(w_t[:, k * H:(k + 1) * H])
        return out

    def gate_pad_bias(b):                         # (4H,) -> (1, 4*HP)
        out = jnp.zeros((1, 4 * HP), jnp.float32)
        for k in range(4):
            out = out.at[0, k * HP:k * HP + H].set(b[k * H:(k + 1) * H])
        return out

    def pad_rows(w, rows):
        return jnp.pad(w, ((0, rows - w.shape[0]), (0, 0)))

    wih0 = gate_pad_cols(raw["wih0"])                              # (I, 4HP)
    whh0 = pad_rows(gate_pad_cols(raw["whh0"]), HP)                # (HP, 4HP)
    b0 = gate_pad_bias(raw["b0"])                                  # (1, 4HP)
    wih1 = pad_rows(gate_pad_cols(raw["wih1"]), HP)                # (HP, 4HP)
    whh1 = pad_rows(gate_pad_cols(raw["whh1"]), HP)                # (HP, 4HP)
    wcat1 = jnp.concatenate([wih1, whh1], axis=0)                  # (2HP, 4HP)
    b1 = gate_pad_bias(raw["b1"])                                  # (1, 4HP)
    wfc = jnp.zeros((HP, OP), jnp.float32).at[:H, :output_size].set(raw["wfc"])
    bfc = jnp.zeros((1, OP), jnp.float32).at[0, :output_size].set(raw["bfc"])

    return {"wih0": wih0, "whh0": whh0, "b0": b0,
            "wcat1": wcat1, "b1": b1, "wfc": wfc, "bfc": bfc}


@functools.partial(jax.jit, static_argnames=("output_size",))
def pose_estimation_lstm(x, pp, output_size):
    """x: (batch, seq, input_size) f32.  Returns (batch, output_size) f32."""
    B = x.shape[0]
    OP = pp["wfc"].shape[1]

    vmem_full = pl.BlockSpec(memory_space=pltpu.MemorySpace.VMEM)
    out = pl.pallas_call(
        lstm_fc_kernel,
        out_shape=jax.ShapeDtypeStruct((B, OP), jnp.float32),
        in_specs=[vmem_full] * 8,
        out_specs=vmem_full,
    )(x, pp["wih0"], pp["whh0"], pp["b0"],
      pp["wcat1"], pp["b1"], pp["wfc"], pp["bfc"])
    return out[:, :output_size]


# --------------------------- pure-JAX reference -------------------------------
def reference_forward(x, raw):
    B, S, _ = x.shape
    H = raw["whh0"].shape[0]
    h1 = jnp.zeros((B, H), jnp.float32)
    c1 = jnp.zeros((B, H), jnp.float32)
    h2 = jnp.zeros((B, H), jnp.float32)
    c2 = jnp.zeros((B, H), jnp.float32)

    def cell(x_in, h, c, wih, whh, b):
        z = x_in @ wih + h @ whh + b
        i = jax.nn.sigmoid(z[:, 0 * H:1 * H])
        f = jax.nn.sigmoid(z[:, 1 * H:2 * H])
        g = jnp.tanh(z[:, 2 * H:3 * H])
        o = jax.nn.sigmoid(z[:, 3 * H:4 * H])
        c_new = f * c + i * g
        return o * jnp.tanh(c_new), c_new

    for t in range(S):
        xt = x[:, t, :]
        h1, c1 = cell(xt, h1, c1, raw["wih0"], raw["whh0"], raw["b0"])
        h2, c2 = cell(h1, h2, c2, raw["wih1"], raw["whh1"], raw["b1"])
    return h2 @ raw["wfc"] + raw["bfc"]


# --------------------------------- init ---------------------------------------
def init_params(key, input_size, hidden_size, output_size):
    """PyTorch-style uniform(-1/sqrt(H), 1/sqrt(H)) init, stored pre-transposed."""
    k = 1.0 / jnp.sqrt(jnp.float32(hidden_size))
    keys = jax.random.split(key, 12)
    u = lambda kk, shape: jax.random.uniform(kk, shape, jnp.float32, -k, k)

    wih0 = u(keys[0], (4 * hidden_size, input_size)).T          # (I, 4H)
    whh0 = u(keys[1], (4 * hidden_size, hidden_size)).T         # (H, 4H)
    b0 = u(keys[2], (4 * hidden_size,)) + u(keys[3], (4 * hidden_size,))
    wih1 = u(keys[4], (4 * hidden_size, hidden_size)).T         # (H, 4H)
    whh1 = u(keys[5], (4 * hidden_size, hidden_size)).T         # (H, 4H)
    b1 = u(keys[6], (4 * hidden_size,)) + u(keys[7], (4 * hidden_size,))
    wfc = jax.random.uniform(keys[8], (output_size, hidden_size),
                             jnp.float32, -k, k).T              # (H, O)
    bfc = jax.random.uniform(keys[9], (output_size,), jnp.float32, -k, k)

    return {"wih0": wih0, "whh0": whh0, "b0": b0,
            "wih1": wih1, "whh1": whh1, "b1": b1,
            "wfc": wfc, "bfc": bfc}


# --------------------------------- main ---------------------------------------
if __name__ == "__main__":
    # Small shapes consistent with the module's forward:
    # x: (batch, seq, input_size); out: (batch, output_size)
    batch, seq, input_size, hidden_size, output_size = 2, 8, 64, 32, 6

    key = jax.random.PRNGKey(0)
    kx, kp = jax.random.split(key)
    x = jax.random.normal(kx, (batch, seq, input_size), jnp.float32)
    raw = init_params(kp, input_size, hidden_size, output_size)
    pp = prepare_params(raw, hidden_size, output_size)

    out = pose_estimation_lstm(x, pp, output_size=output_size)
    out = jax.block_until_ready(out)

    ref = reference_forward(x, raw)
    assert out.shape == (batch, output_size)
    assert jnp.allclose(out, ref, atol=1e-4, rtol=1e-4), (out, ref)

    print("KERNEL_OK")
</pallas_src>

<mosaic_0001>
module attributes {stable_mosaic.version = 11 : i64} {
  func.func @lstm_fc_kernel(%arg0: memref<2x8x64xf32, #tpu.memory_space<vmem>>, %arg1: memref<64x512xf32, #tpu.memory_space<vmem>>, %arg2: memref<128x512xf32, #tpu.memory_space<vmem>>, %arg3: memref<1x512xf32, #tpu.memory_space<vmem>>, %arg4: memref<256x512xf32, #tpu.memory_space<vmem>>, %arg5: memref<1x512xf32, #tpu.memory_space<vmem>>, %arg6: memref<128x128xf32, #tpu.memory_space<vmem>>, %arg7: memref<1x128xf32, #tpu.memory_space<vmem>>, %arg8: memref<2x128xf32, #tpu.memory_space<vmem>>) attributes {dimension_semantics = [], scalar_prefetch = 0 : i64, scratch_operands = 0 : i64, tpu.core_type = #tpu.core_type<tc>} {
    %c0 = arith.constant 0 : index
    %c0_0 = arith.constant 0 : index
    %c0_1 = arith.constant 0 : index
    %0 = vector.load %arg0[%c0, %c0_0, %c0_1] : memref<2x8x64xf32, #tpu.memory_space<vmem>>, vector<2x8x64xf32>
    %c0_2 = arith.constant 0 : index
    %c0_3 = arith.constant 0 : index
    %1 = vector.load %arg1[%c0_2, %c0_3] : memref<64x512xf32, #tpu.memory_space<vmem>>, vector<64x512xf32>
    %c0_4 = arith.constant 0 : index
    %c0_5 = arith.constant 0 : index
    %2 = vector.load %arg2[%c0_4, %c0_5] : memref<128x512xf32, #tpu.memory_space<vmem>>, vector<128x512xf32>
    %c0_6 = arith.constant 0 : index
    %c0_7 = arith.constant 0 : index
    %3 = vector.load %arg3[%c0_6, %c0_7] : memref<1x512xf32, #tpu.memory_space<vmem>>, vector<1x512xf32>
    %c0_8 = arith.constant 0 : index
    %c0_9 = arith.constant 0 : index
    %4 = vector.load %arg4[%c0_8, %c0_9] : memref<256x512xf32, #tpu.memory_space<vmem>>, vector<256x512xf32>
    %c0_10 = arith.constant 0 : index
    %c0_11 = arith.constant 0 : index
    %5 = vector.load %arg5[%c0_10, %c0_11] : memref<1x512xf32, #tpu.memory_space<vmem>>, vector<1x512xf32>
    %cst = arith.constant 0.000000e+00 : f32
    %6 = vector.broadcast %cst : f32 to vector<2x128xf32>
    %cst_12 = arith.constant 0.000000e+00 : f32
    %7 = vector.broadcast %cst_12 : f32 to vector<2x128xf32>
    %cst_13 = arith.constant 0.000000e+00 : f32
    %8 = vector.broadcast %cst_13 : f32 to vector<2x128xf32>
    %cst_14 = arith.constant 0.000000e+00 : f32
    %9 = vector.broadcast %cst_14 : f32 to vector<2x128xf32>
    %10 = vector.extract_strided_slice %0 {offsets = [0, 0, 0], sizes = [2, 1, 64], strides = [1, 1, 1]} : vector<2x8x64xf32> to vector<2x1x64xf32>
    %11 = vector.shape_cast %10 : vector<2x1x64xf32> to vector<2x64xf32>
    %cst_15 = arith.constant dense<0.000000e+00> : vector<2x512xf32>
    %12 = tpu.matmul %11, %1, %cst_15 {dimension_numbers = #tpu.dot_dimension_numbers<[1], [0], [0], [1], [0, 0, 1, 1], [], []>} : vector<2x64xf32>, vector<64x512xf32>, vector<2x512xf32> -> vector<2x512xf32>
    %cst_16 = arith.constant dense<0.000000e+00> : vector<2x512xf32>
    %13 = tpu.matmul %6, %2, %cst_16 {dimension_numbers = #tpu.dot_dimension_numbers<[1], [0], [0], [1], [0, 0, 1, 1], [], []>} : vector<2x128xf32>, vector<128x512xf32>, vector<2x512xf32> -> vector<2x512xf32>
    %14 = arith.addf %12, %13 : vector<2x512xf32>
    %15 = vector.broadcast %3 : vector<1x512xf32> to vector<2x512xf32>
    %16 = arith.addf %14, %15 : vector<2x512xf32>
    %17 = vector.extract_strided_slice %16 {offsets = [0, 0], sizes = [2, 128], strides = [1, 1]} : vector<2x512xf32> to vector<2x128xf32>
    %18 = arith.negf %17 : vector<2x128xf32>
    %19 = math.exp %18 : vector<2x128xf32>
    %cst_17 = arith.constant 1.000000e+00 : f32
    %20 = vector.broadcast %cst_17 : f32 to vector<2x128xf32>
    %21 = arith.addf %20, %19 : vector<2x128xf32>
    %22 = arith.divf %20, %21 : vector<2x128xf32>
    %23 = vector.extract_strided_slice %16 {offsets = [0, 128], sizes = [2, 128], strides = [1, 1]} : vector<2x512xf32> to vector<2x128xf32>
    %24 = arith.negf %23 : vector<2x128xf32>
    %25 = math.exp %24 : vector<2x128xf32>
    %cst_18 = arith.constant 1.000000e+00 : f32
    %26 = vector.broadcast %cst_18 : f32 to vector<2x128xf32>
    %27 = arith.addf %26, %25 : vector<2x128xf32>
    %28 = arith.divf %26, %27 : vector<2x128xf32>
    %29 = vector.extract_strided_slice %16 {offsets = [0, 256], sizes = [2, 128], strides = [1, 1]} : vector<2x512xf32> to vector<2x128xf32>
    %30 = math.tanh %29 : vector<2x128xf32>
    %31 = vector.extract_strided_slice %16 {offsets = [0, 384], sizes = [2, 128], strides = [1, 1]} : vector<2x512xf32> to vector<2x128xf32>
    %32 = arith.negf %31 : vector<2x128xf32>
    %33 = math.exp %32 : vector<2x128xf32>
    %cst_19 = arith.constant 1.000000e+00 : f32
    %34 = vector.broadcast %cst_19 : f32 to vector<2x128xf32>
    %35 = arith.addf %34, %33 : vector<2x128xf32>
    %36 = arith.divf %34, %35 : vector<2x128xf32>
    %37 = arith.mulf %28, %7 : vector<2x128xf32>
    %38 = arith.mulf %22, %30 : vector<2x128xf32>
    %39 = arith.addf %37, %38 : vector<2x128xf32>
    %40 = math.tanh %39 : vector<2x128xf32>
    %41 = arith.mulf %36, %40 : vector<2x128xf32>
    %42 = tpu.concatenate %41, %8 in 1 : vector<2x128xf32>, vector<2x128xf32> -> vector<2x256xf32>
    %cst_20 = arith.constant dense<0.000000e+00> : vector<2x512xf32>
    %43 = tpu.matmul %42, %4, %cst_20 {dimension_numbers = #tpu.dot_dimension_numbers<[1], [0], [0], [1], [0, 0, 1, 1], [], []>} : vector<2x256xf32>, vector<256x512xf32>, vector<2x512xf32> -> vector<2x512xf32>
    %44 = vector.broadcast %5 : vector<1x512xf32> to vector<2x512xf32>
    %45 = arith.addf %43, %44 : vector<2x512xf32>
    %46 = vector.extract_strided_slice %45 {offsets = [0, 0], sizes = [2, 128], strides = [1, 1]} : vector<2x512xf32> to vector<2x128xf32>
    %47 = arith.negf %46 : vector<2x128xf32>
    %48 = math.exp %47 : vector<2x128xf32>
    %cst_21 = arith.constant 1.000000e+00 : f32
    %49 = vector.broadcast %cst_21 : f32 to vector<2x128xf32>
    %50 = arith.addf %49, %48 : vector<2x128xf32>
    %51 = arith.divf %49, %50 : vector<2x128xf32>
    %52 = vector.extract_strided_slice %45 {offsets = [0, 128], sizes = [2, 128], strides = [1, 1]} : vector<2x512xf32> to vector<2x128xf32>
    %53 = arith.negf %52 : vector<2x128xf32>
    %54 = math.exp %53 : vector<2x128xf32>
    %cst_22 = arith.constant 1.000000e+00 : f32
    %55 = vector.broadcast %cst_22 : f32 to vector<2x128xf32>
    %56 = arith.addf %55, %54 : vector<2x128xf32>
    %57 = arith.divf %55, %56 : vector<2x128xf32>
    %58 = vector.extract_strided_slice %45 {offsets = [0, 256], sizes = [2, 128], strides = [1, 1]} : vector<2x512xf32> to vector<2x128xf32>
    %59 = math.tanh %58 : vector<2x128xf32>
    %60 = vector.extract_strided_slice %45 {offsets = [0, 384], sizes = [2, 128], strides = [1, 1]} : vector<2x512xf32> to vector<2x128xf32>
    %61 = arith.negf %60 : vector<2x128xf32>
    %62 = math.exp %61 : vector<2x128xf32>
    %cst_23 = arith.constant 1.000000e+00 : f32
    %63 = vector.broadcast %cst_23 : f32 to vector<2x128xf32>
    %64 = arith.addf %63, %62 : vector<2x128xf32>
    %65 = arith.divf %63, %64 : vector<2x128xf32>
    %66 = arith.mulf %57, %9 : vector<2x128xf32>
    %67 = arith.mulf %51, %59 : vector<2x128xf32>
    %68 = arith.addf %66, %67 : vector<2x128xf32>
    %69 = math.tanh %68 : vector<2x128xf32>
    %70 = arith.mulf %65, %69 : vector<2x128xf32>
    %71 = vector.extract_strided_slice %0 {offsets = [0, 1, 0], sizes = [2, 1, 64], strides = [1, 1, 1]} : vector<2x8x64xf32> to vector<2x1x64xf32>
    %72 = vector.shape_cast %71 : vector<2x1x64xf32> to vector<2x64xf32>
    %cst_24 = arith.constant dense<0.000000e+00> : vector<2x512xf32>
    %73 = tpu.matmul %72, %1, %cst_24 {dimension_numbers = #tpu.dot_dimension_numbers<[1], [0], [0], [1], [0, 0, 1, 1], [], []>} : vector<2x64xf32>, vector<64x512xf32>, vector<2x512xf32> -> vector<2x512xf32>
    %cst_25 = arith.constant dense<0.000000e+00> : vector<2x512xf32>
    %74 = tpu.matmul %41, %2, %cst_25 {dimension_numbers = #tpu.dot_dimension_numbers<[1], [0], [0], [1], [0, 0, 1, 1], [], []>} : vector<2x128xf32>, vector<128x512xf32>, vector<2x512xf32> -> vector<2x512xf32>
    %75 = arith.addf %73, %74 : vector<2x512xf32>
    %76 = vector.broadcast %3 : vector<1x512xf32> to vector<2x512xf32>
    %77 = arith.addf %75, %76 : vector<2x512xf32>
    %78 = vector.extract_strided_slice %77 {offsets = [0, 0], sizes = [2, 128], strides = [1, 1]} : vector<2x512xf32> to vector<2x128xf32>
    %79 = arith.negf %78 : vector<2x128xf32>
    %80 = math.exp %79 : vector<2x128xf32>
    %cst_26 = arith.constant 1.000000e+00 : f32
    %81 = vector.broadcast %cst_26 : f32 to vector<2x128xf32>
    %82 = arith.addf %81, %80 : vector<2x128xf32>
    %83 = arith.divf %81, %82 : vector<2x128xf32>
    %84 = vector.extract_strided_slice %77 {offsets = [0, 128], sizes = [2, 128], strides = [1, 1]} : vector<2x512xf32> to vector<2x128xf32>
    %85 = arith.negf %84 : vector<2x128xf32>
    %86 = math.exp %85 : vector<2x128xf32>
    %cst_27 = arith.constant 1.000000e+00 : f32
    %87 = vector.broadcast %cst_27 : f32 to vector<2x128xf32>
    %88 = arith.addf %87, %86 : vector<2x128xf32>
    %89 = arith.divf %87, %88 : vector<2x128xf32>
    %90 = vector.extract_strided_slice %77 {offsets = [0, 256], sizes = [2, 128], strides = [1, 1]} : vector<2x512xf32> to vector<2x128xf32>
    %91 = math.tanh %90 : vector<2x128xf32>
    %92 = vector.extract_strided_slice %77 {offsets = [0, 384], sizes = [2, 128], strides = [1, 1]} : vector<2x512xf32> to vector<2x128xf32>
    %93 = arith.negf %92 : vector<2x128xf32>
    %94 = math.exp %93 : vector<2x128xf32>
    %cst_28 = arith.constant 1.000000e+00 : f32
    %95 = vector.broadcast %cst_28 : f32 to vector<2x128xf32>
    %96 = arith.addf %95, %94 : vector<2x128xf32>
    %97 = arith.divf %95, %96 : vector<2x128xf32>
    %98 = arith.mulf %89, %39 : vector<2x128xf32>
    %99 = arith.mulf %83, %91 : vector<2x128xf32>
    %100 = arith.addf %98, %99 : vector<2x128xf32>
    %101 = math.tanh %100 : vector<2x128xf32>
    %102 = arith.mulf %97, %101 : vector<2x128xf32>
    %103 = tpu.concatenate %102, %70 in 1 : vector<2x128xf32>, vector<2x128xf32> -> vector<2x256xf32>
    %cst_29 = arith.constant dense<0.000000e+00> : vector<2x512xf32>
    %104 = tpu.matmul %103, %4, %cst_29 {dimension_numbers = #tpu.dot_dimension_numbers<[1], [0], [0], [1], [0, 0, 1, 1], [], []>} : vector<2x256xf32>, vector<256x512xf32>, vector<2x512xf32> -> vector<2x512xf32>
    %105 = vector.broadcast %5 : vector<1x512xf32> to vector<2x512xf32>
    %106 = arith.addf %104, %105 : vector<2x512xf32>
    %107 = vector.extract_strided_slice %106 {offsets = [0, 0], sizes = [2, 128], strides = [1, 1]} : vector<2x512xf32> to vector<2x128xf32>
    %108 = arith.negf %107 : vector<2x128xf32>
    %109 = math.exp %108 : vector<2x128xf32>
    %cst_30 = arith.constant 1.000000e+00 : f32
    %110 = vector.broadcast %cst_30 : f32 to vector<2x128xf32>
    %111 = arith.addf %110, %109 : vector<2x128xf32>
    %112 = arith.divf %110, %111 : vector<2x128xf32>
    %113 = vector.extract_strided_slice %106 {offsets = [0, 128], sizes = [2, 128], strides = [1, 1]} : vector<2x512xf32> to vector<2x128xf32>
    %114 = arith.negf %113 : vector<2x128xf32>
    %115 = math.exp %114 : vector<2x128xf32>
    %cst_31 = arith.constant 1.000000e+00 : f32
    %116 = vector.broadcast %cst_31 : f32 to vector<2x128xf32>
    %117 = arith.addf %116, %115 : vector<2x128xf32>
    %118 = arith.divf %116, %117 : vector<2x128xf32>
    %119 = vector.extract_strided_slice %106 {offsets = [0, 256], sizes = [2, 128], strides = [1, 1]} : vector<2x512xf32> to vector<2x128xf32>
    %120 = math.tanh %119 : vector<2x128xf32>
    %121 = vector.extract_strided_slice %106 {offsets = [0, 384], sizes = [2, 128], strides = [1, 1]} : vector<2x512xf32> to vector<2x128xf32>
    %122 = arith.negf %121 : vector<2x128xf32>
    %123 = math.exp %122 : vector<2x128xf32>
    %cst_32 = arith.constant 1.000000e+00 : f32
    %124 = vector.broadcast %cst_32 : f32 to vector<2x128xf32>
    %125 = arith.addf %124, %123 : vector<2x128xf32>
    %126 = arith.divf %124, %125 : vector<2x128xf32>
    %127 = arith.mulf %118, %68 : vector<2x128xf32>
    %128 = arith.mulf %112, %120 : vector<2x128xf32>
    %129 = arith.addf %127, %128 : vector<2x128xf32>
    %130 = math.tanh %129 : vector<2x128xf32>
    %131 = arith.mulf %126, %130 : vector<2x128xf32>
    %132 = vector.extract_strided_slice %0 {offsets = [0, 2, 0], sizes = [2, 1, 64], strides = [1, 1, 1]} : vector<2x8x64xf32> to vector<2x1x64xf32>
    %133 = vector.shape_cast %132 : vector<2x1x64xf32> to vector<2x64xf32>
    %cst_33 = arith.constant dense<0.000000e+00> : vector<2x512xf32>
    %134 = tpu.matmul %133, %1, %cst_33 {dimension_numbers = #tpu.dot_dimension_numbers<[1], [0], [0], [1], [0, 0, 1, 1], [], []>} : vector<2x64xf32>, vector<64x512xf32>, vector<2x512xf32> -> vector<2x512xf32>
    %cst_34 = arith.constant dense<0.000000e+00> : vector<2x512xf32>
    %135 = tpu.matmul %102, %2, %cst_34 {dimension_numbers = #tpu.dot_dimension_numbers<[1], [0], [0], [1], [0, 0, 1, 1], [], []>} : vector<2x128xf32>, vector<128x512xf32>, vector<2x512xf32> -> vector<2x512xf32>
    %136 = arith.addf %134, %135 : vector<2x512xf32>
    %137 = vector.broadcast %3 : vector<1x512xf32> to vector<2x512xf32>
    %138 = arith.addf %136, %137 : vector<2x512xf32>
    %139 = vector.extract_strided_slice %138 {offsets = [0, 0], sizes = [2, 128], strides = [1, 1]} : vector<2x512xf32> to vector<2x128xf32>
    %140 = arith.negf %139 : vector<2x128xf32>
    %141 = math.exp %140 : vector<2x128xf32>
    %cst_35 = arith.constant 1.000000e+00 : f32
    %142 = vector.broadcast %cst_35 : f32 to vector<2x128xf32>
    %143 = arith.addf %142, %141 : vector<2x128xf32>
    %144 = arith.divf %142, %143 : vector<2x128xf32>
    %145 = vector.extract_strided_slice %138 {offsets = [0, 128], sizes = [2, 128], strides = [1, 1]} : vector<2x512xf32> to vector<2x128xf32>
    %146 = arith.negf %145 : vector<2x128xf32>
    %147 = math.exp %146 : vector<2x128xf32>
    %cst_36 = arith.constant 1.000000e+00 : f32
    %148 = vector.broadcast %cst_36 : f32 to vector<2x128xf32>
    %149 = arith.addf %148, %147 : vector<2x128xf32>
    %150 = arith.divf %148, %149 : vector<2x128xf32>
    %151 = vector.extract_strided_slice %138 {offsets = [0, 256], sizes = [2, 128], strides = [1, 1]} : vector<2x512xf32> to vector<2x128xf32>
    %152 = math.tanh %151 : vector<2x128xf32>
    %153 = vector.extract_strided_slice %138 {offsets = [0, 384], sizes = [2, 128], strides = [1, 1]} : vector<2x512xf32> to vector<2x128xf32>
    %154 = arith.negf %153 : vector<2x128xf32>
    %155 = math.exp %154 : vector<2x128xf32>
    %cst_37 = arith.constant 1.000000e+00 : f32
    %156 = vector.broadcast %cst_37 : f32 to vector<2x128xf32>
    %157 = arith.addf %156, %155 : vector<2x128xf32>
    %158 = arith.divf %156, %157 : vector<2x128xf32>
    %159 = arith.mulf %150, %100 : vector<2x128xf32>
    %160 = arith.mulf %144, %152 : vector<2x128xf32>
    %161 = arith.addf %159, %160 : vector<2x128xf32>
    %162 = math.tanh %161 : vector<2x128xf32>
    %163 = arith.mulf %158, %162 : vector<2x128xf32>
    %164 = tpu.concatenate %163, %131 in 1 : vector<2x128xf32>, vector<2x128xf32> -> vector<2x256xf32>
    %cst_38 = arith.constant dense<0.000000e+00> : vector<2x512xf32>
    %165 = tpu.matmul %164, %4, %cst_38 {dimension_numbers = #tpu.dot_dimension_numbers<[1], [0], [0], [1], [0, 0, 1, 1], [], []>} : vector<2x256xf32>, vector<256x512xf32>, vector<2x512xf32> -> vector<2x512xf32>
    %166 = vector.broadcast %5 : vector<1x512xf32> to vector<2x512xf32>
    %167 = arith.addf %165, %166 : vector<2x512xf32>
    %168 = vector.extract_strided_slice %167 {offsets = [0, 0], sizes = [2, 128], strides = [1, 1]} : vector<2x512xf32> to vector<2x128xf32>
    %169 = arith.negf %168 : vector<2x128xf32>
    %170 = math.exp %169 : vector<2x128xf32>
    %cst_39 = arith.constant 1.000000e+00 : f32
    %171 = vector.broadcast %cst_39 : f32 to vector<2x128xf32>
    %172 = arith.addf %171, %170 : vector<2x128xf32>
    %173 = arith.divf %171, %172 : vector<2x128xf32>
    %174 = vector.extract_strided_slice %167 {offsets = [0, 128], sizes = [2, 128], strides = [1, 1]} : vector<2x512xf32> to vector<2x128xf32>
    %175 = arith.negf %174 : vector<2x128xf32>
    %176 = math.exp %175 : vector<2x128xf32>
    %cst_40 = arith.constant 1.000000e+00 : f32
    %177 = vector.broadcast %cst_40 : f32 to vector<2x128xf32>
    %178 = arith.addf %177, %176 : vector<2x128xf32>
    %179 = arith.divf %177, %178 : vector<2x128xf32>
    %180 = vector.extract_strided_slice %167 {offsets = [0, 256], sizes = [2, 128], strides = [1, 1]} : vector<2x512xf32> to vector<2x128xf32>
    %181 = math.tanh %180 : vector<2x128xf32>
    %182 = vector.extract_strided_slice %167 {offsets = [0, 384], sizes = [2, 128], strides = [1, 1]} : vector<2x512xf32> to vector<2x128xf32>
    %183 = arith.negf %182 : vector<2x128xf32>
    %184 = math.exp %183 : vector<2x128xf32>
    %cst_41 = arith.constant 1.000000e+00 : f32
    %185 = vector.broadcast %cst_41 : f32 to vector<2x128xf32>
    %186 = arith.addf %185, %184 : vector<2x128xf32>
    %187 = arith.divf %185, %186 : vector<2x128xf32>
    %188 = arith.mulf %179, %129 : vector<2x128xf32>
    %189 = arith.mulf %173, %181 : vector<2x128xf32>
    %190 = arith.addf %188, %189 : vector<2x128xf32>
    %191 = math.tanh %190 : vector<2x128xf32>
    %192 = arith.mulf %187, %191 : vector<2x128xf32>
    %193 = vector.extract_strided_slice %0 {offsets = [0, 3, 0], sizes = [2, 1, 64], strides = [1, 1, 1]} : vector<2x8x64xf32> to vector<2x1x64xf32>
    %194 = vector.shape_cast %193 : vector<2x1x64xf32> to vector<2x64xf32>
    %cst_42 = arith.constant dense<0.000000e+00> : vector<2x512xf32>
    %195 = tpu.matmul %194, %1, %cst_42 {dimension_numbers = #tpu.dot_dimension_numbers<[1], [0], [0], [1], [0, 0, 1, 1], [], []>} : vector<2x64xf32>, vector<64x512xf32>, vector<2x512xf32> -> vector<2x512xf32>
    %cst_43 = arith.constant dense<0.000000e+00> : vector<2x512xf32>
    %196 = tpu.matmul %163, %2, %cst_43 {dimension_numbers = #tpu.dot_dimension_numbers<[1], [0], [0], [1], [0, 0, 1, 1], [], []>} : vector<2x128xf32>, vector<128x512xf32>, vector<2x512xf32> -> vector<2x512xf32>
    %197 = arith.addf %195, %196 : vector<2x512xf32>
    %198 = vector.broadcast %3 : vector<1x512xf32> to vector<2x512xf32>
    %199 = arith.addf %197, %198 : vector<2x512xf32>
    %200 = vector.extract_strided_slice %199 {offsets = [0, 0], sizes = [2, 128], strides = [1, 1]} : vector<2x512xf32> to vector<2x128xf32>
    %201 = arith.negf %200 : vector<2x128xf32>
    %202 = math.exp %201 : vector<2x128xf32>
    %cst_44 = arith.constant 1.000000e+00 : f32
    %203 = vector.broadcast %cst_44 : f32 to vector<2x128xf32>
    %204 = arith.addf %203, %202 : vector<2x128xf32>
    %205 = arith.divf %203, %204 : vector<2x128xf32>
    %206 = vector.extract_strided_slice %199 {offsets = [0, 128], sizes = [2, 128], strides = [1, 1]} : vector<2x512xf32> to vector<2x128xf32>
    %207 = arith.negf %206 : vector<2x128xf32>
    %208 = math.exp %207 : vector<2x128xf32>
    %cst_45 = arith.constant 1.000000e+00 : f32
    %209 = vector.broadcast %cst_45 : f32 to vector<2x128xf32>
    %210 = arith.addf %209, %208 : vector<2x128xf32>
    %211 = arith.divf %209, %210 : vector<2x128xf32>
    %212 = vector.extract_strided_slice %199 {offsets = [0, 256], sizes = [2, 128], strides = [1, 1]} : vector<2x512xf32> to vector<2x128xf32>
    %213 = math.tanh %212 : vector<2x128xf32>
    %214 = vector.extract_strided_slice %199 {offsets = [0, 384], sizes = [2, 128], strides = [1, 1]} : vector<2x512xf32> to vector<2x128xf32>
    %215 = arith.negf %214 : vector<2x128xf32>
    %216 = math.exp %215 : vector<2x128xf32>
    %cst_46 = arith.constant 1.000000e+00 : f32
    %217 = vector.broadcast %cst_46 : f32 to vector<2x128xf32>
    %218 = arith.addf %217, %216 : vector<2x128xf32>
    %219 = arith.divf %217, %218 : vector<2x128xf32>
    %220 = arith.mulf %211, %161 : vector<2x128xf32>
    %221 = arith.mulf %205, %213 : vector<2x128xf32>
    %222 = arith.addf %220, %221 : vector<2x128xf32>
    %223 = math.tanh %222 : vector<2x128xf32>
    %224 = arith.mulf %219, %223 : vector<2x128xf32>
    %225 = tpu.concatenate %224, %192 in 1 : vector<2x128xf32>, vector<2x128xf32> -> vector<2x256xf32>
    %cst_47 = arith.constant dense<0.000000e+00> : vector<2x512xf32>
    %226 = tpu.matmul %225, %4, %cst_47 {dimension_numbers = #tpu.dot_dimension_numbers<[1], [0], [0], [1], [0, 0, 1, 1], [], []>} : vector<2x256xf32>, vector<256x512xf32>, vector<2x512xf32> -> vector<2x512xf32>
    %227 = vector.broadcast %5 : vector<1x512xf32> to vector<2x512xf32>
    %228 = arith.addf %226, %227 : vector<2x512xf32>
    %229 = vector.extract_strided_slice %228 {offsets = [0, 0], sizes = [2, 128], strides = [1, 1]} : vector<2x512xf32> to vector<2x128xf32>
    %230 = arith.negf %229 : vector<2x128xf32>
    %231 = math.exp %230 : vector<2x128xf32>
    %cst_48 = arith.constant 1.000000e+00 : f32
    %232 = vector.broadcast %cst_48 : f32 to vector<2x128xf32>
    %233 = arith.addf %232, %231 : vector<2x128xf32>
    %234 = arith.divf %232, %233 : vector<2x128xf32>
    %235 = vector.extract_strided_slice %228 {offsets = [0, 128], sizes = [2, 128], strides = [1, 1]} : vector<2x512xf32> to vector<2x128xf32>
    %236 = arith.negf %235 : vector<2x128xf32>
    %237 = math.exp %236 : vector<2x128xf32>
    %cst_49 = arith.constant 1.000000e+00 : f32
    %238 = vector.broadcast %cst_49 : f32 to vector<2x128xf32>
    %239 = arith.addf %238, %237 : vector<2x128xf32>
    %240 = arith.divf %238, %239 : vector<2x128xf32>
    %241 = vector.extract_strided_slice %228 {offsets = [0, 256], sizes = [2, 128], strides = [1, 1]} : vector<2x512xf32> to vector<2x128xf32>
    %242 = math.tanh %241 : vector<2x128xf32>
    %243 = vector.extract_strided_slice %228 {offsets = [0, 384], sizes = [2, 128], strides = [1, 1]} : vector<2x512xf32> to vector<2x128xf32>
    %244 = arith.negf %243 : vector<2x128xf32>
    %245 = math.exp %244 : vector<2x128xf32>
    %cst_50 = arith.constant 1.000000e+00 : f32
    %246 = vector.broadcast %cst_50 : f32 to vector<2x128xf32>
    %247 = arith.addf %246, %245 : vector<2x128xf32>
    %248 = arith.divf %246, %247 : vector<2x128xf32>
    %249 = arith.mulf %240, %190 : vector<2x128xf32>
    %250 = arith.mulf %234, %242 : vector<2x128xf32>
    %251 = arith.addf %249, %250 : vector<2x128xf32>
    %252 = math.tanh %251 : vector<2x128xf32>
    %253 = arith.mulf %248, %252 : vector<2x128xf32>
    %254 = vector.extract_strided_slice %0 {offsets = [0, 4, 0], sizes = [2, 1, 64], strides = [1, 1, 1]} : vector<2x8x64xf32> to vector<2x1x64xf32>
    %255 = vector.shape_cast %254 : vector<2x1x64xf32> to vector<2x64xf32>
    %cst_51 = arith.constant dense<0.000000e+00> : vector<2x512xf32>
    %256 = tpu.matmul %255, %1, %cst_51 {dimension_numbers = #tpu.dot_dimension_numbers<[1], [0], [0], [1], [0, 0, 1, 1], [], []>} : vector<2x64xf32>, vector<64x512xf32>, vector<2x512xf32> -> vector<2x512xf32>
    %cst_52 = arith.constant dense<0.000000e+00> : vector<2x512xf32>
    %257 = tpu.matmul %224, %2, %cst_52 {dimension_numbers = #tpu.dot_dimension_numbers<[1], [0], [0], [1], [0, 0, 1, 1], [], []>} : vector<2x128xf32>, vector<128x512xf32>, vector<2x512xf32> -> vector<2x512xf32>
    %258 = arith.addf %256, %257 : vector<2x512xf32>
    %259 = vector.broadcast %3 : vector<1x512xf32> to vector<2x512xf32>
    %260 = arith.addf %258, %259 : vector<2x512xf32>
    %261 = vector.extract_strided_slice %260 {offsets = [0, 0], sizes = [2, 128], strides = [1, 1]} : vector<2x512xf32> to vector<2x128xf32>
    %262 = arith.negf %261 : vector<2x128xf32>
    %263 = math.exp %262 : vector<2x128xf32>
    %cst_53 = arith.constant 1.000000e+00 : f32
    %264 = vector.broadcast %cst_53 : f32 to vector<2x128xf32>
    %265 = arith.addf %264, %263 : vector<2x128xf32>
    %266 = arith.divf %264, %265 : vector<2x128xf32>
    %267 = vector.extract_strided_slice %260 {offsets = [0, 128], sizes = [2, 128], strides = [1, 1]} : vector<2x512xf32> to vector<2x128xf32>
    %268 = arith.negf %267 : vector<2x128xf32>
    %269 = math.exp %268 : vector<2x128xf32>
    %cst_54 = arith.constant 1.000000e+00 : f32
    %270 = vector.broadcast %cst_54 : f32 to vector<2x128xf32>
    %271 = arith.addf %270, %269 : vector<2x128xf32>
    %272 = arith.divf %270, %271 : vector<2x128xf32>
    %273 = vector.extract_strided_slice %260 {offsets = [0, 256], sizes = [2, 128], strides = [1, 1]} : vector<2x512xf32> to vector<2x128xf32>
    %274 = math.tanh %273 : vector<2x128xf32>
    %275 = vector.extract_strided_slice %260 {offsets = [0, 384], sizes = [2, 128], strides = [1, 1]} : vector<2x512xf32> to vector<2x128xf32>
    %276 = arith.negf %275 : vector<2x128xf32>
    %277 = math.exp %276 : vector<2x128xf32>
    %cst_55 = arith.constant 1.000000e+00 : f32
    %278 = vector.broadcast %cst_55 : f32 to vector<2x128xf32>
    %279 = arith.addf %278, %277 : vector<2x128xf32>
    %280 = arith.divf %278, %279 : vector<2x128xf32>
    %281 = arith.mulf %272, %222 : vector<2x128xf32>
    %282 = arith.mulf %266, %274 : vector<2x128xf32>
    %283 = arith.addf %281, %282 : vector<2x128xf32>
    %284 = math.tanh %283 : vector<2x128xf32>
    %285 = arith.mulf %280, %284 : vector<2x128xf32>
    %286 = tpu.concatenate %285, %253 in 1 : vector<2x128xf32>, vector<2x128xf32> -> vector<2x256xf32>
    %cst_56 = arith.constant dense<0.000000e+00> : vector<2x512xf32>
    %287 = tpu.matmul %286, %4, %cst_56 {dimension_numbers = #tpu.dot_dimension_numbers<[1], [0], [0], [1], [0, 0, 1, 1], [], []>} : vector<2x256xf32>, vector<256x512xf32>, vector<2x512xf32> -> vector<2x512xf32>
    %288 = vector.broadcast %5 : vector<1x512xf32> to vector<2x512xf32>
    %289 = arith.addf %287, %288 : vector<2x512xf32>
    %290 = vector.extract_strided_slice %289 {offsets = [0, 0], sizes = [2, 128], strides = [1, 1]} : vector<2x512xf32> to vector<2x128xf32>
    %291 = arith.negf %290 : vector<2x128xf32>
    %292 = math.exp %291 : vector<2x128xf32>
    %cst_57 = arith.constant 1.000000e+00 : f32
    %293 = vector.broadcast %cst_57 : f32 to vector<2x128xf32>
    %294 = arith.addf %293, %292 : vector<2x128xf32>
    %295 = arith.divf %293, %294 : vector<2x128xf32>
    %296 = vector.extract_strided_slice %289 {offsets = [0, 128], sizes = [2, 128], strides = [1, 1]} : vector<2x512xf32> to vector<2x128xf32>
    %297 = arith.negf %296 : vector<2x128xf32>
    %298 = math.exp %297 : vector<2x128xf32>
    %cst_58 = arith.constant 1.000000e+00 : f32
    %299 = vector.broadcast %cst_58 : f32 to vector<2x128xf32>
    %300 = arith.addf %299, %298 : vector<2x128xf32>
    %301 = arith.divf %299, %300 : vector<2x128xf32>
    %302 = vector.extract_strided_slice %289 {offsets = [0, 256], sizes = [2, 128], strides = [1, 1]} : vector<2x512xf32> to vector<2x128xf32>
    %303 = math.tanh %302 : vector<2x128xf32>
    %304 = vector.extract_strided_slice %289 {offsets = [0, 384], sizes = [2, 128], strides = [1, 1]} : vector<2x512xf32> to vector<2x128xf32>
    %305 = arith.negf %304 : vector<2x128xf32>
    %306 = math.exp %305 : vector<2x128xf32>
    %cst_59 = arith.constant 1.000000e+00 : f32
    %307 = vector.broadcast %cst_59 : f32 to vector<2x128xf32>
    %308 = arith.addf %307, %306 : vector<2x128xf32>
    %309 = arith.divf %307, %308 : vector<2x128xf32>
    %310 = arith.mulf %301, %251 : vector<2x128xf32>
    %311 = arith.mulf %295, %303 : vector<2x128xf32>
    %312 = arith.addf %310, %311 : vector<2x128xf32>
    %313 = math.tanh %312 : vector<2x128xf32>
    %314 = arith.mulf %309, %313 : vector<2x128xf32>
    %315 = vector.extract_strided_slice %0 {offsets = [0, 5, 0], sizes = [2, 1, 64], strides = [1, 1, 1]} : vector<2x8x64xf32> to vector<2x1x64xf32>
    %316 = vector.shape_cast %315 : vector<2x1x64xf32> to vector<2x64xf32>
    %cst_60 = arith.constant dense<0.000000e+00> : vector<2x512xf32>
    %317 = tpu.matmul %316, %1, %cst_60 {dimension_numbers = #tpu.dot_dimension_numbers<[1], [0], [0], [1], [0, 0, 1, 1], [], []>} : vector<2x64xf32>, vector<64x512xf32>, vector<2x512xf32> -> vector<2x512xf32>
    %cst_61 = arith.constant dense<0.000000e+00> : vector<2x512xf32>
    %318 = tpu.matmul %285, %2, %cst_61 {dimension_numbers = #tpu.dot_dimension_numbers<[1], [0], [0], [1], [0, 0, 1, 1], [], []>} : vector<2x128xf32>, vector<128x512xf32>, vector<2x512xf32> -> vector<2x512xf32>
    %319 = arith.addf %317, %318 : vector<2x512xf32>
    %320 = vector.broadcast %3 : vector<1x512xf32> to vector<2x512xf32>
    %321 = arith.addf %319, %320 : vector<2x512xf32>
    %322 = vector.extract_strided_slice %321 {offsets = [0, 0], sizes = [2, 128], strides = [1, 1]} : vector<2x512xf32> to vector<2x128xf32>
    %323 = arith.negf %322 : vector<2x128xf32>
    %324 = math.exp %323 : vector<2x128xf32>
    %cst_62 = arith.constant 1.000000e+00 : f32
    %325 = vector.broadcast %cst_62 : f32 to vector<2x128xf32>
    %326 = arith.addf %325, %324 : vector<2x128xf32>
    %327 = arith.divf %325, %326 : vector<2x128xf32>
    %328 = vector.extract_strided_slice %321 {offsets = [0, 128], sizes = [2, 128], strides = [1, 1]} : vector<2x512xf32> to vector<2x128xf32>
    %329 = arith.negf %328 : vector<2x128xf32>
    %330 = math.exp %329 : vector<2x128xf32>
    %cst_63 = arith.constant 1.000000e+00 : f32
    %331 = vector.broadcast %cst_63 : f32 to vector<2x128xf32>
    %332 = arith.addf %331, %330 : vector<2x128xf32>
    %333 = arith.divf %331, %332 : vector<2x128xf32>
    %334 = vector.extract_strided_slice %321 {offsets = [0, 256], sizes = [2, 128], strides = [1, 1]} : vector<2x512xf32> to vector<2x128xf32>
    %335 = math.tanh %334 : vector<2x128xf32>
    %336 = vector.extract_strided_slice %321 {offsets = [0, 384], sizes = [2, 128], strides = [1, 1]} : vector<2x512xf32> to vector<2x128xf32>
    %337 = arith.negf %336 : vector<2x128xf32>
    %338 = math.exp %337 : vector<2x128xf32>
    %cst_64 = arith.constant 1.000000e+00 : f32
    %339 = vector.broadcast %cst_64 : f32 to vector<2x128xf32>
    %340 = arith.addf %339, %338 : vector<2x128xf32>
    %341 = arith.divf %339, %340 : vector<2x128xf32>
    %342 = arith.mulf %333, %283 : vector<2x128xf32>
    %343 = arith.mulf %327, %335 : vector<2x128xf32>
    %344 = arith.addf %342, %343 : vector<2x128xf32>
    %345 = math.tanh %344 : vector<2x128xf32>
    %346 = arith.mulf %341, %345 : vector<2x128xf32>
    %347 = tpu.concatenate %346, %314 in 1 : vector<2x128xf32>, vector<2x128xf32> -> vector<2x256xf32>
    %cst_65 = arith.constant dense<0.000000e+00> : vector<2x512xf32>
    %348 = tpu.matmul %347, %4, %cst_65 {dimension_numbers = #tpu.dot_dimension_numbers<[1], [0], [0], [1], [0, 0, 1, 1], [], []>} : vector<2x256xf32>, vector<256x512xf32>, vector<2x512xf32> -> vector<2x512xf32>
    %349 = vector.broadcast %5 : vector<1x512xf32> to vector<2x512xf32>
    %350 = arith.addf %348, %349 : vector<2x512xf32>
    %351 = vector.extract_strided_slice %350 {offsets = [0, 0], sizes = [2, 128], strides = [1, 1]} : vector<2x512xf32> to vector<2x128xf32>
    %352 = arith.negf %351 : vector<2x128xf32>
    %353 = math.exp %352 : vector<2x128xf32>
    %cst_66 = arith.constant 1.000000e+00 : f32
    %354 = vector.broadcast %cst_66 : f32 to vector<2x128xf32>
    %355 = arith.addf %354, %353 : vector<2x128xf32>
    %356 = arith.divf %354, %355 : vector<2x128xf32>
    %357 = vector.extract_strided_slice %350 {offsets = [0, 128], sizes = [2, 128], strides = [1, 1]} : vector<2x512xf32> to vector<2x128xf32>
    %358 = arith.negf %357 : vector<2x128xf32>
    %359 = math.exp %358 : vector<2x128xf32>
    %cst_67 = arith.constant 1.000000e+00 : f32
    %360 = vector.broadcast %cst_67 : f32 to vector<2x128xf32>
    %361 = arith.addf %360, %359 : vector<2x128xf32>
    %362 = arith.divf %360, %361 : vector<2x128xf32>
    %363 = vector.extract_strided_slice %350 {offsets = [0, 256], sizes = [2, 128], strides = [1, 1]} : vector<2x512xf32> to vector<2x128xf32>
    %364 = math.tanh %363 : vector<2x128xf32>
    %365 = vector.extract_strided_slice %350 {offsets = [0, 384], sizes = [2, 128], strides = [1, 1]} : vector<2x512xf32> to vector<2x128xf32>
    %366 = arith.negf %365 : vector<2x128xf32>
    %367 = math.exp %366 : vector<2x128xf32>
    %cst_68 = arith.constant 1.000000e+00 : f32
    %368 = vector.broadcast %cst_68 : f32 to vector<2x128xf32>
    %369 = arith.addf %368, %367 : vector<2x128xf32>
    %370 = arith.divf %368, %369 : vector<2x128xf32>
    %371 = arith.mulf %362, %312 : vector<2x128xf32>
    %372 = arith.mulf %356, %364 : vector<2x128xf32>
    %373 = arith.addf %371, %372 : vector<2x128xf32>
    %374 = math.tanh %373 : vector<2x128xf32>
    %375 = arith.mulf %370, %374 : vector<2x128xf32>
    %376 = vector.extract_strided_slice %0 {offsets = [0, 6, 0], sizes = [2, 1, 64], strides = [1, 1, 1]} : vector<2x8x64xf32> to vector<2x1x64xf32>
    %377 = vector.shape_cast %376 : vector<2x1x64xf32> to vector<2x64xf32>
    %cst_69 = arith.constant dense<0.000000e+00> : vector<2x512xf32>
    %378 = tpu.matmul %377, %1, %cst_69 {dimension_numbers = #tpu.dot_dimension_numbers<[1], [0], [0], [1], [0, 0, 1, 1], [], []>} : vector<2x64xf32>, vector<64x512xf32>, vector<2x512xf32> -> vector<2x512xf32>
    %cst_70 = arith.constant dense<0.000000e+00> : vector<2x512xf32>
    %379 = tpu.matmul %346, %2, %cst_70 {dimension_numbers = #tpu.dot_dimension_numbers<[1], [0], [0], [1], [0, 0, 1, 1], [], []>} : vector<2x128xf32>, vector<128x512xf32>, vector<2x512xf32> -> vector<2x512xf32>
    %380 = arith.addf %378, %379 : vector<2x512xf32>
    %381 = vector.broadcast %3 : vector<1x512xf32> to vector<2x512xf32>
    %382 = arith.addf %380, %381 : vector<2x512xf32>
    %383 = vector.extract_strided_slice %382 {offsets = [0, 0], sizes = [2, 128], strides = [1, 1]} : vector<2x512xf32> to vector<2x128xf32>
    %384 = arith.negf %383 : vector<2x128xf32>
    %385 = math.exp %384 : vector<2x128xf32>
    %cst_71 = arith.constant 1.000000e+00 : f32
    %386 = vector.broadcast %cst_71 : f32 to vector<2x128xf32>
    %387 = arith.addf %386, %385 : vector<2x128xf32>
    %388 = arith.divf %386, %387 : vector<2x128xf32>
    %389 = vector.extract_strided_slice %382 {offsets = [0, 128], sizes = [2, 128], strides = [1, 1]} : vector<2x512xf32> to vector<2x128xf32>
    %390 = arith.negf %389 : vector<2x128xf32>
    %391 = math.exp %390 : vector<2x128xf32>
    %cst_72 = arith.constant 1.000000e+00 : f32
    %392 = vector.broadcast %cst_72 : f32 to vector<2x128xf32>
    %393 = arith.addf %392, %391 : vector<2x128xf32>
    %394 = arith.divf %392, %393 : vector<2x128xf32>
    %395 = vector.extract_strided_slice %382 {offsets = [0, 256], sizes = [2, 128], strides = [1, 1]} : vector<2x512xf32> to vector<2x128xf32>
    %396 = math.tanh %395 : vector<2x128xf32>
    %397 = vector.extract_strided_slice %382 {offsets = [0, 384], sizes = [2, 128], strides = [1, 1]} : vector<2x512xf32> to vector<2x128xf32>
    %398 = arith.negf %397 : vector<2x128xf32>
    %399 = math.exp %398 : vector<2x128xf32>
    %cst_73 = arith.constant 1.000000e+00 : f32
    %400 = vector.broadcast %cst_73 : f32 to vector<2x128xf32>
    %401 = arith.addf %400, %399 : vector<2x128xf32>
    %402 = arith.divf %400, %401 : vector<2x128xf32>
    %403 = arith.mulf %394, %344 : vector<2x128xf32>
    %404 = arith.mulf %388, %396 : vector<2x128xf32>
    %405 = arith.addf %403, %404 : vector<2x128xf32>
    %406 = math.tanh %405 : vector<2x128xf32>
    %407 = arith.mulf %402, %406 : vector<2x128xf32>
    %408 = tpu.concatenate %407, %375 in 1 : vector<2x128xf32>, vector<2x128xf32> -> vector<2x256xf32>
    %cst_74 = arith.constant dense<0.000000e+00> : vector<2x512xf32>
    %409 = tpu.matmul %408, %4, %cst_74 {dimension_numbers = #tpu.dot_dimension_numbers<[1], [0], [0], [1], [0, 0, 1, 1], [], []>} : vector<2x256xf32>, vector<256x512xf32>, vector<2x512xf32> -> vector<2x512xf32>
    %410 = vector.broadcast %5 : vector<1x512xf32> to vector<2x512xf32>
    %411 = arith.addf %409, %410 : vector<2x512xf32>
    %412 = vector.extract_strided_slice %411 {offsets = [0, 0], sizes = [2, 128], strides = [1, 1]} : vector<2x512xf32> to vector<2x128xf32>
    %413 = arith.negf %412 : vector<2x128xf32>
    %414 = math.exp %413 : vector<2x128xf32>
    %cst_75 = arith.constant 1.000000e+00 : f32
    %415 = vector.broadcast %cst_75 : f32 to vector<2x128xf32>
    %416 = arith.addf %415, %414 : vector<2x128xf32>
    %417 = arith.divf %415, %416 : vector<2x128xf32>
    %418 = vector.extract_strided_slice %411 {offsets = [0, 128], sizes = [2, 128], strides = [1, 1]} : vector<2x512xf32> to vector<2x128xf32>
    %419 = arith.negf %418 : vector<2x128xf32>
    %420 = math.exp %419 : vector<2x128xf32>
    %cst_76 = arith.constant 1.000000e+00 : f32
    %421 = vector.broadcast %cst_76 : f32 to vector<2x128xf32>
    %422 = arith.addf %421, %420 : vector<2x128xf32>
    %423 = arith.divf %421, %422 : vector<2x128xf32>
    %424 = vector.extract_strided_slice %411 {offsets = [0, 256], sizes = [2, 128], strides = [1, 1]} : vector<2x512xf32> to vector<2x128xf32>
    %425 = math.tanh %424 : vector<2x128xf32>
    %426 = vector.extract_strided_slice %411 {offsets = [0, 384], sizes = [2, 128], strides = [1, 1]} : vector<2x512xf32> to vector<2x128xf32>
    %427 = arith.negf %426 : vector<2x128xf32>
    %428 = math.exp %427 : vector<2x128xf32>
    %cst_77 = arith.constant 1.000000e+00 : f32
    %429 = vector.broadcast %cst_77 : f32 to vector<2x128xf32>
    %430 = arith.addf %429, %428 : vector<2x128xf32>
    %431 = arith.divf %429, %430 : vector<2x128xf32>
    %432 = arith.mulf %423, %373 : vector<2x128xf32>
    %433 = arith.mulf %417, %425 : vector<2x128xf32>
    %434 = arith.addf %432, %433 : vector<2x128xf32>
    %435 = math.tanh %434 : vector<2x128xf32>
    %436 = arith.mulf %431, %435 : vector<2x128xf32>
    %437 = vector.extract_strided_slice %0 {offsets = [0, 7, 0], sizes = [2, 1, 64], strides = [1, 1, 1]} : vector<2x8x64xf32> to vector<2x1x64xf32>
    %438 = vector.shape_cast %437 : vector<2x1x64xf32> to vector<2x64xf32>
    %cst_78 = arith.constant dense<0.000000e+00> : vector<2x512xf32>
    %439 = tpu.matmul %438, %1, %cst_78 {dimension_numbers = #tpu.dot_dimension_numbers<[1], [0], [0], [1], [0, 0, 1, 1], [], []>} : vector<2x64xf32>, vector<64x512xf32>, vector<2x512xf32> -> vector<2x512xf32>
    %cst_79 = arith.constant dense<0.000000e+00> : vector<2x512xf32>
    %440 = tpu.matmul %407, %2, %cst_79 {dimension_numbers = #tpu.dot_dimension_numbers<[1], [0], [0], [1], [0, 0, 1, 1], [], []>} : vector<2x128xf32>, vector<128x512xf32>, vector<2x512xf32> -> vector<2x512xf32>
    %441 = arith.addf %439, %440 : vector<2x512xf32>
    %442 = vector.broadcast %3 : vector<1x512xf32> to vector<2x512xf32>
    %443 = arith.addf %441, %442 : vector<2x512xf32>
    %444 = vector.extract_strided_slice %443 {offsets = [0, 0], sizes = [2, 128], strides = [1, 1]} : vector<2x512xf32> to vector<2x128xf32>
    %445 = arith.negf %444 : vector<2x128xf32>
    %446 = math.exp %445 : vector<2x128xf32>
    %cst_80 = arith.constant 1.000000e+00 : f32
    %447 = vector.broadcast %cst_80 : f32 to vector<2x128xf32>
    %448 = arith.addf %447, %446 : vector<2x128xf32>
    %449 = arith.divf %447, %448 : vector<2x128xf32>
    %450 = vector.extract_strided_slice %443 {offsets = [0, 128], sizes = [2, 128], strides = [1, 1]} : vector<2x512xf32> to vector<2x128xf32>
    %451 = arith.negf %450 : vector<2x128xf32>
    %452 = math.exp %451 : vector<2x128xf32>
    %cst_81 = arith.constant 1.000000e+00 : f32
    %453 = vector.broadcast %cst_81 : f32 to vector<2x128xf32>
    %454 = arith.addf %453, %452 : vector<2x128xf32>
    %455 = arith.divf %453, %454 : vector<2x128xf32>
    %456 = vector.extract_strided_slice %443 {offsets = [0, 256], sizes = [2, 128], strides = [1, 1]} : vector<2x512xf32> to vector<2x128xf32>
    %457 = math.tanh %456 : vector<2x128xf32>
    %458 = vector.extract_strided_slice %443 {offsets = [0, 384], sizes = [2, 128], strides = [1, 1]} : vector<2x512xf32> to vector<2x128xf32>
    %459 = arith.negf %458 : vector<2x128xf32>
    %460 = math.exp %459 : vector<2x128xf32>
    %cst_82 = arith.constant 1.000000e+00 : f32
    %461 = vector.broadcast %cst_82 : f32 to vector<2x128xf32>
    %462 = arith.addf %461, %460 : vector<2x128xf32>
    %463 = arith.divf %461, %462 : vector<2x128xf32>
    %464 = arith.mulf %455, %405 : vector<2x128xf32>
    %465 = arith.mulf %449, %457 : vector<2x128xf32>
    %466 = arith.addf %464, %465 : vector<2x128xf32>
    %467 = math.tanh %466 : vector<2x128xf32>
    %468 = arith.mulf %463, %467 : vector<2x128xf32>
    %469 = tpu.concatenate %468, %436 in 1 : vector<2x128xf32>, vector<2x128xf32> -> vector<2x256xf32>
    %cst_83 = arith.constant dense<0.000000e+00> : vector<2x512xf32>
    %470 = tpu.matmul %469, %4, %cst_83 {dimension_numbers = #tpu.dot_dimension_numbers<[1], [0], [0], [1], [0, 0, 1, 1], [], []>} : vector<2x256xf32>, vector<256x512xf32>, vector<2x512xf32> -> vector<2x512xf32>
    %471 = vector.broadcast %5 : vector<1x512xf32> to vector<2x512xf32>
    %472 = arith.addf %470, %471 : vector<2x512xf32>
    %473 = vector.extract_strided_slice %472 {offsets = [0, 0], sizes = [2, 128], strides = [1, 1]} : vector<2x512xf32> to vector<2x128xf32>
    %474 = arith.negf %473 : vector<2x128xf32>
    %475 = math.exp %474 : vector<2x128xf32>
    %cst_84 = arith.constant 1.000000e+00 : f32
    %476 = vector.broadcast %cst_84 : f32 to vector<2x128xf32>
    %477 = arith.addf %476, %475 : vector<2x128xf32>
    %478 = arith.divf %476, %477 : vector<2x128xf32>
    %479 = vector.extract_strided_slice %472 {offsets = [0, 128], sizes = [2, 128], strides = [1, 1]} : vector<2x512xf32> to vector<2x128xf32>
    %480 = arith.negf %479 : vector<2x128xf32>
    %481 = math.exp %480 : vector<2x128xf32>
    %cst_85 = arith.constant 1.000000e+00 : f32
    %482 = vector.broadcast %cst_85 : f32 to vector<2x128xf32>
    %483 = arith.addf %482, %481 : vector<2x128xf32>
    %484 = arith.divf %482, %483 : vector<2x128xf32>
    %485 = vector.extract_strided_slice %472 {offsets = [0, 256], sizes = [2, 128], strides = [1, 1]} : vector<2x512xf32> to vector<2x128xf32>
    %486 = math.tanh %485 : vector<2x128xf32>
    %487 = vector.extract_strided_slice %472 {offsets = [0, 384], sizes = [2, 128], strides = [1, 1]} : vector<2x512xf32> to vector<2x128xf32>
    %488 = arith.negf %487 : vector<2x128xf32>
    %489 = math.exp %488 : vector<2x128xf32>
    %cst_86 = arith.constant 1.000000e+00 : f32
    %490 = vector.broadcast %cst_86 : f32 to vector<2x128xf32>
    %491 = arith.addf %490, %489 : vector<2x128xf32>
    %492 = arith.divf %490, %491 : vector<2x128xf32>
    %493 = arith.mulf %484, %434 : vector<2x128xf32>
    %494 = arith.mulf %478, %486 : vector<2x128xf32>
    %495 = arith.addf %493, %494 : vector<2x128xf32>
    %496 = math.tanh %495 : vector<2x128xf32>
    %497 = arith.mulf %492, %496 : vector<2x128xf32>
    %c0_87 = arith.constant 0 : index
    %c0_88 = arith.constant 0 : index
    %498 = vector.load %arg6[%c0_87, %c0_88] : memref<128x128xf32, #tpu.memory_space<vmem>>, vector<128x128xf32>
    %cst_89 = arith.constant dense<0.000000e+00> : vector<2x128xf32>
    %499 = tpu.matmul %497, %498, %cst_89 {dimension_numbers = #tpu.dot_dimension_numbers<[1], [0], [0], [1], [0, 0, 1, 1], [], []>} : vector<2x128xf32>, vector<128x128xf32>, vector<2x128xf32> -> vector<2x128xf32>
    %c0_90 = arith.constant 0 : index
    %c0_91 = arith.constant 0 : index
    %500 = vector.load %arg7[%c0_90, %c0_91] : memref<1x128xf32, #tpu.memory_space<vmem>>, vector<1x128xf32>
    %501 = vector.broadcast %500 : vector<1x128xf32> to vector<2x128xf32>
    %502 = arith.addf %499, %501 : vector<2x128xf32>
    %c0_92 = arith.constant 0 : index
    %c0_93 = arith.constant 0 : index
    %503 = vector.load %arg8[%c0_92, %c0_93] : memref<2x128xf32, #tpu.memory_space<vmem>>, vector<2x128xf32>
    tpu.vector_store %arg8[%c0_92, %c0_93], %502 {strides = array<i32>} : memref<2x128xf32, #tpu.memory_space<vmem>>, vector<2x128xf32>,
    return
  }
}

</mosaic_0001>

<bundles_post_ra>
// kernel: pose_estimation_lstm.1
= control target key start
LH: loop header
LB: loop body
LE: loop exit
PB: predicated region body
PF: predicated region fallthrough
CT: control target
= control target key end

     0   :  { %13 = vsyncpa [#allocation3], 0  ;;  %s9434_s0 = inlined_call_operand.hbm [shape: f32[2,8,64], index: 0, kind: input, shape index: {}]   ;;  %s9435_s1 = inlined_call_operand.hbm [shape: f32[64,512], index: 1, kind: input, shape index: {}]   ;;  %s9436_s2 = inlined_call_operand.hbm [shape: f32[128,512], index: 2, kind: input, shape index: {}]   ;;  %s9437_s3 = inlined_call_operand.hbm [shape: f32[1,512], index: 3, kind: input, shape index: {}]   ;;  %s9438_s4 = inlined_call_operand.hbm [shape: f32[256,512], index: 4, kind: input, shape index: {}]   ;;  %s9439_s5 = inlined_call_operand.hbm [shape: f32[1,512], index: 5, kind: input, shape index: {}]   ;;  %s9440_s6 = inlined_call_operand.hbm [shape: f32[128,128], index: 6, kind: input, shape index: {}]   ;;  %s9441_s7 = inlined_call_operand.vmem [shape: f32[1,128], index: 7, kind: input, shape index: {}]   ;;  %s9442_s8 = inlined_call_operand.hbm [shape: f32[2,128], index: 8, kind: output, shape index: {}]  }
   0x1   :  { %14 = vsyncpa [#allocation6], 0 }
   0x2   :  { %15 = vsyncpa [#allocation9], 0 }
   0x3   :  { %16 = vsyncpa [#allocation12], 0  ;;  %s35_s29 = sshll.u32 %s9435_s1, 4  ;;  %s36_s29 = int_to_ptr.hbm [resolvable:$true] %s35_s29 }
   0x4   :  { %17 = vsyncpa [#allocation4], 0  ;;  %s5357_s30 = smov [#allocation5]   ;;  %s62_s12 = sshll.u32 %s9437_s3, 4  ;;  %s63_s12 = int_to_ptr.hbm [resolvable:$true] %s62_s12 }
   0x5   :  { %s37_s9 = sshll.u32 %s5357_s30, 4  ;;  %s5358_s13 = smov 512   ;;  %s38_s9 = int_to_ptr.vmem [resolvable:$true] %s37_s9 }
   0x6   :  { %s5359_s14 = smov 32   ;;  %s5360_s15 = smov [#allocation8]  }
   0x7   :  { %43 = dma.hbm_to_vmem [thread:$0]  %s36_s29, 4096, %s38_s9, [#allocation6], %s5358_s13, %s5358_s13, %s5359_s14  }
   0x8   :  { %s64_s16 = sshll.u32 %s5360_s15, 4  ;;  %s86_s18 = sshll.u32 %s9439_s5, 4  ;;  %s65_s16 = int_to_ptr.vmem [resolvable:$true] %s64_s16  ;;  %s87_s18 = int_to_ptr.hbm [resolvable:$true] %s86_s18 }
   0x9   :  { %67 = dma.hbm_to_vmem [thread:$0]  %s63_s12, 64, %s65_s16, [#allocation9]  }
   0xa   :  { %s22_s3 = sshll.u32 %s9434_s0, 4  ;;  %s5361_s21 = smov [#allocation11]   ;;  %s23_s3 = int_to_ptr.hbm [resolvable:$true] %s22_s3 }
   0xb   :  { %s88_s22 = sshll.u32 %s5361_s21, 4  ;;  %s5362_s23 = smov [#allocation2]   ;;  %s89_s22 = int_to_ptr.vmem [resolvable:$true] %s88_s22 }
   0xc   :  { %91 = dma.hbm_to_vmem [thread:$0]  %s87_s18, 64, %s89_s22, [#allocation12]  }
   0xd   :  { %s24_s24 = sshll.u32 %s5362_s23, 4  ;;  %s5363_s25 = smov 128   ;;  %s25_s24 = int_to_ptr.vmem [resolvable:$true] %s24_s24 }
   0xe   :  { %s5364_s26 = smov 8   ;;  %s48_s28 = sshll.u32 %s9436_s2, 4  ;;  %s49_s28 = int_to_ptr.hbm [resolvable:$true] %s48_s28 }
   0xf   :  { %30 = dma.hbm_to_vmem [thread:$0]  %s23_s3, 256, %s25_s24, [#allocation3], %s5363_s25, %s5363_s25, %s5364_s26  }
  0x10   :  { %s5365_s29 = smov [#allocation7]   ;;  %s72_s10 = sshll.u32 %s9438_s4, 4  ;;  %s73_s10 = int_to_ptr.hbm [resolvable:$true] %s72_s10 }
  0x11   :  { %s50_s30 = sshll.u32 %s5365_s29, 4  ;;  %s5366_s11 = smov [#allocation10]   ;;  %s51_s30 = int_to_ptr.vmem [resolvable:$true] %s50_s30 }
  0x12   :  { %56 = dma.hbm_to_vmem [thread:$0]  %s49_s28, 8192, %s51_s30, [#allocation6], %s5358_s13, %s5358_s13, %s5359_s14  }
  0x13   :  { %s74_s12 = sshll.u32 %s5366_s11, 4  ;;  %s96_s17 = sshll.u32 %s9440_s6, 4  ;;  %s75_s12 = int_to_ptr.vmem [resolvable:$true] %s74_s12  ;;  %s97_s17 = int_to_ptr.hbm [resolvable:$true] %s96_s17 }
  0x14   :  { %80 = dma.hbm_to_vmem [thread:$0]  %s73_s10, 16384, %s75_s12, [#allocation9], %s5358_s13, %s5358_s13, %s5359_s14  }
  0x15   :  { %s5367_s2 = smov [#allocation13]  }
  0x16   :  { %s98_s1 = sshll.u32 %s5367_s2, 4  ;;  %s99_s1 = int_to_ptr.vmem [resolvable:$true] %s98_s1 }
  0x17   :  { %104 = dma.hbm_to_vmem [thread:$0]  %s97_s17, 2048, %s99_s1, [#allocation12], %s5363_s25, %s5363_s25, %s5364_s26  }
  0x18   :  { %5347 = dma.done.wait [#allocation3], 256  }
  0x19   :  { %5348 = vsyncadd [#allocation3], 4294967040 }
  0x1a   :  { %5349 = dma.done.wait [#allocation6], 12288  }
  0x1b   :  { %5350 = vsyncadd [#allocation6], 4294955008 }
  0x1c   :  { %5351 = dma.done.wait [#allocation9], 16448  }
  0x1d   :  { %5352 = vsyncadd [#allocation9], 4294950848 }
  0x1e   :  { %5353 = dma.done.wait [#allocation12], 2112  }
  0x1f   :  { %5354 = vsyncadd [#allocation12], 4294965184  ;;  %v5445_v0 = vld [vmem:[#allocation7 + $0x1e8] sm:$0xff]  ;;  %v5447_v1 = vld [vmem:[#allocation7 + $0x1f8] sm:$0xff]  ;;  %vm446_vm0 = vcmask 1041409   ;;  %vm448_vm1 = vcmask 523264  }
  0x20   :  { %v5449_v2 = vld [vmem:[#allocation7 + $0x1c8] sm:$0xff]  ;;  %383 = vmatpush.msra.mxu1 %v5445_v0  ;;  %423 = vmatpush.msra.mxu3 %v5447_v1  ;;  %v5453_v3 = vld [vmem:[#allocation7 + $0x1d8] sm:$0xff]  ;;  %v229_v8 = vld [vmem:[#allocation7 + $0x1e0] sm:$0xff]  ;;  %s5369_s13 = smov [#allocation14]   ;;  %s4071_s20 = sshll.u32 %s9442_s8, 4  ;;  %s4072_s20 = int_to_ptr.hbm [resolvable:$true] %s4071_s20 }
  0x21   :  { %v5455_v4 = vld [vmem:[#allocation7 + $0x1a8] sm:$0xff]  ;;  %v5457_v5 = vld [vmem:[#allocation7 + $0x1b8] sm:$0xff]  ;;  %v231_v9 = vld [vmem:[#allocation7 + $0x1f0] sm:$0xff]  ;;  %363 = vmatpush.msra.mxu0 %v229_v8  ;;  %s4069_s14 = sshll.u32 %s5369_s13, 4  ;;  %s4070_s14 = int_to_ptr.vmem [resolvable:$true] %s4069_s14 }
  0x22   :  { %384 = vmatpush.msra.mxu1 %v5449_v2  ;;  %424 = vmatpush.msra.mxu3 %v5453_v3  ;;  %v5461_v6 = vld [vmem:[#allocation7 + $0x188] sm:$0xff]  ;;  %v5463_v7 = vld [vmem:[#allocation7 + $0x198] sm:$0xff]  ;;  %v225_v12 = vld [vmem:[#allocation7 + $0x1c0] sm:$0xff] }
  0x23   :  { %v5467_v10 = vld [vmem:[#allocation7 + $0x168] sm:$0xff]  ;;  %v5469_v11 = vld [vmem:[#allocation7 + $0x178] sm:$0xff]  ;;  %403 = vmatpush.msra.mxu2 %v231_v9  ;;  %v227_v14 = vld [vmem:[#allocation7 + $0x1d0] sm:$0xff]  ;;  %364 = vmatpush.msra.mxu0 %v225_v12  ;;  %v9443_v12 = vmov 0.0  }
  0x24   :  { %385 = vmatpush.msra.mxu1 %v5455_v4  ;;  %425 = vmatpush.msra.mxu3 %v5457_v5  ;;  %v5473_v13 = vld [vmem:[#allocation7 + $0x148] sm:$0xff]  ;;  %v5475_v15 = vld [vmem:[#allocation7 + $0x158] sm:$0xff]  ;;  %v221_v16 = vld [vmem:[#allocation7 + $0x1a0] sm:$0xff] }
  0x25   :  { %404 = vmatpush.msra.mxu2 %v227_v14  ;;  %v223_v17 = vld [vmem:[#allocation7 + $0x1b0] sm:$0xff]  ;;  %v217_v18 = vld [vmem:[#allocation7 + $0x180] sm:$0xff]  ;;  %v5479_v20 = vld [vmem:[#allocation7 + $0x128] sm:$0xff]  ;;  %365 = vmatpush.msra.mxu0 %v221_v16 }
  0x26   :  { %386 = vmatpush.msra.mxu1 %v5461_v6  ;;  %426 = vmatpush.msra.mxu3 %v5463_v7  ;;  %v219_v19 = vld [vmem:[#allocation7 + $0x190] sm:$0xff]  ;;  %v5481_v21 = vld [vmem:[#allocation7 + $0x138] sm:$0xff]  ;;  %v213_v22 = vld [vmem:[#allocation7 + $0x160] sm:$0xff] }
  0x27   :  { %405 = vmatpush.msra.mxu2 %v223_v17  ;;  %v215_v23 = vld [vmem:[#allocation7 + $0x170] sm:$0xff]  ;;  %v5485_v24 = vld [vmem:[#allocation7 + $0x108] sm:$0xff]  ;;  %v5487_v25 = vld [vmem:[#allocation7 + $0x118] sm:$0xff]  ;;  %366 = vmatpush.msra.mxu0 %v217_v18 }
  0x28   :  { %387 = vmatpush.msra.mxu1 %v5467_v10  ;;  %427 = vmatpush.msra.mxu3 %v5469_v11  ;;  %v209_v26 = vld [vmem:[#allocation7 + $0x140] sm:$0xff]  ;;  %v211_v27 = vld [vmem:[#allocation7 + $0x150] sm:$0xff]  ;;  %v5491_v28 = vld [vmem:[#allocation7 + $0xe8] sm:$0xff] }
  0x29   :  { %406 = vmatpush.msra.mxu2 %v219_v19  ;;  %v5493_v29 = vld [vmem:[#allocation7 + $0xf8] sm:$0xff]  ;;  %367 = vmatpush.msra.mxu0 %v213_v22  ;;  %v205_v30 = vld [vmem:[#allocation7 + $0x120] sm:$0xff]  ;;  %v207_v31 = vld [vmem:[#allocation7 + $0x130] sm:$0xff] }
  0x2a   :  { %388 = vmatpush.msra.mxu1 %v5473_v13  ;;  %428 = vmatpush.msra.mxu3 %v5475_v15  ;;  %v5497_v32 = vld [vmem:[#allocation7 + $0xc8] sm:$0xff]  ;;  %v5499_v33 = vld [vmem:[#allocation7 + $0xd8] sm:$0xff]  ;;  %v201_v34 = vld [vmem:[#allocation7 + $0x100] sm:$0xff] }
  0x2b   :  { %407 = vmatpush.msra.mxu2 %v215_v23  ;;  %368 = vmatpush.msra.mxu0 %v209_v26  ;;  %v203_v35 = vld [vmem:[#allocation7 + $0x110] sm:$0xff]  ;;  %v5503_v36 = vld [vmem:[#allocation7 + $0xa8] sm:$0xff]  ;;  %v5505_v37 = vld [vmem:[#allocation7 + $0xb8] sm:$0xff] }
  0x2c   :  { %389 = vmatpush.msra.mxu1 %v5479_v20  ;;  %429 = vmatpush.msra.mxu3 %v5481_v21  ;;  %v197_v38 = vld [vmem:[#allocation7 + $0xe0] sm:$0xff]  ;;  %v199_v39 = vld [vmem:[#allocation7 + $0xf0] sm:$0xff]  ;;  %v5509_v40 = vld [vmem:[#allocation7 + $0x88] sm:$0xff] }
  0x2d   :  { %408 = vmatpush.msra.mxu2 %v211_v27  ;;  %369 = vmatpush.msra.mxu0 %v205_v30  ;;  %v5511_v41 = vld [vmem:[#allocation7 + $0x98] sm:$0xff]  ;;  %v193_v42 = vld [vmem:[#allocation7 + $0xc0] sm:$0xff]  ;;  %v195_v43 = vld [vmem:[#allocation7 + $0xd0] sm:$0xff] }
  0x2e   :  { %390 = vmatpush.msra.mxu1 %v5485_v24  ;;  %430 = vmatpush.msra.mxu3 %v5487_v25  ;;  %v5515_v44 = vld [vmem:[#allocation7 + $0x68] sm:$0xff]  ;;  %v5517_v45 = vld [vmem:[#allocation7 + $0x78] sm:$0xff]  ;;  %v189_v46 = vld [vmem:[#allocation7 + $0xa0] sm:$0xff] }
  0x2f   :  { %409 = vmatpush.msra.mxu2 %v207_v31  ;;  %370 = vmatpush.msra.mxu0 %v201_v34  ;;  %v191_v47 = vld [vmem:[#allocation7 + $0xb0] sm:$0xff]  ;;  %v5521_v48 = vld [vmem:[#allocation7 + $0x48] sm:$0xff]  ;;  %v5523_v49 = vld [vmem:[#allocation7 + $0x58] sm:$0xff] }
  0x30   :  { %391 = vmatpush.msra.mxu1 %v5491_v28  ;;  %431 = vmatpush.msra.mxu3 %v5493_v29  ;;  %v185_v50 = vld [vmem:[#allocation7 + $0x80] sm:$0xff]  ;;  %v187_v51 = vld [vmem:[#allocation7 + $0x90] sm:$0xff]  ;;  %v5527_v52 = vld [vmem:[#allocation7 + $0x28] sm:$0xff] }
  0x31   :  { %410 = vmatpush.msra.mxu2 %v203_v35  ;;  %371 = vmatpush.msra.mxu0 %v197_v38  ;;  %v5529_v53 = vld [vmem:[#allocation7 + $0x38] sm:$0xff]  ;;  %v181_v54 = vld [vmem:[#allocation7 + $0x60] sm:$0xff]  ;;  %v183_v55 = vld [vmem:[#allocation7 + $0x70] sm:$0xff] }
  0x32   :  { %392 = vmatpush.msra.mxu1 %v5497_v32  ;;  %432 = vmatpush.msra.mxu3 %v5499_v33  ;;  %v5533_v56 = vld [vmem:[#allocation7 + $0x8] sm:$0xff]  ;;  %v5535_v57 = vld [vmem:[#allocation7 + $0x18] sm:$0xff]  ;;  %v165_v58 = vld [vmem:[#allocation5 + $0xe0] sm:$0xff] }
  0x33   :  { %411 = vmatpush.msra.mxu2 %v199_v39  ;;  %372 = vmatpush.msra.mxu0 %v193_v42  ;;  %v5539_v59 = vld [vmem:[#allocation5 + $0xf8] sm:$0xff]  ;;  %v161_v60 = vld [vmem:[#allocation5 + $0xc0] sm:$0xff]  ;;  %v179_v63 = vld [vmem:[#allocation7 + $0x50] sm:$0xff] }
  0x34   :  { %393 = vmatpush.msra.mxu1 %v5503_v36  ;;  %433 = vmatpush.msra.mxu3 %v5505_v37  ;;  %v5543_v61 = vld [vmem:[#allocation5 + $0xd8] sm:$0xff]  ;;  %v177_v62 = vld [vmem:[#allocation7 + $0x40] sm:$0xff]  ;;  %v175_v16 = vld [vmem:[#allocation7 + $0x30] sm:$0xff] }
  0x35   :  { %412 = vmatpush.msra.mxu2 %v195_v43  ;;  %373 = vmatpush.msra.mxu0 %v189_v46  ;;  %v157_v8 = vld [vmem:[#allocation5 + $0xa0] sm:$0xff]  ;;  %v5546_v9 = vld [vmem:[#allocation5 + $0xb8] sm:$0xff]  ;;  %v171_v22 = vld [vmem:[#allocation7 + $0x10] sm:$0xff] }
  0x36   :  { %394 = vmatpush.msra.mxu1 %v5509_v40  ;;  %434 = vmatpush.msra.mxu3 %v5511_v41  ;;  %v173_v14 = vld [vmem:[#allocation7 + $0x20] sm:$0xff]  ;;  %v5551_v18 = vld [vmem:[#allocation5 + $0x98] sm:$0xff]  ;;  %v167_v30 = vld [vmem:[#allocation5 + $0xf0] sm:$0xff] }
  0x37   :  { %413 = vmatpush.msra.mxu2 %v191_v47  ;;  %374 = vmatpush.msra.mxu0 %v185_v50  ;;  %v153_v17 = vld [vmem:[#allocation5 + $0x80] sm:$0xff]  ;;  %v5554_v26 = vld [vmem:[#allocation5 + $0x78] sm:$0xff]  ;;  %v163_v38 = vld [vmem:[#allocation5 + $0xd0] sm:$0xff] }
  0x38   :  { %395 = vmatpush.msra.mxu1 %v5515_v44  ;;  %435 = vmatpush.msra.mxu3 %v5517_v45  ;;  %v169_v19 = vld [vmem:[#allocation7] sm:$0xff]  ;;  %v5556_v27 = vld [vmem:[#allocation2 + $0x8] sm:$0xff]  ;;  %v5566_v43 = vld [vmem:[#allocation2] sm:$0xff] }
  0x39   :  { %414 = vmatpush.msra.mxu2 %v187_v51  ;;  %375 = vmatpush.msra.mxu0 %v181_v54  ;;  %v149_v23 = vld [vmem:[#allocation5 + $0x60] sm:$0xff]  ;;  %v5559_v34 = vld [vmem:[#allocation5 + $0x58] sm:$0xff]  ;;  %v445_v35 = vrot.slane %v5556_v27, 7  ;;  %v159_v46 = vld [vmem:[#allocation5 + $0xb0] sm:$0xff] }
  0x3a   :  { %396 = vmatpush.msra.mxu1 %v5521_v48  ;;  %436 = vmatpush.msra.mxu3 %v5523_v49  ;;  %v145_v31 = vld [vmem:[#allocation5 + $0x40] sm:$0xff]  ;;  %v5563_v42 = vld [vmem:[#allocation5 + $0x38] sm:$0xff]  ;;  %v5574_v54 = vld [vmem:[#allocation5 + $0xe8] sm:$0xff] }
  0x3b   :  { %415 = vmatpush.msra.mxu2 %v183_v55  ;;  %376 = vmatpush.msra.mxu0 %v177_v62  ;;  %v141_v39 = vld [vmem:[#allocation5 + $0x20] sm:$0xff]  ;;  %v5569_v50 = vld [vmem:[#allocation5 + $0x18] sm:$0xff]  ;;  %v447_v51 = vsel %vm446_vm0, %v445_v35, %v5566_v43  ;;  %v5576_v55 = vld [vmem:[#allocation5 + $0x90] sm:$0xff] }
  0x3c   :  { %397 = vmatpush.msra.mxu1 %v5527_v52  ;;  %437 = vmatpush.msra.mxu3 %v5529_v53  ;;  %v137_v47 = vld [vmem:[#allocation5] sm:$0xff]  ;;  %10047 = vst [vmem:[#allocation20_spill] sm:$0xff] %v5576_v55  ;;  %v5585_v62 = vld [vmem:[#allocation5 + $0x70] sm:$0xff]  ;;  %v5619_v35 = vld [vmem:[#allocation5 + $0x48] sm:$0xff] }
  0x3d   :  { %416 = vmatpush.msra.mxu2 %v179_v63  ;;  %377 = vmatpush.msra.mxu0 %v173_v14  ;;  %10048 = vst [vmem:[#allocation21_spill] sm:$0xff] %v5585_v62  ;;  %v5589_v63 = vld [vmem:[#allocation10 + $0x3c8] sm:$0xff] }
  0x3e   :  { %398 = vmatpush.msra.mxu1 %v5533_v56  ;;  %438 = vmatpush.msra.mxu3 %v5535_v57  ;;  %v5594_v14 = vld [vmem:[#allocation5 + $0x50] sm:$0xff] }
  0x3f   :  { %399 = vmatmul.f32.vlgmr.msra.gmra.mxu1 %v9443_v12  ;;  %439 = vmatmul.f32.vlgmr.msra.gmra.mxu3 %v9443_v12  ;;  %10049 = vst [vmem:[#allocation22_spill] sm:$0xff] %v5594_v14 }
  0x40   :  { %459 = vmatpush.msrb.mxu1 %v165_v58  ;;  %519 = vmatpush.msrb.mxu3 %v5539_v59  ;;  %v5579_v58 = vld [vmem:[#allocation10 + $0x3e8] sm:$0xff] }
  0x41   :  { %417 = vmatpush.msra.mxu2 %v175_v16  ;;  %378 = vmatpush.msra.mxu0 %v169_v19  ;;  %v5599_v16 = vld [vmem:[#allocation10 + $0x3a8] sm:$0xff] }
  0x42   :  { %460 = vmatpush.msrb.mxu1 %v161_v60  ;;  %520 = vmatpush.msrb.mxu3 %v5543_v61  ;;  %v5583_v60 = vld [vmem:[#allocation5 + $0xc8] sm:$0xff]  ;;  %10050 = vst [vmem:[#allocation23_spill] sm:$0xff] %v5599_v16  ;;  %v5603_v19 = vld [vmem:[#allocation5 + $0x30] sm:$0xff] }
  0x43   :  { %418 = vmatpush.msra.mxu2 %v171_v22  ;;  %379 = vmatmul.f32.vlgmr.msra.gmra.mxu0 %v9443_v12  ;;  %10051 = vst [vmem:[#allocation24_spill] sm:$0xff] %v5603_v19  ;;  %v5608_v22 = vld [vmem:[#allocation10 + $0x388] sm:$0xff] }
  0x44   :  { %461 = vmatpush.msrb.mxu1 %v157_v8  ;;  %521 = vmatpush.msrb.mxu3 %v5546_v9  ;;  %v5591_v8 = vld [vmem:[#allocation5 + $0xa8] sm:$0xff]  ;;  %10052 = vst [vmem:[#allocation25_spill] sm:$0xff] %v5608_v22 }
  0x45   :  { %499 = vmatpush.msrb.mxu2 %v167_v30  ;;  %v5612_v30 = vld [vmem:[#allocation5 + $0x10] sm:$0xff] }
  0x46   :  { %462 = vmatpush.msrb.mxu1 %v153_v17  ;;  %522 = vmatpush.msrb.mxu3 %v5551_v18  ;;  %v5601_v17 = vld [vmem:[#allocation5 + $0x88] sm:$0xff]  ;;  %10053 = vst [vmem:[#allocation26_spill] sm:$0xff] %v5612_v30 }
  0x47   :  { %500 = vmatpush.msrb.mxu2 %v163_v38  ;;  %v5624_v38 = vld [vmem:[#allocation10 + $0x348] sm:$0xff] }
  0x48   :  { %463 = vmatpush.msrb.mxu1 %v149_v23  ;;  %523 = vmatpush.msrb.mxu3 %v5554_v26  ;;  %v5610_v23 = vld [vmem:[#allocation5 + $0x68] sm:$0xff]  ;;  %10055 = vst [vmem:[#allocation28_spill] sm:$0xff] %v5624_v38 }
  0x49   :  { %501 = vmatpush.msrb.mxu2 %v159_v46  ;;  %v5631_v46 = vld [vmem:[#allocation10 + $0x328] sm:$0xff] }
  0x4a   :  { %464 = vmatpush.msrb.mxu1 %v145_v31  ;;  %524 = vmatpush.msrb.mxu3 %v5559_v34  ;;  %v5617_v31 = vld [vmem:[#allocation10 + $0x368] sm:$0xff]  ;;  %10056 = vst [vmem:[#allocation29_spill] sm:$0xff] %v5631_v46 }
  0x4b   :  { %502 = vmatpush.msrb.mxu2 %v5576_v55  ;;  %10054 = vst [vmem:[#allocation27_spill] sm:$0xff] %v5617_v31  ;;  %v5652_v55 = vld [vmem:[#allocation10 + $0x3a0] sm:$0xff] }
  0x4c   :  { %465 = vmatpush.msrb.mxu1 %v141_v39  ;;  %525 = vmatpush.msrb.mxu3 %v5563_v42  ;;  %v5626_v39 = vld [vmem:[#allocation5 + $0x28] sm:$0xff] }
  0x4d   :  { %419 = vmatmul.f32.vlgmr.msra.gmra.mxu2 %v9443_v12  ;;  %v5637_v12 = vld [vmem:[#allocation10 + $0x308] sm:$0xff] }
  0x4e   :  { %466 = vmatpush.msrb.mxu1 %v137_v47  ;;  %526 = vmatpush.msrb.mxu3 %v5569_v50  ;;  %v5633_v47 = vld [vmem:[#allocation5 + $0x8] sm:$0xff]  ;;  %10057 = vst [vmem:[#allocation30_spill] sm:$0xff] %v5637_v12 }
  0x4f   :  { %4084 = vmatmul.msk.f32.vlgmr.msrb.gmra.mxu1 %vm448_vm1, %v447_v51  ;;  %4087 = vmatmul.msk.f32.vlgmr.msrb.gmra.mxu3 %vm448_vm1, %v447_v51 }
  0x50   :  { %479 = vmatpush.msra.mxu1 %v5574_v54  ;;  %676 = vmatpush.msra.mxu3 %v5579_v58 }
  0x51   :  { %503 = vmatpush.msrb.mxu2 %v5585_v62  ;;  %v5650_v62 = vld [vmem:[#allocation10 + $0x2c8] sm:$0xff] }
  0x52   :  { %480 = vmatpush.msra.mxu1 %v5583_v60  ;;  %677 = vmatpush.msra.mxu3 %v5589_v63  ;;  %10059 = vst [vmem:[#allocation32_spill] sm:$0xff] %v5650_v62 }
  0x53   :  { %504 = vmatpush.msrb.mxu2 %v5594_v14  ;;  %v5646_v14 = vld [vmem:[#allocation10 + $0x3c0] sm:$0xff] }
  0x54   :  { %481 = vmatpush.msra.mxu1 %v5591_v8  ;;  %678 = vmatpush.msra.mxu3 %v5599_v16  ;;  %v5680_v16 = vld [vmem:[#allocation10 + $0x228] sm:$0xff] }
  0x55   :  { %505 = vmatpush.msrb.mxu2 %v5603_v19  ;;  %v5643_v19 = vld [vmem:[#allocation10 + $0x2e8] sm:$0xff]  ;;  %10068 = vst [vmem:[#allocation41_spill] sm:$0xff] %v5680_v16 }
  0x56   :  { %482 = vmatpush.msra.mxu1 %v5601_v17  ;;  %679 = vmatpush.msra.mxu3 %v5608_v22  ;;  %10058 = vst [vmem:[#allocation31_spill] sm:$0xff] %v5643_v19  ;;  %v5674_v22 = vld [vmem:[#allocation10 + $0x248] sm:$0xff] }
  0x57   :  { %506 = vmatpush.msrb.mxu2 %v5612_v30  ;;  %v5639_v30 = vld [vmem:[#allocation10 + $0x3e0] sm:$0xff]  ;;  %10066 = vst [vmem:[#allocation39_spill] sm:$0xff] %v5674_v22 }
  0x58   :  { %483 = vmatpush.msra.mxu1 %v5610_v23  ;;  %4086 = vmatmul.msk.f32.vlgmr.msrb.gmra.mxu2 %vm448_vm1, %v447_v51 }
  0x59   :  { %680 = vmatpush.msra.mxu3 %v5617_v31  ;;  %v5668_v31 = vld [vmem:[#allocation10 + $0x268] sm:$0xff] }
  0x5a   :  { %484 = vmatpush.msra.mxu1 %v5619_v35  ;;  %10064 = vst [vmem:[#allocation37_spill] sm:$0xff] %v5668_v31 }
  0x5b   :  { %681 = vmatpush.msra.mxu3 %v5624_v38  ;;  %v5658_v38 = vld [vmem:[#allocation10 + $0x380] sm:$0xff] }
  0x5c   :  { %485 = vmatpush.msra.mxu1 %v5626_v39  ;;  %10061 = vst [vmem:[#allocation34_spill] sm:$0xff] %v5658_v38 }
  0x5d   :  { %682 = vmatpush.msra.mxu3 %v5631_v46  ;;  %v5656_v46 = vld [vmem:[#allocation10 + $0x2a8] sm:$0xff] }
  0x5e   :  { %486 = vmatpush.msra.mxu1 %v5633_v47  ;;  %10060 = vst [vmem:[#allocation33_spill] sm:$0xff] %v5656_v46 }
  0x5f   :  { %4085 = vmatmul.msk.f32.vlgmr.msra.gmra.mxu1 %vm448_vm1, %v447_v51  ;;  %683 = vmatpush.msra.mxu3 %v5637_v12  ;;  %v5662_v51 = vld [vmem:[#allocation10 + $0x288] sm:$0xff]  ;;  %v5664_v12 = vld [vmem:[#allocation10 + $0x360] sm:$0xff] }
  0x60   :  { %636 = vmatpush.msrb.mxu1 %v5639_v30  ;;  %10062 = vst [vmem:[#allocation35_spill] sm:$0xff] %v5662_v51 }
  0x61   :  { %684 = vmatpush.msra.mxu3 %v5643_v19  ;;  %10063 = vst [vmem:[#allocation36_spill] sm:$0xff] %v5664_v12  ;;  %v5670_v19 = vld [vmem:[#allocation10 + $0x340] sm:$0xff] }
  0x62   :  { %637 = vmatpush.msrb.mxu1 %v5646_v14  ;;  %10065 = vst [vmem:[#allocation38_spill] sm:$0xff] %v5670_v19 }
  0x63   :  { %685 = vmatpush.msra.mxu3 %v5650_v62  ;;  %v5676_v62 = vld [vmem:[#allocation10 + $0x320] sm:$0xff] }
  0x64   :  { %638 = vmatpush.msrb.mxu1 %v5652_v55  ;;  %10067 = vst [vmem:[#allocation40_spill] sm:$0xff] %v5676_v62 }
  0x65   :  { %686 = vmatpush.msra.mxu3 %v5656_v46  ;;  %v5682_v46 = vld [vmem:[#allocation10 + $0x300] sm:$0xff] }
  0x66   :  { %639 = vmatpush.msrb.mxu1 %v5658_v38  ;;  %10069 = vst [vmem:[#allocation42_spill] sm:$0xff] %v5682_v46  ;;  %v5686_v38 = vld [vmem:[#allocation10 + $0x208] sm:$0xff] }
  0x67   :  { %687 = vmatpush.msra.mxu3 %v5662_v51  ;;  %10070 = vst [vmem:[#allocation43_spill] sm:$0xff] %v5686_v38  ;;  %v5688_v51 = vld [vmem:[#allocation10 + $0x2e0] sm:$0xff] }
  0x68   :  { %640 = vmatpush.msrb.mxu1 %v5664_v12  ;;  %10071 = vst [vmem:[#allocation44_spill] sm:$0xff] %v5688_v51  ;;  %v5692_v12 = vld [vmem:[#allocation10 + $0x2c0] sm:$0xff] }
  0x69   :  { %688 = vmatpush.msra.mxu3 %v5668_v31  ;;  %10072 = vst [vmem:[#allocation45_spill] sm:$0xff] %v5692_v12  ;;  %v10073_v31 = vmov 0.0  }
  0x6a   :  { %641 = vmatpush.msrb.mxu1 %v5670_v19  ;;  %v5697_v19 = vld [vmem:[#allocation10 + $0x2a0] sm:$0xff] }
  0x6b   :  { %689 = vmatpush.msra.mxu3 %v5674_v22  ;;  %10074 = vst [vmem:[#allocation46_spill] sm:$0xff] %v5697_v19  ;;  %v5700_v22 = vld [vmem:[#allocation10 + $0x280] sm:$0xff] }
  0x6c   :  { %642 = vmatpush.msrb.mxu1 %v5676_v62  ;;  %10075 = vst [vmem:[#allocation47_spill] sm:$0xff] %v5700_v22  ;;  %v5703_v62 = vld [vmem:[#allocation10 + $0x260] sm:$0xff] }
  0x6d   :  { %690 = vmatpush.msra.mxu3 %v5680_v16  ;;  %10076 = vst [vmem:[#allocation48_spill] sm:$0xff] %v5703_v62  ;;  %v5706_v16 = vld [vmem:[#allocation10 + $0x240] sm:$0xff] }
  0x6e   :  { %643 = vmatpush.msrb.mxu1 %v5682_v46  ;;  %10077 = vst [vmem:[#allocation49_spill] sm:$0xff] %v5706_v16  ;;  %v5729_v46 = vld [vmem:[#allocation10 + $0x3b8] sm:$0xff] }
  0x6f   :  { %691 = vmatpush.msra.mxu3 %v5686_v38  ;;  %v5709_v38 = vld [vmem:[#allocation10 + $0x220] sm:$0xff]  ;;  %10085 = vst [vmem:[#allocation57_spill] sm:$0xff] %v5729_v46 }
  0x70   :  { %644 = vmatpush.msrb.mxu1 %v5688_v51  ;;  %692 = vmatmul.f32.vlgmr.msra.gmra.mxu3 %v10073_v31  ;;  %10078 = vst [vmem:[#allocation50_spill] sm:$0xff] %v5709_v38  ;;  %v5712_v51 = vld [vmem:[#allocation10 + $0x200] sm:$0xff] }
  0x71   :  { %10079 = vst [vmem:[#allocation51_spill] sm:$0xff] %v5712_v51 }
  0x72   :  { %645 = vmatpush.msrb.mxu1 %v5692_v12  ;;  %v5719_v12 = vld [vmem:[#allocation10 + $0x3f8] sm:$0xff] }
  0x73   :  { %10081 = vst [vmem:[#allocation53_spill] sm:$0xff] %v5719_v12  ;;  %756 = vmatpush.msrb.mxu3 %v5719_v12  ;;  %v5743_v12 = vld [vmem:[#allocation10 + $0x1e8] sm:$0xff] }
  0x74   :  { %646 = vmatpush.msrb.mxu1 %v5697_v19  ;;  %v5717_v19 = vld [vmem:[#allocation10 + $0x3f0] sm:$0xff]  ;;  %10088 = vst [vmem:[#allocation60_spill] sm:$0xff] %v5743_v12  ;;  %656 = vmatpush.msra.mxu2 %v5743_v12  ;;  %v5765_v12 = vld [vmem:[#allocation10 + $0x1a0] sm:$0xff] }
  0x75   :  { %10080 = vst [vmem:[#allocation52_spill] sm:$0xff] %v5717_v19 }
  0x76   :  { %647 = vmatpush.msrb.mxu1 %v5700_v22  ;;  %v5721_v22 = vld [vmem:[#allocation10 + $0x3d0] sm:$0xff]  ;;  %10095 = vst [vmem:[#allocation67_spill] sm:$0xff] %v5765_v12 }
  0x77   :  { %10082 = vst [vmem:[#allocation54_spill] sm:$0xff] %v5721_v22 }
  0x78   :  { %648 = vmatpush.msrb.mxu1 %v5703_v62  ;;  %v5725_v62 = vld [vmem:[#allocation10 + $0x3d8] sm:$0xff] }
  0x79   :  { %10083 = vst [vmem:[#allocation55_spill] sm:$0xff] %v5725_v62  ;;  %757 = vmatpush.msrb.mxu3 %v5725_v62  ;;  %v5747_v62 = vld [vmem:[#allocation10 + $0x370] sm:$0xff] }
  0x7a   :  { %649 = vmatpush.msrb.mxu1 %v5706_v16  ;;  %v5727_v16 = vld [vmem:[#allocation10 + $0x3b0] sm:$0xff]  ;;  %10089 = vst [vmem:[#allocation61_spill] sm:$0xff] %v5747_v62 }
  0x7b   :  { %10084 = vst [vmem:[#allocation56_spill] sm:$0xff] %v5727_v16  ;;  %758 = vmatpush.msrb.mxu3 %v5729_v46  ;;  %v5753_v46 = vld [vmem:[#allocation10 + $0x1c0] sm:$0xff] }
  0x7c   :  { %650 = vmatpush.msrb.mxu1 %v5709_v38  ;;  %v5737_v38 = vld [vmem:[#allocation10 + $0x398] sm:$0xff]  ;;  %10091 = vst [vmem:[#allocation63_spill] sm:$0xff] %v5753_v46 }
  0x7d   :  { %10086 = vst [vmem:[#allocation58_spill] sm:$0xff] %v5737_v38  ;;  %759 = vmatpush.msrb.mxu3 %v5737_v38  ;;  %v5759_v38 = vld [vmem:[#allocation10 + $0x350] sm:$0xff] }
  0x7e   :  { %651 = vmatpush.msrb.mxu1 %v5712_v51  ;;  %v5735_v51 = vld [vmem:[#allocation10 + $0x390] sm:$0xff]  ;;  %10093 = vst [vmem:[#allocation65_spill] sm:$0xff] %v5759_v38 }
  0x7f   :  { %652 = vmatmul.f32.vlgmr.msrb.gmra.mxu1 %v10073_v31 }
  0x80   :  { %716 = vmatpush.msra.mxu1 %v5717_v19  ;;  %v5739_v19 = vld [vmem:[#allocation10 + $0x1e0] sm:$0xff] }
  0x81   :  { %10087 = vst [vmem:[#allocation59_spill] sm:$0xff] %v5739_v19  ;;  %616 = vmatpush.msrb.mxu0 %v5739_v19  ;;  %v5761_v19 = vld [vmem:[#allocation10 + $0x358] sm:$0xff] }
  0x82   :  { %717 = vmatpush.msra.mxu1 %v5721_v22  ;;  %v5755_v22 = vld [vmem:[#allocation10 + $0x1c8] sm:$0xff]  ;;  %10094 = vst [vmem:[#allocation66_spill] sm:$0xff] %v5761_v19 }
  0x83   :  { %10092 = vst [vmem:[#allocation64_spill] sm:$0xff] %v5755_v22  ;;  %617 = vmatpush.msrb.mxu0 %v5753_v46  ;;  %657 = vmatpush.msra.mxu2 %v5755_v22  ;;  %v5773_v46 = vld [vmem:[#allocation10 + $0x338] sm:$0xff]  ;;  %v5777_v22 = vld [vmem:[#allocation10 + $0x180] sm:$0xff] }
  0x84   :  { %718 = vmatpush.msra.mxu1 %v5727_v16  ;;  %v5749_v16 = vld [vmem:[#allocation10 + $0x378] sm:$0xff]  ;;  %10098 = vst [vmem:[#allocation70_spill] sm:$0xff] %v5773_v46 }
  0x85   :  { %10090 = vst [vmem:[#allocation62_spill] sm:$0xff] %v5749_v16  ;;  %760 = vmatpush.msrb.mxu3 %v5749_v16  ;;  %618 = vmatpush.msrb.mxu0 %v5765_v12  ;;  %v5771_v16 = vld [vmem:[#allocation10 + $0x330] sm:$0xff]  ;;  %v5785_v12 = vld [vmem:[#allocation10 + $0x318] sm:$0xff] }
  0x86   :  { %719 = vmatpush.msra.mxu1 %v5735_v51  ;;  %10097 = vst [vmem:[#allocation69_spill] sm:$0xff] %v5771_v16 }
  0x87   :  { %761 = vmatpush.msrb.mxu3 %v5761_v19  ;;  %10099 = vst [vmem:[#allocation71_spill] sm:$0xff] %v5777_v22  ;;  %619 = vmatpush.msrb.mxu0 %v5777_v22  ;;  %v5783_v19 = vld [vmem:[#allocation10 + $0x310] sm:$0xff]  ;;  %v5797_v22 = vld [vmem:[#allocation10 + $0x2f8] sm:$0xff] }
  0x88   :  { %720 = vmatpush.msra.mxu1 %v5747_v62  ;;  %v5767_v62 = vld [vmem:[#allocation10 + $0x1a8] sm:$0xff]  ;;  %10101 = vst [vmem:[#allocation73_spill] sm:$0xff] %v5783_v19 }
  0x89   :  { %10096 = vst [vmem:[#allocation68_spill] sm:$0xff] %v5767_v62  ;;  %658 = vmatpush.msra.mxu2 %v5767_v62  ;;  %762 = vmatpush.msrb.mxu3 %v5773_v46  ;;  %v5789_v62 = vld [vmem:[#allocation10 + $0x160] sm:$0xff]  ;;  %v5795_v46 = vld [vmem:[#allocation10 + $0x2f0] sm:$0xff] }
  0x8a   :  { %721 = vmatpush.msra.mxu1 %v5759_v38  ;;  %v5779_v38 = vld [vmem:[#allocation10 + $0x188] sm:$0xff]  ;;  %10102 = vst [vmem:[#allocation74_spill] sm:$0xff] %v5785_v12  ;;  %620 = vmatpush.msrb.mxu0 %v5789_v62 }
  0x8b   :  { %10100 = vst [vmem:[#allocation72_spill] sm:$0xff] %v5779_v38  ;;  %659 = vmatpush.msra.mxu2 %v5779_v38  ;;  %763 = vmatpush.msrb.mxu3 %v5785_v12  ;;  %v5801_v38 = vld [vmem:[#allocation10 + $0x140] sm:$0xff]  ;;  %v5807_v12 = vld [vmem:[#allocation10 + $0x2d0] sm:$0xff] }
  0x8c   :  { %722 = vmatpush.msra.mxu1 %v5771_v16  ;;  %10103 = vst [vmem:[#allocation75_spill] sm:$0xff] %v5789_v62  ;;  %v5791_v16 = vld [vmem:[#allocation10 + $0x168] sm:$0xff]  ;;  %621 = vmatpush.msrb.mxu0 %v5801_v38  ;;  %v5809_v62 = vld [vmem:[#allocation10 + $0x2d8] sm:$0xff] }
  0x8d   :  { %10104 = vst [vmem:[#allocation76_spill] sm:$0xff] %v5791_v16  ;;  %660 = vmatpush.msra.mxu2 %v5791_v16  ;;  %764 = vmatpush.msrb.mxu3 %v5797_v22  ;;  %v5813_v16 = vld [vmem:[#allocation10 + $0x120] sm:$0xff] }
  0x8e   :  { %723 = vmatpush.msra.mxu1 %v5783_v19  ;;  %10105 = vst [vmem:[#allocation77_spill] sm:$0xff] %v5795_v46  ;;  %v5803_v19 = vld [vmem:[#allocation10 + $0x148] sm:$0xff]  ;;  %622 = vmatpush.msrb.mxu0 %v5813_v16 }
  0x8f   :  { %10106 = vst [vmem:[#allocation78_spill] sm:$0xff] %v5797_v22  ;;  %661 = vmatpush.msra.mxu2 %v5803_v19  ;;  %765 = vmatpush.msrb.mxu3 %v5809_v62  ;;  %v5819_v22 = vld [vmem:[#allocation10 + $0x2b0] sm:$0xff] }
  0x90   :  { %724 = vmatpush.msra.mxu1 %v5795_v46  ;;  %10107 = vst [vmem:[#allocation79_spill] sm:$0xff] %v5801_v38  ;;  %v5815_v46 = vld [vmem:[#allocation10 + $0x128] sm:$0xff]  ;;  %v5821_v38 = vld [vmem:[#allocation10 + $0x2b8] sm:$0xff] }
  0x91   :  { %10108 = vst [vmem:[#allocation80_spill] sm:$0xff] %v5803_v19  ;;  %662 = vmatpush.msra.mxu2 %v5815_v46  ;;  %766 = vmatpush.msrb.mxu3 %v5821_v38  ;;  %v5825_v19 = vld [vmem:[#allocation10 + $0x100] sm:$0xff] }
  0x92   :  { %10109 = vst [vmem:[#allocation81_spill] sm:$0xff] %v5807_v12  ;;  %725 = vmatpush.msra.mxu1 %v5807_v12  ;;  %v5827_v12 = vld [vmem:[#allocation10 + $0x108] sm:$0xff]  ;;  %623 = vmatpush.msrb.mxu0 %v5825_v19 }
  0x93   :  { %10110 = vst [vmem:[#allocation82_spill] sm:$0xff] %v5809_v62  ;;  %663 = vmatpush.msra.mxu2 %v5827_v12  ;;  %v5831_v62 = vld [vmem:[#allocation10 + $0x290] sm:$0xff] }
  0x94   :  { %10111 = vst [vmem:[#allocation83_spill] sm:$0xff] %v5813_v16  ;;  %726 = vmatpush.msra.mxu1 %v5819_v22  ;;  %v5833_v16 = vld [vmem:[#allocation10 + $0x298] sm:$0xff] }
  0x95   :  { %10112 = vst [vmem:[#allocation84_spill] sm:$0xff] %v5815_v46  ;;  %767 = vmatpush.msrb.mxu3 %v5833_v16  ;;  %v5837_v46 = vld [vmem:[#allocation10 + $0xe0] sm:$0xff] }
  0x96   :  { %10113 = vst [vmem:[#allocation85_spill] sm:$0xff] %v5819_v22  ;;  %727 = vmatpush.msra.mxu1 %v5831_v62  ;;  %v5839_v22 = vld [vmem:[#allocation10 + $0xe8] sm:$0xff]  ;;  %624 = vmatpush.msrb.mxu0 %v5837_v46 }
  0x97   :  { %10114 = vst [vmem:[#allocation86_spill] sm:$0xff] %v5821_v38  ;;  %664 = vmatpush.msra.mxu2 %v5839_v22  ;;  %v5843_v38 = vld [vmem:[#allocation10 + $0x270] sm:$0xff] }
  0x98   :  { %10115 = vst [vmem:[#allocation87_spill] sm:$0xff] %v5825_v19  ;;  %v5845_v19 = vld [vmem:[#allocation10 + $0x278] sm:$0xff]  ;;  %728 = vmatpush.msra.mxu1 %v5843_v38 }
  0x99   :  { %10116 = vst [vmem:[#allocation88_spill] sm:$0xff] %v5827_v12  ;;  %768 = vmatpush.msrb.mxu3 %v5845_v19  ;;  %v5849_v12 = vld [vmem:[#allocation10 + $0xc0] sm:$0xff] }
  0x9a   :  { %10117 = vst [vmem:[#allocation89_spill] sm:$0xff] %v5831_v62  ;;  %v5851_v62 = vld [vmem:[#allocation10 + $0xc8] sm:$0xff]  ;;  %625 = vmatpush.msrb.mxu0 %v5849_v12 }
  0x9b   :  { %10118 = vst [vmem:[#allocation90_spill] sm:$0xff] %v5833_v16  ;;  %665 = vmatpush.msra.mxu2 %v5851_v62  ;;  %v5855_v16 = vld [vmem:[#allocation10 + $0x250] sm:$0xff] }
  0x9c   :  { %10119 = vst [vmem:[#allocation91_spill] sm:$0xff] %v5837_v46  ;;  %v5857_v46 = vld [vmem:[#allocation10 + $0x258] sm:$0xff]  ;;  %729 = vmatpush.msra.mxu1 %v5855_v16 }
  0x9d   :  { %10120 = vst [vmem:[#allocation92_spill] sm:$0xff] %v5839_v22  ;;  %769 = vmatpush.msrb.mxu3 %v5857_v46  ;;  %v5861_v22 = vld [vmem:[#allocation10 + $0xa0] sm:$0xff] }
  0x9e   :  { %10121 = vst [vmem:[#allocation93_spill] sm:$0xff] %v5843_v38  ;;  %v5863_v38 = vld [vmem:[#allocation10 + $0xa8] sm:$0xff]  ;;  %626 = vmatpush.msrb.mxu0 %v5861_v22 }
  0x9f   :  { %10122 = vst [vmem:[#allocation94_spill] sm:$0xff] %v5845_v19  ;;  %666 = vmatpush.msra.mxu2 %v5863_v38  ;;  %v5867_v19 = vld [vmem:[#allocation10 + $0x230] sm:$0xff] }
  0xa0   :  { %10123 = vst [vmem:[#allocation95_spill] sm:$0xff] %v5849_v12  ;;  %v5869_v12 = vld [vmem:[#allocation10 + $0x238] sm:$0xff]  ;;  %730 = vmatpush.msra.mxu1 %v5867_v19 }
  0xa1   :  { %10124 = vst [vmem:[#allocation96_spill] sm:$0xff] %v5851_v62  ;;  %770 = vmatpush.msrb.mxu3 %v5869_v12 }
  0xa2   :  { %10125 = vst [vmem:[#allocation97_spill] sm:$0xff] %v5855_v16  ;;  %v5875_v16 = vld [vmem:[#allocation10 + $0x80] sm:$0xff] }
  0xa3   :  { %10126 = vst [vmem:[#allocation98_spill] sm:$0xff] %v5857_v46  ;;  %v5877_v46 = vld [vmem:[#allocation10 + $0x88] sm:$0xff]  ;;  %627 = vmatpush.msrb.mxu0 %v5875_v16 }
  0xa4   :  { %10127 = vst [vmem:[#allocation99_spill] sm:$0xff] %v5861_v22  ;;  %667 = vmatpush.msra.mxu2 %v5877_v46  ;;  %v5881_v22 = vld [vmem:[#allocation10 + $0x210] sm:$0xff] }
  0xa5   :  { %10128 = vst [vmem:[#allocation100_spill] sm:$0xff] %v5863_v38  ;;  %v5883_v38 = vld [vmem:[#allocation10 + $0x218] sm:$0xff]  ;;  %731 = vmatpush.msra.mxu1 %v5881_v22 }
  0xa6   :  { %10129 = vst [vmem:[#allocation101_spill] sm:$0xff] %v5867_v19  ;;  %771 = vmatpush.msrb.mxu3 %v5883_v38  ;;  %v5887_v19 = vld [vmem:[#allocation10 + $0x60] sm:$0xff]  ;;  %732 = vmatmul.f32.vlgmr.msra.gmra.mxu1 %v10073_v31 }
  0xa7   :  { %10130 = vst [vmem:[#allocation102_spill] sm:$0xff] %v5869_v12  ;;  %v5889_v12 = vld [vmem:[#allocation10 + $0x68] sm:$0xff]  ;;  %628 = vmatpush.msrb.mxu0 %v5887_v19  ;;  %859 = vmatpush.msrb.mxu1 %v5445_v0 }
  0xa8   :  { %10131 = vst [vmem:[#allocation103_spill] sm:$0xff] %v5875_v16  ;;  %668 = vmatpush.msra.mxu2 %v5889_v12  ;;  %899 = vmatpush.msra.mxu3 %v5447_v1  ;;  %v5897_v16 = vld [vmem:[#allocation10 + $0x48] sm:$0xff] }
  0xa9   :  { %10132 = vst [vmem:[#allocation104_spill] sm:$0xff] %v5877_v46  ;;  %v5895_v46 = vld [vmem:[#allocation10 + $0x40] sm:$0xff]  ;;  %860 = vmatpush.msrb.mxu1 %v5449_v2  ;;  %v5907_v0 = vld [vmem:[#allocation10 + $0x28] sm:$0xff]  ;;  %772 = vmatmul.f32.vlgmr.msrb.gmra.mxu3 %v10073_v31 }
  0xaa   :  { %10133 = vst [vmem:[#allocation105_spill] sm:$0xff] %v5881_v22  ;;  %629 = vmatpush.msrb.mxu0 %v5895_v46  ;;  %669 = vmatpush.msra.mxu2 %v5897_v16  ;;  %v5901_v22 = vld [vmem:[#allocation8] sm:$0xf] }
  0xab   :  { %10134 = vst [vmem:[#allocation106_spill] sm:$0xff] %v5883_v38  ;;  %900 = vmatpush.msra.mxu3 %v5453_v3  ;;  %861 = vmatpush.msrb.mxu1 %v5455_v4  ;;  %v5918_v2 = vperm.slane %v5901_v22, 0  ;;  %v5922_v3 = vld [vmem:[#allocation10 + $0x1f0] sm:$0xff] }
  0xac   :  { %10135 = vst [vmem:[#allocation107_spill] sm:$0xff] %v5887_v19  ;;  %670 = vmatpush.msra.mxu2 %v5907_v0  ;;  %v5932_v19 = vld [vmem:[#allocation10 + $0x1d8] sm:$0xff] }
  0xad   :  { %10136 = vst [vmem:[#allocation108_spill] sm:$0xff] %v5889_v12  ;;  %v5905_v12 = vld [vmem:[#allocation10 + $0x20] sm:$0xff]  ;;  %901 = vmatpush.msra.mxu3 %v5457_v5  ;;  %862 = vmatpush.msrb.mxu1 %v5461_v6  ;;  %v5930_v5 = vld [vmem:[#allocation10 + $0x1d0] sm:$0xff] }
  0xae   :  { %10137 = vst [vmem:[#allocation109_spill] sm:$0xff] %v5895_v46  ;;  %630 = vmatpush.msrb.mxu0 %v5905_v12  ;;  %v5915_v46 = vld [vmem:[#allocation10 + $0x8] sm:$0xff]  ;;  %v5939_v6 = vld [vmem:[#allocation10 + $0x1b0] sm:$0xff] }
  0xaf   :  { %10138 = vst [vmem:[#allocation110_spill] sm:$0xff] %v5897_v16  ;;  %v5913_v16 = vld [vmem:[#allocation10] sm:$0xff]  ;;  %671 = vmatpush.msra.mxu2 %v5915_v46  ;;  %902 = vmatpush.msra.mxu3 %v5463_v7  ;;  %v5941_v7 = vld [vmem:[#allocation10 + $0x1b8] sm:$0xff] }
  0xb0   :  { %10139 = vst [vmem:[#allocation111_spill] sm:$0xff] %v5905_v12  ;;  %631 = vmatpush.msrb.mxu0 %v5913_v16  ;;  %v5924_v12 = vld [vmem:[#allocation10 + $0x1f8] sm:$0xff]  ;;  %863 = vmatpush.msrb.mxu1 %v5467_v10  ;;  %v5950_v10 = vld [vmem:[#allocation10 + $0x190] sm:$0xff] }
  0xb1   :  { %10140 = vst [vmem:[#allocation112_spill] sm:$0xff] %v5907_v0  ;;  %736 = vmatpush.msrb.mxu2 %v5924_v12  ;;  %903 = vmatpush.msra.mxu3 %v5469_v11  ;;  %v5952_v11 = vld [vmem:[#allocation10 + $0x198] sm:$0xff] }
  0xb2   :  { %10141 = vst [vmem:[#allocation113_spill] sm:$0xff] %v5915_v46  ;;  %696 = vmatpush.msra.mxu0 %v5922_v3  ;;  %864 = vmatpush.msrb.mxu1 %v5473_v13 }
  0xb3   :  { %10142 = vst [vmem:[#allocation114_spill] sm:$0xff] %v5918_v2  ;;  %737 = vmatpush.msrb.mxu2 %v5932_v19  ;;  %904 = vmatpush.msra.mxu3 %v5475_v15  ;;  %v5958_v15 = vld [vmem:[#allocation10 + $0x170] sm:$0xff] }
  0xb4   :  { %697 = vmatpush.msra.mxu0 %v5930_v5  ;;  %865 = vmatpush.msrb.mxu1 %v5479_v20  ;;  %v5967_v20 = vld [vmem:[#allocation10 + $0x150] sm:$0xff] }
  0xb5   :  { %738 = vmatpush.msrb.mxu2 %v5941_v7  ;;  %905 = vmatpush.msra.mxu3 %v5481_v21  ;;  %v5969_v21 = vld [vmem:[#allocation10 + $0x158] sm:$0xff] }
  0xb6   :  { %698 = vmatpush.msra.mxu0 %v5939_v6  ;;  %866 = vmatpush.msrb.mxu1 %v5485_v24  ;;  %v5975_v24 = vld [vmem:[#allocation10 + $0x130] sm:$0xff] }
  0xb7   :  { %739 = vmatpush.msrb.mxu2 %v5952_v11  ;;  %906 = vmatpush.msra.mxu3 %v5487_v25  ;;  %v5977_v25 = vld [vmem:[#allocation10 + $0x138] sm:$0xff] }
  0xb8   :  { %699 = vmatpush.msra.mxu0 %v5950_v10  ;;  %867 = vmatpush.msrb.mxu1 %v5491_v28  ;;  %v5983_v28 = vld [vmem:[#allocation10 + $0x110] sm:$0xff] }
  0xb9   :  { %907 = vmatpush.msra.mxu3 %v5493_v29  ;;  %v5985_v29 = vld [vmem:[#allocation10 + $0x118] sm:$0xff] }
  0xba   :  { %700 = vmatpush.msra.mxu0 %v5958_v15  ;;  %868 = vmatpush.msrb.mxu1 %v5497_v32  ;;  %v5992_v32 = vperm.slane %v5901_v22, 1 }
  0xbb   :  { %908 = vmatpush.msra.mxu3 %v5499_v33  ;;  %v5996_v33 = vld [vmem:[#allocation10 + $0xf0] sm:$0xff] }
  0xbc   :  { %v5873_v62 = vpop.f32.mrf.mxu1  ;;  %701 = vmatpush.msra.mxu0 %v5967_v20  ;;  %869 = vmatpush.msrb.mxu1 %v5503_v36  ;;  %10144 = vst [vmem:[#allocation116_spill] sm:$0xff] %v5992_v32 }
  0xbd   :  { %909 = vmatpush.msra.mxu3 %v5505_v37  ;;  %v6005_v37 = vld [vmem:[#allocation10 + $0xd0] sm:$0xff] }
  0xbe   :  { %702 = vmatpush.msra.mxu0 %v5975_v24  ;;  %870 = vmatpush.msrb.mxu1 %v5509_v40 }
  0xbf   :  { %910 = vmatpush.msra.mxu3 %v5511_v41 }
  0xc0   :  { %v380_v1 = vpop.f32.mrf.mxu0  ;;  %703 = vmatpush.msra.mxu0 %v5983_v28  ;;  %871 = vmatpush.msrb.mxu1 %v5515_v44  ;;  %v6023_v44 = vld [vmem:[#allocation10 + $0x90] sm:$0xff] }
  0xc1   :  { %911 = vmatpush.msra.mxu3 %v5517_v45  ;;  %v6025_v45 = vld [vmem:[#allocation10 + $0x98] sm:$0xff] }
  0xc2   :  { %v440_v38 = vpop.f32.mrf.mxu3  ;;  %704 = vmatpush.msra.mxu0 %v5996_v33  ;;  %872 = vmatpush.msrb.mxu1 %v5521_v48  ;;  %v6031_v48 = vld [vmem:[#allocation10 + $0x70] sm:$0xff] }
  0xc3   :  { %912 = vmatpush.msra.mxu3 %v5523_v49  ;;  %v6033_v49 = vld [vmem:[#allocation10 + $0x78] sm:$0xff] }
  0xc4   :  { %705 = vmatpush.msra.mxu0 %v6005_v37  ;;  %873 = vmatpush.msrb.mxu1 %v5527_v52  ;;  %10145 = vst [vmem:[#allocation117_spill] sm:$0xff] %v6033_v49  ;;  %v6041_v52 = vld [vmem:[#allocation10 + $0x50] sm:$0xff] }
  0xc5   :  { %913 = vmatpush.msra.mxu3 %v5529_v53  ;;  %v6043_v53 = vld [vmem:[#allocation10 + $0x58] sm:$0xff] }
  0xc6   :  { %874 = vmatpush.msrb.mxu1 %v5533_v56  ;;  %v6053_v56 = vld [vmem:[#allocation10 + $0x30] sm:$0xff] }
  0xc7   :  { %914 = vmatpush.msra.mxu3 %v5535_v57  ;;  %v6055_v57 = vld [vmem:[#allocation10 + $0x38] sm:$0xff] }
  0xc8   :  { %951 = vmatpush.msra.mxu1 %v5574_v54 }
  0xc9   :  { %991 = vmatpush.msrb.mxu3 %v5539_v59 }
  0xca   :  { %952 = vmatpush.msra.mxu1 %v5583_v60 }
  0xcb   :  { %992 = vmatpush.msrb.mxu3 %v5543_v61  ;;  %v6071_v61 = vperm.slane %v5901_v22, 2 }
  0xcc   :  { %v468_v0 = vpop.f32.mrf.mxu1  ;;  %953 = vmatpush.msra.mxu1 %v5591_v8 }
  0xcd   :  { %v469_v4 = vadd.f32 %v468_v0, %v380_v1  ;;  %v5946_v1 = vperm.slane %v5901_v22, 3  ;;  %993 = vmatpush.msrb.mxu3 %v5546_v9  ;;  %10147 = vst [vmem:[#allocation119_spill] sm:$0xff] %v6071_v61 }
  0xce   :  { %954 = vmatpush.msra.mxu1 %v5601_v17 }
  0xcf   :  { %v540_v46 = vadd.f32 %v5918_v2, %v469_v4  ;;  %10143 = vst [vmem:[#allocation115_spill] sm:$0xff] %v5946_v1  ;;  %994 = vmatpush.msrb.mxu3 %v5551_v18 }
  0xd0   :  { %v420_v40 = vpop.f32.mrf.mxu2  ;;  %955 = vmatpush.msra.mxu1 %v5610_v23 }
  0xd1   :  { %v4088_v0 = vmul.f32 -1.442695, %v540_v46  ;;  %v5960_v46 = vld [vmem:[#allocation10 + $0x178] sm:$0xff]  ;;  %995 = vmatpush.msrb.mxu3 %v5554_v26 }
  0xd2   :  { %v528_v4 = vpop.f32.mrf.mxu3  ;;  %740 = vmatpush.msrb.mxu2 %v5960_v46  ;;  %956 = vmatpush.msra.mxu1 %v5619_v35 }
  0xd3   :  { %4178 = vpow2.f32 %v4088_v0  ;;  %v529_v13 = vadd.f32 %v528_v4, %v440_v38  ;;  %996 = vmatpush.msrb.mxu3 %v5559_v34 }
  0xd4   :  { %741 = vmatpush.msrb.mxu2 %v5969_v21  ;;  %957 = vmatpush.msra.mxu1 %v5626_v39 }
  0xd5   :  { %v543_v2 = vadd.f32 %v5946_v1, %v529_v13  ;;  %997 = vmatpush.msrb.mxu3 %v5563_v42 }
  0xd6   :  { %742 = vmatpush.msrb.mxu2 %v5977_v25  ;;  %958 = vmatpush.msra.mxu1 %v5633_v47 }
  0xd7   :  { %v4090_v0 = vmul.f32 -1.442695, %v543_v2  ;;  %v5998_v2 = vld [vmem:[#allocation10 + $0xf8] sm:$0xff]  ;;  %998 = vmatpush.msrb.mxu3 %v5569_v50 }
  0xd8   :  { %743 = vmatpush.msrb.mxu2 %v5985_v29 }
  0xd9   :  { %v4179_v38 = vpop.eup %4178  ;;  %4180 = vpow2.f32 %v4090_v0  ;;  %v6017_v0 = vld [vmem:[#allocation10 + $0xb8] sm:$0xff] }
  0xda   :  { %v5987_v4 = vadd.f32 1.0, %v4179_v38  ;;  %744 = vmatpush.msrb.mxu2 %v5998_v2  ;;  %v6007_v38 = vld [vmem:[#allocation10 + $0xd8] sm:$0xff] }
  0xdc   :  { %v488_v13 = vpop.f32.mrf.mxu1  ;;  %4182 = vrcp.f32 %v5987_v4  ;;  %745 = vmatpush.msrb.mxu2 %v6007_v38  ;;  %vm553_vm2 = vweird.f32 %v5987_v4  ;;  %v559_v26 = vand.u32 2147483648, %v5987_v4  ;;  %v557_v34 = vand.u32 2147483647, %v5987_v4 }
  0xdd   :  { %v489_v36 = vadd.f32 %v488_v13, %v5873_v62  ;;  %v6015_v62 = vld [vmem:[#allocation10 + $0xb0] sm:$0xff] }
  0xde   :  { %706 = vmatpush.msra.mxu0 %v6015_v62  ;;  %746 = vmatpush.msrb.mxu2 %v6017_v0  ;;  %vm558_vm7 = vcmp.eq.f32.partialorder %v557_v34, 8.507059e+37 }
  0xdf   :  { %v541_v41 = vadd.f32 %v5992_v32, %v489_v36  ;;  %v4181_v36 = vpop.eup %4180  ;;  %v508_v32 = vpop.f32.mrf.mxu2 }
  0xe0   :  { %707 = vmatpush.msra.mxu0 %v6023_v44  ;;  %747 = vmatpush.msrb.mxu2 %v6025_v45  ;;  %v6049_v1 = vadd.f32 1.0, %v4181_v36  ;;  %v6061_v36 = vld [vmem:[#allocation10 + $0x10] sm:$0xff]  ;;  %v509_v60 = vadd.f32 %v508_v32, %v420_v40 }
  0xe1   :  { %v4089_v13 = vmul.f32 -1.442695, %v541_v41 }
  0xe2   :  { %v6035_v41 = vpop.eup %4182  ;;  %708 = vmatpush.msra.mxu0 %v6031_v48  ;;  %748 = vmatpush.msrb.mxu2 %v6033_v49  ;;  %v6063_v49 = vld [vmem:[#allocation10 + $0x18] sm:$0xff]  ;;  %v542_v9 = vadd.f32 %v6071_v61, %v509_v60  ;;  %vm592_vm10 = vweird.f32 %v6049_v1 }
  0xe3   :  { %4184 = vpow2.f32 %v4089_v13  ;;  %v549_v13 = vmul.f32 %v6035_v41, %v5987_v4  ;;  %10146 = vst [vmem:[#allocation118_spill] sm:$0xff] %v6063_v49  ;;  %vm554_vm3 = vweird.f32 %v6035_v41 }
  0xe4   :  { %709 = vmatpush.msra.mxu0 %v6041_v52  ;;  %749 = vmatpush.msrb.mxu2 %v6043_v53  ;;  %4186 = vrcp.f32 %v6049_v1  ;;  %vm555_vm4 = vmor %vm553_vm2, %vm554_vm3 }
  0xe5   :  { %v550_v59 = vsub.f32 1.0, %v549_v13 }
  0xe6   :  { %710 = vmatpush.msra.mxu0 %v6053_v56  ;;  %750 = vmatpush.msrb.mxu2 %v6055_v57 }
  0xe7   :  { %v551_v13 = vmul.f32 %v6035_v41, %v550_v59  ;;  %v560_v59 = vor.u32 1.1754944e-38, %v559_v26 }
  0xe8   :  { %711 = vmatpush.msra.mxu0 %v6061_v36  ;;  %751 = vmatpush.msrb.mxu2 %v6063_v49 }
  0xe9   :  { %v4185_v31 = vpop.eup %4184  ;;  %v552_v40 = vadd.f32 %v6035_v41, %v551_v13 }
  0xea   :  { %v566_v54 = vadd.f32 1.0, %v4185_v31  ;;  %v4187_v8 = vpop.eup %4186 }
  0xeb   :  { %v588_v18 = vmul.f32 %v4187_v8, %v6049_v1  ;;  %v556_v31 = vsel %vm555_vm4, %v6035_v41, %v552_v40  ;;  %vm593_vm11 = vweird.f32 %v4187_v8  ;;  %v598_v41 = vand.u32 2147483648, %v6049_v1 }
  0xec   :  { %4188 = vrcp.f32 %v566_v54  ;;  %v578_v23 = vand.u32 2147483648, %v566_v54  ;;  %v576_v39 = vand.u32 2147483647, %v566_v54  ;;  %vm572_vm6 = vweird.f32 %v566_v54  ;;  %vm594_vm12 = vmor %vm592_vm10, %vm593_vm11 }
  0xed   :  { %4190 = vtanh.f32 %v542_v9  ;;  %v589_v42 = vsub.f32 1.0, %v588_v18  ;;  %v596_v18 = vand.u32 2147483647, %v6049_v1  ;;  %v599_v26 = vor.u32 1.1754944e-38, %v598_v41  ;;  %v6108_v1 = vld [vmem:[#allocation7 + $0x1f0] sm:$0xff]  ;;  %v6175_v41 = vld [vmem:[#allocation7 + $0xe0] sm:$0xff] }
  0xee   :  { %v579_v9 = vor.u32 1.1754944e-38, %v578_v23  ;;  %vm577_vm9 = vcmp.eq.f32.partialorder %v576_v39, 8.507059e+37  ;;  %v6125_v39 = vld [vmem:[#allocation7 + $0x1b0] sm:$0xff] }
  0xef   :  { %v590_v47 = vmul.f32 %v4187_v8, %v589_v42  ;;  %vm597_vm13 = vcmp.eq.f32.partialorder %v596_v18, 8.507059e+37  ;;  %v10148_v42 = vld [vmem:[#allocation23_spill] sm:$0xff]  ;;  %v6179_v18 = vld [vmem:[#allocation7 + $0xf0] sm:$0xff] }
  0xf2   :  { %v4189_v22 = vpop.eup %4188 }
  0xf3   :  { %v568_v32 = vmul.f32 %v4189_v22, %v566_v54  ;;  %vm573_vm5 = vweird.f32 %v4189_v22  ;;  %v4191_v13 = vpop.eup %4190  ;;  %v591_v54 = vadd.f32 %v4187_v8, %v590_v47  ;;  %v6171_v47 = vld [vmem:[#allocation7 + $0x110] sm:$0xff] }
  0xf4   :  { %vm574_vm8 = vmor %vm572_vm6, %vm573_vm5 }
  0xf5   :  { %v569_v17 = vsub.f32 1.0, %v568_v32  ;;  %v561_v32 = vsel %vm558_vm7, %v560_v59, %v556_v31  ;;  %v6121_v31 = vld [vmem:[#allocation7 + $0x1a0] sm:$0xff] }
  0xf6   :  { %v603_v49 = vmul.f32 %v4191_v13, %v561_v32  ;;  %v6159_v59 = vld [vmem:[#allocation7 + $0x120] sm:$0xff]  ;;  %v6163_v13 = vld [vmem:[#allocation7 + $0x130] sm:$0xff] }
  0xf7   :  { %v570_v35 = vmul.f32 %v4189_v22, %v569_v17  ;;  %v6167_v32 = vld [vmem:[#allocation7 + $0x100] sm:$0xff] }
  0xf9   :  { %v571_v60 = vadd.f32 %v4189_v22, %v570_v35  ;;  %v6104_v35 = vld [vmem:[#allocation7 + $0x1e0] sm:$0xff] }
  0xfb   :  { %v575_v4 = vsel %vm574_vm8, %v4189_v22, %v571_v60  ;;  %v595_v22 = vsel %vm594_vm12, %v4187_v8, %v591_v54  ;;  %v6117_v8 = vld [vmem:[#allocation7 + $0x1d0] sm:$0xff]  ;;  %v10149_v60 = vld [vmem:[#allocation34_spill] sm:$0xff] }
  0xfc   :  { %v580_v50 = vsel %vm577_vm9, %v579_v9, %v575_v4  ;;  %v600_v34 = vsel %vm597_vm13, %v599_v26, %v595_v22  ;;  %v10150_v9 = vld [vmem:[#allocation25_spill] sm:$0xff]  ;;  %v10151_v4 = vld [vmem:[#allocation36_spill] sm:$0xff]  ;;  %v10153_v54 = vld [vmem:[#allocation38_spill] sm:$0xff] }
  0xfd   :  { %v602_v61 = vmul.f32 0.0, %v580_v50  ;;  %v10152_v50 = vld [vmem:[#allocation27_spill] sm:$0xff]  ;;  %v10154_v26 = vld [vmem:[#allocation28_spill] sm:$0xff] }
  0xfe   :  { %v6183_v22 = vld [vmem:[#allocation7 + $0xc0] sm:$0xff] }
  0xff   :  { %v6096_v40 = vadd.f32 %v603_v49, %v602_v61  ;;  %v6112_v49 = vld [vmem:[#allocation7 + $0x1c0] sm:$0xff]  ;;  %v919_v61 = vrot.slane %v5566_v43, 1 }
 0x100   :  { %v6129_v43 = vld [vmem:[#allocation7 + $0x180] sm:$0xff] }
 0x101   :  { %4192 = vtanh.f32 %v6096_v40 }
 0x107   :  { %v4193_v17 = vpop.eup %4192 }
 0x108   :  { %v6100_v23 = vmul.f32 %v4193_v17, %v600_v34  ;;  %v10155_v17 = vld [vmem:[#allocation40_spill] sm:$0xff] }
 0x109   :  { %v6187_v34 = vld [vmem:[#allocation7 + $0xd0] sm:$0xff] }
 0x10a   :  { %632 = vmatmul.f32.vlgmr.msrb.gmra.mxu0 %v6100_v23  ;;  %672 = vmatmul.f32.vlgmr.msra.gmra.mxu2 %v6100_v23 }
 0x10b   :  { %839 = vmatpush.msrb.mxu0 %v6104_v35  ;;  %875 = vmatmul.f32.vlgmr.msrb.gmra.mxu1 %v6100_v23 }
 0x10c   :  { %879 = vmatpush.msra.mxu2 %v6108_v1  ;;  %915 = vmatmul.f32.vlgmr.msra.gmra.mxu3 %v6100_v23 }
 0x10d   :  { %840 = vmatpush.msrb.mxu0 %v6112_v49  ;;  %1090 = vmatpush.msrb.mxu1 %v5639_v30  ;;  %v6134_v30 = vsel %vm446_vm0, %v5556_v27, %v919_v61  ;;  %v6152_v27 = vld [vmem:[#allocation7 + $0x140] sm:$0xff]  ;;  %v10156_v61 = vld [vmem:[#allocation29_spill] sm:$0xff] }
 0x10e   :  { %880 = vmatpush.msra.mxu2 %v6117_v8  ;;  %1130 = vmatpush.msra.mxu3 %v5579_v58  ;;  %v6137_v58 = vld [vmem:[#allocation7 + $0x190] sm:$0xff] }
 0x10f   :  { %841 = vmatpush.msrb.mxu0 %v6121_v31  ;;  %1091 = vmatpush.msrb.mxu1 %v5646_v14  ;;  %v6142_v14 = vld [vmem:[#allocation7 + $0x160] sm:$0xff] }
 0x110   :  { %881 = vmatpush.msra.mxu2 %v6125_v39  ;;  %1131 = vmatpush.msra.mxu3 %v5589_v63  ;;  %v6145_v63 = vld [vmem:[#allocation7 + $0x170] sm:$0xff] }
 0x111   :  { %842 = vmatpush.msrb.mxu0 %v6129_v43  ;;  %1092 = vmatpush.msrb.mxu1 %v5652_v55  ;;  %v6155_v55 = vld [vmem:[#allocation7 + $0x150] sm:$0xff] }
 0x112   :  { %882 = vmatpush.msra.mxu2 %v6137_v58  ;;  %712 = vmatmul.f32.vlgmr.msra.gmra.mxu0 %v6100_v23 }
 0x113   :  { %752 = vmatmul.f32.vlgmr.msrb.gmra.mxu2 %v6100_v23  ;;  %843 = vmatpush.msrb.mxu0 %v6142_v14 }
 0x114   :  { %883 = vmatpush.msra.mxu2 %v6145_v63  ;;  %4095 = vmatmul.msk.f32.vlgmr.msra.gmra.mxu1 %vm448_vm1, %v6134_v30 }
 0x115   :  { %4097 = vmatmul.msk.f32.vlgmr.msrb.gmra.mxu3 %vm448_vm1, %v6134_v30  ;;  %844 = vmatpush.msrb.mxu0 %v6152_v27 }
 0x116   :  { %884 = vmatpush.msra.mxu2 %v6155_v55  ;;  %1132 = vmatpush.msra.mxu3 %v10148_v42  ;;  %v6191_v42 = vld [vmem:[#allocation7 + $0xa0] sm:$0xff] }
 0x117   :  { %845 = vmatpush.msrb.mxu0 %v6159_v59  ;;  %1093 = vmatpush.msrb.mxu1 %v10149_v60  ;;  %v10157_v60 = vld [vmem:[#allocation42_spill] sm:$0xff] }
 0x118   :  { %885 = vmatpush.msra.mxu2 %v6163_v13  ;;  %1133 = vmatpush.msra.mxu3 %v10150_v9  ;;  %v6195_v9 = vld [vmem:[#allocation7 + $0xb0] sm:$0xff] }
 0x119   :  { %846 = vmatpush.msrb.mxu0 %v6167_v32  ;;  %1094 = vmatpush.msrb.mxu1 %v10151_v4  ;;  %10158 = vst [vmem:[#allocation23_spill] sm:$0xff] %v6195_v9  ;;  %v10159_v4 = vld [vmem:[#allocation30_spill] sm:$0xff] }
 0x11a   :  { %886 = vmatpush.msra.mxu2 %v6171_v47  ;;  %1134 = vmatpush.msra.mxu3 %v10152_v50  ;;  %v6199_v50 = vld [vmem:[#allocation7 + $0x80] sm:$0xff] }
 0x11b   :  { %847 = vmatpush.msrb.mxu0 %v6175_v41  ;;  %1095 = vmatpush.msrb.mxu1 %v10153_v54  ;;  %10160 = vst [vmem:[#allocation34_spill] sm:$0xff] %v6199_v50  ;;  %v10161_v54 = vld [vmem:[#allocation44_spill] sm:$0xff] }
 0x11c   :  { %887 = vmatpush.msra.mxu2 %v6179_v18  ;;  %1135 = vmatpush.msra.mxu3 %v10154_v26  ;;  %v6203_v26 = vld [vmem:[#allocation7 + $0x90] sm:$0xff] }
 0x11d   :  { %848 = vmatpush.msrb.mxu0 %v6183_v22  ;;  %1096 = vmatpush.msrb.mxu1 %v10155_v17  ;;  %10162 = vst [vmem:[#allocation25_spill] sm:$0xff] %v6203_v26  ;;  %v10163_v17 = vld [vmem:[#allocation31_spill] sm:$0xff] }
 0x11e   :  { %888 = vmatpush.msra.mxu2 %v6187_v34  ;;  %1136 = vmatpush.msra.mxu3 %v10156_v61  ;;  %v6207_v61 = vld [vmem:[#allocation7 + $0x60] sm:$0xff] }
 0x11f   :  { %849 = vmatpush.msrb.mxu0 %v6191_v42  ;;  %1097 = vmatpush.msrb.mxu1 %v10157_v60  ;;  %10164 = vst [vmem:[#allocation36_spill] sm:$0xff] %v6207_v61  ;;  %v10165_v60 = vld [vmem:[#allocation45_spill] sm:$0xff] }
 0x120   :  { %889 = vmatpush.msra.mxu2 %v6195_v9  ;;  %1137 = vmatpush.msra.mxu3 %v10159_v4  ;;  %v6211_v9 = vld [vmem:[#allocation7 + $0x70] sm:$0xff] }
 0x121   :  { %850 = vmatpush.msrb.mxu0 %v6199_v50  ;;  %1098 = vmatpush.msrb.mxu1 %v10161_v54  ;;  %10166 = vst [vmem:[#allocation27_spill] sm:$0xff] %v6211_v9  ;;  %v10167_v4 = vld [vmem:[#allocation32_spill] sm:$0xff]  ;;  %v6215_v50 = vld [vmem:[#allocation7 + $0x40] sm:$0xff] }
 0x122   :  { %890 = vmatpush.msra.mxu2 %v6203_v26  ;;  %1138 = vmatpush.msra.mxu3 %v10163_v17  ;;  %10168 = vst [vmem:[#allocation38_spill] sm:$0xff] %v6215_v50  ;;  %v10169_v54 = vld [vmem:[#allocation46_spill] sm:$0xff]  ;;  %v6219_v26 = vld [vmem:[#allocation7 + $0x50] sm:$0xff] }
 0x123   :  { %851 = vmatpush.msrb.mxu0 %v6207_v61  ;;  %1099 = vmatpush.msrb.mxu1 %v10165_v60  ;;  %10170 = vst [vmem:[#allocation28_spill] sm:$0xff] %v6219_v26  ;;  %v10171_v17 = vld [vmem:[#allocation33_spill] sm:$0xff]  ;;  %v6223_v61 = vld [vmem:[#allocation7 + $0x20] sm:$0xff] }
 0x124   :  { %891 = vmatpush.msra.mxu2 %v6211_v9  ;;  %1139 = vmatpush.msra.mxu3 %v10167_v4  ;;  %10172 = vst [vmem:[#allocation40_spill] sm:$0xff] %v6223_v61  ;;  %v10173_v60 = vld [vmem:[#allocation47_spill] sm:$0xff]  ;;  %v6227_v9 = vld [vmem:[#allocation7 + $0x30] sm:$0xff] }
 0x125   :  { %852 = vmatpush.msrb.mxu0 %v6215_v50  ;;  %1100 = vmatpush.msrb.mxu1 %v10169_v54  ;;  %10174 = vst [vmem:[#allocation29_spill] sm:$0xff] %v6227_v9  ;;  %v10175_v4 = vld [vmem:[#allocation35_spill] sm:$0xff]  ;;  %v10177_v54 = vld [vmem:[#allocation48_spill] sm:$0xff] }
 0x126   :  { %892 = vmatpush.msra.mxu2 %v6219_v26  ;;  %1140 = vmatpush.msra.mxu3 %v10171_v17  ;;  %v6231_v50 = vld [vmem:[#allocation7] sm:$0xff]  ;;  %v6235_v26 = vld [vmem:[#allocation7 + $0x10] sm:$0xff] }
 0x127   :  { %853 = vmatpush.msrb.mxu0 %v6223_v61  ;;  %1101 = vmatpush.msrb.mxu1 %v10173_v60  ;;  %10176 = vst [vmem:[#allocation42_spill] sm:$0xff] %v6231_v50  ;;  %v6240_v17 = vld [vmem:[#allocation5 + $0xe0] sm:$0xff]  ;;  %v6243_v60 = vld [vmem:[#allocation5 + $0xf0] sm:$0xff] }
 0x128   :  { %893 = vmatpush.msra.mxu2 %v6227_v9  ;;  %1141 = vmatpush.msra.mxu3 %v10175_v4  ;;  %10178 = vst [vmem:[#allocation30_spill] sm:$0xff] %v6235_v26  ;;  %v10181_v4 = vld [vmem:[#allocation37_spill] sm:$0xff]  ;;  %v6255_v9 = vld [vmem:[#allocation5 + $0xa0] sm:$0xff] }
 0x129   :  { %854 = vmatpush.msrb.mxu0 %v6231_v50  ;;  %1102 = vmatpush.msrb.mxu1 %v10177_v54  ;;  %10179 = vst [vmem:[#allocation44_spill] sm:$0xff] %v6240_v17  ;;  %v6247_v50 = vld [vmem:[#allocation5 + $0xc0] sm:$0xff]  ;;  %v10183_v54 = vld [vmem:[#allocation49_spill] sm:$0xff] }
 0x12a   :  { %894 = vmatpush.msra.mxu2 %v6235_v26  ;;  %855 = vmatmul.f32.vlgmr.msrb.gmra.mxu0 %v6100_v23  ;;  %10180 = vst [vmem:[#allocation31_spill] sm:$0xff] %v6243_v60  ;;  %v6251_v26 = vld [vmem:[#allocation5 + $0xd0] sm:$0xff]  ;;  %v6269_v61 = vld [vmem:[#allocation5 + $0x60] sm:$0xff] }
 0x12b   :  { %895 = vmatmul.f32.vlgmr.msra.gmra.mxu2 %v6100_v23  ;;  %931 = vmatpush.msra.mxu0 %v6240_v17  ;;  %10182 = vst [vmem:[#allocation45_spill] sm:$0xff] %v6247_v50  ;;  %v10185_v23 = vld [vmem:[#allocation39_spill] sm:$0xff]  ;;  %v10187_v17 = vld [vmem:[#allocation50_spill] sm:$0xff] }
 0x12c   :  { %971 = vmatpush.msrb.mxu2 %v6243_v60  ;;  %1142 = vmatpush.msra.mxu3 %v10181_v4  ;;  %10184 = vst [vmem:[#allocation32_spill] sm:$0xff] %v6251_v26  ;;  %v6259_v60 = vld [vmem:[#allocation5 + $0xb0] sm:$0xff] }
 0x12d   :  { %932 = vmatpush.msra.mxu0 %v6247_v50  ;;  %1103 = vmatpush.msrb.mxu1 %v10183_v54  ;;  %10186 = vst [vmem:[#allocation46_spill] sm:$0xff] %v6255_v9  ;;  %v10189_v4 = vld [vmem:[#allocation41_spill] sm:$0xff]  ;;  %v6263_v50 = vld [vmem:[#allocation5 + $0x80] sm:$0xff] }
 0x12e   :  { %972 = vmatpush.msrb.mxu2 %v6251_v26  ;;  %1143 = vmatpush.msra.mxu3 %v10185_v23  ;;  %10188 = vst [vmem:[#allocation33_spill] sm:$0xff] %v6259_v60  ;;  %v10191_v54 = vld [vmem:[#allocation51_spill] sm:$0xff]  ;;  %v10192_v26 = vld [vmem:[#allocation20_spill] sm:$0xff] }
 0x12f   :  { %933 = vmatpush.msra.mxu0 %v6255_v9  ;;  %1104 = vmatpush.msrb.mxu1 %v10187_v17  ;;  %10190 = vst [vmem:[#allocation47_spill] sm:$0xff] %v6263_v50  ;;  %v10193_v23 = vld [vmem:[#allocation43_spill] sm:$0xff]  ;;  %v10195_v17 = vld [vmem:[#allocation52_spill] sm:$0xff]  ;;  %v10196_v9 = vld [vmem:[#allocation21_spill] sm:$0xff] }
 0x130   :  { %973 = vmatpush.msrb.mxu2 %v6259_v60  ;;  %1144 = vmatpush.msra.mxu3 %v10189_v4  ;;  %10194 = vst [vmem:[#allocation35_spill] sm:$0xff] %v6269_v61  ;;  %v10197_v60 = vld [vmem:[#allocation53_spill] sm:$0xff]  ;;  %v6275_v4 = vld [vmem:[#allocation5 + $0x40] sm:$0xff] }
 0x131   :  { %934 = vmatpush.msra.mxu0 %v6263_v50  ;;  %1105 = vmatpush.msrb.mxu1 %v10191_v54  ;;  %10198 = vst [vmem:[#allocation48_spill] sm:$0xff] %v6275_v4  ;;  %v10199_v50 = vld [vmem:[#allocation54_spill] sm:$0xff] }
 0x132   :  { %974 = vmatpush.msrb.mxu2 %v10192_v26  ;;  %1145 = vmatpush.msra.mxu3 %v10193_v23  ;;  %v10200_v54 = vld [vmem:[#allocation22_spill] sm:$0xff]  ;;  %v10201_v26 = vld [vmem:[#allocation55_spill] sm:$0xff] }
 0x133   :  { %935 = vmatpush.msra.mxu0 %v6269_v61  ;;  %1170 = vmatpush.msra.mxu1 %v10195_v17  ;;  %v6281_v23 = vld [vmem:[#allocation5 + $0x20] sm:$0xff]  ;;  %v10203_v61 = vld [vmem:[#allocation56_spill] sm:$0xff] }
 0x134   :  { %975 = vmatpush.msrb.mxu2 %v10196_v9  ;;  %1210 = vmatpush.msrb.mxu3 %v10197_v60  ;;  %10202 = vst [vmem:[#allocation37_spill] sm:$0xff] %v6281_v23  ;;  %v10204_v17 = vld [vmem:[#allocation24_spill] sm:$0xff]  ;;  %v10205_v9 = vld [vmem:[#allocation57_spill] sm:$0xff]  ;;  %v6287_v60 = vld [vmem:[#allocation5] sm:$0xff] }
 0x135   :  { %936 = vmatpush.msra.mxu0 %v6275_v4  ;;  %1171 = vmatpush.msra.mxu1 %v10199_v50  ;;  %10206 = vst [vmem:[#allocation49_spill] sm:$0xff] %v6287_v60  ;;  %v10207_v50 = vld [vmem:[#allocation26_spill] sm:$0xff]  ;;  %v10217_v4 = vld [vmem:[#allocation67_spill] sm:$0xff] }
 0x136   :  { %976 = vmatpush.msrb.mxu2 %v10200_v54  ;;  %1211 = vmatpush.msrb.mxu3 %v10201_v26  ;;  %v10208_v54 = vld [vmem:[#allocation58_spill] sm:$0xff]  ;;  %v10210_v26 = vld [vmem:[#allocation60_spill] sm:$0xff] }
 0x137   :  { %937 = vmatpush.msra.mxu0 %v6281_v23  ;;  %1172 = vmatpush.msra.mxu1 %v10203_v61  ;;  %v10209_v61 = vld [vmem:[#allocation59_spill] sm:$0xff]  ;;  %v10216_v23 = vld [vmem:[#allocation66_spill] sm:$0xff] }
 0x138   :  { %977 = vmatpush.msrb.mxu2 %v10204_v17  ;;  %1212 = vmatpush.msrb.mxu3 %v10205_v9  ;;  %v10211_v17 = vld [vmem:[#allocation61_spill] sm:$0xff]  ;;  %v10212_v9 = vld [vmem:[#allocation62_spill] sm:$0xff] }
 0x139   :  { %938 = vmatpush.msra.mxu0 %v6287_v60  ;;  %1173 = vmatpush.msra.mxu1 %v5735_v51  ;;  %v10213_v60 = vld [vmem:[#allocation63_spill] sm:$0xff]  ;;  %v10214_v51 = vld [vmem:[#allocation64_spill] sm:$0xff] }
 0x13a   :  { %978 = vmatpush.msrb.mxu2 %v10207_v50  ;;  %4094 = vmatmul.msk.f32.vlgmr.msra.gmra.mxu0 %vm448_vm1, %v6134_v30  ;;  %v10215_v50 = vld [vmem:[#allocation65_spill] sm:$0xff] }
 0x13b   :  { %4096 = vmatmul.msk.f32.vlgmr.msrb.gmra.mxu2 %vm448_vm1, %v6134_v30  ;;  %1213 = vmatpush.msrb.mxu3 %v10208_v54  ;;  %v10218_v30 = vld [vmem:[#allocation68_spill] sm:$0xff]  ;;  %v10219_v54 = vld [vmem:[#allocation69_spill] sm:$0xff] }
 0x13c   :  { %1070 = vmatpush.msrb.mxu0 %v10209_v61  ;;  %1110 = vmatpush.msra.mxu2 %v10210_v26  ;;  %v10220_v61 = vld [vmem:[#allocation70_spill] sm:$0xff]  ;;  %v10221_v26 = vld [vmem:[#allocation71_spill] sm:$0xff] }
 0x13d   :  { %1174 = vmatpush.msra.mxu1 %v10211_v17  ;;  %1214 = vmatpush.msrb.mxu3 %v10212_v9  ;;  %v10222_v17 = vld [vmem:[#allocation72_spill] sm:$0xff]  ;;  %v10223_v9 = vld [vmem:[#allocation73_spill] sm:$0xff] }
 0x13e   :  { %1071 = vmatpush.msrb.mxu0 %v10213_v60  ;;  %1111 = vmatpush.msra.mxu2 %v10214_v51  ;;  %v10224_v60 = vld [vmem:[#allocation74_spill] sm:$0xff]  ;;  %v10225_v51 = vld [vmem:[#allocation75_spill] sm:$0xff] }
 0x13f   :  { %1175 = vmatpush.msra.mxu1 %v10215_v50  ;;  %1215 = vmatpush.msrb.mxu3 %v10216_v23  ;;  %v10226_v50 = vld [vmem:[#allocation76_spill] sm:$0xff]  ;;  %v10227_v23 = vld [vmem:[#allocation77_spill] sm:$0xff] }
 0x140   :  { %1072 = vmatpush.msrb.mxu0 %v10217_v4  ;;  %1112 = vmatpush.msra.mxu2 %v10218_v30  ;;  %v10228_v4 = vld [vmem:[#allocation78_spill] sm:$0xff]  ;;  %v10229_v30 = vld [vmem:[#allocation79_spill] sm:$0xff] }
 0x141   :  { %1176 = vmatpush.msra.mxu1 %v10219_v54  ;;  %1216 = vmatpush.msrb.mxu3 %v10220_v61  ;;  %v10230_v54 = vld [vmem:[#allocation80_spill] sm:$0xff]  ;;  %v10231_v61 = vld [vmem:[#allocation81_spill] sm:$0xff] }
 0x142   :  { %1073 = vmatpush.msrb.mxu0 %v10221_v26  ;;  %1113 = vmatpush.msra.mxu2 %v10222_v17  ;;  %v10232_v26 = vld [vmem:[#allocation82_spill] sm:$0xff]  ;;  %v10233_v17 = vld [vmem:[#allocation83_spill] sm:$0xff] }
 0x143   :  { %1177 = vmatpush.msra.mxu1 %v10223_v9  ;;  %1217 = vmatpush.msrb.mxu3 %v10224_v60  ;;  %v10234_v9 = vld [vmem:[#allocation84_spill] sm:$0xff]  ;;  %v10235_v60 = vld [vmem:[#allocation85_spill] sm:$0xff] }
 0x144   :  { %1074 = vmatpush.msrb.mxu0 %v10225_v51  ;;  %1114 = vmatpush.msra.mxu2 %v10226_v50  ;;  %v10236_v51 = vld [vmem:[#allocation86_spill] sm:$0xff]  ;;  %v10237_v50 = vld [vmem:[#allocation87_spill] sm:$0xff] }
 0x145   :  { %1178 = vmatpush.msra.mxu1 %v10227_v23  ;;  %1218 = vmatpush.msrb.mxu3 %v10228_v4  ;;  %v10238_v23 = vld [vmem:[#allocation88_spill] sm:$0xff]  ;;  %v10239_v4 = vld [vmem:[#allocation89_spill] sm:$0xff] }
 0x146   :  { %1075 = vmatpush.msrb.mxu0 %v10229_v30  ;;  %1115 = vmatpush.msra.mxu2 %v10230_v54  ;;  %v10240_v30 = vld [vmem:[#allocation90_spill] sm:$0xff]  ;;  %v10241_v54 = vld [vmem:[#allocation91_spill] sm:$0xff] }
 0x147   :  { %1179 = vmatpush.msra.mxu1 %v10231_v61  ;;  %1219 = vmatpush.msrb.mxu3 %v10232_v26  ;;  %v10242_v61 = vld [vmem:[#allocation92_spill] sm:$0xff]  ;;  %v10243_v26 = vld [vmem:[#allocation93_spill] sm:$0xff] }
 0x148   :  { %1076 = vmatpush.msrb.mxu0 %v10233_v17  ;;  %1116 = vmatpush.msra.mxu2 %v10234_v9  ;;  %v10244_v17 = vld [vmem:[#allocation94_spill] sm:$0xff]  ;;  %v10245_v9 = vld [vmem:[#allocation95_spill] sm:$0xff] }
 0x149   :  { %1180 = vmatpush.msra.mxu1 %v10235_v60  ;;  %1220 = vmatpush.msrb.mxu3 %v10236_v51  ;;  %v10246_v60 = vld [vmem:[#allocation96_spill] sm:$0xff]  ;;  %v10247_v51 = vld [vmem:[#allocation97_spill] sm:$0xff] }
 0x14a   :  { %1077 = vmatpush.msrb.mxu0 %v10237_v50  ;;  %1117 = vmatpush.msra.mxu2 %v10238_v23  ;;  %v10248_v50 = vld [vmem:[#allocation98_spill] sm:$0xff]  ;;  %v10249_v23 = vld [vmem:[#allocation99_spill] sm:$0xff] }
 0x14b   :  { %1181 = vmatpush.msra.mxu1 %v10239_v4  ;;  %1221 = vmatpush.msrb.mxu3 %v10240_v30  ;;  %v10250_v4 = vld [vmem:[#allocation100_spill] sm:$0xff]  ;;  %v10251_v30 = vld [vmem:[#allocation101_spill] sm:$0xff] }
 0x14c   :  { %1078 = vmatpush.msrb.mxu0 %v10241_v54  ;;  %1118 = vmatpush.msra.mxu2 %v10242_v61  ;;  %v10252_v54 = vld [vmem:[#allocation102_spill] sm:$0xff]  ;;  %v10253_v61 = vld [vmem:[#allocation103_spill] sm:$0xff] }
 0x14d   :  { %1182 = vmatpush.msra.mxu1 %v10243_v26  ;;  %1222 = vmatpush.msrb.mxu3 %v10244_v17  ;;  %v10254_v26 = vld [vmem:[#allocation104_spill] sm:$0xff]  ;;  %v10255_v17 = vld [vmem:[#allocation105_spill] sm:$0xff] }
 0x14e   :  { %1079 = vmatpush.msrb.mxu0 %v10245_v9  ;;  %1119 = vmatpush.msra.mxu2 %v10246_v60  ;;  %v10256_v9 = vld [vmem:[#allocation106_spill] sm:$0xff]  ;;  %v10257_v60 = vld [vmem:[#allocation107_spill] sm:$0xff] }
 0x14f   :  { %1183 = vmatpush.msra.mxu1 %v10247_v51  ;;  %1223 = vmatpush.msrb.mxu3 %v10248_v50  ;;  %v10258_v51 = vld [vmem:[#allocation108_spill] sm:$0xff]  ;;  %v10259_v50 = vld [vmem:[#allocation109_spill] sm:$0xff] }
 0x150   :  { %1080 = vmatpush.msrb.mxu0 %v10249_v23  ;;  %1120 = vmatpush.msra.mxu2 %v10250_v4  ;;  %v10260_v23 = vld [vmem:[#allocation110_spill] sm:$0xff]  ;;  %v10261_v4 = vld [vmem:[#allocation111_spill] sm:$0xff] }
 0x151   :  { %1184 = vmatpush.msra.mxu1 %v10251_v30  ;;  %1224 = vmatpush.msrb.mxu3 %v10252_v54  ;;  %v10262_v30 = vld [vmem:[#allocation112_spill] sm:$0xff]  ;;  %v10263_v54 = vld [vmem:[#allocation113_spill] sm:$0xff] }
 0x152   :  { %1081 = vmatpush.msrb.mxu0 %v10253_v61  ;;  %1121 = vmatpush.msra.mxu2 %v10254_v26 }
 0x153   :  { %1185 = vmatpush.msra.mxu1 %v10255_v17  ;;  %1225 = vmatpush.msrb.mxu3 %v10256_v9 }
 0x154   :  { %1082 = vmatpush.msrb.mxu0 %v10257_v60  ;;  %1122 = vmatpush.msra.mxu2 %v10258_v51 }
 0x156   :  { %1083 = vmatpush.msrb.mxu0 %v10259_v50  ;;  %1123 = vmatpush.msra.mxu2 %v10260_v23 }
 0x158   :  { %1084 = vmatpush.msrb.mxu0 %v10261_v4  ;;  %1124 = vmatpush.msra.mxu2 %v10262_v30  ;;  %v10269_v4 = vld [vmem:[#allocation116_spill] sm:$0xff] }
 0x15a   :  { %1085 = vmatpush.msrb.mxu0 %v5913_v16  ;;  %1125 = vmatpush.msra.mxu2 %v10263_v54  ;;  %v10265_v16 = vld [vmem:[#allocation118_spill] sm:$0xff] }
 0x15c   :  { %1150 = vmatpush.msra.mxu0 %v5922_v3  ;;  %1190 = vmatpush.msrb.mxu2 %v5924_v12  ;;  %v10264_v12 = vld [vmem:[#allocation117_spill] sm:$0xff]  ;;  %v362_v3 = vld [vmem:[#allocation11] sm:$0xf] }
 0x15e   :  { %1151 = vmatpush.msra.mxu0 %v5930_v5  ;;  %1191 = vmatpush.msrb.mxu2 %v5932_v19  ;;  %v653_v19 = vpop.f32.mrf.mxu1  ;;  %v6385_v5 = vperm.slane %v362_v3, 0 }
 0x160   :  { %1152 = vmatpush.msra.mxu0 %v5939_v6  ;;  %1192 = vmatpush.msrb.mxu2 %v5941_v7  ;;  %10266 = vst [vmem:[#allocation39_spill] sm:$0xff] %v6385_v5 }
 0x162   :  { %1153 = vmatpush.msra.mxu0 %v5950_v10  ;;  %1193 = vmatpush.msrb.mxu2 %v5952_v11 }
 0x164   :  { %1154 = vmatpush.msra.mxu0 %v5958_v15  ;;  %1194 = vmatpush.msrb.mxu2 %v5960_v46  ;;  %v6388_v15 = vperm.slane %v362_v3, 1  ;;  %v693_v46 = vpop.f32.mrf.mxu3 }
 0x166   :  { %1155 = vmatpush.msra.mxu0 %v5967_v20  ;;  %1195 = vmatpush.msrb.mxu2 %v5969_v21  ;;  %v733_v7 = vpop.f32.mrf.mxu1  ;;  %10267 = vst [vmem:[#allocation50_spill] sm:$0xff] %v6388_v15 }
 0x168   :  { %1156 = vmatpush.msra.mxu0 %v5975_v24  ;;  %1196 = vmatpush.msrb.mxu2 %v5977_v25 }
 0x16a   :  { %1157 = vmatpush.msra.mxu0 %v5983_v28  ;;  %1197 = vmatpush.msrb.mxu2 %v5985_v29 }
 0x16c   :  { %1158 = vmatpush.msra.mxu0 %v5996_v33  ;;  %1198 = vmatpush.msrb.mxu2 %v5998_v2  ;;  %v6391_v2 = vperm.slane %v362_v3, 3 }
 0x16e   :  { %1159 = vmatpush.msra.mxu0 %v6005_v37  ;;  %1199 = vmatpush.msrb.mxu2 %v6007_v38  ;;  %10268 = vst [vmem:[#allocation41_spill] sm:$0xff] %v6391_v2  ;;  %v773_v37 = vpop.f32.mrf.mxu3 }
 0x170   :  { %1160 = vmatpush.msra.mxu0 %v6015_v62  ;;  %1200 = vmatpush.msrb.mxu2 %v6017_v0 }
 0x172   :  { %1161 = vmatpush.msra.mxu0 %v6023_v44  ;;  %1201 = vmatpush.msrb.mxu2 %v6025_v45  ;;  %v6394_v45 = vperm.slane %v362_v3, 2 }
 0x174   :  { %1162 = vmatpush.msra.mxu0 %v6031_v48  ;;  %1202 = vmatpush.msrb.mxu2 %v10264_v12 }
 0x176   :  { %1163 = vmatpush.msra.mxu0 %v6041_v52  ;;  %1203 = vmatpush.msrb.mxu2 %v6043_v53 }
 0x178   :  { %1164 = vmatpush.msra.mxu0 %v6053_v56  ;;  %1204 = vmatpush.msrb.mxu2 %v6055_v57 }
 0x17a   :  { %1165 = vmatpush.msra.mxu0 %v6061_v36  ;;  %1205 = vmatpush.msrb.mxu2 %v10265_v16 }
 0x187   :  { %v633_v6 = vpop.f32.mrf.mxu0 }
 0x188   :  { %v634_v10 = vadd.f32 %v633_v6, %v6385_v5  ;;  %v876_v28 = vpop.f32.mrf.mxu1 }
 0x18a   :  { %v654_v11 = vadd.f32 %v653_v19, %v634_v10 }
 0x18c   :  { %v4091_v20 = vmul.f32 -1.442695, %v654_v11 }
 0x18d   :  { %v673_v21 = vpop.f32.mrf.mxu2 }
 0x18e   :  { %4194 = vpow2.f32 %v4091_v20  ;;  %v674_v24 = vadd.f32 %v673_v21, %v6388_v15 }
 0x18f   :  { %v713_v53 = vpop.f32.mrf.mxu0  ;;  %v916_v17 = vpop.f32.mrf.mxu3 }
 0x190   :  { %v694_v25 = vadd.f32 %v693_v46, %v674_v24  ;;  %v714_v26 = vadd.f32 %v713_v53, %v6394_v45 }
 0x191   :  { %v960_v56 = vpop.f32.mrf.mxu1 }
 0x192   :  { %v4092_v29 = vmul.f32 -1.442695, %v694_v25  ;;  %v961_v9 = vadd.f32 %v960_v56, %v876_v28  ;;  %v734_v51 = vadd.f32 %v733_v7, %v714_v26 }
 0x194   :  { %v4195_v33 = vpop.eup %4194  ;;  %4196 = vpow2.f32 %v4092_v29  ;;  %v1004_v30 = vadd.f32 %v961_v9, %v10269_v4 }
 0x195   :  { %v779_v38 = vadd.f32 1.0, %v4195_v33 }
 0x196   :  { %v753_v62 = vpop.f32.mrf.mxu2  ;;  %v4099_v46 = vmul.f32 -1.442695, %v1004_v30 }
 0x197   :  { %4198 = vrcp.f32 %v779_v38  ;;  %v754_v0 = vadd.f32 %v753_v62, %v6391_v2  ;;  %v791_v19 = vand.u32 2147483648, %v779_v38  ;;  %vm785_vm15 = vweird.f32 %v779_v38 }
 0x198   :  { %v789_v10 = vand.u32 2147483647, %v779_v38  ;;  %v1000_v25 = vpop.f32.mrf.mxu3 }
 0x199   :  { %v774_v48 = vadd.f32 %v773_v37, %v754_v0  ;;  %v792_v24 = vor.u32 1.1754944e-38, %v791_v19 }
 0x19a   :  { %v4197_v44 = vpop.eup %4196  ;;  %vm790_vm5 = vcmp.eq.f32.partialorder %v789_v10, 8.507059e+37 }
 0x19b   :  { %v798_v52 = vadd.f32 1.0, %v4197_v44  ;;  %v4093_v57 = vmul.f32 -1.442695, %v774_v48 }
 0x19d   :  { %v4199_v36 = vpop.eup %4198  ;;  %4200 = vrcp.f32 %v798_v52  ;;  %v810_v11 = vand.u32 2147483648, %v798_v52  ;;  %v808_v21 = vand.u32 2147483647, %v798_v52  ;;  %vm804_vm4 = vweird.f32 %v798_v52 }
 0x19e   :  { %v781_v61 = vmul.f32 %v4199_v36, %v779_v38  ;;  %4202 = vpow2.f32 %v4093_v57  ;;  %vm786_vm14 = vweird.f32 %v4199_v36  ;;  %v1001_v38 = vadd.f32 %v1000_v25, %v916_v17 }
 0x19f   :  { %4204 = vtanh.f32 %v734_v51  ;;  %vm787_vm2 = vmor %vm785_vm15, %vm786_vm14  ;;  %v811_v29 = vor.u32 1.1754944e-38, %v810_v11  ;;  %vm809_vm7 = vcmp.eq.f32.partialorder %v808_v21, 8.507059e+37  ;;  %v6406_v21 = vld [vmem:[#allocation7 + $0x1e8] sm:$0xff] }
 0x1a0   :  { %v782_v60 = vsub.f32 1.0, %v781_v61  ;;  %v10270_v61 = vld [vmem:[#allocation115_spill] sm:$0xff] }
 0x1a2   :  { %v783_v50 = vmul.f32 %v4199_v36, %v782_v60 }
 0x1a3   :  { %v4201_v23 = vpop.eup %4200 }
 0x1a4   :  { %v4203_v54 = vpop.eup %4202  ;;  %v800_v12 = vmul.f32 %v4201_v23, %v798_v52  ;;  %v784_v16 = vadd.f32 %v4199_v36, %v783_v50  ;;  %vm805_vm3 = vweird.f32 %v4201_v23  ;;  %v1006_v52 = vadd.f32 %v1001_v38, %v10270_v61 }
 0x1a5   :  { %v818_v3 = vadd.f32 1.0, %v4203_v54  ;;  %vm806_vm6 = vmor %vm804_vm4, %vm805_vm3  ;;  %v4205_v37 = vpop.eup %4204 }
 0x1a6   :  { %v801_v6 = vsub.f32 1.0, %v800_v12  ;;  %v788_v7 = vsel %vm787_vm2, %v4199_v36, %v784_v16 }
 0x1a7   :  { %4206 = vrcp.f32 %v818_v3  ;;  %v793_v33 = vsel %vm790_vm5, %v792_v24, %v788_v7  ;;  %v856_v57 = vpop.f32.mrf.mxu0  ;;  %v830_v60 = vand.u32 2147483648, %v818_v3  ;;  %v828_v50 = vand.u32 2147483647, %v818_v3 }
 0x1a8   :  { %v802_v20 = vmul.f32 %v4201_v23, %v801_v6  ;;  %4208 = vpow2.f32 %v4099_v46  ;;  %v835_v53 = vmul.f32 %v4205_v37, %v793_v33  ;;  %vm824_vm9 = vweird.f32 %v818_v3  ;;  %v10271_v46 = vld [vmem:[#allocation114_spill] sm:$0xff]  ;;  %v6420_v37 = vld [vmem:[#allocation7 + $0x1a8] sm:$0xff] }
 0x1a9   :  { %v831_v54 = vor.u32 1.1754944e-38, %v830_v60  ;;  %vm829_vm11 = vcmp.eq.f32.partialorder %v828_v50, 8.507059e+37  ;;  %v6445_v60 = vld [vmem:[#allocation7 + $0x148] sm:$0xff] }
 0x1aa   :  { %v803_v28 = vadd.f32 %v4201_v23, %v802_v20  ;;  %v6452_v50 = vld [vmem:[#allocation7 + $0x128] sm:$0xff] }
 0x1ac   :  { %v807_v62 = vsel %vm806_vm6, %v4201_v23, %v803_v28  ;;  %v4100_v23 = vmul.f32 -1.442695, %v1006_v52  ;;  %v6412_v28 = vld [vmem:[#allocation7 + $0x1c8] sm:$0xff] }
 0x1ad   :  { %v4207_v0 = vpop.eup %4206  ;;  %v812_v44 = vsel %vm809_vm7, %v811_v29, %v807_v62  ;;  %v6415_v29 = vld [vmem:[#allocation7 + $0x1d8] sm:$0xff] }
 0x1ae   :  { %v834_v48 = vmul.f32 0.0, %v812_v44  ;;  %v820_v56 = vmul.f32 %v4207_v0, %v818_v3  ;;  %v4209_v9 = vpop.eup %4208  ;;  %vm825_vm8 = vweird.f32 %v4207_v0  ;;  %v6409_v3 = vld [vmem:[#allocation7 + $0x1f8] sm:$0xff]  ;;  %v896_v25 = vpop.f32.mrf.mxu2  ;;  %v6430_v44 = vld [vmem:[#allocation7 + $0x188] sm:$0xff] }
 0x1af   :  { %v6402_v17 = vadd.f32 1.0, %v4209_v9  ;;  %vm826_vm10 = vmor %vm824_vm9, %vm825_vm8  ;;  %v6423_v62 = vld [vmem:[#allocation7 + $0x1b8] sm:$0xff] }
 0x1b0   :  { %v6398_v36 = vadd.f32 %v835_v53, %v834_v48  ;;  %v821_v26 = vsub.f32 1.0, %v820_v56  ;;  %v6433_v48 = vld [vmem:[#allocation7 + $0x198] sm:$0xff]  ;;  %v6436_v56 = vld [vmem:[#allocation7 + $0x168] sm:$0xff] }
 0x1b1   :  { %vm1035_vm13 = vweird.f32 %v6402_v17 }
 0x1b2   :  { %4210 = vtanh.f32 %v6398_v36  ;;  %v822_v51 = vmul.f32 %v4207_v0, %v821_v26 }
 0x1b3   :  { %4212 = vpow2.f32 %v4100_v23  ;;  %v6455_v23 = vld [vmem:[#allocation7 + $0x138] sm:$0xff] }
 0x1b4   :  { %v823_v30 = vadd.f32 %v4207_v0, %v822_v51  ;;  %4214 = vrcp.f32 %v6402_v17  ;;  %v6448_v51 = vld [vmem:[#allocation7 + $0x158] sm:$0xff]  ;;  %10272 = vst [vmem:[#allocation51_spill] sm:$0xff] %v6455_v23 }
 0x1b6   :  { %v827_v16 = vsel %vm826_vm10, %v4207_v0, %v823_v30 }
 0x1b7   :  { %v940_v12 = vpop.f32.mrf.mxu0  ;;  %v832_v10 = vsel %vm829_vm11, %v831_v54, %v827_v16  ;;  %v6462_v16 = vld [vmem:[#allocation7 + $0x118] sm:$0xff] }
 0x1b8   :  { %v4211_v19 = vpop.eup %4210  ;;  %v941_v6 = vadd.f32 %v940_v12, %v856_v57  ;;  %v6439_v57 = vld [vmem:[#allocation7 + $0x178] sm:$0xff]  ;;  %v6459_v12 = vld [vmem:[#allocation7 + $0x108] sm:$0xff]  ;;  %10274 = vst [vmem:[#allocation43_spill] sm:$0xff] %v6462_v16 }
 0x1b9   :  { %v838_v11 = vmul.f32 %v4211_v19, %v832_v10  ;;  %v4213_v24 = vpop.eup %4212  ;;  %10273 = vst [vmem:[#allocation20_spill] sm:$0xff] %v6459_v12  ;;  %v6470_v10 = vld [vmem:[#allocation7 + $0xf8] sm:$0xff] }
 0x1ba   :  { %v1003_v20 = vadd.f32 %v941_v6, %v10271_v46  ;;  %v6418_v33 = vpop.eup %4214  ;;  %v6428_v0 = vadd.f32 1.0, %v4213_v24  ;;  %v6467_v6 = vld [vmem:[#allocation7 + $0xe8] sm:$0xff]  ;;  %10276 = vst [vmem:[#allocation21_spill] sm:$0xff] %v6470_v10 }
 0x1bb   :  { %1106 = vmatmul.f32.vlgmr.msrb.gmra.mxu1 %v838_v11  ;;  %1146 = vmatmul.f32.vlgmr.msra.gmra.mxu3 %v838_v11  ;;  %v1031_v38 = vmul.f32 %v6418_v33, %v6402_v17  ;;  %10275 = vst [vmem:[#allocation52_spill] sm:$0xff] %v6467_v6  ;;  %vm1036_vm12 = vweird.f32 %v6418_v33 }
 0x1bc   :  { %v4098_v7 = vmul.f32 -1.442695, %v1003_v20  ;;  %1313 = vmatpush.msrb.mxu1 %v6406_v21  ;;  %1353 = vmatpush.msra.mxu3 %v6409_v3  ;;  %v10277_v20 = vld [vmem:[#allocation119_spill] sm:$0xff]  ;;  %vm6496_vm14 = vmor %vm1035_vm13, %vm1036_vm12  ;;  %vm1055_vm7 = vweird.f32 %v6428_v0 }
 0x1bd   :  { %v1032_v26 = vsub.f32 1.0, %v1031_v38  ;;  %v6477_v38 = vld [vmem:[#allocation7 + $0xc8] sm:$0xff] }
 0x1be   :  { %4216 = vpow2.f32 %v4098_v7  ;;  %1314 = vmatpush.msrb.mxu1 %v6412_v28  ;;  %1354 = vmatpush.msra.mxu3 %v6415_v29  ;;  %v980_v9 = vpop.f32.mrf.mxu2  ;;  %10278 = vst [vmem:[#allocation53_spill] sm:$0xff] %v6477_v38 }
 0x1bf   :  { %4218 = vrcp.f32 %v6428_v0  ;;  %v981_v30 = vadd.f32 %v980_v9, %v896_v25  ;;  %v1033_v54 = vmul.f32 %v6418_v33, %v1032_v26  ;;  %v1041_v26 = vand.u32 2147483648, %v6402_v17 }
 0x1c0   :  { %1315 = vmatpush.msrb.mxu1 %v6420_v37  ;;  %1355 = vmatpush.msra.mxu3 %v6423_v62 }
 0x1c1   :  { %v1005_v7 = vadd.f32 %v981_v30, %v10277_v20  ;;  %v1034_v25 = vadd.f32 %v6418_v33, %v1033_v54  ;;  %v1039_v20 = vand.u32 2147483647, %v6402_v17  ;;  %v6491_v54 = vld [vmem:[#allocation7 + $0xb8] sm:$0xff] }
 0x1c2   :  { %1316 = vmatpush.msrb.mxu1 %v6430_v44  ;;  %1356 = vmatpush.msra.mxu3 %v6433_v48  ;;  %10281 = vst [vmem:[#allocation55_spill] sm:$0xff] %v6491_v54 }
 0x1c3   :  { %1186 = vmatmul.f32.vlgmr.msra.gmra.mxu1 %v838_v11  ;;  %1226 = vmatmul.f32.vlgmr.msrb.gmra.mxu3 %v838_v11  ;;  %vm1040_vm3 = vcmp.eq.f32.partialorder %v1039_v20, 8.507059e+37 }
 0x1c4   :  { %v4217_v53 = vpop.eup %4216  ;;  %1317 = vmatpush.msrb.mxu1 %v6436_v56  ;;  %1357 = vmatpush.msra.mxu3 %v6439_v57 }
 0x1c5   :  { %v6442_v52 = vadd.f32 1.0, %v4217_v53  ;;  %v6465_v19 = vpop.eup %4218  ;;  %v6480_v53 = vld [vmem:[#allocation7 + $0xd8] sm:$0xff] }
 0x1c6   :  { %1318 = vmatpush.msrb.mxu1 %v6445_v60  ;;  %1358 = vmatpush.msra.mxu3 %v6448_v51  ;;  %10279 = vst [vmem:[#allocation54_spill] sm:$0xff] %v6480_v53  ;;  %v1051_v9 = vmul.f32 %v6465_v19, %v6428_v0  ;;  %vm1056_vm6 = vweird.f32 %v6465_v19 }
 0x1c7   :  { %4220 = vrcp.f32 %v6442_v52  ;;  %v1020_v17 = vand.u32 2147483647, %v6442_v52  ;;  %vm1016_vm2 = vweird.f32 %v6442_v52  ;;  %vm1057_vm8 = vmor %vm1055_vm7, %vm1056_vm6 }
 0x1c8   :  { %1319 = vmatpush.msrb.mxu1 %v6452_v50  ;;  %1359 = vmatpush.msra.mxu3 %v6455_v23  ;;  %4222 = vtanh.f32 %v1005_v7  ;;  %v6512_v7 = vld [vmem:[#allocation7 + $0x68] sm:$0xff] }
 0x1c9   :  { %10285 = vst [vmem:[#allocation24_spill] sm:$0xff] %v6512_v7  ;;  %vm1021_vm5 = vcmp.eq.f32.partialorder %v1020_v17, 8.507059e+37  ;;  %v1061_v17 = vand.u32 2147483648, %v6428_v0 }
 0x1ca   :  { %1320 = vmatpush.msrb.mxu1 %v6459_v12  ;;  %1360 = vmatpush.msra.mxu3 %v6462_v16  ;;  %v1042_v16 = vor.u32 1.1754944e-38, %v1041_v26  ;;  %v1052_v12 = vsub.f32 1.0, %v1051_v9  ;;  %v6519_v26 = vld [vmem:[#allocation7 + $0x48] sm:$0xff] }
 0x1cc   :  { %1321 = vmatpush.msrb.mxu1 %v6467_v6  ;;  %1361 = vmatpush.msra.mxu3 %v6470_v10  ;;  %v6488_v10 = vld [vmem:[#allocation7 + $0xa8] sm:$0xff]  ;;  %v1053_v9 = vmul.f32 %v6465_v19, %v1052_v12 }
 0x1cd   :  { %v4221_v11 = vpop.eup %4220  ;;  %10280 = vst [vmem:[#allocation22_spill] sm:$0xff] %v6488_v10  ;;  %v6505_v6 = vld [vmem:[#allocation7 + $0x88] sm:$0xff] }
 0x1ce   :  { %v1012_v24 = vmul.f32 %v4221_v11, %v6442_v52  ;;  %1322 = vmatpush.msrb.mxu1 %v6477_v38  ;;  %1362 = vmatpush.msra.mxu3 %v6480_v53  ;;  %v1022_v38 = vand.u32 2147483648, %v6442_v52  ;;  %vm1017_vm15 = vweird.f32 %v4221_v11  ;;  %v6515_v53 = vld [vmem:[#allocation7 + $0x78] sm:$0xff]  ;;  %v4223_v20 = vpop.eup %4222  ;;  %v6543_v12 = vld [vmem:[#allocation5 + $0xe8] sm:$0xff] }
 0x1cf   :  { %10286 = vst [vmem:[#allocation57_spill] sm:$0xff] %v6515_v53  ;;  %vm1018_vm4 = vmor %vm1016_vm2, %vm1017_vm15  ;;  %v6522_v52 = vld [vmem:[#allocation7 + $0x58] sm:$0xff] }
 0x1d0   :  { %v1013_v30 = vsub.f32 1.0, %v1012_v24  ;;  %1323 = vmatpush.msrb.mxu1 %v6488_v10  ;;  %1363 = vmatpush.msra.mxu3 %v6491_v54  ;;  %v1038_v10 = vsel %vm6496_vm14, %v6418_v33, %v1034_v25  ;;  %v6508_v54 = vld [vmem:[#allocation7 + $0x98] sm:$0xff]  ;;  %v1023_v33 = vor.u32 1.1754944e-38, %v1022_v38 }
 0x1d1   :  { %10284 = vst [vmem:[#allocation56_spill] sm:$0xff] %v6508_v54  ;;  %v1043_v25 = vsel %vm1040_vm3, %v1042_v16, %v1038_v10  ;;  %v6535_v10 = vld [vmem:[#allocation7 + $0x8] sm:$0xff]  ;;  %v6546_v38 = vld [vmem:[#allocation5 + $0xf8] sm:$0xff] }
 0x1d2   :  { %v1014_v24 = vmul.f32 %v4221_v11, %v1013_v30  ;;  %1324 = vmatpush.msrb.mxu1 %v6505_v6  ;;  %1364 = vmatpush.msra.mxu3 %v6508_v54  ;;  %v6527_v54 = vld [vmem:[#allocation7 + $0x28] sm:$0xff] }
 0x1d4   :  { %v1015_v23 = vadd.f32 %v4221_v11, %v1014_v24  ;;  %1325 = vmatpush.msrb.mxu1 %v6512_v7  ;;  %1365 = vmatpush.msra.mxu3 %v6515_v53  ;;  %v1065_v53 = vmul.f32 %v1043_v25, %v6096_v40  ;;  %v1054_v40 = vadd.f32 %v6465_v19, %v1053_v9  ;;  %v6566_v9 = vld [vmem:[#allocation5 + $0x88] sm:$0xff] }
 0x1d6   :  { %v1019_v30 = vsel %vm1018_vm4, %v4221_v11, %v1015_v23  ;;  %1326 = vmatpush.msrb.mxu1 %v6519_v26  ;;  %1366 = vmatpush.msra.mxu3 %v6522_v52  ;;  %v6530_v23 = vld [vmem:[#allocation7 + $0x38] sm:$0xff]  ;;  %v1058_v25 = vsel %vm1057_vm8, %v6465_v19, %v1054_v40 }
 0x1d7   :  { %v1024_v24 = vsel %vm1021_vm5, %v1023_v33, %v1019_v30  ;;  %v6538_v11 = vld [vmem:[#allocation7 + $0x18] sm:$0xff]  ;;  %v6560_v30 = vld [vmem:[#allocation5 + $0xa8] sm:$0xff] }
 0x1d8   :  { %v1066_v7 = vmul.f32 %v4223_v20, %v1024_v24  ;;  %1327 = vmatpush.msrb.mxu1 %v6527_v54  ;;  %1367 = vmatpush.msra.mxu3 %v6530_v23  ;;  %v6556_v33 = vld [vmem:[#allocation5 + $0xd8] sm:$0xff]  ;;  %10289 = vst [vmem:[#allocation59_spill] sm:$0xff] %v6560_v30 }
 0x1d9   :  { %10288 = vst [vmem:[#allocation58_spill] sm:$0xff] %v6556_v33  ;;  %v6563_v20 = vld [vmem:[#allocation5 + $0xb8] sm:$0xff] }
 0x1da   :  { %v6533_v16 = vadd.f32 %v1066_v7, %v1065_v53  ;;  %1328 = vmatpush.msrb.mxu1 %v6535_v10  ;;  %1368 = vmatpush.msra.mxu3 %v6538_v11  ;;  %v1059_v7 = vand.u32 2147483647, %v6428_v0  ;;  %v6553_v53 = vld [vmem:[#allocation5 + $0xc8] sm:$0xff]  ;;  %v1062_v0 = vor.u32 1.1754944e-38, %v1061_v17  ;;  %v6569_v24 = vld [vmem:[#allocation5 + $0x98] sm:$0xff] }
 0x1db   :  { %10287 = vst [vmem:[#allocation26_spill] sm:$0xff] %v6553_v53  ;;  %v6587_v17 = vld [vmem:[#allocation5 + $0x48] sm:$0xff] }
 0x1dc   :  { %1406 = vmatpush.msra.mxu1 %v6543_v12  ;;  %1446 = vmatpush.msrb.mxu3 %v6546_v38  ;;  %4224 = vtanh.f32 %v6533_v16  ;;  %vm1060_vm9 = vcmp.eq.f32.partialorder %v1059_v7, 8.507059e+37  ;;  %v6591_v7 = vld [vmem:[#allocation5 + $0x58] sm:$0xff] }
 0x1dd   :  { %v1063_v19 = vsel %vm1060_vm9, %v1062_v0, %v1058_v25  ;;  %v6597_v25 = vld [vmem:[#allocation2 + $0x8] sm:$0xff]  ;;  %v6609_v0 = vld [vmem:[#allocation5 + $0x8] sm:$0xff] }
 0x1de   :  { %1407 = vmatpush.msra.mxu1 %v6553_v53  ;;  %1447 = vmatpush.msrb.mxu3 %v6556_v33  ;;  %v6574_v53 = vld [vmem:[#allocation5 + $0x68] sm:$0xff] }
 0x1e0   :  { %1408 = vmatpush.msra.mxu1 %v6560_v30  ;;  %1448 = vmatpush.msrb.mxu3 %v6563_v20  ;;  %v6577_v30 = vld [vmem:[#allocation5 + $0x78] sm:$0xff] }
 0x1e2   :  { %1409 = vmatpush.msra.mxu1 %v6566_v9  ;;  %1449 = vmatpush.msrb.mxu3 %v6569_v24  ;;  %v4225_v33 = vpop.eup %4224 }
 0x1e3   :  { %v6572_v40 = vmul.f32 %v4225_v33, %v1063_v19  ;;  %v6594_v33 = vld [vmem:[#allocation2] sm:$0xff]  ;;  %v6613_v19 = vld [vmem:[#allocation5 + $0x18] sm:$0xff] }
 0x1e4   :  { %1410 = vmatpush.msra.mxu1 %v6574_v53  ;;  %1450 = vmatpush.msrb.mxu3 %v6577_v30  ;;  %10290 = vst [vmem:[#allocation60_spill] sm:$0xff] %v6613_v19 }
 0x1e5   :  { %1086 = vmatmul.f32.vlgmr.msrb.gmra.mxu0 %v6572_v40  ;;  %1126 = vmatmul.f32.vlgmr.msra.gmra.mxu2 %v6572_v40 }
 0x1e6   :  { %1293 = vmatpush.msrb.mxu0 %v6104_v35  ;;  %1329 = vmatmul.f32.vlgmr.msrb.gmra.mxu1 %v6572_v40  ;;  %v1373_v35 = vrot.slane %v6594_v33, 2 }
 0x1e7   :  { %1333 = vmatpush.msra.mxu2 %v6108_v1  ;;  %1369 = vmatmul.f32.vlgmr.msra.gmra.mxu3 %v6572_v40  ;;  %v1374_v1 = vrot.slane %v6597_v25, 1 }
 0x1e8   :  { %1294 = vmatpush.msrb.mxu0 %v6112_v49  ;;  %1411 = vmatpush.msra.mxu1 %v6587_v17  ;;  %v6601_v49 = vld [vmem:[#allocation5 + $0x28] sm:$0xff] }
 0x1e9   :  { %1334 = vmatpush.msra.mxu2 %v6117_v8  ;;  %1451 = vmatpush.msrb.mxu3 %v6591_v7  ;;  %v6605_v8 = vld [vmem:[#allocation5 + $0x38] sm:$0xff] }
 0x1ea   :  { %1295 = vmatpush.msrb.mxu0 %v6121_v31  ;;  %1412 = vmatpush.msra.mxu1 %v6601_v49  ;;  %v6617_v31 = vsel %vm446_vm0, %v1374_v1, %v1373_v35  ;;  %v6677_v35 = vld [vmem:[#allocation10 + $0x320] sm:$0xff]  ;;  %v6680_v1 = vld [vmem:[#allocation10 + $0x328] sm:$0xff] }
 0x1eb   :  { %1335 = vmatpush.msra.mxu2 %v6125_v39  ;;  %1452 = vmatpush.msrb.mxu3 %v6605_v8  ;;  %v6629_v39 = vld [vmem:[#allocation10 + $0x3e0] sm:$0xff]  ;;  %10306 = vst [vmem:[#allocation73_spill] sm:$0xff] %v6677_v35 }
 0x1ec   :  { %1296 = vmatpush.msrb.mxu0 %v6129_v43  ;;  %1413 = vmatpush.msra.mxu1 %v6609_v0  ;;  %10291 = vst [vmem:[#allocation61_spill] sm:$0xff] %v6629_v39  ;;  %v6632_v43 = vld [vmem:[#allocation10 + $0x3e8] sm:$0xff] }
 0x1ed   :  { %1336 = vmatpush.msra.mxu2 %v6137_v58  ;;  %1453 = vmatpush.msrb.mxu3 %v6613_v19  ;;  %10292 = vst [vmem:[#allocation62_spill] sm:$0xff] %v6632_v43  ;;  %v6637_v58 = vld [vmem:[#allocation10 + $0x3c0] sm:$0xff] }
 0x1ee   :  { %1166 = vmatmul.f32.vlgmr.msra.gmra.mxu0 %v6572_v40  ;;  %1206 = vmatmul.f32.vlgmr.msrb.gmra.mxu2 %v6572_v40  ;;  %10293 = vst [vmem:[#allocation63_spill] sm:$0xff] %v6637_v58 }
 0x1ef   :  { %1297 = vmatpush.msrb.mxu0 %v6142_v14  ;;  %1337 = vmatpush.msra.mxu2 %v6145_v63  ;;  %v6640_v14 = vld [vmem:[#allocation10 + $0x3c8] sm:$0xff]  ;;  %v6645_v63 = vld [vmem:[#allocation10 + $0x3a0] sm:$0xff]  ;;  %10307 = vst [vmem:[#allocation74_spill] sm:$0xff] %v6680_v1 }
 0x1f0   :  { %4105 = vmatmul.msk.f32.vlgmr.msra.gmra.mxu1 %vm448_vm1, %v6617_v31  ;;  %4107 = vmatmul.msk.f32.vlgmr.msrb.gmra.mxu3 %vm448_vm1, %v6617_v31  ;;  %10294 = vst [vmem:[#allocation64_spill] sm:$0xff] %v6640_v14 }
 0x1f1   :  { %1298 = vmatpush.msrb.mxu0 %v6152_v27  ;;  %1338 = vmatpush.msra.mxu2 %v6155_v55  ;;  %10295 = vst [vmem:[#allocation65_spill] sm:$0xff] %v6645_v63  ;;  %v6648_v27 = vld [vmem:[#allocation10 + $0x3a8] sm:$0xff]  ;;  %v6653_v55 = vld [vmem:[#allocation10 + $0x380] sm:$0xff] }
 0x1f2   :  { %1545 = vmatpush.msrb.mxu1 %v6629_v39  ;;  %1585 = vmatpush.msra.mxu3 %v6632_v43  ;;  %10296 = vst [vmem:[#allocation66_spill] sm:$0xff] %v6648_v27 }
 0x1f3   :  { %1299 = vmatpush.msrb.mxu0 %v6159_v59  ;;  %1339 = vmatpush.msra.mxu2 %v6163_v13  ;;  %10297 = vst [vmem:[#allocation67_spill] sm:$0xff] %v6653_v55  ;;  %v6656_v59 = vld [vmem:[#allocation10 + $0x388] sm:$0xff]  ;;  %v6661_v13 = vld [vmem:[#allocation10 + $0x360] sm:$0xff] }
 0x1f4   :  { %1546 = vmatpush.msrb.mxu1 %v6637_v58  ;;  %1586 = vmatpush.msra.mxu3 %v6640_v14  ;;  %10298 = vst [vmem:[#allocation68_spill] sm:$0xff] %v6656_v59 }
 0x1f5   :  { %1300 = vmatpush.msrb.mxu0 %v6167_v32  ;;  %1340 = vmatpush.msra.mxu2 %v6171_v47  ;;  %10299 = vst [vmem:[#allocation69_spill] sm:$0xff] %v6661_v13  ;;  %v6664_v32 = vld [vmem:[#allocation10 + $0x368] sm:$0xff]  ;;  %v10301_v47 = vld [vmem:[#allocation23_spill] sm:$0xff] }
 0x1f6   :  { %1547 = vmatpush.msrb.mxu1 %v6645_v63  ;;  %1587 = vmatpush.msra.mxu3 %v6648_v27  ;;  %10300 = vst [vmem:[#allocation70_spill] sm:$0xff] %v6664_v32 }
 0x1f7   :  { %1301 = vmatpush.msrb.mxu0 %v6175_v41  ;;  %1341 = vmatpush.msra.mxu2 %v6179_v18  ;;  %v6669_v41 = vld [vmem:[#allocation10 + $0x340] sm:$0xff]  ;;  %v6672_v18 = vld [vmem:[#allocation10 + $0x348] sm:$0xff] }
 0x1f8   :  { %1548 = vmatpush.msrb.mxu1 %v6653_v55  ;;  %1588 = vmatpush.msra.mxu3 %v6656_v59  ;;  %10302 = vst [vmem:[#allocation71_spill] sm:$0xff] %v6669_v41 }
 0x1f9   :  { %1302 = vmatpush.msrb.mxu0 %v6183_v22  ;;  %1342 = vmatpush.msra.mxu2 %v6187_v34  ;;  %10303 = vst [vmem:[#allocation72_spill] sm:$0xff] %v6672_v18  ;;  %v10304_v22 = vld [vmem:[#allocation34_spill] sm:$0xff]  ;;  %v10305_v34 = vld [vmem:[#allocation25_spill] sm:$0xff] }
 0x1fa   :  { %1549 = vmatpush.msrb.mxu1 %v6661_v13  ;;  %1589 = vmatpush.msra.mxu3 %v6664_v32 }
 0x1fb   :  { %1303 = vmatpush.msrb.mxu0 %v6191_v42  ;;  %1343 = vmatpush.msra.mxu2 %v10301_v47  ;;  %v10308_v42 = vld [vmem:[#allocation36_spill] sm:$0xff]  ;;  %v10309_v47 = vld [vmem:[#allocation27_spill] sm:$0xff] }
 0x1fc   :  { %1550 = vmatpush.msrb.mxu1 %v6669_v41  ;;  %1590 = vmatpush.msra.mxu3 %v6672_v18  ;;  %v6685_v41 = vld [vmem:[#allocation10 + $0x300] sm:$0xff]  ;;  %v6688_v18 = vld [vmem:[#allocation10 + $0x308] sm:$0xff] }
 0x1fd   :  { %1304 = vmatpush.msrb.mxu0 %v10304_v22  ;;  %1344 = vmatpush.msra.mxu2 %v10305_v34  ;;  %10310 = vst [vmem:[#allocation75_spill] sm:$0xff] %v6685_v41  ;;  %v10312_v22 = vld [vmem:[#allocation38_spill] sm:$0xff]  ;;  %v10313_v34 = vld [vmem:[#allocation28_spill] sm:$0xff] }
 0x1fe   :  { %1551 = vmatpush.msrb.mxu1 %v6677_v35  ;;  %1591 = vmatpush.msra.mxu3 %v6680_v1  ;;  %10311 = vst [vmem:[#allocation76_spill] sm:$0xff] %v6688_v18  ;;  %v6693_v35 = vld [vmem:[#allocation10 + $0x2e0] sm:$0xff]  ;;  %v6696_v1 = vld [vmem:[#allocation10 + $0x2e8] sm:$0xff] }
 0x1ff   :  { %1305 = vmatpush.msrb.mxu0 %v10308_v42  ;;  %1345 = vmatpush.msra.mxu2 %v10309_v47  ;;  %10314 = vst [vmem:[#allocation77_spill] sm:$0xff] %v6693_v35  ;;  %v10316_v42 = vld [vmem:[#allocation40_spill] sm:$0xff]  ;;  %v10317_v47 = vld [vmem:[#allocation29_spill] sm:$0xff] }
 0x200   :  { %1552 = vmatpush.msrb.mxu1 %v6685_v41  ;;  %1592 = vmatpush.msra.mxu3 %v6688_v18  ;;  %10315 = vst [vmem:[#allocation78_spill] sm:$0xff] %v6696_v1  ;;  %v6701_v41 = vld [vmem:[#allocation10 + $0x2c0] sm:$0xff]  ;;  %v6704_v18 = vld [vmem:[#allocation10 + $0x2c8] sm:$0xff] }
 0x201   :  { %1306 = vmatpush.msrb.mxu0 %v10312_v22  ;;  %1346 = vmatpush.msra.mxu2 %v10313_v34  ;;  %10318 = vst [vmem:[#allocation79_spill] sm:$0xff] %v6701_v41  ;;  %v10320_v22 = vld [vmem:[#allocation42_spill] sm:$0xff] }
 0x202   :  { %1553 = vmatpush.msrb.mxu1 %v6693_v35  ;;  %1593 = vmatpush.msra.mxu3 %v6696_v1  ;;  %10319 = vst [vmem:[#allocation80_spill] sm:$0xff] %v6704_v18  ;;  %v10321_v34 = vld [vmem:[#allocation30_spill] sm:$0xff]  ;;  %v10322_v1 = vld [vmem:[#allocation44_spill] sm:$0xff] }
 0x203   :  { %1307 = vmatpush.msrb.mxu0 %v10316_v42  ;;  %1347 = vmatpush.msra.mxu2 %v10317_v47  ;;  %v10323_v42 = vld [vmem:[#allocation31_spill] sm:$0xff] }
 0x204   :  { %1554 = vmatpush.msrb.mxu1 %v6701_v41  ;;  %1594 = vmatpush.msra.mxu3 %v6704_v18  ;;  %v6713_v47 = vld [vmem:[#allocation10 + $0x2a0] sm:$0xff]  ;;  %v6716_v41 = vld [vmem:[#allocation10 + $0x2a8] sm:$0xff] }
 0x205   :  { %1308 = vmatpush.msrb.mxu0 %v10320_v22  ;;  %1348 = vmatpush.msra.mxu2 %v10321_v34  ;;  %10324 = vst [vmem:[#allocation81_spill] sm:$0xff] %v6713_v47  ;;  %v10326_v18 = vld [vmem:[#allocation45_spill] sm:$0xff]  ;;  %v10327_v22 = vld [vmem:[#allocation32_spill] sm:$0xff] }
 0x206   :  { %1309 = vmatmul.f32.vlgmr.msrb.gmra.mxu0 %v6572_v40  ;;  %1349 = vmatmul.f32.vlgmr.msra.gmra.mxu2 %v6572_v40  ;;  %10325 = vst [vmem:[#allocation82_spill] sm:$0xff] %v6716_v41  ;;  %v6721_v34 = vld [vmem:[#allocation10 + $0x280] sm:$0xff]  ;;  %v6724_v40 = vld [vmem:[#allocation10 + $0x288] sm:$0xff] }
 0x207   :  { %1386 = vmatpush.msra.mxu0 %v10322_v1  ;;  %1426 = vmatpush.msrb.mxu2 %v10323_v42  ;;  %10328 = vst [vmem:[#allocation83_spill] sm:$0xff] %v6721_v34  ;;  %v10330_v1 = vld [vmem:[#allocation46_spill] sm:$0xff]  ;;  %v10331_v42 = vld [vmem:[#allocation33_spill] sm:$0xff] }
 0x208   :  { %1555 = vmatpush.msrb.mxu1 %v6713_v47  ;;  %1595 = vmatpush.msra.mxu3 %v6716_v41  ;;  %10329 = vst [vmem:[#allocation84_spill] sm:$0xff] %v6724_v40  ;;  %v6729_v47 = vld [vmem:[#allocation10 + $0x260] sm:$0xff]  ;;  %v6732_v41 = vld [vmem:[#allocation10 + $0x268] sm:$0xff] }
 0x209   :  { %1387 = vmatpush.msra.mxu0 %v10326_v18  ;;  %1427 = vmatpush.msrb.mxu2 %v10327_v22  ;;  %10332 = vst [vmem:[#allocation85_spill] sm:$0xff] %v6729_v47  ;;  %v10334_v18 = vld [vmem:[#allocation47_spill] sm:$0xff]  ;;  %v6736_v22 = vld [vmem:[#allocation5 + $0x90] sm:$0xff] }
 0x20a   :  { %1556 = vmatpush.msrb.mxu1 %v6721_v34  ;;  %1596 = vmatpush.msra.mxu3 %v6724_v40  ;;  %10333 = vst [vmem:[#allocation86_spill] sm:$0xff] %v6732_v41  ;;  %v6739_v34 = vld [vmem:[#allocation10 + $0x240] sm:$0xff] }
 0x20b   :  { %1388 = vmatpush.msra.mxu0 %v10330_v1  ;;  %1428 = vmatpush.msrb.mxu2 %v10331_v42  ;;  %10335 = vst [vmem:[#allocation87_spill] sm:$0xff] %v6736_v22  ;;  %v6742_v1 = vld [vmem:[#allocation10 + $0x248] sm:$0xff]  ;;  %v10338_v42 = vld [vmem:[#allocation35_spill] sm:$0xff] }
 0x20c   :  { %1557 = vmatpush.msrb.mxu1 %v6729_v47  ;;  %1597 = vmatpush.msra.mxu3 %v6732_v41  ;;  %10336 = vst [vmem:[#allocation88_spill] sm:$0xff] %v6739_v34  ;;  %v6746_v47 = vld [vmem:[#allocation5 + $0x70] sm:$0xff]  ;;  %v6749_v41 = vld [vmem:[#allocation10 + $0x220] sm:$0xff] }
 0x20d   :  { %1389 = vmatpush.msra.mxu0 %v10334_v18  ;;  %1429 = vmatpush.msrb.mxu2 %v6736_v22  ;;  %10337 = vst [vmem:[#allocation89_spill] sm:$0xff] %v6742_v1  ;;  %v6752_v18 = vld [vmem:[#allocation10 + $0x228] sm:$0xff] }
 0x20e   :  { %1558 = vmatpush.msrb.mxu1 %v6739_v34  ;;  %1598 = vmatpush.msra.mxu3 %v6742_v1  ;;  %10339 = vst [vmem:[#allocation90_spill] sm:$0xff] %v6746_v47  ;;  %v10342_v22 = vld [vmem:[#allocation48_spill] sm:$0xff] }
 0x20f   :  { %1390 = vmatpush.msra.mxu0 %v10338_v42  ;;  %1430 = vmatpush.msrb.mxu2 %v6746_v47  ;;  %10340 = vst [vmem:[#allocation91_spill] sm:$0xff] %v6749_v41  ;;  %v6756_v34 = vld [vmem:[#allocation5 + $0x50] sm:$0xff]  ;;  %v6759_v1 = vld [vmem:[#allocation10 + $0x200] sm:$0xff] }
 0x210   :  { %1559 = vmatpush.msrb.mxu1 %v6749_v41  ;;  %10341 = vst [vmem:[#allocation92_spill] sm:$0xff] %v6752_v18  ;;  %1599 = vmatpush.msra.mxu3 %v6752_v18  ;;  %v6762_v42 = vld [vmem:[#allocation10 + $0x208] sm:$0xff]  ;;  %v6769_v18 = vld [vmem:[#allocation10 + $0x3f0] sm:$0xff] }
 0x211   :  { %1391 = vmatpush.msra.mxu0 %v10342_v22  ;;  %10343 = vst [vmem:[#allocation93_spill] sm:$0xff] %v6756_v34  ;;  %1431 = vmatpush.msrb.mxu2 %v6756_v34  ;;  %v10346_v47 = vld [vmem:[#allocation37_spill] sm:$0xff]  ;;  %v6772_v22 = vld [vmem:[#allocation10 + $0x3f8] sm:$0xff] }
 0x212   :  { %10344 = vst [vmem:[#allocation94_spill] sm:$0xff] %v6759_v1  ;;  %1560 = vmatpush.msrb.mxu1 %v6759_v1  ;;  %1600 = vmatpush.msra.mxu3 %v6762_v42  ;;  %v6766_v41 = vld [vmem:[#allocation5 + $0x30] sm:$0xff] }
 0x213   :  { %10345 = vst [vmem:[#allocation95_spill] sm:$0xff] %v6762_v42  ;;  %1392 = vmatpush.msra.mxu0 %v10346_v47  ;;  %1432 = vmatpush.msrb.mxu2 %v6766_v41  ;;  %v10350_v34 = vld [vmem:[#allocation49_spill] sm:$0xff] }
 0x214   :  { %10347 = vst [vmem:[#allocation96_spill] sm:$0xff] %v6766_v41  ;;  %1625 = vmatpush.msra.mxu1 %v6769_v18  ;;  %1665 = vmatpush.msrb.mxu3 %v6772_v22  ;;  %v6776_v1 = vld [vmem:[#allocation5 + $0x10] sm:$0xff]  ;;  %v6786_v41 = vld [vmem:[#allocation10 + $0x3d8] sm:$0xff] }
 0x215   :  { %10348 = vst [vmem:[#allocation97_spill] sm:$0xff] %v6769_v18  ;;  %1393 = vmatpush.msra.mxu0 %v10350_v34  ;;  %1433 = vmatpush.msrb.mxu2 %v6776_v1  ;;  %v6783_v47 = vld [vmem:[#allocation10 + $0x3d0] sm:$0xff]  ;;  %v6792_v34 = vld [vmem:[#allocation10 + $0x1e8] sm:$0xff] }
 0x216   :  { %10349 = vst [vmem:[#allocation98_spill] sm:$0xff] %v6772_v22  ;;  %4104 = vmatmul.msk.f32.vlgmr.msra.gmra.mxu0 %vm448_vm1, %v6617_v31  ;;  %4106 = vmatmul.msk.f32.vlgmr.msrb.gmra.mxu2 %vm448_vm1, %v6617_v31  ;;  %v6789_v22 = vld [vmem:[#allocation10 + $0x1e0] sm:$0xff]  ;;  %v6798_v31 = vld [vmem:[#allocation10 + $0x3b8] sm:$0xff] }
 0x217   :  { %10351 = vst [vmem:[#allocation99_spill] sm:$0xff] %v6776_v1  ;;  %1626 = vmatpush.msra.mxu1 %v6783_v47  ;;  %1666 = vmatpush.msrb.mxu3 %v6786_v41  ;;  %v6795_v1 = vld [vmem:[#allocation10 + $0x3b0] sm:$0xff] }
 0x218   :  { %10352 = vst [vmem:[#allocation100_spill] sm:$0xff] %v6783_v47  ;;  %1525 = vmatpush.msrb.mxu0 %v6789_v22  ;;  %1565 = vmatpush.msra.mxu2 %v6792_v34  ;;  %v6801_v47 = vld [vmem:[#allocation10 + $0x1c0] sm:$0xff] }
 0x219   :  { %10353 = vst [vmem:[#allocation101_spill] sm:$0xff] %v6786_v41  ;;  %1627 = vmatpush.msra.mxu1 %v6795_v1  ;;  %1667 = vmatpush.msrb.mxu3 %v6798_v31  ;;  %v6804_v41 = vld [vmem:[#allocation10 + $0x1c8] sm:$0xff] }
 0x21a   :  { %10354 = vst [vmem:[#allocation102_spill] sm:$0xff] %v6789_v22  ;;  %1526 = vmatpush.msrb.mxu0 %v6801_v47  ;;  %1566 = vmatpush.msra.mxu2 %v6804_v41  ;;  %v6807_v22 = vld [vmem:[#allocation10 + $0x390] sm:$0xff] }
 0x21b   :  { %10355 = vst [vmem:[#allocation103_spill] sm:$0xff] %v6792_v34  ;;  %1628 = vmatpush.msra.mxu1 %v6807_v22  ;;  %v6810_v34 = vld [vmem:[#allocation10 + $0x398] sm:$0xff] }
 0x21c   :  { %10356 = vst [vmem:[#allocation104_spill] sm:$0xff] %v6795_v1  ;;  %1668 = vmatpush.msrb.mxu3 %v6810_v34  ;;  %v6813_v1 = vld [vmem:[#allocation10 + $0x1a0] sm:$0xff] }
 0x21d   :  { %10357 = vst [vmem:[#allocation105_spill] sm:$0xff] %v6798_v31  ;;  %1527 = vmatpush.msrb.mxu0 %v6813_v1  ;;  %v6816_v31 = vld [vmem:[#allocation10 + $0x1a8] sm:$0xff] }
 0x21e   :  { %10358 = vst [vmem:[#allocation106_spill] sm:$0xff] %v6801_v47  ;;  %1567 = vmatpush.msra.mxu2 %v6816_v31  ;;  %v6819_v47 = vld [vmem:[#allocation10 + $0x370] sm:$0xff] }
 0x21f   :  { %10359 = vst [vmem:[#allocation107_spill] sm:$0xff] %v6804_v41  ;;  %1629 = vmatpush.msra.mxu1 %v6819_v47  ;;  %v6822_v41 = vld [vmem:[#allocation10 + $0x378] sm:$0xff] }
 0x220   :  { %10360 = vst [vmem:[#allocation108_spill] sm:$0xff] %v6807_v22  ;;  %1669 = vmatpush.msrb.mxu3 %v6822_v41  ;;  %v6825_v22 = vld [vmem:[#allocation10 + $0x180] sm:$0xff] }
 0x221   :  { %10361 = vst [vmem:[#allocation109_spill] sm:$0xff] %v6810_v34  ;;  %1528 = vmatpush.msrb.mxu0 %v6825_v22  ;;  %v6828_v34 = vld [vmem:[#allocation10 + $0x188] sm:$0xff] }
 0x222   :  { %10362 = vst [vmem:[#allocation110_spill] sm:$0xff] %v6813_v1  ;;  %1568 = vmatpush.msra.mxu2 %v6828_v34  ;;  %v6831_v1 = vld [vmem:[#allocation10 + $0x350] sm:$0xff] }
 0x223   :  { %10363 = vst [vmem:[#allocation111_spill] sm:$0xff] %v6816_v31  ;;  %1630 = vmatpush.msra.mxu1 %v6831_v1  ;;  %v6834_v31 = vld [vmem:[#allocation10 + $0x358] sm:$0xff] }
 0x224   :  { %10364 = vst [vmem:[#allocation112_spill] sm:$0xff] %v6819_v47  ;;  %1670 = vmatpush.msrb.mxu3 %v6834_v31  ;;  %v6837_v47 = vld [vmem:[#allocation10 + $0x160] sm:$0xff] }
 0x225   :  { %10365 = vst [vmem:[#allocation113_spill] sm:$0xff] %v6822_v41  ;;  %1529 = vmatpush.msrb.mxu0 %v6837_v47  ;;  %v6840_v41 = vld [vmem:[#allocation10 + $0x168] sm:$0xff] }
 0x226   :  { %10366 = vst [vmem:[#allocation117_spill] sm:$0xff] %v6825_v22  ;;  %1569 = vmatpush.msra.mxu2 %v6840_v41  ;;  %v6843_v22 = vld [vmem:[#allocation10 + $0x330] sm:$0xff] }
 0x227   :  { %10367 = vst [vmem:[#allocation118_spill] sm:$0xff] %v6828_v34  ;;  %1631 = vmatpush.msra.mxu1 %v6843_v22  ;;  %v6846_v34 = vld [vmem:[#allocation10 + $0x338] sm:$0xff] }
 0x228   :  { %10368 = vst [vmem:[#allocation115_spill] sm:$0xff] %v6831_v1  ;;  %1671 = vmatpush.msrb.mxu3 %v6846_v34  ;;  %v6849_v1 = vld [vmem:[#allocation10 + $0x140] sm:$0xff] }
 0x229   :  { %10369 = vst [vmem:[#allocation114_spill] sm:$0xff] %v6834_v31  ;;  %1530 = vmatpush.msrb.mxu0 %v6849_v1  ;;  %v6852_v31 = vld [vmem:[#allocation10 + $0x148] sm:$0xff] }
 0x22a   :  { %10370 = vst [vmem:[#allocation23_spill] sm:$0xff] %v6837_v47  ;;  %1570 = vmatpush.msra.mxu2 %v6852_v31  ;;  %v6855_v47 = vld [vmem:[#allocation10 + $0x310] sm:$0xff] }
 0x22b   :  { %10371 = vst [vmem:[#allocation34_spill] sm:$0xff] %v6840_v41  ;;  %1632 = vmatpush.msra.mxu1 %v6855_v47  ;;  %v6858_v41 = vld [vmem:[#allocation10 + $0x318] sm:$0xff] }
 0x22c   :  { %10372 = vst [vmem:[#allocation25_spill] sm:$0xff] %v6843_v22  ;;  %1672 = vmatpush.msrb.mxu3 %v6858_v41  ;;  %v6861_v22 = vld [vmem:[#allocation10 + $0x120] sm:$0xff] }
 0x22d   :  { %10373 = vst [vmem:[#allocation36_spill] sm:$0xff] %v6846_v34  ;;  %1531 = vmatpush.msrb.mxu0 %v6861_v22  ;;  %v6864_v34 = vld [vmem:[#allocation10 + $0x128] sm:$0xff] }
 0x22e   :  { %10374 = vst [vmem:[#allocation27_spill] sm:$0xff] %v6849_v1  ;;  %1571 = vmatpush.msra.mxu2 %v6864_v34  ;;  %v6867_v1 = vld [vmem:[#allocation10 + $0x2f0] sm:$0xff] }
 0x22f   :  { %10375 = vst [vmem:[#allocation38_spill] sm:$0xff] %v6852_v31  ;;  %1633 = vmatpush.msra.mxu1 %v6867_v1  ;;  %v6870_v31 = vld [vmem:[#allocation10 + $0x2f8] sm:$0xff] }
 0x230   :  { %10376 = vst [vmem:[#allocation28_spill] sm:$0xff] %v6855_v47  ;;  %1673 = vmatpush.msrb.mxu3 %v6870_v31  ;;  %v6873_v47 = vld [vmem:[#allocation10 + $0x100] sm:$0xff] }
 0x231   :  { %10377 = vst [vmem:[#allocation40_spill] sm:$0xff] %v6858_v41  ;;  %1532 = vmatpush.msrb.mxu0 %v6873_v47  ;;  %v6876_v41 = vld [vmem:[#allocation10 + $0x108] sm:$0xff] }
 0x232   :  { %10378 = vst [vmem:[#allocation29_spill] sm:$0xff] %v6861_v22  ;;  %1572 = vmatpush.msra.mxu2 %v6876_v41  ;;  %v6879_v22 = vld [vmem:[#allocation10 + $0x2d0] sm:$0xff] }
 0x233   :  { %10379 = vst [vmem:[#allocation42_spill] sm:$0xff] %v6864_v34  ;;  %1634 = vmatpush.msra.mxu1 %v6879_v22  ;;  %v6882_v34 = vld [vmem:[#allocation10 + $0x2d8] sm:$0xff] }
 0x234   :  { %10380 = vst [vmem:[#allocation30_spill] sm:$0xff] %v6867_v1  ;;  %1674 = vmatpush.msrb.mxu3 %v6882_v34  ;;  %v6885_v1 = vld [vmem:[#allocation10 + $0xe0] sm:$0xff] }
 0x235   :  { %10381 = vst [vmem:[#allocation44_spill] sm:$0xff] %v6870_v31  ;;  %1533 = vmatpush.msrb.mxu0 %v6885_v1  ;;  %v6888_v31 = vld [vmem:[#allocation10 + $0xe8] sm:$0xff] }
 0x236   :  { %10382 = vst [vmem:[#allocation31_spill] sm:$0xff] %v6873_v47  ;;  %1573 = vmatpush.msra.mxu2 %v6888_v31  ;;  %v6891_v47 = vld [vmem:[#allocation10 + $0x2b0] sm:$0xff] }
 0x237   :  { %10383 = vst [vmem:[#allocation45_spill] sm:$0xff] %v6876_v41  ;;  %1635 = vmatpush.msra.mxu1 %v6891_v47  ;;  %v6894_v41 = vld [vmem:[#allocation10 + $0x2b8] sm:$0xff] }
 0x238   :  { %10384 = vst [vmem:[#allocation32_spill] sm:$0xff] %v6879_v22  ;;  %1675 = vmatpush.msrb.mxu3 %v6894_v41  ;;  %v6897_v22 = vld [vmem:[#allocation10 + $0xc0] sm:$0xff] }
 0x239   :  { %10385 = vst [vmem:[#allocation46_spill] sm:$0xff] %v6882_v34  ;;  %1534 = vmatpush.msrb.mxu0 %v6897_v22  ;;  %v6900_v34 = vld [vmem:[#allocation10 + $0xc8] sm:$0xff] }
 0x23a   :  { %10386 = vst [vmem:[#allocation33_spill] sm:$0xff] %v6885_v1  ;;  %1574 = vmatpush.msra.mxu2 %v6900_v34  ;;  %v6903_v1 = vld [vmem:[#allocation10 + $0x290] sm:$0xff] }
 0x23b   :  { %10387 = vst [vmem:[#allocation47_spill] sm:$0xff] %v6888_v31  ;;  %1636 = vmatpush.msra.mxu1 %v6903_v1  ;;  %v6906_v31 = vld [vmem:[#allocation10 + $0x298] sm:$0xff] }
 0x23c   :  { %10388 = vst [vmem:[#allocation35_spill] sm:$0xff] %v6891_v47  ;;  %1676 = vmatpush.msrb.mxu3 %v6906_v31  ;;  %v6909_v47 = vld [vmem:[#allocation10 + $0xa0] sm:$0xff] }
 0x23d   :  { %10389 = vst [vmem:[#allocation48_spill] sm:$0xff] %v6894_v41  ;;  %1535 = vmatpush.msrb.mxu0 %v6909_v47  ;;  %v6912_v41 = vld [vmem:[#allocation10 + $0xa8] sm:$0xff] }
 0x23e   :  { %10390 = vst [vmem:[#allocation37_spill] sm:$0xff] %v6897_v22  ;;  %1575 = vmatpush.msra.mxu2 %v6912_v41  ;;  %v6915_v22 = vld [vmem:[#allocation10 + $0x270] sm:$0xff]  ;;  %v1147_v32 = vpop.f32.mrf.mxu3 }
 0x23f   :  { %10391 = vst [vmem:[#allocation49_spill] sm:$0xff] %v6900_v34  ;;  %1637 = vmatpush.msra.mxu1 %v6915_v22  ;;  %v6918_v34 = vld [vmem:[#allocation10 + $0x278] sm:$0xff] }
 0x240   :  { %10392 = vst [vmem:[#allocation120_spill] sm:$0xff] %v6903_v1  ;;  %1677 = vmatpush.msrb.mxu3 %v6918_v34  ;;  %v6921_v1 = vld [vmem:[#allocation10 + $0x80] sm:$0xff] }
 0x241   :  { %10393 = vst [vmem:[#allocation121_spill] sm:$0xff] %v6906_v31  ;;  %1536 = vmatpush.msrb.mxu0 %v6921_v1  ;;  %v6924_v31 = vld [vmem:[#allocation10 + $0x88] sm:$0xff] }
 0x242   :  { %10394 = vst [vmem:[#allocation122_spill] sm:$0xff] %v6909_v47  ;;  %1576 = vmatpush.msra.mxu2 %v6924_v31  ;;  %v6927_v47 = vld [vmem:[#allocation10 + $0x250] sm:$0xff] }
 0x243   :  { %10395 = vst [vmem:[#allocation123_spill] sm:$0xff] %v6912_v41  ;;  %1638 = vmatpush.msra.mxu1 %v6927_v47  ;;  %v6930_v41 = vld [vmem:[#allocation10 + $0x258] sm:$0xff] }
 0x244   :  { %10396 = vst [vmem:[#allocation124_spill] sm:$0xff] %v6915_v22  ;;  %1678 = vmatpush.msrb.mxu3 %v6930_v41  ;;  %v6933_v22 = vld [vmem:[#allocation10 + $0x60] sm:$0xff] }
 0x245   :  { %10397 = vst [vmem:[#allocation125_spill] sm:$0xff] %v6918_v34  ;;  %1537 = vmatpush.msrb.mxu0 %v6933_v22  ;;  %v6936_v34 = vld [vmem:[#allocation10 + $0x68] sm:$0xff] }
 0x246   :  { %10398 = vst [vmem:[#allocation126_spill] sm:$0xff] %v6921_v1  ;;  %1577 = vmatpush.msra.mxu2 %v6936_v34  ;;  %v6939_v1 = vld [vmem:[#allocation10 + $0x230] sm:$0xff] }
 0x247   :  { %10399 = vst [vmem:[#allocation127_spill] sm:$0xff] %v6924_v31  ;;  %1639 = vmatpush.msra.mxu1 %v6939_v1  ;;  %v6942_v31 = vld [vmem:[#allocation10 + $0x238] sm:$0xff] }
 0x248   :  { %10400 = vst [vmem:[#allocation128_spill] sm:$0xff] %v6927_v47  ;;  %1679 = vmatpush.msrb.mxu3 %v6942_v31  ;;  %v6945_v47 = vld [vmem:[#allocation10 + $0x40] sm:$0xff] }
 0x249   :  { %10401 = vst [vmem:[#allocation129_spill] sm:$0xff] %v6930_v41  ;;  %1538 = vmatpush.msrb.mxu0 %v6945_v47  ;;  %v6948_v41 = vld [vmem:[#allocation10 + $0x48] sm:$0xff] }
 0x24a   :  { %10402 = vst [vmem:[#allocation130_spill] sm:$0xff] %v6933_v22  ;;  %1578 = vmatpush.msra.mxu2 %v6948_v41  ;;  %v6951_v22 = vld [vmem:[#allocation10 + $0x210] sm:$0xff] }
 0x24b   :  { %10403 = vst [vmem:[#allocation131_spill] sm:$0xff] %v6936_v34  ;;  %1640 = vmatpush.msra.mxu1 %v6951_v22  ;;  %v6954_v34 = vld [vmem:[#allocation10 + $0x218] sm:$0xff] }
 0x24c   :  { %10404 = vst [vmem:[#allocation132_spill] sm:$0xff] %v6939_v1  ;;  %1680 = vmatpush.msrb.mxu3 %v6954_v34  ;;  %v6957_v1 = vld [vmem:[#allocation10 + $0x20] sm:$0xff] }
 0x24d   :  { %10405 = vst [vmem:[#allocation133_spill] sm:$0xff] %v6942_v31  ;;  %1539 = vmatpush.msrb.mxu0 %v6957_v1  ;;  %v6960_v31 = vld [vmem:[#allocation10 + $0x28] sm:$0xff] }
 0x24e   :  { %10406 = vst [vmem:[#allocation134_spill] sm:$0xff] %v6945_v47  ;;  %1579 = vmatpush.msra.mxu2 %v6960_v31  ;;  %v6963_v47 = vld [vmem:[#allocation10] sm:$0xff] }
 0x24f   :  { %10407 = vst [vmem:[#allocation135_spill] sm:$0xff] %v6948_v41  ;;  %1540 = vmatpush.msrb.mxu0 %v6963_v47  ;;  %v6966_v41 = vld [vmem:[#allocation10 + $0x8] sm:$0xff] }
 0x250   :  { %10408 = vst [vmem:[#allocation136_spill] sm:$0xff] %v6951_v22  ;;  %1580 = vmatpush.msra.mxu2 %v6966_v41  ;;  %v6969_v22 = vld [vmem:[#allocation10 + $0x1f0] sm:$0xff] }
 0x251   :  { %10409 = vst [vmem:[#allocation137_spill] sm:$0xff] %v6954_v34  ;;  %1605 = vmatpush.msra.mxu0 %v6969_v22  ;;  %v6972_v34 = vld [vmem:[#allocation10 + $0x1f8] sm:$0xff] }
 0x252   :  { %10410 = vst [vmem:[#allocation138_spill] sm:$0xff] %v6957_v1  ;;  %1645 = vmatpush.msrb.mxu2 %v6972_v34  ;;  %v6975_v1 = vld [vmem:[#allocation10 + $0x1d0] sm:$0xff] }
 0x253   :  { %10411 = vst [vmem:[#allocation139_spill] sm:$0xff] %v6960_v31  ;;  %1606 = vmatpush.msra.mxu0 %v6975_v1  ;;  %v6978_v31 = vld [vmem:[#allocation10 + $0x1d8] sm:$0xff] }
 0x254   :  { %10412 = vst [vmem:[#allocation140_spill] sm:$0xff] %v6963_v47  ;;  %1646 = vmatpush.msrb.mxu2 %v6978_v31  ;;  %v6981_v47 = vld [vmem:[#allocation10 + $0x1b0] sm:$0xff] }
 0x255   :  { %10413 = vst [vmem:[#allocation141_spill] sm:$0xff] %v6966_v41  ;;  %1607 = vmatpush.msra.mxu0 %v6981_v47  ;;  %v6984_v41 = vld [vmem:[#allocation10 + $0x1b8] sm:$0xff] }
 0x256   :  { %10414 = vst [vmem:[#allocation142_spill] sm:$0xff] %v6969_v22  ;;  %1647 = vmatpush.msrb.mxu2 %v6984_v41  ;;  %v6987_v22 = vld [vmem:[#allocation10 + $0x190] sm:$0xff] }
 0x257   :  { %10415 = vst [vmem:[#allocation143_spill] sm:$0xff] %v6972_v34  ;;  %1608 = vmatpush.msra.mxu0 %v6987_v22  ;;  %v6990_v34 = vld [vmem:[#allocation10 + $0x198] sm:$0xff] }
 0x258   :  { %10416 = vst [vmem:[#allocation144_spill] sm:$0xff] %v6975_v1  ;;  %1648 = vmatpush.msrb.mxu2 %v6990_v34  ;;  %v6993_v1 = vld [vmem:[#allocation10 + $0x170] sm:$0xff] }
 0x259   :  { %10417 = vst [vmem:[#allocation145_spill] sm:$0xff] %v6978_v31  ;;  %1609 = vmatpush.msra.mxu0 %v6993_v1  ;;  %v6996_v31 = vld [vmem:[#allocation10 + $0x178] sm:$0xff] }
 0x25a   :  { %10418 = vst [vmem:[#allocation146_spill] sm:$0xff] %v6981_v47  ;;  %1649 = vmatpush.msrb.mxu2 %v6996_v31  ;;  %v6999_v47 = vld [vmem:[#allocation10 + $0x150] sm:$0xff] }
 0x25b   :  { %10419 = vst [vmem:[#allocation147_spill] sm:$0xff] %v6984_v41  ;;  %1610 = vmatpush.msra.mxu0 %v6999_v47  ;;  %v7002_v41 = vld [vmem:[#allocation10 + $0x158] sm:$0xff] }
 0x25c   :  { %10420 = vst [vmem:[#allocation148_spill] sm:$0xff] %v6987_v22  ;;  %1650 = vmatpush.msrb.mxu2 %v7002_v41  ;;  %v7005_v22 = vld [vmem:[#allocation10 + $0x130] sm:$0xff] }
 0x25d   :  { %10421 = vst [vmem:[#allocation149_spill] sm:$0xff] %v6990_v34  ;;  %1611 = vmatpush.msra.mxu0 %v7005_v22  ;;  %v7008_v34 = vld [vmem:[#allocation10 + $0x138] sm:$0xff] }
 0x25e   :  { %10422 = vst [vmem:[#allocation150_spill] sm:$0xff] %v6993_v1  ;;  %1651 = vmatpush.msrb.mxu2 %v7008_v34  ;;  %v7011_v1 = vld [vmem:[#allocation10 + $0x110] sm:$0xff] }
 0x25f   :  { %10423 = vst [vmem:[#allocation151_spill] sm:$0xff] %v6996_v31  ;;  %1612 = vmatpush.msra.mxu0 %v7011_v1  ;;  %v7014_v31 = vld [vmem:[#allocation10 + $0x118] sm:$0xff] }
 0x260   :  { %10424 = vst [vmem:[#allocation152_spill] sm:$0xff] %v6999_v47  ;;  %1652 = vmatpush.msrb.mxu2 %v7014_v31  ;;  %v7017_v47 = vld [vmem:[#allocation10 + $0xf0] sm:$0xff] }
 0x261   :  { %10425 = vst [vmem:[#allocation153_spill] sm:$0xff] %v7002_v41  ;;  %1613 = vmatpush.msra.mxu0 %v7017_v47  ;;  %v7020_v41 = vld [vmem:[#allocation10 + $0xf8] sm:$0xff] }
 0x262   :  { %10426 = vst [vmem:[#allocation154_spill] sm:$0xff] %v7005_v22  ;;  %1653 = vmatpush.msrb.mxu2 %v7020_v41  ;;  %v7023_v22 = vld [vmem:[#allocation10 + $0xd0] sm:$0xff]  ;;  %v1087_v18 = vpop.f32.mrf.mxu0 }
 0x263   :  { %10427 = vst [vmem:[#allocation155_spill] sm:$0xff] %v7008_v34  ;;  %1614 = vmatpush.msra.mxu0 %v7023_v22  ;;  %v7026_v34 = vld [vmem:[#allocation10 + $0xd8] sm:$0xff] }
 0x264   :  { %10428 = vst [vmem:[#allocation156_spill] sm:$0xff] %v7011_v1  ;;  %1654 = vmatpush.msrb.mxu2 %v7026_v34  ;;  %v7029_v1 = vld [vmem:[#allocation10 + $0xb0] sm:$0xff] }
 0x265   :  { %10429 = vst [vmem:[#allocation157_spill] sm:$0xff] %v7014_v31  ;;  %1615 = vmatpush.msra.mxu0 %v7029_v1  ;;  %v7032_v31 = vld [vmem:[#allocation10 + $0xb8] sm:$0xff] }
 0x266   :  { %10430 = vst [vmem:[#allocation158_spill] sm:$0xff] %v7017_v47  ;;  %1655 = vmatpush.msrb.mxu2 %v7032_v31  ;;  %v7035_v47 = vld [vmem:[#allocation10 + $0x90] sm:$0xff] }
 0x267   :  { %10431 = vst [vmem:[#allocation159_spill] sm:$0xff] %v7020_v41  ;;  %1616 = vmatpush.msra.mxu0 %v7035_v47  ;;  %v7038_v41 = vld [vmem:[#allocation10 + $0x98] sm:$0xff] }
 0x268   :  { %10432 = vst [vmem:[#allocation160_spill] sm:$0xff] %v7023_v22  ;;  %1656 = vmatpush.msrb.mxu2 %v7038_v41  ;;  %v7041_v22 = vld [vmem:[#allocation10 + $0x70] sm:$0xff] }
 0x269   :  { %10433 = vst [vmem:[#allocation161_spill] sm:$0xff] %v7026_v34  ;;  %1617 = vmatpush.msra.mxu0 %v7041_v22  ;;  %v7044_v34 = vld [vmem:[#allocation10 + $0x78] sm:$0xff] }
 0x26a   :  { %10434 = vst [vmem:[#allocation162_spill] sm:$0xff] %v7029_v1  ;;  %1657 = vmatpush.msrb.mxu2 %v7044_v34  ;;  %v7047_v1 = vld [vmem:[#allocation10 + $0x50] sm:$0xff] }
 0x26b   :  { %10435 = vst [vmem:[#allocation163_spill] sm:$0xff] %v7032_v31  ;;  %1618 = vmatpush.msra.mxu0 %v7047_v1  ;;  %v7050_v31 = vld [vmem:[#allocation10 + $0x58] sm:$0xff] }
 0x26c   :  { %10436 = vst [vmem:[#allocation164_spill] sm:$0xff] %v7035_v47  ;;  %1658 = vmatpush.msrb.mxu2 %v7050_v31  ;;  %v7053_v47 = vld [vmem:[#allocation10 + $0x30] sm:$0xff] }
 0x26d   :  { %10437 = vst [vmem:[#allocation165_spill] sm:$0xff] %v7038_v41  ;;  %1619 = vmatpush.msra.mxu0 %v7053_v47  ;;  %v7056_v41 = vld [vmem:[#allocation10 + $0x38] sm:$0xff] }
 0x26e   :  { %10438 = vst [vmem:[#allocation166_spill] sm:$0xff] %v7041_v22  ;;  %1659 = vmatpush.msrb.mxu2 %v7056_v41  ;;  %v7059_v22 = vld [vmem:[#allocation10 + $0x10] sm:$0xff] }
 0x26f   :  { %10439 = vst [vmem:[#allocation167_spill] sm:$0xff] %v7044_v34  ;;  %1620 = vmatpush.msra.mxu0 %v7059_v22  ;;  %v7062_v34 = vld [vmem:[#allocation10 + $0x18] sm:$0xff] }
 0x270   :  { %10440 = vst [vmem:[#allocation168_spill] sm:$0xff] %v7047_v1  ;;  %1660 = vmatpush.msrb.mxu2 %v7062_v34  ;;  %v1107_v1 = vpop.f32.mrf.mxu1 }
 0x271   :  { %10441 = vst [vmem:[#allocation169_spill] sm:$0xff] %v7050_v31  ;;  %v1088_v31 = vadd.f32 %v1087_v18, %v6385_v5 }
 0x272   :  { %10442 = vst [vmem:[#allocation170_spill] sm:$0xff] %v7053_v47  ;;  %v1127_v47 = vpop.f32.mrf.mxu2 }
 0x273   :  { %10443 = vst [vmem:[#allocation171_spill] sm:$0xff] %v7056_v41  ;;  %v1108_v42 = vadd.f32 %v1107_v1, %v1088_v31  ;;  %v1128_v41 = vadd.f32 %v1127_v47, %v6388_v15 }
 0x274   :  { %10444 = vst [vmem:[#allocation172_spill] sm:$0xff] %v7059_v22 }
 0x275   :  { %10445 = vst [vmem:[#allocation173_spill] sm:$0xff] %v7062_v34  ;;  %v4101_v35 = vmul.f32 -1.442695, %v1108_v42  ;;  %v1148_v13 = vadd.f32 %v1147_v32, %v1128_v41  ;;  %v1227_v34 = vpop.f32.mrf.mxu3  ;;  %v1167_v42 = vpop.f32.mrf.mxu0 }
 0x276   :  { %v1168_v32 = vadd.f32 %v1167_v42, %v6394_v45 }
 0x277   :  { %4226 = vpow2.f32 %v4101_v35  ;;  %v4102_v59 = vmul.f32 -1.442695, %v1148_v13 }
 0x278   :  { %v1187_v40 = vpop.f32.mrf.mxu1 }
 0x279   :  { %4228 = vpow2.f32 %v4102_v59  ;;  %v1188_v47 = vadd.f32 %v1187_v40, %v1168_v32 }
 0x27a   :  { %v1207_v63 = vpop.f32.mrf.mxu2 }
 0x27b   :  { %v1208_v14 = vadd.f32 %v1207_v63, %v6391_v2 }
 0x27d   :  { %v4227_v55 = vpop.eup %4226  ;;  %v1228_v1 = vadd.f32 %v1227_v34, %v1208_v14  ;;  %v1370_v59 = vpop.f32.mrf.mxu3 }
 0x27e   :  { %v1233_v27 = vadd.f32 1.0, %v4227_v55 }
 0x27f   :  { %v4229_v18 = vpop.eup %4228  ;;  %v4103_v5 = vmul.f32 -1.442695, %v1228_v1 }
 0x280   :  { %v1330_v22 = vpop.f32.mrf.mxu1  ;;  %4230 = vrcp.f32 %v1233_v27  ;;  %v1252_v31 = vadd.f32 1.0, %v4229_v18  ;;  %v1245_v14 = vand.u32 2147483648, %v1233_v27  ;;  %vm1239_vm11 = vweird.f32 %v1233_v27 }
 0x281   :  { %v1243_v19 = vand.u32 2147483647, %v1233_v27 }
 0x282   :  { %4232 = vrcp.f32 %v1252_v31  ;;  %v1264_v42 = vand.u32 2147483648, %v1252_v31  ;;  %vm1258_vm14 = vweird.f32 %v1252_v31 }
 0x283   :  { %4234 = vpow2.f32 %v4103_v5  ;;  %vm1244_vm15 = vcmp.eq.f32.partialorder %v1243_v19, 8.507059e+37 }
 0x284   :  { %4236 = vtanh.f32 %v1188_v47 }
 0x286   :  { %v4231_v58 = vpop.eup %4230 }
 0x287   :  { %v1235_v35 = vmul.f32 %v4231_v58, %v1233_v27  ;;  %vm1240_vm10 = vweird.f32 %v4231_v58 }
 0x288   :  { %v1415_v13 = vpop.f32.mrf.mxu1  ;;  %v4233_v43 = vpop.eup %4232  ;;  %vm1241_vm12 = vmor %vm1239_vm11, %vm1240_vm10 }
 0x289   :  { %v1236_v41 = vsub.f32 1.0, %v1235_v35  ;;  %v1416_v55 = vadd.f32 %v1415_v13, %v1330_v22  ;;  %v4235_v39 = vpop.eup %4234  ;;  %v1254_v63 = vmul.f32 %v4233_v43, %v1252_v31  ;;  %vm1259_vm13 = vweird.f32 %v4233_v43  ;;  %v1455_v13 = vpop.f32.mrf.mxu3 }
 0x28a   :  { %v1272_v18 = vadd.f32 1.0, %v4235_v39  ;;  %v1262_v22 = vand.u32 2147483647, %v1252_v31  ;;  %v1246_v35 = vor.u32 1.1754944e-38, %v1245_v14  ;;  %vm1260_vm2 = vmor %vm1258_vm14, %vm1259_vm13  ;;  %v1310_v31 = vpop.f32.mrf.mxu0 }
 0x28b   :  { %v1237_v15 = vmul.f32 %v4231_v58, %v1236_v41  ;;  %v1459_v34 = vadd.f32 %v1416_v55, %v10269_v4  ;;  %v1255_v1 = vsub.f32 1.0, %v1254_v63  ;;  %v1265_v41 = vor.u32 1.1754944e-38, %v1264_v42  ;;  %v4237_v55 = vpop.eup %4236 }
 0x28c   :  { %4238 = vrcp.f32 %v1272_v18  ;;  %vm1263_vm3 = vcmp.eq.f32.partialorder %v1262_v22, 8.507059e+37  ;;  %v1456_v4 = vadd.f32 %v1455_v13, %v1370_v59  ;;  %vm1278_vm5 = vweird.f32 %v1272_v18 }
 0x28d   :  { %v1238_v2 = vadd.f32 %v4231_v58, %v1237_v15  ;;  %v1256_v5 = vmul.f32 %v4233_v43, %v1255_v1  ;;  %v4109_v32 = vmul.f32 -1.442695, %v1459_v34 }
 0x28e   :  { %v1461_v19 = vadd.f32 %v1456_v4, %v10270_v61 }
 0x28f   :  { %v1242_v40 = vsel %vm1241_vm12, %v4231_v58, %v1238_v2  ;;  %v1257_v15 = vadd.f32 %v4233_v43, %v1256_v5  ;;  %4240 = vpow2.f32 %v4109_v32  ;;  %v1284_v5 = vand.u32 2147483648, %v1272_v18 }
 0x290   :  { %v1247_v39 = vsel %vm1244_vm15, %v1246_v35, %v1242_v40  ;;  %v1282_v40 = vand.u32 2147483647, %v1272_v18  ;;  %v4110_v22 = vmul.f32 -1.442695, %v1461_v19 }
 0x291   :  { %v1261_v63 = vsel %vm1260_vm2, %v4233_v43, %v1257_v15  ;;  %v1289_v2 = vmul.f32 %v4237_v55, %v1247_v39 }
 0x292   :  { %v4239_v27 = vpop.eup %4238  ;;  %v1266_v47 = vsel %vm1263_vm3, %v1265_v41, %v1261_v63  ;;  %vm1283_vm7 = vcmp.eq.f32.partialorder %v1282_v40, 8.507059e+37 }
 0x293   :  { %v1288_v1 = vmul.f32 %v1266_v47, %v6398_v36  ;;  %v1274_v58 = vmul.f32 %v4239_v27, %v1272_v18  ;;  %vm1279_vm4 = vweird.f32 %v4239_v27  ;;  %v1285_v36 = vor.u32 1.1754944e-38, %v1284_v5  ;;  %v1395_v13 = vpop.f32.mrf.mxu0 }
 0x294   :  { %vm1280_vm6 = vmor %vm1278_vm5, %vm1279_vm4  ;;  %v1396_v41 = vadd.f32 %v1395_v13, %v1310_v31  ;;  %v10451_v31 = vld [vmem:[#allocation119_spill] sm:$0xff] }
 0x295   :  { %v7071_v14 = vadd.f32 %v1289_v2, %v1288_v1  ;;  %v1275_v34 = vsub.f32 1.0, %v1274_v58  ;;  %v4241_v42 = vpop.eup %4240  ;;  %v10447_v1 = vld [vmem:[#allocation20_spill] sm:$0xff] }
 0x296   :  { %v7075_v59 = vadd.f32 1.0, %v4241_v42  ;;  %v1458_v55 = vadd.f32 %v1396_v41, %v10271_v46  ;;  %v10449_v2 = vld [vmem:[#allocation52_spill] sm:$0xff] }
 0x297   :  { %4242 = vtanh.f32 %v7071_v14  ;;  %v1276_v43 = vmul.f32 %v4239_v27, %v1275_v34  ;;  %v10452_v34 = vld [vmem:[#allocation53_spill] sm:$0xff] }
 0x298   :  { %4244 = vpow2.f32 %v4110_v22  ;;  %v4108_v18 = vmul.f32 -1.442695, %v1458_v55  ;;  %v10454_v22 = vld [vmem:[#allocation22_spill] sm:$0xff]  ;;  %vm1490_vm9 = vweird.f32 %v7075_v59 }
 0x299   :  { %v1277_v35 = vadd.f32 %v4239_v27, %v1276_v43  ;;  %4246 = vrcp.f32 %v7075_v59  ;;  %v1496_v43 = vand.u32 2147483648, %v7075_v59 }
 0x29a   :  { %4248 = vpow2.f32 %v4108_v18 }
 0x29b   :  { %v1281_v32 = vsel %vm1280_vm6, %v4239_v27, %v1277_v35  ;;  %v1350_v27 = vpop.f32.mrf.mxu2  ;;  %v10455_v35 = vld [vmem:[#allocation55_spill] sm:$0xff]  ;;  %v1497_v18 = vor.u32 1.1754944e-38, %v1496_v43 }
 0x29c   :  { %v1286_v4 = vsel %vm1283_vm7, %v1285_v36, %v1281_v32  ;;  %v1494_v32 = vand.u32 2147483647, %v7075_v59  ;;  %v7219_v43 = vld [vmem:[#allocation7 + $0x100] sm:$0xff] }
 0x29d   :  { %v4243_v15 = vpop.eup %4242 }
 0x29e   :  { %v1292_v39 = vmul.f32 %v4243_v15, %v1286_v4  ;;  %v4245_v63 = vpop.eup %4244  ;;  %v10458_v4 = vld [vmem:[#allocation56_spill] sm:$0xff]  ;;  %vm1495_vm13 = vcmp.eq.f32.partialorder %v1494_v32, 8.507059e+37  ;;  %v10471_v32 = vld [vmem:[#allocation67_spill] sm:$0xff] }
 0x29f   :  { %v4247_v47 = vpop.eup %4246  ;;  %v7231_v15 = vld [vmem:[#allocation7 + $0xf0] sm:$0xff] }
 0x2a0   :  { %1561 = vmatmul.f32.vlgmr.msrb.gmra.mxu1 %v1292_v39  ;;  %1601 = vmatmul.f32.vlgmr.msra.gmra.mxu3 %v1292_v39  ;;  %vm1491_vm8 = vweird.f32 %v4247_v47 }
 0x2a1   :  { %1768 = vmatpush.msrb.mxu1 %v6406_v21  ;;  %1808 = vmatpush.msra.mxu3 %v6409_v3  ;;  %v1486_v21 = vmul.f32 %v4247_v47, %v7075_v59  ;;  %v7088_v3 = vadd.f32 1.0, %v4245_v63  ;;  %vm7113_vm10 = vmor %vm1490_vm9, %vm1491_vm8  ;;  %v10460_v59 = vld [vmem:[#allocation57_spill] sm:$0xff] }
 0x2a3   :  { %1769 = vmatpush.msrb.mxu1 %v6412_v28  ;;  %1809 = vmatpush.msra.mxu3 %v6415_v29  ;;  %v4249_v28 = vpop.eup %4248  ;;  %4250 = vrcp.f32 %v7088_v3  ;;  %vm1510_vm3 = vweird.f32 %v7088_v3 }
 0x2a4   :  { %v1465_v29 = vadd.f32 1.0, %v4249_v28 }
 0x2a5   :  { %1770 = vmatpush.msrb.mxu1 %v6420_v37  ;;  %1810 = vmatpush.msra.mxu3 %v6423_v62  ;;  %v1487_v37 = vsub.f32 1.0, %v1486_v21  ;;  %v1435_v62 = vpop.f32.mrf.mxu2 }
 0x2a6   :  { %4252 = vrcp.f32 %v1465_v29  ;;  %v1477_v13 = vand.u32 2147483648, %v1465_v29  ;;  %vm1471_vm12 = vweird.f32 %v1465_v29 }
 0x2a7   :  { %1771 = vmatpush.msrb.mxu1 %v6430_v44  ;;  %1811 = vmatpush.msra.mxu3 %v6433_v48  ;;  %v10446_v44 = vld [vmem:[#allocation51_spill] sm:$0xff]  ;;  %v1436_v48 = vadd.f32 %v1435_v62, %v1350_v27  ;;  %v10459_v27 = vld [vmem:[#allocation24_spill] sm:$0xff] }
 0x2a8   :  { %1641 = vmatmul.f32.vlgmr.msra.gmra.mxu1 %v1292_v39  ;;  %1681 = vmatmul.f32.vlgmr.msrb.gmra.mxu3 %v1292_v39  ;;  %v1475_v39 = vand.u32 2147483647, %v1465_v29  ;;  %v1478_v28 = vor.u32 1.1754944e-38, %v1477_v13  ;;  %v10472_v13 = vld [vmem:[#allocation68_spill] sm:$0xff] }
 0x2a9   :  { %1772 = vmatpush.msrb.mxu1 %v6436_v56  ;;  %1812 = vmatpush.msra.mxu3 %v6439_v57  ;;  %v10448_v56 = vld [vmem:[#allocation43_spill] sm:$0xff]  ;;  %v1488_v57 = vmul.f32 %v4247_v47, %v1487_v37  ;;  %v1460_v19 = vadd.f32 %v1436_v48, %v10451_v31 }
 0x2aa   :  { %vm1476_vm15 = vcmp.eq.f32.partialorder %v1475_v39, 8.507059e+37  ;;  %v7239_v39 = vld [vmem:[#allocation7 + $0xd0] sm:$0xff] }
 0x2ab   :  { %1773 = vmatpush.msrb.mxu1 %v6445_v60  ;;  %1813 = vmatpush.msra.mxu3 %v6448_v51  ;;  %v10450_v60 = vld [vmem:[#allocation21_spill] sm:$0xff]  ;;  %v7101_v51 = vpop.eup %4250  ;;  %v1489_v42 = vadd.f32 %v4247_v47, %v1488_v57  ;;  %4254 = vtanh.f32 %v1460_v19  ;;  %v10466_v19 = vld [vmem:[#allocation62_spill] sm:$0xff] }
 0x2ac   :  { %v4253_v58 = vpop.eup %4252  ;;  %v1506_v40 = vmul.f32 %v7101_v51, %v7088_v3  ;;  %vm1511_vm2 = vweird.f32 %v7101_v51  ;;  %v7178_v57 = vld [vmem:[#allocation7 + $0x1b0] sm:$0xff] }
 0x2ad   :  { %1774 = vmatpush.msrb.mxu1 %v6452_v50  ;;  %1814 = vmatpush.msra.mxu3 %v10446_v44  ;;  %v10453_v50 = vld [vmem:[#allocation54_spill] sm:$0xff]  ;;  %v1467_v5 = vmul.f32 %v4253_v58, %v1465_v29  ;;  %vm1472_vm11 = vweird.f32 %v4253_v58  ;;  %v1493_v55 = vsel %vm7113_vm10, %v4247_v47, %v1489_v42  ;;  %vm1512_vm4 = vmor %vm1510_vm3, %vm1511_vm2  ;;  %v10468_v42 = vld [vmem:[#allocation64_spill] sm:$0xff] }
 0x2ae   :  { %v1507_v63 = vsub.f32 1.0, %v1506_v40  ;;  %vm1473_vm14 = vmor %vm1471_vm12, %vm1472_vm11  ;;  %v10469_v40 = vld [vmem:[#allocation65_spill] sm:$0xff] }
 0x2af   :  { %1775 = vmatpush.msrb.mxu1 %v10447_v1  ;;  %1815 = vmatpush.msra.mxu3 %v10448_v56  ;;  %v1468_v36 = vsub.f32 1.0, %v1467_v5  ;;  %v7215_v5 = vld [vmem:[#allocation7 + $0x130] sm:$0xff] }
 0x2b0   :  { %v1508_v47 = vmul.f32 %v7101_v51, %v1507_v63  ;;  %v10475_v63 = vld [vmem:[#allocation71_spill] sm:$0xff] }
 0x2b1   :  { %1776 = vmatpush.msrb.mxu1 %v10449_v2  ;;  %1816 = vmatpush.msra.mxu3 %v10450_v60  ;;  %v1469_v41 = vmul.f32 %v4253_v58, %v1468_v36  ;;  %v4255_v62 = vpop.eup %4254  ;;  %v7189_v2 = vld [vmem:[#allocation7 + $0x190] sm:$0xff]  ;;  %v7227_v36 = vld [vmem:[#allocation7 + $0xe0] sm:$0xff] }
 0x2b2   :  { %v7197_v60 = vld [vmem:[#allocation7 + $0x170] sm:$0xff] }
 0x2b3   :  { %1777 = vmatpush.msrb.mxu1 %v10452_v34  ;;  %1817 = vmatpush.msra.mxu3 %v10453_v50  ;;  %v1470_v21 = vadd.f32 %v4253_v58, %v1469_v41  ;;  %v7211_v34 = vld [vmem:[#allocation7 + $0x120] sm:$0xff]  ;;  %v10473_v41 = vld [vmem:[#allocation69_spill] sm:$0xff] }
 0x2b4   :  { %v10467_v50 = vld [vmem:[#allocation63_spill] sm:$0xff] }
 0x2b5   :  { %1778 = vmatpush.msrb.mxu1 %v10454_v22  ;;  %1818 = vmatpush.msra.mxu3 %v10455_v35  ;;  %v1474_v37 = vsel %vm1473_vm14, %v4253_v58, %v1470_v21  ;;  %v7207_v58 = vld [vmem:[#allocation7 + $0x150] sm:$0xff]  ;;  %v10470_v35 = vld [vmem:[#allocation66_spill] sm:$0xff] }
 0x2b6   :  { %v1479_v44 = vsel %vm1476_vm15, %v1478_v28, %v1474_v37  ;;  %v7223_v22 = vld [vmem:[#allocation7 + $0x110] sm:$0xff]  ;;  %v7251_v21 = vld [vmem:[#allocation7 + $0x80] sm:$0xff] }
 0x2b7   :  { %1779 = vmatpush.msrb.mxu1 %v6505_v6  ;;  %1819 = vmatpush.msra.mxu3 %v10458_v4  ;;  %v1498_v6 = vsel %vm1495_vm13, %v1497_v18, %v1493_v55  ;;  %v1521_v48 = vmul.f32 %v4255_v62, %v1479_v44  ;;  %v7235_v4 = vld [vmem:[#allocation7 + $0xc0] sm:$0xff]  ;;  %v10477_v28 = vld [vmem:[#allocation73_spill] sm:$0xff] }
 0x2b8   :  { %v1520_v29 = vmul.f32 %v1498_v6, %v6533_v16  ;;  %v10462_v16 = vld [vmem:[#allocation58_spill] sm:$0xff]  ;;  %v7255_v6 = vld [vmem:[#allocation7 + $0x90] sm:$0xff] }
 0x2b9   :  { %1780 = vmatpush.msrb.mxu1 %v10459_v27  ;;  %1820 = vmatpush.msra.mxu3 %v10460_v59  ;;  %v10474_v55 = vld [vmem:[#allocation70_spill] sm:$0xff]  ;;  %v7247_v27 = vld [vmem:[#allocation7 + $0xb0] sm:$0xff] }
 0x2ba   :  { %v7243_v18 = vld [vmem:[#allocation7 + $0xa0] sm:$0xff]  ;;  %v10476_v59 = vld [vmem:[#allocation72_spill] sm:$0xff] }
 0x2bb   :  { %1781 = vmatpush.msrb.mxu1 %v6519_v26  ;;  %1821 = vmatpush.msra.mxu3 %v6522_v52  ;;  %v7131_v26 = vadd.f32 %v1521_v48, %v1520_v29  ;;  %v1509_v52 = vadd.f32 %v7101_v51, %v1508_v47  ;;  %v10478_v37 = vld [vmem:[#allocation74_spill] sm:$0xff]  ;;  %v10479_v47 = vld [vmem:[#allocation75_spill] sm:$0xff]  ;;  %v7263_v44 = vld [vmem:[#allocation7 + $0x70] sm:$0xff] }
 0x2bc   :  { %v7259_v62 = vld [vmem:[#allocation7 + $0x60] sm:$0xff]  ;;  %v10480_v29 = vld [vmem:[#allocation76_spill] sm:$0xff] }
 0x2bd   :  { %1782 = vmatpush.msrb.mxu1 %v6527_v54  ;;  %1822 = vmatpush.msra.mxu3 %v6530_v23  ;;  %v1516_v54 = vand.u32 2147483648, %v7088_v3  ;;  %4256 = vtanh.f32 %v7131_v26  ;;  %v10461_v23 = vld [vmem:[#allocation26_spill] sm:$0xff] }
 0x2be   :  { %v7267_v48 = vld [vmem:[#allocation7 + $0x40] sm:$0xff] }
 0x2bf   :  { %1783 = vmatpush.msrb.mxu1 %v6535_v10  ;;  %1823 = vmatpush.msra.mxu3 %v6538_v11  ;;  %v1514_v10 = vand.u32 2147483647, %v7088_v3  ;;  %v10463_v11 = vld [vmem:[#allocation59_spill] sm:$0xff] }
 0x2c1   :  { %1861 = vmatpush.msra.mxu1 %v6543_v12  ;;  %1901 = vmatpush.msrb.mxu3 %v6546_v38  ;;  %v1513_v12 = vsel %vm1512_vm4, %v7101_v51, %v1509_v52  ;;  %v1517_v38 = vor.u32 1.1754944e-38, %v1516_v54  ;;  %vm1515_vm5 = vcmp.eq.f32.partialorder %v1514_v10, 8.507059e+37  ;;  %v7204_v51 = vld [vmem:[#allocation7 + $0x140] sm:$0xff]  ;;  %v10481_v52 = vld [vmem:[#allocation77_spill] sm:$0xff] }
 0x2c2   :  { %v7271_v54 = vld [vmem:[#allocation7 + $0x50] sm:$0xff]  ;;  %v10483_v10 = vld [vmem:[#allocation79_spill] sm:$0xff] }
 0x2c3   :  { %1862 = vmatpush.msra.mxu1 %v10461_v23  ;;  %1902 = vmatpush.msrb.mxu3 %v10462_v16  ;;  %v4257_v1 = vpop.eup %4256  ;;  %v1518_v56 = vsel %vm1515_vm5, %v1517_v38, %v1513_v12  ;;  %v10482_v23 = vld [vmem:[#allocation78_spill] sm:$0xff]  ;;  %v10484_v12 = vld [vmem:[#allocation80_spill] sm:$0xff] }
 0x2c4   :  { %v7150_v3 = vmul.f32 %v4257_v1, %v1518_v56  ;;  %v7275_v16 = vld [vmem:[#allocation7 + $0x20] sm:$0xff]  ;;  %v10485_v1 = vld [vmem:[#allocation81_spill] sm:$0xff] }
 0x2c5   :  { %1863 = vmatpush.msra.mxu1 %v10463_v11  ;;  %1903 = vmatpush.msrb.mxu3 %v6563_v20  ;;  %v7156_v20 = vld [vmem:[#allocation7 + $0x1e0] sm:$0xff]  ;;  %v7279_v11 = vld [vmem:[#allocation7 + $0x30] sm:$0xff] }
 0x2c6   :  { %1541 = vmatmul.f32.vlgmr.msrb.gmra.mxu0 %v7150_v3  ;;  %1581 = vmatmul.f32.vlgmr.msra.gmra.mxu2 %v7150_v3  ;;  %v7283_v38 = vld [vmem:[#allocation7] sm:$0xff]  ;;  %v7287_v56 = vld [vmem:[#allocation7 + $0x10] sm:$0xff] }
 0x2c7   :  { %1864 = vmatpush.msra.mxu1 %v6566_v9  ;;  %1904 = vmatpush.msrb.mxu3 %v6569_v24  ;;  %v7160_v9 = vld [vmem:[#allocation7 + $0x1f0] sm:$0xff]  ;;  %v1829_v24 = vrot.slane %v6597_v25, 2 }
 0x2c8   :  { %1748 = vmatpush.msrb.mxu0 %v7156_v20  ;;  %1784 = vmatmul.f32.vlgmr.msrb.gmra.mxu1 %v7150_v3 }
 0x2c9   :  { %1865 = vmatpush.msra.mxu1 %v6574_v53  ;;  %1905 = vmatpush.msrb.mxu3 %v6577_v30  ;;  %v7164_v53 = vld [vmem:[#allocation7 + $0x1c0] sm:$0xff]  ;;  %v1828_v30 = vrot.slane %v6594_v33, 3 }
 0x2ca   :  { %1788 = vmatpush.msra.mxu2 %v7160_v9  ;;  %1824 = vmatmul.f32.vlgmr.msra.gmra.mxu3 %v7150_v3  ;;  %v7182_v33 = vld [vmem:[#allocation7 + $0x180] sm:$0xff] }
 0x2cb   :  { %1866 = vmatpush.msra.mxu1 %v6587_v17  ;;  %1906 = vmatpush.msrb.mxu3 %v6591_v7  ;;  %v7170_v17 = vld [vmem:[#allocation7 + $0x1d0] sm:$0xff]  ;;  %v7174_v7 = vld [vmem:[#allocation7 + $0x1a0] sm:$0xff]  ;;  %v7186_v25 = vsel %vm446_vm0, %v1829_v24, %v1828_v30 }
 0x2cc   :  { %1749 = vmatpush.msrb.mxu0 %v7164_v53  ;;  %1789 = vmatpush.msra.mxu2 %v7170_v17  ;;  %v7292_v30 = vld [vmem:[#allocation5 + $0xe0] sm:$0xff]  ;;  %v7295_v24 = vld [vmem:[#allocation5 + $0xf0] sm:$0xff] }
 0x2cd   :  { %1867 = vmatpush.msra.mxu1 %v6601_v49  ;;  %1907 = vmatpush.msrb.mxu3 %v6605_v8  ;;  %v10464_v49 = vld [vmem:[#allocation60_spill] sm:$0xff]  ;;  %v10465_v8 = vld [vmem:[#allocation61_spill] sm:$0xff]  ;;  %10486 = vst [vmem:[#allocation51_spill] sm:$0xff] %v7295_v24 }
 0x2ce   :  { %1750 = vmatpush.msrb.mxu0 %v7174_v7  ;;  %1790 = vmatpush.msra.mxu2 %v7178_v57 }
 0x2cf   :  { %1868 = vmatpush.msra.mxu1 %v6609_v0  ;;  %1908 = vmatpush.msrb.mxu3 %v10464_v49  ;;  %v7194_v0 = vld [vmem:[#allocation7 + $0x160] sm:$0xff] }
 0x2d0   :  { %1751 = vmatpush.msrb.mxu0 %v7182_v33  ;;  %1791 = vmatpush.msra.mxu2 %v7189_v2  ;;  %v10487_v49 = vld [vmem:[#allocation82_spill] sm:$0xff] }
 0x2d1   :  { %2000 = vmatpush.msrb.mxu1 %v10465_v8  ;;  %1621 = vmatmul.f32.vlgmr.msra.gmra.mxu0 %v7150_v3  ;;  %v7299_v8 = vld [vmem:[#allocation5 + $0xc0] sm:$0xff] }
 0x2d2   :  { %1661 = vmatmul.f32.vlgmr.msrb.gmra.mxu2 %v7150_v3  ;;  %1752 = vmatpush.msrb.mxu0 %v7194_v0  ;;  %10488 = vst [vmem:[#allocation20_spill] sm:$0xff] %v7299_v8 }
 0x2d3   :  { %1792 = vmatpush.msra.mxu2 %v7197_v60  ;;  %4115 = vmatmul.msk.f32.vlgmr.msra.gmra.mxu1 %vm448_vm1, %v7186_v25 }
 0x2d4   :  { %4117 = vmatmul.msk.f32.vlgmr.msrb.gmra.mxu3 %vm448_vm1, %v7186_v25  ;;  %1753 = vmatpush.msrb.mxu0 %v7204_v51 }
 0x2d5   :  { %1793 = vmatpush.msra.mxu2 %v7207_v58  ;;  %2040 = vmatpush.msra.mxu3 %v10466_v19  ;;  %v10489_v19 = vld [vmem:[#allocation83_spill] sm:$0xff] }
 0x2d6   :  { %1754 = vmatpush.msrb.mxu0 %v7211_v34  ;;  %2001 = vmatpush.msrb.mxu1 %v10467_v50  ;;  %v7303_v50 = vld [vmem:[#allocation5 + $0xd0] sm:$0xff] }
 0x2d7   :  { %1794 = vmatpush.msra.mxu2 %v7215_v5  ;;  %2041 = vmatpush.msra.mxu3 %v10468_v42  ;;  %10490 = vst [vmem:[#allocation43_spill] sm:$0xff] %v7303_v50  ;;  %v7307_v42 = vld [vmem:[#allocation5 + $0xa0] sm:$0xff] }
 0x2d8   :  { %1755 = vmatpush.msrb.mxu0 %v7219_v43  ;;  %2002 = vmatpush.msrb.mxu1 %v10469_v40  ;;  %10492 = vst [vmem:[#allocation52_spill] sm:$0xff] %v7307_v42  ;;  %v10493_v40 = vld [vmem:[#allocation85_spill] sm:$0xff] }
 0x2d9   :  { %1795 = vmatpush.msra.mxu2 %v7223_v22  ;;  %2042 = vmatpush.msra.mxu3 %v10470_v35  ;;  %v7311_v35 = vld [vmem:[#allocation5 + $0xb0] sm:$0xff] }
 0x2da   :  { %1756 = vmatpush.msrb.mxu0 %v7227_v36  ;;  %2003 = vmatpush.msrb.mxu1 %v10471_v32  ;;  %10494 = vst [vmem:[#allocation21_spill] sm:$0xff] %v7311_v35  ;;  %v10495_v32 = vld [vmem:[#allocation86_spill] sm:$0xff] }
 0x2db   :  { %1796 = vmatpush.msra.mxu2 %v7231_v15  ;;  %2043 = vmatpush.msra.mxu3 %v10472_v13  ;;  %v7315_v13 = vld [vmem:[#allocation5 + $0x80] sm:$0xff] }
 0x2dc   :  { %1757 = vmatpush.msrb.mxu0 %v7235_v4  ;;  %2004 = vmatpush.msrb.mxu1 %v10473_v41  ;;  %10496 = vst [vmem:[#allocation53_spill] sm:$0xff] %v7315_v13  ;;  %v10497_v41 = vld [vmem:[#allocation88_spill] sm:$0xff] }
 0x2dd   :  { %1797 = vmatpush.msra.mxu2 %v7239_v39  ;;  %2044 = vmatpush.msra.mxu3 %v10474_v55  ;;  %v10498_v55 = vld [vmem:[#allocation87_spill] sm:$0xff] }
 0x2de   :  { %1758 = vmatpush.msrb.mxu0 %v7243_v18  ;;  %2005 = vmatpush.msrb.mxu1 %v10475_v63  ;;  %v10499_v63 = vld [vmem:[#allocation89_spill] sm:$0xff] }
 0x2df   :  { %1798 = vmatpush.msra.mxu2 %v7247_v27  ;;  %2045 = vmatpush.msra.mxu3 %v10476_v59  ;;  %v7321_v59 = vld [vmem:[#allocation5 + $0x60] sm:$0xff] }
 0x2e0   :  { %1759 = vmatpush.msrb.mxu0 %v7251_v21  ;;  %2006 = vmatpush.msrb.mxu1 %v10477_v28  ;;  %10500 = vst [vmem:[#allocation54_spill] sm:$0xff] %v7321_v59  ;;  %v10501_v28 = vld [vmem:[#allocation91_spill] sm:$0xff] }
 0x2e1   :  { %1799 = vmatpush.msra.mxu2 %v7255_v6  ;;  %2046 = vmatpush.msra.mxu3 %v10478_v37  ;;  %v10502_v37 = vld [vmem:[#allocation90_spill] sm:$0xff] }
 0x2e2   :  { %1760 = vmatpush.msrb.mxu0 %v7259_v62  ;;  %2007 = vmatpush.msrb.mxu1 %v10479_v47  ;;  %v10503_v47 = vld [vmem:[#allocation92_spill] sm:$0xff] }
 0x2e3   :  { %1800 = vmatpush.msra.mxu2 %v7263_v44  ;;  %2047 = vmatpush.msra.mxu3 %v10480_v29  ;;  %v7327_v29 = vld [vmem:[#allocation5 + $0x40] sm:$0xff] }
 0x2e4   :  { %1761 = vmatpush.msrb.mxu0 %v7267_v48  ;;  %2008 = vmatpush.msrb.mxu1 %v10481_v52  ;;  %10504 = vst [vmem:[#allocation22_spill] sm:$0xff] %v7327_v29  ;;  %v10505_v52 = vld [vmem:[#allocation94_spill] sm:$0xff] }
 0x2e5   :  { %1801 = vmatpush.msra.mxu2 %v7271_v54  ;;  %2048 = vmatpush.msra.mxu3 %v10482_v23  ;;  %v10506_v23 = vld [vmem:[#allocation93_spill] sm:$0xff] }
 0x2e6   :  { %1762 = vmatpush.msrb.mxu0 %v7275_v16  ;;  %2009 = vmatpush.msrb.mxu1 %v10483_v10  ;;  %v10507_v10 = vld [vmem:[#allocation95_spill] sm:$0xff] }
 0x2e7   :  { %1802 = vmatpush.msra.mxu2 %v7279_v11  ;;  %2049 = vmatpush.msra.mxu3 %v10484_v12  ;;  %v7333_v12 = vld [vmem:[#allocation5 + $0x20] sm:$0xff] }
 0x2e8   :  { %1763 = vmatpush.msrb.mxu0 %v7283_v38  ;;  %2010 = vmatpush.msrb.mxu1 %v10485_v1  ;;  %10508 = vst [vmem:[#allocation55_spill] sm:$0xff] %v7333_v12  ;;  %v10509_v1 = vld [vmem:[#allocation97_spill] sm:$0xff] }
 0x2e9   :  { %1803 = vmatpush.msra.mxu2 %v7287_v56  ;;  %1764 = vmatmul.f32.vlgmr.msrb.gmra.mxu0 %v7150_v3 }
 0x2ea   :  { %1804 = vmatmul.f32.vlgmr.msra.gmra.mxu2 %v7150_v3  ;;  %1841 = vmatpush.msra.mxu0 %v7292_v30  ;;  %v10491_v3 = vld [vmem:[#allocation84_spill] sm:$0xff] }
 0x2eb   :  { %1881 = vmatpush.msrb.mxu2 %v7295_v24  ;;  %2050 = vmatpush.msra.mxu3 %v10487_v49  ;;  %v10510_v49 = vld [vmem:[#allocation96_spill] sm:$0xff] }
 0x2ec   :  { %1842 = vmatpush.msra.mxu0 %v7299_v8  ;;  %2011 = vmatpush.msrb.mxu1 %v10489_v19  ;;  %v10511_v19 = vld [vmem:[#allocation98_spill] sm:$0xff] }
 0x2ed   :  { %1882 = vmatpush.msrb.mxu2 %v7303_v50  ;;  %2051 = vmatpush.msra.mxu3 %v10491_v3  ;;  %v7339_v3 = vld [vmem:[#allocation5] sm:$0xff]  ;;  %v10611_v50 = vld [vmem:[#allocation116_spill] sm:$0xff] }
 0x2ee   :  { %1843 = vmatpush.msra.mxu0 %v7307_v42  ;;  %2012 = vmatpush.msrb.mxu1 %v10493_v40  ;;  %10512 = vst [vmem:[#allocation56_spill] sm:$0xff] %v7339_v3  ;;  %v10513_v40 = vld [vmem:[#allocation100_spill] sm:$0xff] }
 0x2ef   :  { %1883 = vmatpush.msrb.mxu2 %v7311_v35  ;;  %2052 = vmatpush.msra.mxu3 %v10495_v32  ;;  %v10514_v32 = vld [vmem:[#allocation99_spill] sm:$0xff] }
 0x2f0   :  { %1844 = vmatpush.msra.mxu0 %v7315_v13  ;;  %2013 = vmatpush.msrb.mxu1 %v10497_v41  ;;  %v10515_v41 = vld [vmem:[#allocation101_spill] sm:$0xff] }
 0x2f1   :  { %1884 = vmatpush.msrb.mxu2 %v10498_v55  ;;  %2053 = vmatpush.msra.mxu3 %v10499_v63  ;;  %v10516_v55 = vld [vmem:[#allocation104_spill] sm:$0xff]  ;;  %v10517_v63 = vld [vmem:[#allocation102_spill] sm:$0xff] }
 0x2f2   :  { %1845 = vmatpush.msra.mxu0 %v7321_v59  ;;  %2014 = vmatpush.msrb.mxu1 %v10501_v28  ;;  %v10518_v28 = vld [vmem:[#allocation105_spill] sm:$0xff] }
 0x2f3   :  { %1885 = vmatpush.msrb.mxu2 %v10502_v37  ;;  %2054 = vmatpush.msra.mxu3 %v10503_v47  ;;  %v10519_v37 = vld [vmem:[#allocation103_spill] sm:$0xff]  ;;  %v10520_v47 = vld [vmem:[#allocation108_spill] sm:$0xff]  ;;  %v10610_v59 = vld [vmem:[#allocation41_spill] sm:$0xff] }
 0x2f4   :  { %1846 = vmatpush.msra.mxu0 %v7327_v29  ;;  %2015 = vmatpush.msrb.mxu1 %v10505_v52  ;;  %v10521_v52 = vld [vmem:[#allocation106_spill] sm:$0xff] }
 0x2f5   :  { %1886 = vmatpush.msrb.mxu2 %v10506_v23  ;;  %2055 = vmatpush.msra.mxu3 %v10507_v10  ;;  %v10522_v23 = vld [vmem:[#allocation109_spill] sm:$0xff]  ;;  %v10523_v10 = vld [vmem:[#allocation107_spill] sm:$0xff] }
 0x2f6   :  { %1847 = vmatpush.msra.mxu0 %v7333_v12  ;;  %2080 = vmatpush.msra.mxu1 %v10509_v1  ;;  %v10524_v1 = vld [vmem:[#allocation112_spill] sm:$0xff] }
 0x2f7   :  { %1887 = vmatpush.msrb.mxu2 %v10510_v49  ;;  %2120 = vmatpush.msrb.mxu3 %v10511_v19  ;;  %v10526_v49 = vld [vmem:[#allocation113_spill] sm:$0xff]  ;;  %v10527_v19 = vld [vmem:[#allocation111_spill] sm:$0xff] }
 0x2f8   :  { %1848 = vmatpush.msra.mxu0 %v7339_v3  ;;  %2081 = vmatpush.msra.mxu1 %v10513_v40  ;;  %v10528_v40 = vld [vmem:[#allocation115_spill] sm:$0xff] }
 0x2f9   :  { %1888 = vmatpush.msrb.mxu2 %v10514_v32  ;;  %4114 = vmatmul.msk.f32.vlgmr.msra.gmra.mxu0 %vm448_vm1, %v7186_v25  ;;  %v10529_v32 = vld [vmem:[#allocation117_spill] sm:$0xff] }
 0x2fa   :  { %4116 = vmatmul.msk.f32.vlgmr.msrb.gmra.mxu2 %vm448_vm1, %v7186_v25  ;;  %2121 = vmatpush.msrb.mxu3 %v10515_v41  ;;  %v10525_v25 = vld [vmem:[#allocation110_spill] sm:$0xff] }
 0x2fb   :  { %2082 = vmatpush.msra.mxu1 %v10516_v55  ;;  %1980 = vmatpush.msrb.mxu0 %v10517_v63  ;;  %v10530_v41 = vld [vmem:[#allocation114_spill] sm:$0xff]  ;;  %v10532_v63 = vld [vmem:[#allocation25_spill] sm:$0xff] }
 0x2fc   :  { %2122 = vmatpush.msrb.mxu3 %v10518_v28  ;;  %2020 = vmatpush.msra.mxu2 %v10519_v37  ;;  %v10531_v55 = vld [vmem:[#allocation118_spill] sm:$0xff]  ;;  %v10533_v28 = vld [vmem:[#allocation23_spill] sm:$0xff]  ;;  %v10534_v37 = vld [vmem:[#allocation36_spill] sm:$0xff] }
 0x2fd   :  { %2083 = vmatpush.msra.mxu1 %v10520_v47  ;;  %1981 = vmatpush.msrb.mxu0 %v10521_v52  ;;  %v10535_v47 = vld [vmem:[#allocation34_spill] sm:$0xff]  ;;  %v10536_v52 = vld [vmem:[#allocation28_spill] sm:$0xff] }
 0x2fe   :  { %2123 = vmatpush.msrb.mxu3 %v10522_v23  ;;  %2021 = vmatpush.msra.mxu2 %v10523_v10  ;;  %v10537_v23 = vld [vmem:[#allocation27_spill] sm:$0xff]  ;;  %v10538_v10 = vld [vmem:[#allocation40_spill] sm:$0xff] }
 0x2ff   :  { %2084 = vmatpush.msra.mxu1 %v10524_v1  ;;  %1982 = vmatpush.msrb.mxu0 %v10525_v25  ;;  %v10539_v1 = vld [vmem:[#allocation38_spill] sm:$0xff] }
 0x300   :  { %2124 = vmatpush.msrb.mxu3 %v10526_v49  ;;  %2022 = vmatpush.msra.mxu2 %v10527_v19  ;;  %v10540_v25 = vld [vmem:[#allocation30_spill] sm:$0xff]  ;;  %v10541_v49 = vld [vmem:[#allocation29_spill] sm:$0xff]  ;;  %v10542_v19 = vld [vmem:[#allocation44_spill] sm:$0xff] }
 0x301   :  { %2085 = vmatpush.msra.mxu1 %v10528_v40  ;;  %1983 = vmatpush.msrb.mxu0 %v10529_v32  ;;  %v10543_v40 = vld [vmem:[#allocation42_spill] sm:$0xff]  ;;  %v10544_v32 = vld [vmem:[#allocation32_spill] sm:$0xff] }
 0x302   :  { %2125 = vmatpush.msrb.mxu3 %v10530_v41  ;;  %2023 = vmatpush.msra.mxu2 %v10531_v55  ;;  %v10545_v41 = vld [vmem:[#allocation31_spill] sm:$0xff]  ;;  %v10546_v55 = vld [vmem:[#allocation46_spill] sm:$0xff] }
 0x303   :  { %2086 = vmatpush.msra.mxu1 %v10532_v63  ;;  %1984 = vmatpush.msrb.mxu0 %v10533_v28  ;;  %v10547_v63 = vld [vmem:[#allocation45_spill] sm:$0xff]  ;;  %v10548_v28 = vld [vmem:[#allocation35_spill] sm:$0xff] }
 0x304   :  { %2126 = vmatpush.msrb.mxu3 %v10534_v37  ;;  %2024 = vmatpush.msra.mxu2 %v10535_v47  ;;  %v10549_v37 = vld [vmem:[#allocation33_spill] sm:$0xff]  ;;  %v10550_v47 = vld [vmem:[#allocation48_spill] sm:$0xff] }
 0x305   :  { %2087 = vmatpush.msra.mxu1 %v10536_v52  ;;  %1985 = vmatpush.msrb.mxu0 %v10537_v23  ;;  %v10551_v52 = vld [vmem:[#allocation47_spill] sm:$0xff]  ;;  %v10552_v23 = vld [vmem:[#allocation120_spill] sm:$0xff] }
 0x306   :  { %2127 = vmatpush.msrb.mxu3 %v10538_v10  ;;  %2025 = vmatpush.msra.mxu2 %v10539_v1  ;;  %v10553_v10 = vld [vmem:[#allocation37_spill] sm:$0xff] }
 0x307   :  { %2088 = vmatpush.msra.mxu1 %v10540_v25  ;;  %1986 = vmatpush.msrb.mxu0 %v10541_v49  ;;  %v10554_v1 = vld [vmem:[#allocation121_spill] sm:$0xff]  ;;  %v10556_v49 = vld [vmem:[#allocation124_spill] sm:$0xff] }
 0x308   :  { %2128 = vmatpush.msrb.mxu3 %v10542_v19  ;;  %2026 = vmatpush.msra.mxu2 %v10543_v40  ;;  %v10555_v25 = vld [vmem:[#allocation49_spill] sm:$0xff]  ;;  %v10557_v19 = vld [vmem:[#allocation122_spill] sm:$0xff] }
 0x309   :  { %2089 = vmatpush.msra.mxu1 %v10544_v32  ;;  %1987 = vmatpush.msrb.mxu0 %v10545_v41  ;;  %v10558_v40 = vld [vmem:[#allocation125_spill] sm:$0xff]  ;;  %v10559_v32 = vld [vmem:[#allocation123_spill] sm:$0xff]  ;;  %v10560_v41 = vld [vmem:[#allocation128_spill] sm:$0xff] }
 0x30a   :  { %2129 = vmatpush.msrb.mxu3 %v10546_v55  ;;  %2027 = vmatpush.msra.mxu2 %v10547_v63  ;;  %v10561_v55 = vld [vmem:[#allocation126_spill] sm:$0xff]  ;;  %v10562_v63 = vld [vmem:[#allocation129_spill] sm:$0xff] }
 0x30b   :  { %2090 = vmatpush.msra.mxu1 %v10548_v28  ;;  %1988 = vmatpush.msrb.mxu0 %v10549_v37  ;;  %v10563_v28 = vld [vmem:[#allocation127_spill] sm:$0xff]  ;;  %v10564_v37 = vld [vmem:[#allocation132_spill] sm:$0xff] }
 0x30c   :  { %2130 = vmatpush.msrb.mxu3 %v10550_v47  ;;  %2028 = vmatpush.msra.mxu2 %v10551_v52  ;;  %v10565_v47 = vld [vmem:[#allocation130_spill] sm:$0xff]  ;;  %v10566_v52 = vld [vmem:[#allocation133_spill] sm:$0xff] }
 0x30d   :  { %2091 = vmatpush.msra.mxu1 %v10552_v23  ;;  %1989 = vmatpush.msrb.mxu0 %v10553_v10  ;;  %v10567_v23 = vld [vmem:[#allocation131_spill] sm:$0xff]  ;;  %v10568_v10 = vld [vmem:[#allocation136_spill] sm:$0xff] }
 0x30e   :  { %2131 = vmatpush.msrb.mxu3 %v10554_v1  ;;  %2029 = vmatpush.msra.mxu2 %v10555_v25  ;;  %v10569_v1 = vld [vmem:[#allocation134_spill] sm:$0xff]  ;;  %v10570_v25 = vld [vmem:[#allocation137_spill] sm:$0xff] }
 0x30f   :  { %2092 = vmatpush.msra.mxu1 %v10556_v49  ;;  %1990 = vmatpush.msrb.mxu0 %v10557_v19  ;;  %v10571_v49 = vld [vmem:[#allocation135_spill] sm:$0xff]  ;;  %v10572_v19 = vld [vmem:[#allocation138_spill] sm:$0xff] }
 0x310   :  { %2132 = vmatpush.msrb.mxu3 %v10558_v40  ;;  %2030 = vmatpush.msra.mxu2 %v10559_v32  ;;  %v10573_v40 = vld [vmem:[#allocation139_spill] sm:$0xff]  ;;  %v10574_v32 = vld [vmem:[#allocation140_spill] sm:$0xff] }
 0x311   :  { %2093 = vmatpush.msra.mxu1 %v10560_v41  ;;  %1991 = vmatpush.msrb.mxu0 %v10561_v55  ;;  %v10575_v41 = vld [vmem:[#allocation141_spill] sm:$0xff]  ;;  %v10576_v55 = vld [vmem:[#allocation142_spill] sm:$0xff] }
 0x312   :  { %2133 = vmatpush.msrb.mxu3 %v10562_v63  ;;  %2031 = vmatpush.msra.mxu2 %v10563_v28  ;;  %v10577_v63 = vld [vmem:[#allocation143_spill] sm:$0xff]  ;;  %v10578_v28 = vld [vmem:[#allocation144_spill] sm:$0xff] }
 0x313   :  { %2094 = vmatpush.msra.mxu1 %v10564_v37  ;;  %1992 = vmatpush.msrb.mxu0 %v10565_v47  ;;  %v10579_v37 = vld [vmem:[#allocation145_spill] sm:$0xff]  ;;  %v10580_v47 = vld [vmem:[#allocation146_spill] sm:$0xff] }
 0x314   :  { %2134 = vmatpush.msrb.mxu3 %v10566_v52  ;;  %2032 = vmatpush.msra.mxu2 %v10567_v23  ;;  %v10581_v52 = vld [vmem:[#allocation147_spill] sm:$0xff]  ;;  %v10582_v23 = vld [vmem:[#allocation148_spill] sm:$0xff] }
 0x315   :  { %2095 = vmatpush.msra.mxu1 %v10568_v10  ;;  %1993 = vmatpush.msrb.mxu0 %v10569_v1  ;;  %v10583_v10 = vld [vmem:[#allocation149_spill] sm:$0xff]  ;;  %v10584_v1 = vld [vmem:[#allocation150_spill] sm:$0xff] }
 0x316   :  { %2135 = vmatpush.msrb.mxu3 %v10570_v25  ;;  %2033 = vmatpush.msra.mxu2 %v10571_v49  ;;  %v10585_v25 = vld [vmem:[#allocation151_spill] sm:$0xff]  ;;  %v10586_v49 = vld [vmem:[#allocation152_spill] sm:$0xff] }
 0x317   :  { %1994 = vmatpush.msrb.mxu0 %v10572_v19  ;;  %v10587_v19 = vld [vmem:[#allocation153_spill] sm:$0xff] }
 0x318   :  { %2034 = vmatpush.msra.mxu2 %v10573_v40  ;;  %v10588_v40 = vld [vmem:[#allocation154_spill] sm:$0xff] }
 0x319   :  { %1995 = vmatpush.msrb.mxu0 %v10574_v32  ;;  %v10589_v32 = vld [vmem:[#allocation155_spill] sm:$0xff] }
 0x31a   :  { %2035 = vmatpush.msra.mxu2 %v10575_v41  ;;  %v10590_v41 = vld [vmem:[#allocation156_spill] sm:$0xff] }
 0x31b   :  { %2060 = vmatpush.msra.mxu0 %v10576_v55  ;;  %v10591_v55 = vld [vmem:[#allocation157_spill] sm:$0xff] }
 0x31c   :  { %2100 = vmatpush.msrb.mxu2 %v10577_v63  ;;  %v10592_v63 = vld [vmem:[#allocation158_spill] sm:$0xff] }
 0x31d   :  { %2061 = vmatpush.msra.mxu0 %v10578_v28  ;;  %v10593_v28 = vld [vmem:[#allocation159_spill] sm:$0xff] }
 0x31e   :  { %2101 = vmatpush.msrb.mxu2 %v10579_v37  ;;  %v10594_v37 = vld [vmem:[#allocation160_spill] sm:$0xff] }
 0x31f   :  { %2062 = vmatpush.msra.mxu0 %v10580_v47  ;;  %v10595_v47 = vld [vmem:[#allocation161_spill] sm:$0xff] }
 0x320   :  { %2102 = vmatpush.msrb.mxu2 %v10581_v52  ;;  %v10596_v52 = vld [vmem:[#allocation162_spill] sm:$0xff] }
 0x321   :  { %2063 = vmatpush.msra.mxu0 %v10582_v23  ;;  %v10597_v23 = vld [vmem:[#allocation163_spill] sm:$0xff] }
 0x322   :  { %2103 = vmatpush.msrb.mxu2 %v10583_v10  ;;  %v10598_v10 = vld [vmem:[#allocation164_spill] sm:$0xff] }
 0x323   :  { %2064 = vmatpush.msra.mxu0 %v10584_v1  ;;  %v10599_v1 = vld [vmem:[#allocation165_spill] sm:$0xff] }
 0x324   :  { %2104 = vmatpush.msrb.mxu2 %v10585_v25  ;;  %v10600_v25 = vld [vmem:[#allocation166_spill] sm:$0xff] }
 0x325   :  { %2065 = vmatpush.msra.mxu0 %v10586_v49  ;;  %v10601_v49 = vld [vmem:[#allocation167_spill] sm:$0xff] }
 0x326   :  { %2105 = vmatpush.msrb.mxu2 %v10587_v19  ;;  %v10602_v19 = vld [vmem:[#allocation168_spill] sm:$0xff] }
 0x327   :  { %2066 = vmatpush.msra.mxu0 %v10588_v40  ;;  %v10603_v40 = vld [vmem:[#allocation169_spill] sm:$0xff] }
 0x328   :  { %2106 = vmatpush.msrb.mxu2 %v10589_v32  ;;  %v10604_v32 = vld [vmem:[#allocation170_spill] sm:$0xff] }
 0x329   :  { %2067 = vmatpush.msra.mxu0 %v10590_v41  ;;  %v10605_v41 = vld [vmem:[#allocation171_spill] sm:$0xff] }
 0x32a   :  { %2107 = vmatpush.msrb.mxu2 %v10591_v55  ;;  %v10606_v55 = vld [vmem:[#allocation172_spill] sm:$0xff] }
 0x32b   :  { %2068 = vmatpush.msra.mxu0 %v10592_v63  ;;  %v10607_v63 = vld [vmem:[#allocation173_spill] sm:$0xff] }
 0x32c   :  { %2108 = vmatpush.msrb.mxu2 %v10593_v28  ;;  %v1562_v28 = vpop.f32.mrf.mxu1 }
 0x32d   :  { %2069 = vmatpush.msra.mxu0 %v10594_v37 }
 0x32e   :  { %2109 = vmatpush.msrb.mxu2 %v10595_v47  ;;  %v10608_v47 = vld [vmem:[#allocation39_spill] sm:$0xff] }
 0x32f   :  { %2070 = vmatpush.msra.mxu0 %v10596_v52 }
 0x330   :  { %2110 = vmatpush.msrb.mxu2 %v10597_v23 }
 0x331   :  { %2071 = vmatpush.msra.mxu0 %v10598_v10 }
 0x332   :  { %2111 = vmatpush.msrb.mxu2 %v10599_v1 }
 0x333   :  { %2072 = vmatpush.msra.mxu0 %v10600_v25  ;;  %v1602_v25 = vpop.f32.mrf.mxu3 }
 0x334   :  { %2112 = vmatpush.msrb.mxu2 %v10601_v49  ;;  %v1642_v23 = vpop.f32.mrf.mxu1 }
 0x335   :  { %2073 = vmatpush.msra.mxu0 %v10602_v19  ;;  %v10609_v19 = vld [vmem:[#allocation50_spill] sm:$0xff] }
 0x336   :  { %2113 = vmatpush.msrb.mxu2 %v10603_v40 }
 0x337   :  { %2074 = vmatpush.msra.mxu0 %v10604_v32 }
 0x338   :  { %2114 = vmatpush.msrb.mxu2 %v10605_v41 }
 0x339   :  { %2075 = vmatpush.msra.mxu0 %v10606_v55 }
 0x33a   :  { %2115 = vmatpush.msrb.mxu2 %v10607_v63 }
 0x33b   :  { %v1682_v63 = vpop.f32.mrf.mxu3 }
 0x343   :  { %v1542_v37 = vpop.f32.mrf.mxu0 }
 0x344   :  { %v1543_v52 = vadd.f32 %v1542_v37, %v10608_v47 }
 0x345   :  { %v1785_v32 = vpop.f32.mrf.mxu1 }
 0x346   :  { %v1563_v10 = vadd.f32 %v1562_v28, %v1543_v52 }
 0x348   :  { %v4111_v1 = vmul.f32 -1.442695, %v1563_v10 }
 0x349   :  { %v1582_v49 = vpop.f32.mrf.mxu2 }
 0x34a   :  { %4258 = vpow2.f32 %v4111_v1  ;;  %v1583_v40 = vadd.f32 %v1582_v49, %v10609_v19 }
 0x34c   :  { %v1603_v3 = vadd.f32 %v1602_v25, %v1583_v40 }
 0x34e   :  { %v4112_v12 = vmul.f32 -1.442695, %v1603_v3  ;;  %v1622_v52 = vpop.f32.mrf.mxu0  ;;  %v1825_v3 = vpop.f32.mrf.mxu3 }
 0x34f   :  { %v1623_v25 = vadd.f32 %v1622_v52, %v6394_v45 }
 0x350   :  { %v4259_v41 = vpop.eup %4258  ;;  %4260 = vpow2.f32 %v4112_v12  ;;  %v1870_v10 = vpop.f32.mrf.mxu1 }
 0x351   :  { %v1688_v55 = vadd.f32 1.0, %v4259_v41  ;;  %v1871_v12 = vadd.f32 %v1870_v10, %v1785_v32  ;;  %v1643_v41 = vadd.f32 %v1642_v23, %v1623_v25 }
 0x353   :  { %4262 = vrcp.f32 %v1688_v55  ;;  %vm1694_vm7 = vweird.f32 %v1688_v55  ;;  %v1698_v24 = vand.u32 2147483647, %v1688_v55 }
 0x355   :  { %v1662_v29 = vpop.f32.mrf.mxu2  ;;  %vm1699_vm11 = vcmp.eq.f32.partialorder %v1698_v24, 8.507059e+37 }
 0x356   :  { %v1663_v13 = vadd.f32 %v1662_v29, %v10610_v59  ;;  %v4261_v37 = vpop.eup %4260  ;;  %v1914_v29 = vadd.f32 %v1871_v12, %v10611_v50 }
 0x357   :  { %v1707_v28 = vadd.f32 1.0, %v4261_v37  ;;  %v1700_v37 = vand.u32 2147483648, %v1688_v55  ;;  %v1910_v25 = vpop.f32.mrf.mxu3 }
 0x358   :  { %v1683_v47 = vadd.f32 %v1682_v63, %v1663_v13 }
 0x359   :  { %v4263_v1 = vpop.eup %4262  ;;  %4264 = vrcp.f32 %v1707_v28  ;;  %v1719_v52 = vand.u32 2147483648, %v1707_v28  ;;  %v1717_v10 = vand.u32 2147483647, %v1707_v28  ;;  %vm1713_vm10 = vweird.f32 %v1707_v28 }
 0x35a   :  { %v4113_v35 = vmul.f32 -1.442695, %v1683_v47  ;;  %v1690_v49 = vmul.f32 %v4263_v1, %v1688_v55  ;;  %vm1695_vm6 = vweird.f32 %v4263_v1  ;;  %v1911_v55 = vadd.f32 %v1910_v25, %v1825_v3 }
 0x35b   :  { %vm1696_vm8 = vmor %vm1694_vm7, %vm1695_vm6  ;;  %v1720_v12 = vor.u32 1.1754944e-38, %v1719_v52  ;;  %vm1718_vm13 = vcmp.eq.f32.partialorder %v1717_v10, 8.507059e+37 }
 0x35c   :  { %4266 = vpow2.f32 %v4113_v35  ;;  %v1691_v40 = vsub.f32 1.0, %v1690_v49  ;;  %v4119_v35 = vmul.f32 -1.442695, %v1914_v29  ;;  %v1701_v49 = vor.u32 1.1754944e-38, %v1700_v37 }
 0x35d   :  { %4268 = vtanh.f32 %v1643_v41  ;;  %v1916_v24 = vadd.f32 %v1911_v55, %v10270_v61  ;;  %v7458_v55 = vld [vmem:[#allocation7 + $0x1f8] sm:$0xff] }
 0x35e   :  { %v1692_v19 = vmul.f32 %v4263_v1, %v1691_v40 }
 0x35f   :  { %v4265_v42 = vpop.eup %4264  ;;  %v4120_v3 = vmul.f32 -1.442695, %v1916_v24  ;;  %v7472_v24 = vld [vmem:[#allocation7 + $0x1b8] sm:$0xff] }
 0x360   :  { %v1709_v13 = vmul.f32 %v4265_v42, %v1707_v28  ;;  %v1693_v63 = vadd.f32 %v4263_v1, %v1692_v19  ;;  %vm1714_vm9 = vweird.f32 %v4265_v42  ;;  %10612 = vst [vmem:[#allocation24_spill] sm:$0xff] %v7472_v24 }
 0x361   :  { %vm1715_vm12 = vmor %vm1713_vm10, %vm1714_vm9 }
 0x362   :  { %v4267_v59 = vpop.eup %4266  ;;  %v1710_v8 = vsub.f32 1.0, %v1709_v13  ;;  %v1697_v23 = vsel %vm1696_vm8, %v4263_v1, %v1693_v63 }
 0x363   :  { %v1727_v47 = vadd.f32 1.0, %v4267_v59  ;;  %v1702_v59 = vsel %vm1699_vm11, %v1701_v49, %v1697_v23  ;;  %v4269_v40 = vpop.eup %4268 }
 0x364   :  { %v1711_v32 = vmul.f32 %v4265_v42, %v1710_v8  ;;  %v1744_v50 = vmul.f32 %v4269_v40, %v1702_v59 }
 0x365   :  { %4270 = vrcp.f32 %v1727_v47  ;;  %vm1733_vm15 = vweird.f32 %v1727_v47 }
 0x366   :  { %v1712_v19 = vadd.f32 %v4265_v42, %v1711_v32  ;;  %4272 = vpow2.f32 %v4119_v35  ;;  %v1765_v63 = vpop.f32.mrf.mxu0  ;;  %v1737_v35 = vand.u32 2147483647, %v1727_v47 }
 0x368   :  { %v1716_v13 = vsel %vm1715_vm12, %v4265_v42, %v1712_v19  ;;  %v1739_v42 = vand.u32 2147483648, %v1727_v47  ;;  %vm1738_vm3 = vcmp.eq.f32.partialorder %v1737_v35, 8.507059e+37  ;;  %v7482_v35 = vld [vmem:[#allocation7 + $0x198] sm:$0xff] }
 0x369   :  { %v1721_v29 = vsel %vm1718_vm13, %v1720_v12, %v1716_v13  ;;  %10614 = vst [vmem:[#allocation26_spill] sm:$0xff] %v7482_v35 }
 0x36a   :  { %v1743_v8 = vmul.f32 %v1721_v29, %v7071_v14  ;;  %v1740_v49 = vor.u32 1.1754944e-38, %v1739_v42  ;;  %v7479_v42 = vld [vmem:[#allocation7 + $0x188] sm:$0xff] }
 0x36b   :  { %v4271_v41 = vpop.eup %4270  ;;  %10613 = vst [vmem:[#allocation57_spill] sm:$0xff] %v7479_v42 }
 0x36c   :  { %v1729_v1 = vmul.f32 %v4271_v41, %v1727_v47  ;;  %v7447_v37 = vadd.f32 %v1744_v50, %v1743_v8  ;;  %v4273_v32 = vpop.eup %4272  ;;  %vm1734_vm14 = vweird.f32 %v4271_v41  ;;  %v7455_v47 = vld [vmem:[#allocation7 + $0x1e8] sm:$0xff] }
 0x36d   :  { %v7451_v10 = vadd.f32 1.0, %v4273_v32  ;;  %vm1735_vm2 = vmor %vm1733_vm15, %vm1734_vm14  ;;  %v1805_v29 = vpop.f32.mrf.mxu2  ;;  %v7461_v8 = vld [vmem:[#allocation7 + $0x1c8] sm:$0xff] }
 0x36e   :  { %v1730_v28 = vsub.f32 1.0, %v1729_v1  ;;  %4274 = vtanh.f32 %v7447_v37  ;;  %v7464_v1 = vld [vmem:[#allocation7 + $0x1d8] sm:$0xff] }
 0x36f   :  { %4276 = vpow2.f32 %v4120_v3  ;;  %vm1945_vm5 = vweird.f32 %v7451_v10 }
 0x370   :  { %v1731_v52 = vmul.f32 %v4271_v41, %v1730_v28  ;;  %4278 = vrcp.f32 %v7451_v10  ;;  %v7469_v28 = vld [vmem:[#allocation7 + $0x1a8] sm:$0xff] }
 0x372   :  { %v1732_v23 = vadd.f32 %v4271_v41, %v1731_v52 }
 0x374   :  { %v1736_v14 = vsel %vm1735_vm2, %v4271_v41, %v1732_v23  ;;  %v4275_v25 = vpop.eup %4274  ;;  %v7485_v23 = vld [vmem:[#allocation7 + $0x168] sm:$0xff] }
 0x375   :  { %v1741_v12 = vsel %vm1738_vm3, %v1740_v49, %v1736_v14  ;;  %v4277_v41 = vpop.eup %4276  ;;  %10615 = vst [vmem:[#allocation58_spill] sm:$0xff] %v7485_v23  ;;  %v7488_v14 = vld [vmem:[#allocation7 + $0x178] sm:$0xff] }
 0x376   :  { %v1850_v50 = vpop.f32.mrf.mxu0  ;;  %v1747_v59 = vmul.f32 %v4275_v25, %v1741_v12  ;;  %v7477_v52 = vadd.f32 1.0, %v4277_v41  ;;  %10616 = vst [vmem:[#allocation59_spill] sm:$0xff] %v7488_v14  ;;  %v7497_v12 = vld [vmem:[#allocation7 + $0x158] sm:$0xff] }
 0x377   :  { %v1851_v19 = vadd.f32 %v1850_v50, %v1765_v63  ;;  %v7467_v63 = vpop.eup %4278  ;;  %10618 = vst [vmem:[#allocation61_spill] sm:$0xff] %v7497_v12 }
 0x378   :  { %2016 = vmatmul.f32.vlgmr.msrb.gmra.mxu1 %v1747_v59  ;;  %2056 = vmatmul.f32.vlgmr.msra.gmra.mxu3 %v1747_v59  ;;  %v1941_v32 = vmul.f32 %v7467_v63, %v7451_v10  ;;  %vm1946_vm4 = vweird.f32 %v7467_v63  ;;  %vm1965_vm13 = vweird.f32 %v7477_v52 }
 0x379   :  { %v1913_v40 = vadd.f32 %v1851_v19, %v10271_v46  ;;  %2223 = vmatpush.msrb.mxu1 %v7455_v47  ;;  %2263 = vmatpush.msra.mxu3 %v7458_v55  ;;  %v7494_v19 = vld [vmem:[#allocation7 + $0x148] sm:$0xff]  ;;  %vm7545_vm6 = vmor %vm1945_vm5, %vm1946_vm4 }
 0x37a   :  { %v1942_v50 = vsub.f32 1.0, %v1941_v32  ;;  %10617 = vst [vmem:[#allocation60_spill] sm:$0xff] %v7494_v19  ;;  %v7508_v32 = vld [vmem:[#allocation7 + $0x108] sm:$0xff] }
 0x37b   :  { %v4118_v13 = vmul.f32 -1.442695, %v1913_v40  ;;  %2224 = vmatpush.msrb.mxu1 %v7461_v8  ;;  %2264 = vmatpush.msra.mxu3 %v7464_v1  ;;  %v7504_v40 = vld [vmem:[#allocation7 + $0x138] sm:$0xff]  ;;  %10621 = vst [vmem:[#allocation64_spill] sm:$0xff] %v7508_v32 }
 0x37c   :  { %10620 = vst [vmem:[#allocation63_spill] sm:$0xff] %v7504_v40  ;;  %v1943_v41 = vmul.f32 %v7467_v63, %v1942_v50 }
 0x37d   :  { %4280 = vpow2.f32 %v4118_v13  ;;  %2225 = vmatpush.msrb.mxu1 %v7469_v28  ;;  %2265 = vmatpush.msra.mxu3 %v7472_v24  ;;  %v1890_v25 = vpop.f32.mrf.mxu2 }
 0x37e   :  { %4282 = vrcp.f32 %v7477_v52  ;;  %v1891_v13 = vadd.f32 %v1890_v25, %v1805_v29 }
 0x37f   :  { %2226 = vmatpush.msrb.mxu1 %v7479_v42  ;;  %2266 = vmatpush.msra.mxu3 %v7482_v35 }
 0x380   :  { %2096 = vmatmul.f32.vlgmr.msra.gmra.mxu1 %v1747_v59  ;;  %2136 = vmatmul.f32.vlgmr.msrb.gmra.mxu3 %v1747_v59  ;;  %v7501_v59 = vld [vmem:[#allocation7 + $0x128] sm:$0xff]  ;;  %v1915_v50 = vadd.f32 %v1891_v13, %v10451_v31  ;;  %v1949_v31 = vand.u32 2147483647, %v7451_v10 }
 0x381   :  { %2227 = vmatpush.msrb.mxu1 %v7485_v23  ;;  %2267 = vmatpush.msra.mxu3 %v7488_v14  ;;  %10619 = vst [vmem:[#allocation62_spill] sm:$0xff] %v7501_v59  ;;  %v7537_v14 = vld [vmem:[#allocation7 + $0xa8] sm:$0xff] }
 0x382   :  { %10627 = vst [vmem:[#allocation70_spill] sm:$0xff] %v7537_v14  ;;  %v7554_v23 = vld [vmem:[#allocation7 + $0x88] sm:$0xff]  ;;  %vm1950_vm9 = vcmp.eq.f32.partialorder %v1949_v31, 8.507059e+37 }
 0x383   :  { %v4281_v3 = vpop.eup %4280  ;;  %2228 = vmatpush.msrb.mxu1 %v7494_v19  ;;  %2268 = vmatpush.msra.mxu3 %v7497_v12  ;;  %v7516_v19 = vld [vmem:[#allocation7 + $0xe8] sm:$0xff] }
 0x384   :  { %v7491_v49 = vadd.f32 1.0, %v4281_v3  ;;  %v7511_v3 = vld [vmem:[#allocation7 + $0x118] sm:$0xff]  ;;  %v7514_v12 = vpop.eup %4282  ;;  %10623 = vst [vmem:[#allocation66_spill] sm:$0xff] %v7516_v19 }
 0x385   :  { %2229 = vmatpush.msrb.mxu1 %v7501_v59  ;;  %2269 = vmatpush.msra.mxu3 %v7504_v40  ;;  %10622 = vst [vmem:[#allocation65_spill] sm:$0xff] %v7511_v3  ;;  %v7519_v59 = vld [vmem:[#allocation7 + $0xf8] sm:$0xff]  ;;  %vm1966_vm12 = vweird.f32 %v7514_v12 }
 0x386   :  { %4284 = vrcp.f32 %v7491_v49  ;;  %10624 = vst [vmem:[#allocation67_spill] sm:$0xff] %v7519_v59  ;;  %v7529_v40 = vld [vmem:[#allocation7 + $0xd8] sm:$0xff]  ;;  %vm1926_vm8 = vweird.f32 %v7491_v49  ;;  %vm1967_vm14 = vmor %vm1965_vm13, %vm1966_vm12 }
 0x387   :  { %2230 = vmatpush.msrb.mxu1 %v7508_v32  ;;  %2270 = vmatpush.msra.mxu3 %v7511_v3  ;;  %v1944_v32 = vadd.f32 %v7467_v63, %v1943_v41  ;;  %v7526_v3 = vld [vmem:[#allocation7 + $0xc8] sm:$0xff]  ;;  %10626 = vst [vmem:[#allocation69_spill] sm:$0xff] %v7529_v40  ;;  %v7540_v41 = vld [vmem:[#allocation7 + $0xb8] sm:$0xff]  ;;  %4286 = vtanh.f32 %v1915_v50 }
 0x388   :  { %10625 = vst [vmem:[#allocation68_spill] sm:$0xff] %v7526_v3  ;;  %v7561_v50 = vld [vmem:[#allocation7 + $0x68] sm:$0xff] }
 0x389   :  { %2231 = vmatpush.msrb.mxu1 %v7516_v19  ;;  %2271 = vmatpush.msra.mxu3 %v7519_v59  ;;  %v1951_v19 = vand.u32 2147483648, %v7451_v10  ;;  %v1961_v59 = vmul.f32 %v7514_v12, %v7477_v52  ;;  %10628 = vst [vmem:[#allocation71_spill] sm:$0xff] %v7540_v41  ;;  %v1930_v10 = vand.u32 2147483647, %v7491_v49 }
 0x38a   :  { %10632 = vst [vmem:[#allocation73_spill] sm:$0xff] %v7561_v50 }
 0x38b   :  { %2232 = vmatpush.msrb.mxu1 %v7526_v3  ;;  %2272 = vmatpush.msra.mxu3 %v7529_v40  ;;  %v1932_v3 = vand.u32 2147483648, %v7491_v49  ;;  %v1952_v35 = vor.u32 1.1754944e-38, %v1951_v19  ;;  %v1962_v42 = vsub.f32 1.0, %v1961_v59  ;;  %v7564_v40 = vld [vmem:[#allocation7 + $0x78] sm:$0xff]  ;;  %vm1931_vm11 = vcmp.eq.f32.partialorder %v1930_v10, 8.507059e+37  ;;  %v7568_v19 = vld [vmem:[#allocation7 + $0x48] sm:$0xff] }
 0x38c   :  { %v4285_v29 = vpop.eup %4284  ;;  %10633 = vst [vmem:[#allocation74_spill] sm:$0xff] %v7564_v40  ;;  %v1971_v10 = vand.u32 2147483648, %v7477_v52 }
 0x38d   :  { %v1922_v25 = vmul.f32 %v4285_v29, %v7491_v49  ;;  %2233 = vmatpush.msrb.mxu1 %v7537_v14  ;;  %2273 = vmatpush.msra.mxu3 %v7540_v41  ;;  %vm1927_vm7 = vweird.f32 %v4285_v29  ;;  %v1948_v14 = vsel %vm7545_vm6, %v7467_v63, %v1944_v32  ;;  %v7557_v41 = vld [vmem:[#allocation7 + $0x98] sm:$0xff]  ;;  %v1933_v63 = vor.u32 1.1754944e-38, %v1932_v3  ;;  %v4287_v31 = vpop.eup %4286 }
 0x38e   :  { %10631 = vst [vmem:[#allocation72_spill] sm:$0xff] %v7557_v41  ;;  %vm1928_vm10 = vmor %vm1926_vm8, %vm1927_vm7  ;;  %v1953_v32 = vsel %vm1950_vm9, %v1952_v35, %v1948_v14  ;;  %v7571_v49 = vld [vmem:[#allocation7 + $0x58] sm:$0xff]  ;;  %v1963_v59 = vmul.f32 %v7514_v12, %v1962_v42  ;;  %v7584_v14 = vld [vmem:[#allocation7 + $0x8] sm:$0xff] }
 0x38f   :  { %v1923_v13 = vsub.f32 1.0, %v1922_v25  ;;  %2234 = vmatpush.msrb.mxu1 %v7554_v23  ;;  %2274 = vmatpush.msra.mxu3 %v7557_v41  ;;  %v7576_v41 = vld [vmem:[#allocation7 + $0x28] sm:$0xff]  ;;  %v7587_v3 = vld [vmem:[#allocation7 + $0x18] sm:$0xff] }
 0x390   :  { %v7592_v42 = vld [vmem:[#allocation5 + $0xe8] sm:$0xff] }
 0x391   :  { %v1924_v25 = vmul.f32 %v4285_v29, %v1923_v13  ;;  %2235 = vmatpush.msrb.mxu1 %v7561_v50  ;;  %2275 = vmatpush.msra.mxu3 %v7564_v40  ;;  %v1975_v40 = vmul.f32 %v1953_v32, %v7131_v26  ;;  %v1964_v26 = vadd.f32 %v7514_v12, %v1963_v59  ;;  %v7615_v59 = vld [vmem:[#allocation5 + $0x88] sm:$0xff] }
 0x393   :  { %v1925_v24 = vadd.f32 %v4285_v29, %v1924_v25  ;;  %2236 = vmatpush.msrb.mxu1 %v7568_v19  ;;  %2276 = vmatpush.msra.mxu3 %v7571_v49  ;;  %v1968_v32 = vsel %vm1967_vm14, %v7514_v12, %v1964_v26 }
 0x395   :  { %v1929_v13 = vsel %vm1928_vm10, %v4285_v29, %v1925_v24  ;;  %2237 = vmatpush.msrb.mxu1 %v7576_v41  ;;  %v7579_v24 = vld [vmem:[#allocation7 + $0x38] sm:$0xff] }
 0x396   :  { %v1934_v25 = vsel %vm1931_vm11, %v1933_v63, %v1929_v13  ;;  %2277 = vmatpush.msra.mxu3 %v7579_v24  ;;  %v7595_v29 = vld [vmem:[#allocation5 + $0xf8] sm:$0xff]  ;;  %v7609_v13 = vld [vmem:[#allocation5 + $0xa8] sm:$0xff] }
 0x397   :  { %v1976_v50 = vmul.f32 %v4287_v31, %v1934_v25  ;;  %2238 = vmatpush.msrb.mxu1 %v7584_v14  ;;  %v7605_v63 = vld [vmem:[#allocation5 + $0xd8] sm:$0xff]  ;;  %10636 = vst [vmem:[#allocation77_spill] sm:$0xff] %v7609_v13 }
 0x398   :  { %2278 = vmatpush.msra.mxu3 %v7587_v3  ;;  %10635 = vst [vmem:[#allocation76_spill] sm:$0xff] %v7605_v63  ;;  %v7612_v31 = vld [vmem:[#allocation5 + $0xb8] sm:$0xff] }
 0x399   :  { %v7582_v35 = vadd.f32 %v1976_v50, %v1975_v40  ;;  %2316 = vmatpush.msra.mxu1 %v7592_v42  ;;  %v1969_v50 = vand.u32 2147483647, %v7477_v52  ;;  %v7602_v40 = vld [vmem:[#allocation5 + $0xc8] sm:$0xff]  ;;  %v1972_v52 = vor.u32 1.1754944e-38, %v1971_v10  ;;  %v7618_v25 = vld [vmem:[#allocation5 + $0x98] sm:$0xff] }
 0x39a   :  { %2356 = vmatpush.msrb.mxu3 %v7595_v29  ;;  %10634 = vst [vmem:[#allocation75_spill] sm:$0xff] %v7602_v40  ;;  %v7636_v10 = vld [vmem:[#allocation5 + $0x48] sm:$0xff] }
 0x39b   :  { %4288 = vtanh.f32 %v7582_v35  ;;  %2317 = vmatpush.msra.mxu1 %v7602_v40  ;;  %vm1970_vm15 = vcmp.eq.f32.partialorder %v1969_v50, 8.507059e+37  ;;  %v7623_v40 = vld [vmem:[#allocation5 + $0x68] sm:$0xff]  ;;  %v7640_v50 = vld [vmem:[#allocation5 + $0x58] sm:$0xff] }
 0x39c   :  { %2357 = vmatpush.msrb.mxu3 %v7605_v63  ;;  %v1973_v12 = vsel %vm1970_vm15, %v1972_v52, %v1968_v32  ;;  %v7646_v32 = vld [vmem:[#allocation2 + $0x8] sm:$0xff]  ;;  %v7658_v52 = vld [vmem:[#allocation5 + $0x8] sm:$0xff] }
 0x39d   :  { %2318 = vmatpush.msra.mxu1 %v7609_v13  ;;  %v7626_v13 = vld [vmem:[#allocation5 + $0x78] sm:$0xff] }
 0x39e   :  { %2358 = vmatpush.msrb.mxu3 %v7612_v31 }
 0x39f   :  { %2319 = vmatpush.msra.mxu1 %v7615_v59 }
 0x3a0   :  { %2359 = vmatpush.msrb.mxu3 %v7618_v25 }
 0x3a1   :  { %v4289_v63 = vpop.eup %4288  ;;  %2320 = vmatpush.msra.mxu1 %v7623_v40 }
 0x3a2   :  { %v7621_v26 = vmul.f32 %v4289_v63, %v1973_v12  ;;  %2360 = vmatpush.msrb.mxu3 %v7626_v13  ;;  %v7643_v63 = vld [vmem:[#allocation2] sm:$0xff]  ;;  %v7662_v12 = vld [vmem:[#allocation5 + $0x18] sm:$0xff] }
 0x3a3   :  { %2321 = vmatpush.msra.mxu1 %v7636_v10 }
 0x3a4   :  { %1996 = vmatmul.f32.vlgmr.msrb.gmra.mxu0 %v7621_v26  ;;  %2036 = vmatmul.f32.vlgmr.msra.gmra.mxu2 %v7621_v26 }
 0x3a5   :  { %2203 = vmatpush.msrb.mxu0 %v7156_v20  ;;  %2239 = vmatmul.f32.vlgmr.msrb.gmra.mxu1 %v7621_v26  ;;  %v2283_v20 = vrot.slane %v7643_v63, 4 }
 0x3a6   :  { %2243 = vmatpush.msra.mxu2 %v7160_v9  ;;  %2279 = vmatmul.f32.vlgmr.msra.gmra.mxu3 %v7621_v26  ;;  %v2284_v9 = vrot.slane %v7646_v32, 3 }
 0x3a7   :  { %2204 = vmatpush.msrb.mxu0 %v7164_v53  ;;  %2361 = vmatpush.msrb.mxu3 %v7640_v50  ;;  %v7650_v53 = vld [vmem:[#allocation5 + $0x28] sm:$0xff] }
 0x3a8   :  { %2244 = vmatpush.msra.mxu2 %v7170_v17  ;;  %2322 = vmatpush.msra.mxu1 %v7650_v53  ;;  %v7654_v17 = vld [vmem:[#allocation5 + $0x38] sm:$0xff] }
 0x3a9   :  { %2205 = vmatpush.msrb.mxu0 %v7174_v7  ;;  %2362 = vmatpush.msrb.mxu3 %v7654_v17  ;;  %v7666_v7 = vsel %vm446_vm0, %v2284_v9, %v2283_v20  ;;  %v7778_v20 = vld [vmem:[#allocation10 + $0x260] sm:$0xff]  ;;  %v7781_v9 = vld [vmem:[#allocation10 + $0x268] sm:$0xff] }
 0x3aa   :  { %2245 = vmatpush.msra.mxu2 %v7178_v57  ;;  %2323 = vmatpush.msra.mxu1 %v7658_v52  ;;  %v7678_v57 = vld [vmem:[#allocation10 + $0x3e0] sm:$0xff]  ;;  %10659 = vst [vmem:[#allocation95_spill] sm:$0xff] %v7778_v20 }
 0x3ab   :  { %2206 = vmatpush.msrb.mxu0 %v7182_v33  ;;  %2363 = vmatpush.msrb.mxu3 %v7662_v12  ;;  %v7681_v33 = vld [vmem:[#allocation10 + $0x3e8] sm:$0xff]  ;;  %10660 = vst [vmem:[#allocation97_spill] sm:$0xff] %v7781_v9 }
 0x3ac   :  { %2246 = vmatpush.msra.mxu2 %v7189_v2  ;;  %2076 = vmatmul.f32.vlgmr.msra.gmra.mxu0 %v7621_v26  ;;  %v7686_v2 = vld [vmem:[#allocation10 + $0x3c0] sm:$0xff] }
 0x3ad   :  { %2116 = vmatmul.f32.vlgmr.msrb.gmra.mxu2 %v7621_v26  ;;  %2207 = vmatpush.msrb.mxu0 %v7194_v0  ;;  %v7689_v0 = vld [vmem:[#allocation10 + $0x3c8] sm:$0xff] }
 0x3ae   :  { %2247 = vmatpush.msra.mxu2 %v7197_v60  ;;  %4125 = vmatmul.msk.f32.vlgmr.msra.gmra.mxu1 %vm448_vm1, %v7666_v7  ;;  %v7694_v60 = vld [vmem:[#allocation10 + $0x3a0] sm:$0xff] }
 0x3af   :  { %4127 = vmatmul.msk.f32.vlgmr.msrb.gmra.mxu3 %vm448_vm1, %v7666_v7  ;;  %2208 = vmatpush.msrb.mxu0 %v7204_v51  ;;  %v7697_v51 = vld [vmem:[#allocation10 + $0x3a8] sm:$0xff] }
 0x3b0   :  { %2248 = vmatpush.msra.mxu2 %v7207_v58  ;;  %2455 = vmatpush.msrb.mxu1 %v7678_v57  ;;  %v7702_v58 = vld [vmem:[#allocation10 + $0x380] sm:$0xff] }
 0x3b1   :  { %2495 = vmatpush.msra.mxu3 %v7681_v33  ;;  %2209 = vmatpush.msrb.mxu0 %v7211_v34  ;;  %v7705_v34 = vld [vmem:[#allocation10 + $0x388] sm:$0xff] }
 0x3b2   :  { %2249 = vmatpush.msra.mxu2 %v7215_v5  ;;  %2456 = vmatpush.msrb.mxu1 %v7686_v2  ;;  %10637 = vst [vmem:[#allocation78_spill] sm:$0xff] %v7705_v34  ;;  %v7710_v5 = vld [vmem:[#allocation10 + $0x360] sm:$0xff] }
 0x3b3   :  { %2496 = vmatpush.msra.mxu3 %v7689_v0  ;;  %2210 = vmatpush.msrb.mxu0 %v7219_v43  ;;  %10638 = vst [vmem:[#allocation79_spill] sm:$0xff] %v7710_v5  ;;  %v7713_v43 = vld [vmem:[#allocation10 + $0x368] sm:$0xff] }
 0x3b4   :  { %2250 = vmatpush.msra.mxu2 %v7223_v22  ;;  %2457 = vmatpush.msrb.mxu1 %v7694_v60  ;;  %10639 = vst [vmem:[#allocation80_spill] sm:$0xff] %v7713_v43  ;;  %v7718_v22 = vld [vmem:[#allocation10 + $0x340] sm:$0xff] }
 0x3b5   :  { %2497 = vmatpush.msra.mxu3 %v7697_v51  ;;  %2211 = vmatpush.msrb.mxu0 %v7227_v36  ;;  %10640 = vst [vmem:[#allocation81_spill] sm:$0xff] %v7718_v22  ;;  %v7721_v36 = vld [vmem:[#allocation10 + $0x348] sm:$0xff] }
 0x3b6   :  { %2251 = vmatpush.msra.mxu2 %v7231_v15  ;;  %2458 = vmatpush.msrb.mxu1 %v7702_v58  ;;  %10641 = vst [vmem:[#allocation82_spill] sm:$0xff] %v7721_v36  ;;  %v7726_v15 = vld [vmem:[#allocation10 + $0x320] sm:$0xff] }
 0x3b7   :  { %2498 = vmatpush.msra.mxu3 %v7705_v34  ;;  %2212 = vmatpush.msrb.mxu0 %v7235_v4  ;;  %10642 = vst [vmem:[#allocation83_spill] sm:$0xff] %v7726_v15  ;;  %v7729_v4 = vld [vmem:[#allocation10 + $0x328] sm:$0xff] }
 0x3b8   :  { %2252 = vmatpush.msra.mxu2 %v7239_v39  ;;  %2459 = vmatpush.msrb.mxu1 %v7710_v5  ;;  %10643 = vst [vmem:[#allocation84_spill] sm:$0xff] %v7729_v4  ;;  %v7734_v39 = vld [vmem:[#allocation10 + $0x300] sm:$0xff] }
 0x3b9   :  { %2499 = vmatpush.msra.mxu3 %v7713_v43  ;;  %2213 = vmatpush.msrb.mxu0 %v7243_v18  ;;  %10644 = vst [vmem:[#allocation85_spill] sm:$0xff] %v7734_v39  ;;  %v7737_v18 = vld [vmem:[#allocation10 + $0x308] sm:$0xff] }
 0x3ba   :  { %2253 = vmatpush.msra.mxu2 %v7247_v27  ;;  %2460 = vmatpush.msrb.mxu1 %v7718_v22  ;;  %10645 = vst [vmem:[#allocation86_spill] sm:$0xff] %v7737_v18  ;;  %v7742_v27 = vld [vmem:[#allocation10 + $0x2e0] sm:$0xff] }
 0x3bb   :  { %2500 = vmatpush.msra.mxu3 %v7721_v36  ;;  %2214 = vmatpush.msrb.mxu0 %v7251_v21  ;;  %10646 = vst [vmem:[#allocation88_spill] sm:$0xff] %v7742_v27  ;;  %v7745_v21 = vld [vmem:[#allocation10 + $0x2e8] sm:$0xff] }
 0x3bc   :  { %2254 = vmatpush.msra.mxu2 %v7255_v6  ;;  %2461 = vmatpush.msrb.mxu1 %v7726_v15  ;;  %10647 = vst [vmem:[#allocation87_spill] sm:$0xff] %v7745_v21  ;;  %v7750_v6 = vld [vmem:[#allocation10 + $0x2c0] sm:$0xff] }
 0x3bd   :  { %2501 = vmatpush.msra.mxu3 %v7729_v4  ;;  %2215 = vmatpush.msrb.mxu0 %v7259_v62  ;;  %10648 = vst [vmem:[#allocation89_spill] sm:$0xff] %v7750_v6  ;;  %v7753_v62 = vld [vmem:[#allocation10 + $0x2c8] sm:$0xff] }
 0x3be   :  { %2255 = vmatpush.msra.mxu2 %v7263_v44  ;;  %2462 = vmatpush.msrb.mxu1 %v7734_v39  ;;  %10649 = vst [vmem:[#allocation91_spill] sm:$0xff] %v7753_v62  ;;  %v10650_v44 = vld [vmem:[#allocation51_spill] sm:$0xff]  ;;  %v10775_v4 = vld [vmem:[#allocation41_spill] sm:$0xff] }
 0x3bf   :  { %2502 = vmatpush.msra.mxu3 %v7737_v18  ;;  %2216 = vmatpush.msrb.mxu0 %v7267_v48  ;;  %v7762_v48 = vld [vmem:[#allocation10 + $0x2a0] sm:$0xff] }
 0x3c0   :  { %2256 = vmatpush.msra.mxu2 %v7271_v54  ;;  %2463 = vmatpush.msrb.mxu1 %v7742_v27  ;;  %10651 = vst [vmem:[#allocation90_spill] sm:$0xff] %v7762_v48  ;;  %v7765_v54 = vld [vmem:[#allocation10 + $0x2a8] sm:$0xff] }
 0x3c1   :  { %2503 = vmatpush.msra.mxu3 %v7745_v21  ;;  %2217 = vmatpush.msrb.mxu0 %v7275_v16  ;;  %10652 = vst [vmem:[#allocation92_spill] sm:$0xff] %v7765_v54  ;;  %v10653_v16 = vld [vmem:[#allocation20_spill] sm:$0xff] }
 0x3c2   :  { %2257 = vmatpush.msra.mxu2 %v7279_v11  ;;  %2464 = vmatpush.msrb.mxu1 %v7750_v6  ;;  %v10654_v11 = vld [vmem:[#allocation43_spill] sm:$0xff] }
 0x3c3   :  { %2504 = vmatpush.msra.mxu3 %v7753_v62  ;;  %2218 = vmatpush.msrb.mxu0 %v7283_v38  ;;  %v7770_v38 = vld [vmem:[#allocation10 + $0x280] sm:$0xff]  ;;  %v10774_v62 = vld [vmem:[#allocation50_spill] sm:$0xff] }
 0x3c4   :  { %2258 = vmatpush.msra.mxu2 %v7287_v56  ;;  %2219 = vmatmul.f32.vlgmr.msrb.gmra.mxu0 %v7621_v26  ;;  %10655 = vst [vmem:[#allocation94_spill] sm:$0xff] %v7770_v38  ;;  %v7773_v56 = vld [vmem:[#allocation10 + $0x288] sm:$0xff] }
 0x3c5   :  { %2259 = vmatmul.f32.vlgmr.msra.gmra.mxu2 %v7621_v26  ;;  %2296 = vmatpush.msra.mxu0 %v7292_v30  ;;  %10656 = vst [vmem:[#allocation93_spill] sm:$0xff] %v7773_v56  ;;  %v10657_v30 = vld [vmem:[#allocation52_spill] sm:$0xff]  ;;  %v10658_v26 = vld [vmem:[#allocation21_spill] sm:$0xff] }
 0x3c6   :  { %2336 = vmatpush.msrb.mxu2 %v10650_v44  ;;  %2465 = vmatpush.msrb.mxu1 %v7762_v48  ;;  %v10661_v44 = vld [vmem:[#allocation53_spill] sm:$0xff] }
 0x3c7   :  { %2505 = vmatpush.msra.mxu3 %v7765_v54  ;;  %2297 = vmatpush.msra.mxu0 %v10653_v16  ;;  %v7785_v16 = vld [vmem:[#allocation5 + $0x90] sm:$0xff] }
 0x3c8   :  { %2337 = vmatpush.msrb.mxu2 %v10654_v11  ;;  %2466 = vmatpush.msrb.mxu1 %v7770_v38  ;;  %10662 = vst [vmem:[#allocation96_spill] sm:$0xff] %v7785_v16  ;;  %v7788_v11 = vld [vmem:[#allocation10 + $0x240] sm:$0xff] }
 0x3c9   :  { %2506 = vmatpush.msra.mxu3 %v7773_v56  ;;  %2298 = vmatpush.msra.mxu0 %v10657_v30  ;;  %10663 = vst [vmem:[#allocation98_spill] sm:$0xff] %v7788_v11  ;;  %v7791_v30 = vld [vmem:[#allocation10 + $0x248] sm:$0xff] }
 0x3ca   :  { %2338 = vmatpush.msrb.mxu2 %v10658_v26  ;;  %2467 = vmatpush.msrb.mxu1 %v7778_v20  ;;  %10664 = vst [vmem:[#allocation100_spill] sm:$0xff] %v7791_v30  ;;  %v10665_v26 = vld [vmem:[#allocation54_spill] sm:$0xff]  ;;  %v7795_v20 = vld [vmem:[#allocation5 + $0x70] sm:$0xff] }
 0x3cb   :  { %2507 = vmatpush.msra.mxu3 %v7781_v9  ;;  %2299 = vmatpush.msra.mxu0 %v10661_v44  ;;  %10666 = vst [vmem:[#allocation99_spill] sm:$0xff] %v7795_v20  ;;  %v7798_v9 = vld [vmem:[#allocation10 + $0x220] sm:$0xff]  ;;  %v7801_v44 = vld [vmem:[#allocation10 + $0x228] sm:$0xff] }
 0x3cc   :  { %2339 = vmatpush.msrb.mxu2 %v7785_v16  ;;  %2468 = vmatpush.msrb.mxu1 %v7788_v11  ;;  %10667 = vst [vmem:[#allocation101_spill] sm:$0xff] %v7798_v9  ;;  %v10669_v16 = vld [vmem:[#allocation22_spill] sm:$0xff]  ;;  %v7805_v11 = vld [vmem:[#allocation5 + $0x50] sm:$0xff] }
 0x3cd   :  { %2508 = vmatpush.msra.mxu3 %v7791_v30  ;;  %2300 = vmatpush.msra.mxu0 %v10665_v26  ;;  %10668 = vst [vmem:[#allocation104_spill] sm:$0xff] %v7801_v44  ;;  %v7808_v30 = vld [vmem:[#allocation10 + $0x200] sm:$0xff]  ;;  %v7811_v26 = vld [vmem:[#allocation10 + $0x208] sm:$0xff] }
 0x3ce   :  { %2340 = vmatpush.msrb.mxu2 %v7795_v20  ;;  %2469 = vmatpush.msrb.mxu1 %v7798_v9  ;;  %10670 = vst [vmem:[#allocation102_spill] sm:$0xff] %v7805_v11  ;;  %v10673_v20 = vld [vmem:[#allocation55_spill] sm:$0xff]  ;;  %v7815_v9 = vld [vmem:[#allocation5 + $0x30] sm:$0xff] }
 0x3cf   :  { %2509 = vmatpush.msra.mxu3 %v7801_v44  ;;  %2301 = vmatpush.msra.mxu0 %v10669_v16  ;;  %10671 = vst [vmem:[#allocation105_spill] sm:$0xff] %v7808_v30  ;;  %v7818_v44 = vld [vmem:[#allocation10 + $0x3f0] sm:$0xff]  ;;  %v7821_v16 = vld [vmem:[#allocation10 + $0x3f8] sm:$0xff] }
 0x3d0   :  { %2341 = vmatpush.msrb.mxu2 %v7805_v11  ;;  %2470 = vmatpush.msrb.mxu1 %v7808_v30  ;;  %10672 = vst [vmem:[#allocation103_spill] sm:$0xff] %v7811_v26  ;;  %v10677_v11 = vld [vmem:[#allocation56_spill] sm:$0xff] }
 0x3d1   :  { %2510 = vmatpush.msra.mxu3 %v7811_v26  ;;  %2302 = vmatpush.msra.mxu0 %v10673_v20  ;;  %10674 = vst [vmem:[#allocation108_spill] sm:$0xff] %v7815_v9  ;;  %v7825_v30 = vld [vmem:[#allocation5 + $0x10] sm:$0xff]  ;;  %v10773_v26 = vld [vmem:[#allocation39_spill] sm:$0xff] }
 0x3d2   :  { %2342 = vmatpush.msrb.mxu2 %v7815_v9  ;;  %10675 = vst [vmem:[#allocation106_spill] sm:$0xff] %v7818_v44  ;;  %2535 = vmatpush.msra.mxu1 %v7818_v44  ;;  %v7832_v20 = vld [vmem:[#allocation10 + $0x3d0] sm:$0xff]  ;;  %v7835_v9 = vld [vmem:[#allocation10 + $0x3d8] sm:$0xff] }
 0x3d3   :  { %10676 = vst [vmem:[#allocation109_spill] sm:$0xff] %v7821_v16  ;;  %2575 = vmatpush.msrb.mxu3 %v7821_v16  ;;  %2303 = vmatpush.msra.mxu0 %v10677_v11  ;;  %v7838_v16 = vld [vmem:[#allocation10 + $0x1e0] sm:$0xff]  ;;  %v7841_v11 = vld [vmem:[#allocation10 + $0x1e8] sm:$0xff] }
 0x3d4   :  { %10678 = vst [vmem:[#allocation107_spill] sm:$0xff] %v7825_v30  ;;  %2343 = vmatpush.msrb.mxu2 %v7825_v30  ;;  %4124 = vmatmul.msk.f32.vlgmr.msra.gmra.mxu0 %vm448_vm1, %v7666_v7  ;;  %v7844_v30 = vld [vmem:[#allocation10 + $0x3b0] sm:$0xff] }
 0x3d5   :  { %4126 = vmatmul.msk.f32.vlgmr.msrb.gmra.mxu2 %vm448_vm1, %v7666_v7  ;;  %10679 = vst [vmem:[#allocation112_spill] sm:$0xff] %v7832_v20  ;;  %2536 = vmatpush.msra.mxu1 %v7832_v20  ;;  %v7847_v7 = vld [vmem:[#allocation10 + $0x3b8] sm:$0xff]  ;;  %v7850_v20 = vld [vmem:[#allocation10 + $0x1c0] sm:$0xff] }
 0x3d6   :  { %10680 = vst [vmem:[#allocation110_spill] sm:$0xff] %v7835_v9  ;;  %2576 = vmatpush.msrb.mxu3 %v7835_v9  ;;  %2435 = vmatpush.msrb.mxu0 %v7838_v16  ;;  %v7853_v9 = vld [vmem:[#allocation10 + $0x1c8] sm:$0xff] }
 0x3d7   :  { %10681 = vst [vmem:[#allocation113_spill] sm:$0xff] %v7838_v16  ;;  %2475 = vmatpush.msra.mxu2 %v7841_v11  ;;  %2537 = vmatpush.msra.mxu1 %v7844_v30  ;;  %v7856_v16 = vld [vmem:[#allocation10 + $0x390] sm:$0xff] }
 0x3d8   :  { %10682 = vst [vmem:[#allocation111_spill] sm:$0xff] %v7841_v11  ;;  %2577 = vmatpush.msrb.mxu3 %v7847_v7  ;;  %2436 = vmatpush.msrb.mxu0 %v7850_v20  ;;  %v7859_v11 = vld [vmem:[#allocation10 + $0x398] sm:$0xff] }
 0x3d9   :  { %10683 = vst [vmem:[#allocation115_spill] sm:$0xff] %v7844_v30  ;;  %2476 = vmatpush.msra.mxu2 %v7853_v9  ;;  %2538 = vmatpush.msra.mxu1 %v7856_v16  ;;  %v7862_v30 = vld [vmem:[#allocation10 + $0x1a0] sm:$0xff] }
 0x3da   :  { %10684 = vst [vmem:[#allocation117_spill] sm:$0xff] %v7847_v7  ;;  %2578 = vmatpush.msrb.mxu3 %v7859_v11  ;;  %2437 = vmatpush.msrb.mxu0 %v7862_v30  ;;  %v7865_v7 = vld [vmem:[#allocation10 + $0x1a8] sm:$0xff] }
 0x3db   :  { %10685 = vst [vmem:[#allocation114_spill] sm:$0xff] %v7850_v20  ;;  %2477 = vmatpush.msra.mxu2 %v7865_v7  ;;  %v7868_v20 = vld [vmem:[#allocation10 + $0x370] sm:$0xff] }
 0x3dc   :  { %10686 = vst [vmem:[#allocation118_spill] sm:$0xff] %v7853_v9  ;;  %2539 = vmatpush.msra.mxu1 %v7868_v20  ;;  %v7871_v9 = vld [vmem:[#allocation10 + $0x378] sm:$0xff] }
 0x3dd   :  { %10687 = vst [vmem:[#allocation25_spill] sm:$0xff] %v7856_v16  ;;  %2579 = vmatpush.msrb.mxu3 %v7871_v9  ;;  %v7874_v16 = vld [vmem:[#allocation10 + $0x180] sm:$0xff] }
 0x3de   :  { %10688 = vst [vmem:[#allocation23_spill] sm:$0xff] %v7859_v11  ;;  %2438 = vmatpush.msrb.mxu0 %v7874_v16  ;;  %v7877_v11 = vld [vmem:[#allocation10 + $0x188] sm:$0xff] }
 0x3df   :  { %10689 = vst [vmem:[#allocation36_spill] sm:$0xff] %v7862_v30  ;;  %2478 = vmatpush.msra.mxu2 %v7877_v11  ;;  %v7880_v30 = vld [vmem:[#allocation10 + $0x350] sm:$0xff] }
 0x3e0   :  { %10690 = vst [vmem:[#allocation34_spill] sm:$0xff] %v7865_v7  ;;  %2540 = vmatpush.msra.mxu1 %v7880_v30  ;;  %v7883_v7 = vld [vmem:[#allocation10 + $0x358] sm:$0xff] }
 0x3e1   :  { %10691 = vst [vmem:[#allocation28_spill] sm:$0xff] %v7868_v20  ;;  %2580 = vmatpush.msrb.mxu3 %v7883_v7  ;;  %v7886_v20 = vld [vmem:[#allocation10 + $0x160] sm:$0xff] }
 0x3e2   :  { %10692 = vst [vmem:[#allocation27_spill] sm:$0xff] %v7871_v9  ;;  %2439 = vmatpush.msrb.mxu0 %v7886_v20  ;;  %v7889_v9 = vld [vmem:[#allocation10 + $0x168] sm:$0xff] }
 0x3e3   :  { %10693 = vst [vmem:[#allocation40_spill] sm:$0xff] %v7874_v16  ;;  %2479 = vmatpush.msra.mxu2 %v7889_v9  ;;  %v7892_v16 = vld [vmem:[#allocation10 + $0x330] sm:$0xff] }
 0x3e4   :  { %10694 = vst [vmem:[#allocation38_spill] sm:$0xff] %v7877_v11  ;;  %2541 = vmatpush.msra.mxu1 %v7892_v16  ;;  %v7895_v11 = vld [vmem:[#allocation10 + $0x338] sm:$0xff] }
 0x3e5   :  { %10695 = vst [vmem:[#allocation30_spill] sm:$0xff] %v7880_v30  ;;  %2581 = vmatpush.msrb.mxu3 %v7895_v11  ;;  %v7898_v30 = vld [vmem:[#allocation10 + $0x140] sm:$0xff] }
 0x3e6   :  { %10696 = vst [vmem:[#allocation29_spill] sm:$0xff] %v7883_v7  ;;  %2440 = vmatpush.msrb.mxu0 %v7898_v30  ;;  %v7901_v7 = vld [vmem:[#allocation10 + $0x148] sm:$0xff] }
 0x3e7   :  { %10697 = vst [vmem:[#allocation44_spill] sm:$0xff] %v7886_v20  ;;  %2480 = vmatpush.msra.mxu2 %v7901_v7  ;;  %v7904_v20 = vld [vmem:[#allocation10 + $0x310] sm:$0xff] }
 0x3e8   :  { %10698 = vst [vmem:[#allocation42_spill] sm:$0xff] %v7889_v9  ;;  %2542 = vmatpush.msra.mxu1 %v7904_v20  ;;  %v7907_v9 = vld [vmem:[#allocation10 + $0x318] sm:$0xff] }
 0x3e9   :  { %10699 = vst [vmem:[#allocation32_spill] sm:$0xff] %v7892_v16  ;;  %2582 = vmatpush.msrb.mxu3 %v7907_v9  ;;  %v7910_v16 = vld [vmem:[#allocation10 + $0x120] sm:$0xff] }
 0x3ea   :  { %10700 = vst [vmem:[#allocation31_spill] sm:$0xff] %v7895_v11  ;;  %2441 = vmatpush.msrb.mxu0 %v7910_v16  ;;  %v7913_v11 = vld [vmem:[#allocation10 + $0x128] sm:$0xff] }
 0x3eb   :  { %10701 = vst [vmem:[#allocation46_spill] sm:$0xff] %v7898_v30  ;;  %2481 = vmatpush.msra.mxu2 %v7913_v11  ;;  %v7916_v30 = vld [vmem:[#allocation10 + $0x2f0] sm:$0xff] }
 0x3ec   :  { %10702 = vst [vmem:[#allocation45_spill] sm:$0xff] %v7901_v7  ;;  %2543 = vmatpush.msra.mxu1 %v7916_v30  ;;  %v7919_v7 = vld [vmem:[#allocation10 + $0x2f8] sm:$0xff] }
 0x3ed   :  { %10703 = vst [vmem:[#allocation35_spill] sm:$0xff] %v7904_v20  ;;  %2583 = vmatpush.msrb.mxu3 %v7919_v7  ;;  %v7922_v20 = vld [vmem:[#allocation10 + $0x100] sm:$0xff] }
 0x3ee   :  { %10704 = vst [vmem:[#allocation33_spill] sm:$0xff] %v7907_v9  ;;  %2442 = vmatpush.msrb.mxu0 %v7922_v20  ;;  %v7925_v9 = vld [vmem:[#allocation10 + $0x108] sm:$0xff] }
 0x3ef   :  { %10705 = vst [vmem:[#allocation48_spill] sm:$0xff] %v7910_v16  ;;  %2482 = vmatpush.msra.mxu2 %v7925_v9  ;;  %v7928_v16 = vld [vmem:[#allocation10 + $0x2d0] sm:$0xff] }
 0x3f0   :  { %10706 = vst [vmem:[#allocation47_spill] sm:$0xff] %v7913_v11  ;;  %2544 = vmatpush.msra.mxu1 %v7928_v16  ;;  %v7931_v11 = vld [vmem:[#allocation10 + $0x2d8] sm:$0xff] }
 0x3f1   :  { %10707 = vst [vmem:[#allocation120_spill] sm:$0xff] %v7916_v30  ;;  %2584 = vmatpush.msrb.mxu3 %v7931_v11  ;;  %v7934_v30 = vld [vmem:[#allocation10 + $0xe0] sm:$0xff] }
 0x3f2   :  { %10708 = vst [vmem:[#allocation37_spill] sm:$0xff] %v7919_v7  ;;  %2443 = vmatpush.msrb.mxu0 %v7934_v30  ;;  %v7937_v7 = vld [vmem:[#allocation10 + $0xe8] sm:$0xff] }
 0x3f3   :  { %10709 = vst [vmem:[#allocation121_spill] sm:$0xff] %v7922_v20  ;;  %2483 = vmatpush.msra.mxu2 %v7937_v7  ;;  %v7940_v20 = vld [vmem:[#allocation10 + $0x2b0] sm:$0xff] }
 0x3f4   :  { %10710 = vst [vmem:[#allocation49_spill] sm:$0xff] %v7925_v9  ;;  %2545 = vmatpush.msra.mxu1 %v7940_v20  ;;  %v7943_v9 = vld [vmem:[#allocation10 + $0x2b8] sm:$0xff] }
 0x3f5   :  { %10711 = vst [vmem:[#allocation124_spill] sm:$0xff] %v7928_v16  ;;  %2585 = vmatpush.msrb.mxu3 %v7943_v9  ;;  %v7946_v16 = vld [vmem:[#allocation10 + $0xc0] sm:$0xff] }
 0x3f6   :  { %10712 = vst [vmem:[#allocation122_spill] sm:$0xff] %v7931_v11  ;;  %2444 = vmatpush.msrb.mxu0 %v7946_v16  ;;  %v7949_v11 = vld [vmem:[#allocation10 + $0xc8] sm:$0xff] }
 0x3f7   :  { %10713 = vst [vmem:[#allocation125_spill] sm:$0xff] %v7934_v30  ;;  %2484 = vmatpush.msra.mxu2 %v7949_v11  ;;  %v7952_v30 = vld [vmem:[#allocation10 + $0x290] sm:$0xff] }
 0x3f8   :  { %10714 = vst [vmem:[#allocation123_spill] sm:$0xff] %v7937_v7  ;;  %2546 = vmatpush.msra.mxu1 %v7952_v30  ;;  %v7955_v7 = vld [vmem:[#allocation10 + $0x298] sm:$0xff] }
 0x3f9   :  { %10715 = vst [vmem:[#allocation128_spill] sm:$0xff] %v7940_v20  ;;  %2586 = vmatpush.msrb.mxu3 %v7955_v7  ;;  %v7958_v20 = vld [vmem:[#allocation10 + $0xa0] sm:$0xff] }
 0x3fa   :  { %10716 = vst [vmem:[#allocation126_spill] sm:$0xff] %v7943_v9  ;;  %2445 = vmatpush.msrb.mxu0 %v7958_v20  ;;  %v7961_v9 = vld [vmem:[#allocation10 + $0xa8] sm:$0xff] }
 0x3fb   :  { %10717 = vst [vmem:[#allocation129_spill] sm:$0xff] %v7946_v16  ;;  %2485 = vmatpush.msra.mxu2 %v7961_v9  ;;  %v7964_v16 = vld [vmem:[#allocation10 + $0x270] sm:$0xff]  ;;  %v2057_v48 = vpop.f32.mrf.mxu3 }
 0x3fc   :  { %10718 = vst [vmem:[#allocation127_spill] sm:$0xff] %v7949_v11  ;;  %2547 = vmatpush.msra.mxu1 %v7964_v16  ;;  %v7967_v11 = vld [vmem:[#allocation10 + $0x278] sm:$0xff] }
 0x3fd   :  { %10719 = vst [vmem:[#allocation132_spill] sm:$0xff] %v7952_v30  ;;  %2587 = vmatpush.msrb.mxu3 %v7967_v11  ;;  %v7970_v30 = vld [vmem:[#allocation10 + $0x80] sm:$0xff] }
 0x3fe   :  { %10720 = vst [vmem:[#allocation130_spill] sm:$0xff] %v7955_v7  ;;  %2446 = vmatpush.msrb.mxu0 %v7970_v30  ;;  %v7973_v7 = vld [vmem:[#allocation10 + $0x88] sm:$0xff] }
 0x3ff   :  { %10721 = vst [vmem:[#allocation133_spill] sm:$0xff] %v7958_v20  ;;  %2486 = vmatpush.msra.mxu2 %v7973_v7  ;;  %v7976_v20 = vld [vmem:[#allocation10 + $0x250] sm:$0xff] }
 0x400   :  { %10722 = vst [vmem:[#allocation131_spill] sm:$0xff] %v7961_v9  ;;  %2548 = vmatpush.msra.mxu1 %v7976_v20  ;;  %v7979_v9 = vld [vmem:[#allocation10 + $0x258] sm:$0xff] }
 0x401   :  { %10723 = vst [vmem:[#allocation136_spill] sm:$0xff] %v7964_v16  ;;  %2588 = vmatpush.msrb.mxu3 %v7979_v9  ;;  %v7982_v16 = vld [vmem:[#allocation10 + $0x60] sm:$0xff] }
 0x402   :  { %10724 = vst [vmem:[#allocation134_spill] sm:$0xff] %v7967_v11  ;;  %2447 = vmatpush.msrb.mxu0 %v7982_v16  ;;  %v7985_v11 = vld [vmem:[#allocation10 + $0x68] sm:$0xff] }
 0x403   :  { %10725 = vst [vmem:[#allocation137_spill] sm:$0xff] %v7970_v30  ;;  %2487 = vmatpush.msra.mxu2 %v7985_v11  ;;  %v7988_v30 = vld [vmem:[#allocation10 + $0x230] sm:$0xff] }
 0x404   :  { %10726 = vst [vmem:[#allocation135_spill] sm:$0xff] %v7973_v7  ;;  %2549 = vmatpush.msra.mxu1 %v7988_v30  ;;  %v7991_v7 = vld [vmem:[#allocation10 + $0x238] sm:$0xff] }
 0x405   :  { %10727 = vst [vmem:[#allocation138_spill] sm:$0xff] %v7976_v20  ;;  %2589 = vmatpush.msrb.mxu3 %v7991_v7  ;;  %v7994_v20 = vld [vmem:[#allocation10 + $0x40] sm:$0xff] }
 0x406   :  { %10728 = vst [vmem:[#allocation139_spill] sm:$0xff] %v7979_v9  ;;  %2448 = vmatpush.msrb.mxu0 %v7994_v20  ;;  %v7997_v9 = vld [vmem:[#allocation10 + $0x48] sm:$0xff] }
 0x407   :  { %10729 = vst [vmem:[#allocation140_spill] sm:$0xff] %v7982_v16  ;;  %2488 = vmatpush.msra.mxu2 %v7997_v9  ;;  %v8000_v16 = vld [vmem:[#allocation10 + $0x210] sm:$0xff] }
 0x408   :  { %10730 = vst [vmem:[#allocation141_spill] sm:$0xff] %v7985_v11  ;;  %2550 = vmatpush.msra.mxu1 %v8000_v16  ;;  %v8003_v11 = vld [vmem:[#allocation10 + $0x218] sm:$0xff] }
 0x409   :  { %10731 = vst [vmem:[#allocation142_spill] sm:$0xff] %v7988_v30  ;;  %2590 = vmatpush.msrb.mxu3 %v8003_v11  ;;  %v8006_v30 = vld [vmem:[#allocation10 + $0x20] sm:$0xff] }
 0x40a   :  { %10732 = vst [vmem:[#allocation143_spill] sm:$0xff] %v7991_v7  ;;  %2449 = vmatpush.msrb.mxu0 %v8006_v30  ;;  %v8009_v7 = vld [vmem:[#allocation10 + $0x28] sm:$0xff] }
 0x40b   :  { %10733 = vst [vmem:[#allocation144_spill] sm:$0xff] %v7994_v20  ;;  %2489 = vmatpush.msra.mxu2 %v8009_v7  ;;  %v8012_v20 = vld [vmem:[#allocation10] sm:$0xff] }
 0x40c   :  { %10734 = vst [vmem:[#allocation145_spill] sm:$0xff] %v7997_v9  ;;  %2450 = vmatpush.msrb.mxu0 %v8012_v20  ;;  %v8015_v9 = vld [vmem:[#allocation10 + $0x8] sm:$0xff] }
 0x40d   :  { %10735 = vst [vmem:[#allocation146_spill] sm:$0xff] %v8000_v16  ;;  %2490 = vmatpush.msra.mxu2 %v8015_v9  ;;  %v8018_v16 = vld [vmem:[#allocation10 + $0x1f0] sm:$0xff] }
 0x40e   :  { %10736 = vst [vmem:[#allocation147_spill] sm:$0xff] %v8003_v11  ;;  %2515 = vmatpush.msra.mxu0 %v8018_v16  ;;  %v8021_v11 = vld [vmem:[#allocation10 + $0x1f8] sm:$0xff] }
 0x40f   :  { %10737 = vst [vmem:[#allocation148_spill] sm:$0xff] %v8006_v30  ;;  %2555 = vmatpush.msrb.mxu2 %v8021_v11  ;;  %v8024_v30 = vld [vmem:[#allocation10 + $0x1d0] sm:$0xff] }
 0x410   :  { %10738 = vst [vmem:[#allocation149_spill] sm:$0xff] %v8009_v7  ;;  %2516 = vmatpush.msra.mxu0 %v8024_v30  ;;  %v8027_v7 = vld [vmem:[#allocation10 + $0x1d8] sm:$0xff] }
 0x411   :  { %10739 = vst [vmem:[#allocation150_spill] sm:$0xff] %v8012_v20  ;;  %2556 = vmatpush.msrb.mxu2 %v8027_v7  ;;  %v8030_v20 = vld [vmem:[#allocation10 + $0x1b0] sm:$0xff] }
 0x412   :  { %10740 = vst [vmem:[#allocation151_spill] sm:$0xff] %v8015_v9  ;;  %2517 = vmatpush.msra.mxu0 %v8030_v20  ;;  %v8033_v9 = vld [vmem:[#allocation10 + $0x1b8] sm:$0xff] }
 0x413   :  { %10741 = vst [vmem:[#allocation152_spill] sm:$0xff] %v8018_v16  ;;  %2557 = vmatpush.msrb.mxu2 %v8033_v9  ;;  %v8036_v16 = vld [vmem:[#allocation10 + $0x190] sm:$0xff] }
 0x414   :  { %10742 = vst [vmem:[#allocation153_spill] sm:$0xff] %v8021_v11  ;;  %2518 = vmatpush.msra.mxu0 %v8036_v16  ;;  %v8039_v11 = vld [vmem:[#allocation10 + $0x198] sm:$0xff] }
 0x415   :  { %10743 = vst [vmem:[#allocation154_spill] sm:$0xff] %v8024_v30  ;;  %2558 = vmatpush.msrb.mxu2 %v8039_v11  ;;  %v8042_v30 = vld [vmem:[#allocation10 + $0x170] sm:$0xff] }
 0x416   :  { %10744 = vst [vmem:[#allocation155_spill] sm:$0xff] %v8027_v7  ;;  %2519 = vmatpush.msra.mxu0 %v8042_v30  ;;  %v8045_v7 = vld [vmem:[#allocation10 + $0x178] sm:$0xff] }
 0x417   :  { %10745 = vst [vmem:[#allocation156_spill] sm:$0xff] %v8030_v20  ;;  %2559 = vmatpush.msrb.mxu2 %v8045_v7  ;;  %v8048_v20 = vld [vmem:[#allocation10 + $0x150] sm:$0xff] }
 0x418   :  { %10746 = vst [vmem:[#allocation157_spill] sm:$0xff] %v8033_v9  ;;  %2520 = vmatpush.msra.mxu0 %v8048_v20  ;;  %v8051_v9 = vld [vmem:[#allocation10 + $0x158] sm:$0xff] }
 0x419   :  { %10747 = vst [vmem:[#allocation158_spill] sm:$0xff] %v8036_v16  ;;  %2560 = vmatpush.msrb.mxu2 %v8051_v9  ;;  %v8054_v16 = vld [vmem:[#allocation10 + $0x130] sm:$0xff] }
 0x41a   :  { %10748 = vst [vmem:[#allocation159_spill] sm:$0xff] %v8039_v11  ;;  %2521 = vmatpush.msra.mxu0 %v8054_v16  ;;  %v8057_v11 = vld [vmem:[#allocation10 + $0x138] sm:$0xff] }
 0x41b   :  { %10749 = vst [vmem:[#allocation160_spill] sm:$0xff] %v8042_v30  ;;  %2561 = vmatpush.msrb.mxu2 %v8057_v11  ;;  %v8060_v30 = vld [vmem:[#allocation10 + $0x110] sm:$0xff] }
 0x41c   :  { %10750 = vst [vmem:[#allocation161_spill] sm:$0xff] %v8045_v7  ;;  %2522 = vmatpush.msra.mxu0 %v8060_v30  ;;  %v8063_v7 = vld [vmem:[#allocation10 + $0x118] sm:$0xff] }
 0x41d   :  { %10751 = vst [vmem:[#allocation162_spill] sm:$0xff] %v8048_v20  ;;  %2562 = vmatpush.msrb.mxu2 %v8063_v7  ;;  %v8066_v20 = vld [vmem:[#allocation10 + $0xf0] sm:$0xff] }
 0x41e   :  { %10752 = vst [vmem:[#allocation163_spill] sm:$0xff] %v8051_v9  ;;  %2523 = vmatpush.msra.mxu0 %v8066_v20  ;;  %v8069_v9 = vld [vmem:[#allocation10 + $0xf8] sm:$0xff] }
 0x41f   :  { %10753 = vst [vmem:[#allocation164_spill] sm:$0xff] %v8054_v16  ;;  %2563 = vmatpush.msrb.mxu2 %v8069_v9  ;;  %v8072_v16 = vld [vmem:[#allocation10 + $0xd0] sm:$0xff] }
 0x420   :  { %10754 = vst [vmem:[#allocation165_spill] sm:$0xff] %v8057_v11  ;;  %2524 = vmatpush.msra.mxu0 %v8072_v16  ;;  %v8075_v11 = vld [vmem:[#allocation10 + $0xd8] sm:$0xff] }
 0x421   :  { %10755 = vst [vmem:[#allocation166_spill] sm:$0xff] %v8060_v30  ;;  %2564 = vmatpush.msrb.mxu2 %v8075_v11  ;;  %v8078_v30 = vld [vmem:[#allocation10 + $0xb0] sm:$0xff]  ;;  %v1997_v44 = vpop.f32.mrf.mxu0 }
 0x422   :  { %10756 = vst [vmem:[#allocation167_spill] sm:$0xff] %v8063_v7  ;;  %2525 = vmatpush.msra.mxu0 %v8078_v30  ;;  %v8081_v7 = vld [vmem:[#allocation10 + $0xb8] sm:$0xff] }
 0x423   :  { %10757 = vst [vmem:[#allocation168_spill] sm:$0xff] %v8066_v20  ;;  %2565 = vmatpush.msrb.mxu2 %v8081_v7  ;;  %v8084_v20 = vld [vmem:[#allocation10 + $0x90] sm:$0xff] }
 0x424   :  { %10758 = vst [vmem:[#allocation169_spill] sm:$0xff] %v8069_v9  ;;  %2526 = vmatpush.msra.mxu0 %v8084_v20  ;;  %v8087_v9 = vld [vmem:[#allocation10 + $0x98] sm:$0xff] }
 0x425   :  { %10759 = vst [vmem:[#allocation170_spill] sm:$0xff] %v8072_v16  ;;  %2566 = vmatpush.msrb.mxu2 %v8087_v9  ;;  %v8090_v16 = vld [vmem:[#allocation10 + $0x70] sm:$0xff] }
 0x426   :  { %10760 = vst [vmem:[#allocation171_spill] sm:$0xff] %v8075_v11  ;;  %2527 = vmatpush.msra.mxu0 %v8090_v16  ;;  %v8093_v11 = vld [vmem:[#allocation10 + $0x78] sm:$0xff] }
 0x427   :  { %10761 = vst [vmem:[#allocation172_spill] sm:$0xff] %v8078_v30  ;;  %2567 = vmatpush.msrb.mxu2 %v8093_v11  ;;  %v8096_v30 = vld [vmem:[#allocation10 + $0x50] sm:$0xff] }
 0x428   :  { %10762 = vst [vmem:[#allocation173_spill] sm:$0xff] %v8081_v7  ;;  %2528 = vmatpush.msra.mxu0 %v8096_v30  ;;  %v8099_v7 = vld [vmem:[#allocation10 + $0x58] sm:$0xff] }
 0x429   :  { %10763 = vst [vmem:[#allocation51_spill] sm:$0xff] %v8084_v20  ;;  %2568 = vmatpush.msrb.mxu2 %v8099_v7  ;;  %v8102_v20 = vld [vmem:[#allocation10 + $0x30] sm:$0xff] }
 0x42a   :  { %10764 = vst [vmem:[#allocation20_spill] sm:$0xff] %v8087_v9  ;;  %2529 = vmatpush.msra.mxu0 %v8102_v20  ;;  %v8105_v9 = vld [vmem:[#allocation10 + $0x38] sm:$0xff] }
 0x42b   :  { %10765 = vst [vmem:[#allocation43_spill] sm:$0xff] %v8090_v16  ;;  %2569 = vmatpush.msrb.mxu2 %v8105_v9  ;;  %v8108_v16 = vld [vmem:[#allocation10 + $0x10] sm:$0xff] }
 0x42c   :  { %10766 = vst [vmem:[#allocation52_spill] sm:$0xff] %v8093_v11  ;;  %2530 = vmatpush.msra.mxu0 %v8108_v16  ;;  %v8111_v11 = vld [vmem:[#allocation10 + $0x18] sm:$0xff] }
 0x42d   :  { %10767 = vst [vmem:[#allocation21_spill] sm:$0xff] %v8096_v30  ;;  %2570 = vmatpush.msrb.mxu2 %v8111_v11  ;;  %v2017_v30 = vpop.f32.mrf.mxu1 }
 0x42e   :  { %10768 = vst [vmem:[#allocation53_spill] sm:$0xff] %v8099_v7  ;;  %v1998_v7 = vadd.f32 %v1997_v44, %v10773_v26 }
 0x42f   :  { %10769 = vst [vmem:[#allocation54_spill] sm:$0xff] %v8102_v20  ;;  %v2037_v20 = vpop.f32.mrf.mxu2 }
 0x430   :  { %10770 = vst [vmem:[#allocation22_spill] sm:$0xff] %v8105_v9  ;;  %v2018_v56 = vadd.f32 %v2017_v30, %v1998_v7  ;;  %v2038_v9 = vadd.f32 %v2037_v20, %v10774_v62 }
 0x431   :  { %10771 = vst [vmem:[#allocation55_spill] sm:$0xff] %v8108_v16 }
 0x432   :  { %10772 = vst [vmem:[#allocation56_spill] sm:$0xff] %v8111_v11  ;;  %v4121_v54 = vmul.f32 -1.442695, %v2018_v56  ;;  %v2058_v6 = vadd.f32 %v2057_v48, %v2038_v9  ;;  %v2137_v11 = vpop.f32.mrf.mxu3  ;;  %v2077_v56 = vpop.f32.mrf.mxu0 }
 0x433   :  { %v2078_v48 = vadd.f32 %v2077_v56, %v6394_v45 }
 0x434   :  { %4290 = vpow2.f32 %v4121_v54  ;;  %v4122_v21 = vmul.f32 -1.442695, %v2058_v6 }
 0x435   :  { %v2097_v38 = vpop.f32.mrf.mxu1 }
 0x436   :  { %4292 = vpow2.f32 %v4122_v21  ;;  %v2098_v20 = vadd.f32 %v2097_v38, %v2078_v48 }
 0x437   :  { %v2117_v39 = vpop.f32.mrf.mxu2 }
 0x438   :  { %v2118_v15 = vadd.f32 %v2117_v39, %v10775_v4 }
 0x43a   :  { %v4291_v27 = vpop.eup %4290  ;;  %v2138_v30 = vadd.f32 %v2137_v11, %v2118_v15  ;;  %v2280_v21 = vpop.f32.mrf.mxu3  ;;  %v10776_v11 = vld [vmem:[#allocation116_spill] sm:$0xff] }
 0x43b   :  { %v2143_v18 = vadd.f32 1.0, %v4291_v27 }
 0x43c   :  { %v4293_v44 = vpop.eup %4292  ;;  %v4123_v26 = vmul.f32 -1.442695, %v2138_v30 }
 0x43d   :  { %v2240_v16 = vpop.f32.mrf.mxu1  ;;  %4294 = vrcp.f32 %v2143_v18  ;;  %v2162_v7 = vadd.f32 1.0, %v4293_v44  ;;  %v2155_v15 = vand.u32 2147483648, %v2143_v18  ;;  %vm2149_vm3 = vweird.f32 %v2143_v18 }
 0x43e   :  { %v2153_v34 = vand.u32 2147483647, %v2143_v18 }
 0x43f   :  { %4296 = vrcp.f32 %v2162_v7  ;;  %v2174_v56 = vand.u32 2147483648, %v2162_v7  ;;  %vm2168_vm6 = vweird.f32 %v2162_v7 }
 0x440   :  { %4298 = vpow2.f32 %v4123_v26  ;;  %vm2154_vm7 = vcmp.eq.f32.partialorder %v2153_v34, 8.507059e+37 }
 0x441   :  { %4300 = vtanh.f32 %v2098_v20  ;;  %v2220_v34 = vpop.f32.mrf.mxu0 }
 0x443   :  { %v4295_v36 = vpop.eup %4294 }
 0x444   :  { %v2145_v54 = vmul.f32 %v4295_v36, %v2143_v18  ;;  %vm2150_vm2 = vweird.f32 %v4295_v36 }
 0x445   :  { %v2325_v6 = vpop.f32.mrf.mxu1  ;;  %v4297_v22 = vpop.eup %4296  ;;  %vm2151_vm4 = vmor %vm2149_vm3, %vm2150_vm2 }
 0x446   :  { %v2146_v9 = vsub.f32 1.0, %v2145_v54  ;;  %v2326_v27 = vadd.f32 %v2325_v6, %v2240_v16  ;;  %v4299_v43 = vpop.eup %4298  ;;  %v2164_v39 = vmul.f32 %v4297_v22, %v2162_v7  ;;  %vm2169_vm5 = vweird.f32 %v4297_v22  ;;  %v2365_v6 = vpop.f32.mrf.mxu3 }
 0x447   :  { %v2182_v30 = vadd.f32 1.0, %v4299_v43  ;;  %v2172_v16 = vand.u32 2147483647, %v2162_v7  ;;  %v2156_v54 = vor.u32 1.1754944e-38, %v2155_v15  ;;  %vm2170_vm8 = vmor %vm2168_vm6, %vm2169_vm5 }
 0x448   :  { %v2147_v62 = vmul.f32 %v4295_v36, %v2146_v9  ;;  %v2369_v44 = vadd.f32 %v2326_v27, %v10776_v11  ;;  %v2165_v5 = vsub.f32 1.0, %v2164_v39  ;;  %v2175_v9 = vor.u32 1.1754944e-38, %v2174_v56  ;;  %v4301_v27 = vpop.eup %4300 }
 0x449   :  { %4302 = vrcp.f32 %v2182_v30  ;;  %vm2173_vm9 = vcmp.eq.f32.partialorder %v2172_v16, 8.507059e+37  ;;  %v2366_v11 = vadd.f32 %v2365_v6, %v2280_v21  ;;  %vm2188_vm11 = vweird.f32 %v2182_v30 }
 0x44a   :  { %v2148_v4 = vadd.f32 %v4295_v36, %v2147_v62  ;;  %v2166_v26 = vmul.f32 %v4297_v22, %v2165_v5  ;;  %v4129_v48 = vmul.f32 -1.442695, %v2369_v44 }
 0x44b   :  { %v2371_v44 = vadd.f32 %v2366_v11, %v10270_v61 }
 0x44c   :  { %v2152_v38 = vsel %vm2151_vm4, %v4295_v36, %v2148_v4  ;;  %v2167_v62 = vadd.f32 %v4297_v22, %v2166_v26  ;;  %4304 = vpow2.f32 %v4129_v48 }
 0x44d   :  { %v2157_v43 = vsel %vm2154_vm7, %v2156_v54, %v2152_v38  ;;  %v2192_v38 = vand.u32 2147483647, %v2182_v30  ;;  %v4130_v21 = vmul.f32 -1.442695, %v2371_v44  ;;  %v10782_v44 = vld [vmem:[#allocation60_spill] sm:$0xff] }
 0x44e   :  { %v2171_v39 = vsel %vm2170_vm8, %v4297_v22, %v2167_v62  ;;  %v2199_v36 = vmul.f32 %v4301_v27, %v2157_v43  ;;  %v2194_v22 = vand.u32 2147483648, %v2182_v30 }
 0x44f   :  { %v4303_v18 = vpop.eup %4302  ;;  %v2176_v20 = vsel %vm2173_vm9, %v2175_v9, %v2171_v39  ;;  %vm2193_vm13 = vcmp.eq.f32.partialorder %v2192_v38, 8.507059e+37  ;;  %v10785_v38 = vld [vmem:[#allocation63_spill] sm:$0xff] }
 0x450   :  { %v2198_v5 = vmul.f32 %v2176_v20, %v7447_v37  ;;  %v2184_v4 = vmul.f32 %v4303_v18, %v2182_v30  ;;  %vm2189_vm10 = vweird.f32 %v4303_v18  ;;  %v2195_v48 = vor.u32 1.1754944e-38, %v2194_v22 }
 0x451   :  { %vm2190_vm12 = vmor %vm2188_vm11, %vm2189_vm10  ;;  %v2305_v6 = vpop.f32.mrf.mxu0 }
 0x452   :  { %v8120_v15 = vadd.f32 %v2199_v36, %v2198_v5  ;;  %v2185_v7 = vsub.f32 1.0, %v2184_v4  ;;  %v4305_v26 = vpop.eup %4304  ;;  %v2306_v11 = vadd.f32 %v2305_v6, %v2220_v34  ;;  %v10777_v5 = vld [vmem:[#allocation24_spill] sm:$0xff]  ;;  %v10778_v36 = vld [vmem:[#allocation57_spill] sm:$0xff]  ;;  %v10779_v4 = vld [vmem:[#allocation26_spill] sm:$0xff] }
 0x453   :  { %v8124_v37 = vadd.f32 1.0, %v4305_v26  ;;  %v10784_v26 = vld [vmem:[#allocation62_spill] sm:$0xff]  ;;  %v10789_v6 = vld [vmem:[#allocation67_spill] sm:$0xff] }
 0x454   :  { %4306 = vtanh.f32 %v8120_v15  ;;  %v2186_v56 = vmul.f32 %v4303_v18, %v2185_v7  ;;  %v2368_v27 = vadd.f32 %v2306_v11, %v10271_v46 }
 0x455   :  { %4308 = vpow2.f32 %v4130_v21  ;;  %v10786_v21 = vld [vmem:[#allocation64_spill] sm:$0xff]  ;;  %vm2400_vm15 = vweird.f32 %v8124_v37 }
 0x456   :  { %v2187_v16 = vadd.f32 %v4303_v18, %v2186_v56  ;;  %4310 = vrcp.f32 %v8124_v37  ;;  %v4128_v30 = vmul.f32 -1.442695, %v2368_v27 }
 0x458   :  { %v2191_v54 = vsel %vm2190_vm12, %v4303_v18, %v2187_v16  ;;  %v2260_v18 = vpop.f32.mrf.mxu2  ;;  %4312 = vpow2.f32 %v4128_v30  ;;  %v10791_v30 = vld [vmem:[#allocation68_spill] sm:$0xff] }
 0x459   :  { %v2196_v9 = vsel %vm2193_vm13, %v2195_v48, %v2191_v54  ;;  %v10787_v54 = vld [vmem:[#allocation65_spill] sm:$0xff] }
 0x45a   :  { %v4307_v62 = vpop.eup %4306 }
 0x45b   :  { %v2202_v43 = vmul.f32 %v4307_v62, %v2196_v9  ;;  %v4309_v39 = vpop.eup %4308  ;;  %v10788_v62 = vld [vmem:[#allocation66_spill] sm:$0xff] }
 0x45c   :  { %v4311_v20 = vpop.eup %4310 }
 0x45d   :  { %2471 = vmatmul.f32.vlgmr.msrb.gmra.mxu1 %v2202_v43  ;;  %2511 = vmatmul.f32.vlgmr.msra.gmra.mxu3 %v2202_v43  ;;  %vm2401_vm14 = vweird.f32 %v4311_v20 }
 0x45e   :  { %2678 = vmatpush.msrb.mxu1 %v7455_v47  ;;  %2718 = vmatpush.msra.mxu3 %v7458_v55  ;;  %v2396_v47 = vmul.f32 %v4311_v20, %v8124_v37  ;;  %v8137_v55 = vadd.f32 1.0, %v4309_v39  ;;  %v4313_v7 = vpop.eup %4312  ;;  %v10792_v39 = vld [vmem:[#allocation69_spill] sm:$0xff]  ;;  %vm8162_vm2 = vmor %vm2400_vm15, %vm2401_vm14 }
 0x45f   :  { %v2375_v34 = vadd.f32 1.0, %v4313_v7  ;;  %v2404_v7 = vand.u32 2147483647, %v8124_v37 }
 0x460   :  { %2679 = vmatpush.msrb.mxu1 %v7461_v8  ;;  %2719 = vmatpush.msra.mxu3 %v7464_v1  ;;  %v10780_v8 = vld [vmem:[#allocation58_spill] sm:$0xff]  ;;  %v10781_v1 = vld [vmem:[#allocation59_spill] sm:$0xff]  ;;  %v2397_v56 = vsub.f32 1.0, %v2396_v47  ;;  %4314 = vrcp.f32 %v8137_v55  ;;  %v2345_v22 = vpop.f32.mrf.mxu2  ;;  %vm2420_vm9 = vweird.f32 %v8137_v55 }
 0x461   :  { %4316 = vrcp.f32 %v2375_v34  ;;  %v2346_v16 = vadd.f32 %v2345_v22, %v2260_v18  ;;  %v10793_v47 = vld [vmem:[#allocation70_spill] sm:$0xff]  ;;  %vm2381_vm4 = vweird.f32 %v2375_v34  ;;  %vm2405_vm5 = vcmp.eq.f32.partialorder %v2404_v7, 8.507059e+37 }
 0x462   :  { %2680 = vmatpush.msrb.mxu1 %v7469_v28  ;;  %2720 = vmatpush.msra.mxu3 %v10777_v5  ;;  %v10783_v28 = vld [vmem:[#allocation61_spill] sm:$0xff]  ;;  %v2398_v48 = vmul.f32 %v4311_v20, %v2397_v56  ;;  %v10797_v56 = vld [vmem:[#allocation72_spill] sm:$0xff]  ;;  %v8292_v7 = vld [vmem:[#allocation7 + $0xa0] sm:$0xff] }
 0x464   :  { %2681 = vmatpush.msrb.mxu1 %v10778_v36  ;;  %2721 = vmatpush.msra.mxu3 %v10779_v4  ;;  %v2399_v5 = vadd.f32 %v4311_v20, %v2398_v48  ;;  %v2406_v36 = vand.u32 2147483648, %v8124_v37  ;;  %v10799_v37 = vld [vmem:[#allocation74_spill] sm:$0xff] }
 0x465   :  { %2551 = vmatmul.f32.vlgmr.msra.gmra.mxu1 %v2202_v43  ;;  %2591 = vmatmul.f32.vlgmr.msrb.gmra.mxu3 %v2202_v43  ;;  %v10790_v43 = vld [vmem:[#allocation119_spill] sm:$0xff] }
 0x466   :  { %2682 = vmatpush.msrb.mxu1 %v10780_v8  ;;  %2722 = vmatpush.msra.mxu3 %v10781_v1  ;;  %v8150_v9 = vpop.eup %4314  ;;  %v2370_v27 = vadd.f32 %v2346_v16, %v10790_v43  ;;  %v10794_v8 = vld [vmem:[#allocation71_spill] sm:$0xff]  ;;  %v2407_v16 = vor.u32 1.1754944e-38, %v2406_v36  ;;  %v8264_v36 = vld [vmem:[#allocation7 + $0x130] sm:$0xff] }
 0x467   :  { %v4317_v11 = vpop.eup %4316  ;;  %v2416_v4 = vmul.f32 %v8150_v9, %v8137_v55  ;;  %vm2421_vm8 = vweird.f32 %v8150_v9 }
 0x468   :  { %2683 = vmatpush.msrb.mxu1 %v10782_v44  ;;  %2723 = vmatpush.msra.mxu3 %v10783_v28  ;;  %v2377_v18 = vmul.f32 %v4317_v11, %v2375_v34  ;;  %v2387_v28 = vand.u32 2147483648, %v2375_v34  ;;  %4318 = vtanh.f32 %v2370_v27  ;;  %vm2382_vm3 = vweird.f32 %v4317_v11  ;;  %vm2422_vm10 = vmor %vm2420_vm9, %vm2421_vm8  ;;  %v8296_v44 = vld [vmem:[#allocation7 + $0xb0] sm:$0xff] }
 0x469   :  { %vm2383_vm6 = vmor %vm2381_vm4, %vm2382_vm3 }
 0x46a   :  { %2684 = vmatpush.msrb.mxu1 %v10784_v26  ;;  %2724 = vmatpush.msra.mxu3 %v10785_v38  ;;  %v2378_v1 = vsub.f32 1.0, %v2377_v18  ;;  %v2385_v26 = vand.u32 2147483647, %v2375_v34  ;;  %v2403_v38 = vsel %vm8162_vm2, %v4311_v20, %v2399_v5  ;;  %v8260_v5 = vld [vmem:[#allocation7 + $0x120] sm:$0xff] }
 0x46c   :  { %2685 = vmatpush.msrb.mxu1 %v10786_v21  ;;  %2725 = vmatpush.msra.mxu3 %v10787_v54  ;;  %v2379_v22 = vmul.f32 %v4317_v11, %v2378_v1  ;;  %v2417_v21 = vsub.f32 1.0, %v2416_v4  ;;  %v10798_v54 = vld [vmem:[#allocation73_spill] sm:$0xff]  ;;  %vm2386_vm7 = vcmp.eq.f32.partialorder %v2385_v26, 8.507059e+37  ;;  %v8268_v4 = vld [vmem:[#allocation7 + $0x100] sm:$0xff] }
 0x46d   :  { %v8288_v1 = vld [vmem:[#allocation7 + $0xd0] sm:$0xff] }
 0x46e   :  { %2686 = vmatpush.msrb.mxu1 %v10788_v62  ;;  %2726 = vmatpush.msra.mxu3 %v10789_v6  ;;  %v2380_v48 = vadd.f32 %v4317_v11, %v2379_v22  ;;  %v2388_v62 = vor.u32 1.1754944e-38, %v2387_v28  ;;  %v4319_v27 = vpop.eup %4318  ;;  %v2418_v20 = vmul.f32 %v8150_v9, %v2417_v21  ;;  %v10807_v28 = vld [vmem:[#allocation82_spill] sm:$0xff]  ;;  %v10808_v22 = vld [vmem:[#allocation83_spill] sm:$0xff]  ;;  %v8304_v26 = vld [vmem:[#allocation7 + $0x90] sm:$0xff] }
 0x46f   :  { %v10810_v21 = vld [vmem:[#allocation85_spill] sm:$0xff] }
 0x470   :  { %2687 = vmatpush.msrb.mxu1 %v10791_v30  ;;  %2727 = vmatpush.msra.mxu3 %v10792_v39  ;;  %v2384_v6 = vsel %vm2383_vm6, %v4317_v11, %v2380_v48  ;;  %v8316_v48 = vld [vmem:[#allocation7 + $0x40] sm:$0xff] }
 0x471   :  { %v2389_v30 = vsel %vm2386_vm7, %v2388_v62, %v2384_v6  ;;  %v10812_v62 = vld [vmem:[#allocation88_spill] sm:$0xff]  ;;  %v10813_v6 = vld [vmem:[#allocation87_spill] sm:$0xff] }
 0x472   :  { %2688 = vmatpush.msrb.mxu1 %v10793_v47  ;;  %2728 = vmatpush.msra.mxu3 %v10794_v8  ;;  %v2431_v39 = vmul.f32 %v4319_v27, %v2389_v30  ;;  %v8272_v47 = vld [vmem:[#allocation7 + $0x110] sm:$0xff]  ;;  %v8284_v8 = vld [vmem:[#allocation7 + $0xc0] sm:$0xff] }
 0x473   :  { %v8324_v27 = vld [vmem:[#allocation7 + $0x20] sm:$0xff]  ;;  %v8328_v30 = vld [vmem:[#allocation7 + $0x30] sm:$0xff] }
 0x474   :  { %2689 = vmatpush.msrb.mxu1 %v7554_v23  ;;  %2729 = vmatpush.msra.mxu3 %v10797_v56  ;;  %v2408_v23 = vsel %vm2405_vm5, %v2407_v16, %v2403_v38  ;;  %v8300_v56 = vld [vmem:[#allocation7 + $0x80] sm:$0xff]  ;;  %v10809_v38 = vld [vmem:[#allocation84_spill] sm:$0xff] }
 0x475   :  { %v2430_v34 = vmul.f32 %v2408_v23, %v7582_v35  ;;  %v10801_v35 = vld [vmem:[#allocation76_spill] sm:$0xff]  ;;  %v8308_v16 = vld [vmem:[#allocation7 + $0x60] sm:$0xff] }
 0x476   :  { %2690 = vmatpush.msrb.mxu1 %v10798_v54  ;;  %2730 = vmatpush.msra.mxu3 %v10799_v37  ;;  %v8312_v54 = vld [vmem:[#allocation7 + $0x70] sm:$0xff]  ;;  %v10811_v37 = vld [vmem:[#allocation86_spill] sm:$0xff] }
 0x477   :  { %v8320_v23 = vld [vmem:[#allocation7 + $0x50] sm:$0xff] }
 0x478   :  { %2691 = vmatpush.msrb.mxu1 %v7568_v19  ;;  %2731 = vmatpush.msra.mxu3 %v7571_v49  ;;  %v8180_v19 = vadd.f32 %v2431_v39, %v2430_v34  ;;  %v2419_v49 = vadd.f32 %v8150_v9, %v2418_v20  ;;  %v10814_v20 = vld [vmem:[#allocation89_spill] sm:$0xff]  ;;  %v10815_v34 = vld [vmem:[#allocation91_spill] sm:$0xff] }
 0x479   :  { %v8332_v39 = vld [vmem:[#allocation7] sm:$0xff] }
 0x47a   :  { %2692 = vmatpush.msrb.mxu1 %v7576_v41  ;;  %2732 = vmatpush.msra.mxu3 %v7579_v24  ;;  %v2426_v41 = vand.u32 2147483648, %v8137_v55  ;;  %4320 = vtanh.f32 %v8180_v19  ;;  %v10800_v24 = vld [vmem:[#allocation75_spill] sm:$0xff] }
 0x47c   :  { %2693 = vmatpush.msrb.mxu1 %v7584_v14  ;;  %2733 = vmatpush.msra.mxu3 %v7587_v3  ;;  %v2424_v14 = vand.u32 2147483647, %v8137_v55  ;;  %v10802_v3 = vld [vmem:[#allocation77_spill] sm:$0xff] }
 0x47e   :  { %2771 = vmatpush.msra.mxu1 %v7592_v42  ;;  %2811 = vmatpush.msrb.mxu3 %v7595_v29  ;;  %v2423_v42 = vsel %vm2422_vm10, %v8150_v9, %v2419_v49  ;;  %v2427_v29 = vor.u32 1.1754944e-38, %v2426_v41  ;;  %vm2425_vm11 = vcmp.eq.f32.partialorder %v2424_v14, 8.507059e+37  ;;  %v8227_v9 = vld [vmem:[#allocation7 + $0x1b0] sm:$0xff]  ;;  %v10816_v49 = vld [vmem:[#allocation90_spill] sm:$0xff] }
 0x47f   :  { %v8336_v41 = vld [vmem:[#allocation7 + $0x10] sm:$0xff] }
 0x480   :  { %2772 = vmatpush.msra.mxu1 %v10800_v24  ;;  %2812 = vmatpush.msrb.mxu3 %v10801_v35  ;;  %v4321_v11 = vpop.eup %4320  ;;  %v2428_v18 = vsel %vm2425_vm11, %v2427_v29, %v2423_v42  ;;  %v8341_v24 = vld [vmem:[#allocation5 + $0xe0] sm:$0xff]  ;;  %v8344_v35 = vld [vmem:[#allocation5 + $0xf0] sm:$0xff] }
 0x481   :  { %v8199_v55 = vmul.f32 %v4321_v11, %v2428_v18  ;;  %10817 = vst [vmem:[#allocation24_spill] sm:$0xff] %v8344_v35  ;;  %v10818_v14 = vld [vmem:[#allocation92_spill] sm:$0xff]  ;;  %v10820_v42 = vld [vmem:[#allocation94_spill] sm:$0xff]  ;;  %v10822_v11 = vld [vmem:[#allocation93_spill] sm:$0xff] }
 0x482   :  { %2773 = vmatpush.msra.mxu1 %v10802_v3  ;;  %2813 = vmatpush.msrb.mxu3 %v7612_v31  ;;  %v8205_v31 = vld [vmem:[#allocation7 + $0x1e0] sm:$0xff]  ;;  %v8352_v29 = vld [vmem:[#allocation5 + $0xd0] sm:$0xff] }
 0x483   :  { %2451 = vmatmul.f32.vlgmr.msrb.gmra.mxu0 %v8199_v55  ;;  %2491 = vmatmul.f32.vlgmr.msra.gmra.mxu2 %v8199_v55  ;;  %v8348_v3 = vld [vmem:[#allocation5 + $0xc0] sm:$0xff]  ;;  %10821 = vst [vmem:[#allocation26_spill] sm:$0xff] %v8352_v29 }
 0x484   :  { %2774 = vmatpush.msra.mxu1 %v7615_v59  ;;  %2814 = vmatpush.msrb.mxu3 %v7618_v25  ;;  %v8209_v59 = vld [vmem:[#allocation7 + $0x1f0] sm:$0xff]  ;;  %v2739_v25 = vrot.slane %v7646_v32, 4  ;;  %10819 = vst [vmem:[#allocation57_spill] sm:$0xff] %v8348_v3  ;;  %v8356_v18 = vld [vmem:[#allocation5 + $0xa0] sm:$0xff] }
 0x485   :  { %2658 = vmatpush.msrb.mxu0 %v8205_v31  ;;  %2694 = vmatmul.f32.vlgmr.msrb.gmra.mxu1 %v8199_v55  ;;  %10823 = vst [vmem:[#allocation58_spill] sm:$0xff] %v8356_v18 }
 0x486   :  { %2775 = vmatpush.msra.mxu1 %v7623_v40  ;;  %2815 = vmatpush.msrb.mxu3 %v7626_v13  ;;  %v8213_v40 = vld [vmem:[#allocation7 + $0x1c0] sm:$0xff]  ;;  %v2738_v13 = vrot.slane %v7643_v63, 5 }
 0x487   :  { %2698 = vmatpush.msra.mxu2 %v8209_v59  ;;  %2734 = vmatmul.f32.vlgmr.msra.gmra.mxu3 %v8199_v55  ;;  %v8231_v63 = vld [vmem:[#allocation7 + $0x180] sm:$0xff] }
 0x488   :  { %2776 = vmatpush.msra.mxu1 %v7636_v10  ;;  %2816 = vmatpush.msrb.mxu3 %v7640_v50  ;;  %v8219_v10 = vld [vmem:[#allocation7 + $0x1d0] sm:$0xff]  ;;  %v8223_v50 = vld [vmem:[#allocation7 + $0x1a0] sm:$0xff]  ;;  %v8235_v32 = vsel %vm446_vm0, %v2739_v25, %v2738_v13 }
 0x489   :  { %2659 = vmatpush.msrb.mxu0 %v8213_v40  ;;  %2699 = vmatpush.msra.mxu2 %v8219_v10  ;;  %v8360_v13 = vld [vmem:[#allocation5 + $0xb0] sm:$0xff] }
 0x48a   :  { %2777 = vmatpush.msra.mxu1 %v7650_v53  ;;  %2817 = vmatpush.msrb.mxu3 %v7654_v17  ;;  %v8238_v53 = vld [vmem:[#allocation7 + $0x190] sm:$0xff]  ;;  %v8243_v17 = vld [vmem:[#allocation7 + $0x160] sm:$0xff]  ;;  %10825 = vst [vmem:[#allocation59_spill] sm:$0xff] %v8360_v13 }
 0x48b   :  { %2660 = vmatpush.msrb.mxu0 %v8223_v50  ;;  %2700 = vmatpush.msra.mxu2 %v8227_v9  ;;  %v10826_v25 = vld [vmem:[#allocation97_spill] sm:$0xff] }
 0x48c   :  { %2778 = vmatpush.msra.mxu1 %v7658_v52  ;;  %2818 = vmatpush.msrb.mxu3 %v7662_v12  ;;  %v8246_v52 = vld [vmem:[#allocation7 + $0x170] sm:$0xff]  ;;  %v8253_v12 = vld [vmem:[#allocation7 + $0x140] sm:$0xff] }
 0x48d   :  { %2661 = vmatpush.msrb.mxu0 %v8231_v63  ;;  %2701 = vmatpush.msra.mxu2 %v8238_v53 }
 0x48e   :  { %2910 = vmatpush.msrb.mxu1 %v7678_v57  ;;  %2531 = vmatmul.f32.vlgmr.msra.gmra.mxu0 %v8199_v55  ;;  %v8256_v57 = vld [vmem:[#allocation7 + $0x150] sm:$0xff] }
 0x48f   :  { %2571 = vmatmul.f32.vlgmr.msrb.gmra.mxu2 %v8199_v55  ;;  %2662 = vmatpush.msrb.mxu0 %v8243_v17 }
 0x490   :  { %2702 = vmatpush.msra.mxu2 %v8246_v52  ;;  %4135 = vmatmul.msk.f32.vlgmr.msra.gmra.mxu1 %vm448_vm1, %v8235_v32 }
 0x491   :  { %4137 = vmatmul.msk.f32.vlgmr.msrb.gmra.mxu3 %vm448_vm1, %v8235_v32  ;;  %2663 = vmatpush.msrb.mxu0 %v8253_v12 }
 0x492   :  { %2703 = vmatpush.msra.mxu2 %v8256_v57  ;;  %2950 = vmatpush.msra.mxu3 %v7681_v33  ;;  %v8276_v33 = vld [vmem:[#allocation7 + $0xe0] sm:$0xff] }
 0x493   :  { %2664 = vmatpush.msrb.mxu0 %v8260_v5  ;;  %2911 = vmatpush.msrb.mxu1 %v7686_v2  ;;  %v8280_v2 = vld [vmem:[#allocation7 + $0xf0] sm:$0xff] }
 0x494   :  { %2704 = vmatpush.msra.mxu2 %v8264_v36  ;;  %2951 = vmatpush.msra.mxu3 %v7689_v0  ;;  %v10803_v0 = vld [vmem:[#allocation78_spill] sm:$0xff] }
 0x495   :  { %2665 = vmatpush.msrb.mxu0 %v8268_v4  ;;  %2912 = vmatpush.msrb.mxu1 %v7694_v60  ;;  %v10804_v60 = vld [vmem:[#allocation79_spill] sm:$0xff] }
 0x496   :  { %2705 = vmatpush.msra.mxu2 %v8272_v47  ;;  %2952 = vmatpush.msra.mxu3 %v7697_v51  ;;  %v10805_v51 = vld [vmem:[#allocation80_spill] sm:$0xff] }
 0x497   :  { %2666 = vmatpush.msrb.mxu0 %v8276_v33  ;;  %2913 = vmatpush.msrb.mxu1 %v7702_v58  ;;  %v10806_v58 = vld [vmem:[#allocation81_spill] sm:$0xff] }
 0x498   :  { %2706 = vmatpush.msra.mxu2 %v8280_v2  ;;  %2953 = vmatpush.msra.mxu3 %v10803_v0  ;;  %v8364_v0 = vld [vmem:[#allocation5 + $0x80] sm:$0xff] }
 0x499   :  { %2667 = vmatpush.msrb.mxu0 %v8284_v8  ;;  %2914 = vmatpush.msrb.mxu1 %v10804_v60  ;;  %10827 = vst [vmem:[#allocation60_spill] sm:$0xff] %v8364_v0  ;;  %v10828_v60 = vld [vmem:[#allocation98_spill] sm:$0xff] }
 0x49a   :  { %2707 = vmatpush.msra.mxu2 %v8288_v1  ;;  %2954 = vmatpush.msra.mxu3 %v10805_v51  ;;  %v10829_v51 = vld [vmem:[#allocation96_spill] sm:$0xff] }
 0x49b   :  { %2668 = vmatpush.msrb.mxu0 %v8292_v7  ;;  %2915 = vmatpush.msrb.mxu1 %v10806_v58  ;;  %v10830_v58 = vld [vmem:[#allocation100_spill] sm:$0xff] }
 0x49c   :  { %2708 = vmatpush.msra.mxu2 %v8296_v44  ;;  %2955 = vmatpush.msra.mxu3 %v10807_v28  ;;  %v8370_v28 = vld [vmem:[#allocation5 + $0x60] sm:$0xff] }
 0x49d   :  { %2669 = vmatpush.msrb.mxu0 %v8300_v56  ;;  %2916 = vmatpush.msrb.mxu1 %v10808_v22  ;;  %10831 = vst [vmem:[#allocation61_spill] sm:$0xff] %v8370_v28  ;;  %v10832_v22 = vld [vmem:[#allocation101_spill] sm:$0xff] }
 0x49e   :  { %2709 = vmatpush.msra.mxu2 %v8304_v26  ;;  %2956 = vmatpush.msra.mxu3 %v10809_v38  ;;  %v10833_v38 = vld [vmem:[#allocation99_spill] sm:$0xff] }
 0x49f   :  { %2670 = vmatpush.msrb.mxu0 %v8308_v16  ;;  %2917 = vmatpush.msrb.mxu1 %v10810_v21  ;;  %v10834_v21 = vld [vmem:[#allocation104_spill] sm:$0xff] }
 0x4a0   :  { %2710 = vmatpush.msra.mxu2 %v8312_v54  ;;  %2957 = vmatpush.msra.mxu3 %v10811_v37  ;;  %v8376_v37 = vld [vmem:[#allocation5 + $0x40] sm:$0xff] }
 0x4a1   :  { %2671 = vmatpush.msrb.mxu0 %v8316_v48  ;;  %2918 = vmatpush.msrb.mxu1 %v10812_v62  ;;  %10835 = vst [vmem:[#allocation62_spill] sm:$0xff] %v8376_v37  ;;  %v10836_v62 = vld [vmem:[#allocation105_spill] sm:$0xff] }
 0x4a2   :  { %2711 = vmatpush.msra.mxu2 %v8320_v23  ;;  %2958 = vmatpush.msra.mxu3 %v10813_v6  ;;  %v10837_v6 = vld [vmem:[#allocation102_spill] sm:$0xff] }
 0x4a3   :  { %2672 = vmatpush.msrb.mxu0 %v8324_v27  ;;  %2919 = vmatpush.msrb.mxu1 %v10814_v20  ;;  %v10838_v20 = vld [vmem:[#allocation103_spill] sm:$0xff] }
 0x4a4   :  { %2712 = vmatpush.msra.mxu2 %v8328_v30  ;;  %2959 = vmatpush.msra.mxu3 %v10815_v34  ;;  %v8382_v34 = vld [vmem:[#allocation5 + $0x20] sm:$0xff] }
 0x4a5   :  { %2673 = vmatpush.msrb.mxu0 %v8332_v39  ;;  %2920 = vmatpush.msrb.mxu1 %v10816_v49  ;;  %10839 = vst [vmem:[#allocation63_spill] sm:$0xff] %v8382_v34  ;;  %v10840_v49 = vld [vmem:[#allocation106_spill] sm:$0xff] }
 0x4a6   :  { %2713 = vmatpush.msra.mxu2 %v8336_v41  ;;  %2674 = vmatmul.f32.vlgmr.msrb.gmra.mxu0 %v8199_v55 }
 0x4a7   :  { %2714 = vmatmul.f32.vlgmr.msra.gmra.mxu2 %v8199_v55  ;;  %2751 = vmatpush.msra.mxu0 %v8341_v24  ;;  %v10824_v55 = vld [vmem:[#allocation95_spill] sm:$0xff] }
 0x4a8   :  { %2791 = vmatpush.msrb.mxu2 %v8344_v35  ;;  %2960 = vmatpush.msra.mxu3 %v10818_v14  ;;  %v10841_v14 = vld [vmem:[#allocation108_spill] sm:$0xff] }
 0x4a9   :  { %2752 = vmatpush.msra.mxu0 %v8348_v3  ;;  %2921 = vmatpush.msrb.mxu1 %v10820_v42  ;;  %v10842_v42 = vld [vmem:[#allocation109_spill] sm:$0xff] }
 0x4aa   :  { %2792 = vmatpush.msrb.mxu2 %v8352_v29  ;;  %2961 = vmatpush.msra.mxu3 %v10822_v11  ;;  %v8388_v11 = vld [vmem:[#allocation5] sm:$0xff]  ;;  %v10942_v29 = vld [vmem:[#allocation116_spill] sm:$0xff] }
 0x4ab   :  { %2753 = vmatpush.msra.mxu0 %v8356_v18  ;;  %2922 = vmatpush.msrb.mxu1 %v10824_v55  ;;  %10843 = vst [vmem:[#allocation64_spill] sm:$0xff] %v8388_v11  ;;  %v10844_v55 = vld [vmem:[#allocation112_spill] sm:$0xff] }
 0x4ac   :  { %2793 = vmatpush.msrb.mxu2 %v8360_v13  ;;  %2962 = vmatpush.msra.mxu3 %v10826_v25  ;;  %v10845_v25 = vld [vmem:[#allocation107_spill] sm:$0xff] }
 0x4ad   :  { %2754 = vmatpush.msra.mxu0 %v8364_v0  ;;  %2923 = vmatpush.msrb.mxu1 %v10828_v60  ;;  %v10846_v60 = vld [vmem:[#allocation110_spill] sm:$0xff] }
 0x4ae   :  { %2794 = vmatpush.msrb.mxu2 %v10829_v51  ;;  %2963 = vmatpush.msra.mxu3 %v10830_v58  ;;  %v10847_v51 = vld [vmem:[#allocation115_spill] sm:$0xff]  ;;  %v10848_v58 = vld [vmem:[#allocation113_spill] sm:$0xff] }
 0x4af   :  { %2755 = vmatpush.msra.mxu0 %v8370_v28  ;;  %2924 = vmatpush.msrb.mxu1 %v10832_v22  ;;  %v10849_v22 = vld [vmem:[#allocation117_spill] sm:$0xff] }
 0x4b0   :  { %2795 = vmatpush.msrb.mxu2 %v10833_v38  ;;  %2964 = vmatpush.msra.mxu3 %v10834_v21  ;;  %v10850_v38 = vld [vmem:[#allocation111_spill] sm:$0xff]  ;;  %v10851_v21 = vld [vmem:[#allocation25_spill] sm:$0xff] }
 0x4b1   :  { %2756 = vmatpush.msra.mxu0 %v8376_v37  ;;  %2925 = vmatpush.msrb.mxu1 %v10836_v62  ;;  %v10852_v62 = vld [vmem:[#allocation114_spill] sm:$0xff]  ;;  %v10941_v28 = vld [vmem:[#allocation41_spill] sm:$0xff] }
 0x4b2   :  { %2796 = vmatpush.msrb.mxu2 %v10837_v6  ;;  %2965 = vmatpush.msra.mxu3 %v10838_v20  ;;  %v10853_v6 = vld [vmem:[#allocation23_spill] sm:$0xff]  ;;  %v10854_v20 = vld [vmem:[#allocation118_spill] sm:$0xff] }
 0x4b3   :  { %2757 = vmatpush.msra.mxu0 %v8382_v34  ;;  %2990 = vmatpush.msra.mxu1 %v10840_v49  ;;  %v10855_v49 = vld [vmem:[#allocation28_spill] sm:$0xff] }
 0x4b4   :  { %2797 = vmatpush.msrb.mxu2 %v10841_v14  ;;  %3030 = vmatpush.msrb.mxu3 %v10842_v42  ;;  %v10857_v14 = vld [vmem:[#allocation27_spill] sm:$0xff]  ;;  %v10858_v42 = vld [vmem:[#allocation34_spill] sm:$0xff] }
 0x4b5   :  { %2758 = vmatpush.msra.mxu0 %v8388_v11  ;;  %2991 = vmatpush.msra.mxu1 %v10844_v55  ;;  %v10859_v55 = vld [vmem:[#allocation30_spill] sm:$0xff] }
 0x4b6   :  { %2798 = vmatpush.msrb.mxu2 %v10845_v25  ;;  %4134 = vmatmul.msk.f32.vlgmr.msra.gmra.mxu0 %vm448_vm1, %v8235_v32  ;;  %v10860_v25 = vld [vmem:[#allocation40_spill] sm:$0xff] }
 0x4b7   :  { %4136 = vmatmul.msk.f32.vlgmr.msrb.gmra.mxu2 %vm448_vm1, %v8235_v32  ;;  %3031 = vmatpush.msrb.mxu3 %v10846_v60  ;;  %v10856_v32 = vld [vmem:[#allocation36_spill] sm:$0xff]  ;;  %v10861_v60 = vld [vmem:[#allocation29_spill] sm:$0xff] }
 0x4b8   :  { %2992 = vmatpush.msra.mxu1 %v10847_v51  ;;  %2890 = vmatpush.msrb.mxu0 %v10848_v58  ;;  %v10862_v51 = vld [vmem:[#allocation38_spill] sm:$0xff]  ;;  %v10863_v58 = vld [vmem:[#allocation32_spill] sm:$0xff] }
 0x4b9   :  { %3032 = vmatpush.msrb.mxu3 %v10849_v22  ;;  %2930 = vmatpush.msra.mxu2 %v10850_v38  ;;  %v10864_v22 = vld [vmem:[#allocation44_spill] sm:$0xff]  ;;  %v10865_v38 = vld [vmem:[#allocation31_spill] sm:$0xff] }
 0x4ba   :  { %2993 = vmatpush.msra.mxu1 %v10851_v21  ;;  %2891 = vmatpush.msrb.mxu0 %v10852_v62  ;;  %v10866_v21 = vld [vmem:[#allocation42_spill] sm:$0xff]  ;;  %v10867_v62 = vld [vmem:[#allocation35_spill] sm:$0xff] }
 0x4bb   :  { %3033 = vmatpush.msrb.mxu3 %v10853_v6  ;;  %2931 = vmatpush.msra.mxu2 %v10854_v20  ;;  %v10868_v6 = vld [vmem:[#allocation46_spill] sm:$0xff]  ;;  %v10869_v20 = vld [vmem:[#allocation33_spill] sm:$0xff] }
 0x4bc   :  { %2994 = vmatpush.msra.mxu1 %v10855_v49  ;;  %2892 = vmatpush.msrb.mxu0 %v10856_v32  ;;  %v10870_v49 = vld [vmem:[#allocation45_spill] sm:$0xff]  ;;  %v10871_v32 = vld [vmem:[#allocation120_spill] sm:$0xff] }
 0x4bd   :  { %3034 = vmatpush.msrb.mxu3 %v10857_v14  ;;  %2932 = vmatpush.msra.mxu2 %v10858_v42  ;;  %v10872_v14 = vld [vmem:[#allocation48_spill] sm:$0xff]  ;;  %v10873_v42 = vld [vmem:[#allocation37_spill] sm:$0xff] }
 0x4be   :  { %2995 = vmatpush.msra.mxu1 %v10859_v55  ;;  %2893 = vmatpush.msrb.mxu0 %v10860_v25  ;;  %v10874_v55 = vld [vmem:[#allocation47_spill] sm:$0xff]  ;;  %v10875_v25 = vld [vmem:[#allocation124_spill] sm:$0xff] }
 0x4bf   :  { %3035 = vmatpush.msrb.mxu3 %v10861_v60  ;;  %2933 = vmatpush.msra.mxu2 %v10862_v51  ;;  %v10876_v60 = vld [vmem:[#allocation121_spill] sm:$0xff]  ;;  %v10877_v51 = vld [vmem:[#allocation122_spill] sm:$0xff] }
 0x4c0   :  { %2996 = vmatpush.msra.mxu1 %v10863_v58  ;;  %2894 = vmatpush.msrb.mxu0 %v10864_v22  ;;  %v10878_v58 = vld [vmem:[#allocation49_spill] sm:$0xff]  ;;  %v10879_v22 = vld [vmem:[#allocation128_spill] sm:$0xff] }
 0x4c1   :  { %3036 = vmatpush.msrb.mxu3 %v10865_v38  ;;  %2934 = vmatpush.msra.mxu2 %v10866_v21  ;;  %v10880_v38 = vld [vmem:[#allocation125_spill] sm:$0xff]  ;;  %v10881_v21 = vld [vmem:[#allocation126_spill] sm:$0xff] }
 0x4c2   :  { %2997 = vmatpush.msra.mxu1 %v10867_v62  ;;  %2895 = vmatpush.msrb.mxu0 %v10868_v6  ;;  %v10882_v62 = vld [vmem:[#allocation123_spill] sm:$0xff]  ;;  %v10883_v6 = vld [vmem:[#allocation132_spill] sm:$0xff] }
 0x4c3   :  { %3037 = vmatpush.msrb.mxu3 %v10869_v20  ;;  %2935 = vmatpush.msra.mxu2 %v10870_v49  ;;  %v10884_v20 = vld [vmem:[#allocation129_spill] sm:$0xff]  ;;  %v10885_v49 = vld [vmem:[#allocation130_spill] sm:$0xff] }
 0x4c4   :  { %2998 = vmatpush.msra.mxu1 %v10871_v32  ;;  %2896 = vmatpush.msrb.mxu0 %v10872_v14  ;;  %v10886_v32 = vld [vmem:[#allocation127_spill] sm:$0xff]  ;;  %v10887_v14 = vld [vmem:[#allocation136_spill] sm:$0xff] }
 0x4c5   :  { %3038 = vmatpush.msrb.mxu3 %v10873_v42  ;;  %2936 = vmatpush.msra.mxu2 %v10874_v55  ;;  %v10888_v42 = vld [vmem:[#allocation133_spill] sm:$0xff]  ;;  %v10889_v55 = vld [vmem:[#allocation134_spill] sm:$0xff] }
 0x4c6   :  { %2999 = vmatpush.msra.mxu1 %v10875_v25  ;;  %2897 = vmatpush.msrb.mxu0 %v10876_v60  ;;  %v10890_v25 = vld [vmem:[#allocation131_spill] sm:$0xff]  ;;  %v10891_v60 = vld [vmem:[#allocation138_spill] sm:$0xff] }
 0x4c7   :  { %3039 = vmatpush.msrb.mxu3 %v10877_v51  ;;  %2937 = vmatpush.msra.mxu2 %v10878_v58  ;;  %v10892_v51 = vld [vmem:[#allocation137_spill] sm:$0xff]  ;;  %v10893_v58 = vld [vmem:[#allocation139_spill] sm:$0xff] }
 0x4c8   :  { %3000 = vmatpush.msra.mxu1 %v10879_v22  ;;  %2898 = vmatpush.msrb.mxu0 %v10880_v38  ;;  %v10894_v22 = vld [vmem:[#allocation135_spill] sm:$0xff]  ;;  %v10895_v38 = vld [vmem:[#allocation142_spill] sm:$0xff] }
 0x4c9   :  { %3040 = vmatpush.msrb.mxu3 %v10881_v21  ;;  %2938 = vmatpush.msra.mxu2 %v10882_v62  ;;  %v10896_v21 = vld [vmem:[#allocation140_spill] sm:$0xff]  ;;  %v10897_v62 = vld [vmem:[#allocation143_spill] sm:$0xff] }
 0x4ca   :  { %3001 = vmatpush.msra.mxu1 %v10883_v6  ;;  %2899 = vmatpush.msrb.mxu0 %v10884_v20  ;;  %v10898_v6 = vld [vmem:[#allocation141_spill] sm:$0xff]  ;;  %v10899_v20 = vld [vmem:[#allocation146_spill] sm:$0xff] }
 0x4cb   :  { %3041 = vmatpush.msrb.mxu3 %v10885_v49  ;;  %2939 = vmatpush.msra.mxu2 %v10886_v32  ;;  %v10900_v49 = vld [vmem:[#allocation144_spill] sm:$0xff]  ;;  %v10901_v32 = vld [vmem:[#allocation147_spill] sm:$0xff] }
 0x4cc   :  { %3002 = vmatpush.msra.mxu1 %v10887_v14  ;;  %2900 = vmatpush.msrb.mxu0 %v10888_v42  ;;  %v10902_v14 = vld [vmem:[#allocation145_spill] sm:$0xff]  ;;  %v10903_v42 = vld [vmem:[#allocation148_spill] sm:$0xff] }
 0x4cd   :  { %3042 = vmatpush.msrb.mxu3 %v10889_v55  ;;  %2940 = vmatpush.msra.mxu2 %v10890_v25  ;;  %v10904_v55 = vld [vmem:[#allocation149_spill] sm:$0xff]  ;;  %v10905_v25 = vld [vmem:[#allocation150_spill] sm:$0xff] }
 0x4ce   :  { %3003 = vmatpush.msra.mxu1 %v10891_v60  ;;  %2901 = vmatpush.msrb.mxu0 %v10892_v51  ;;  %v10906_v60 = vld [vmem:[#allocation151_spill] sm:$0xff]  ;;  %v10907_v51 = vld [vmem:[#allocation152_spill] sm:$0xff] }
 0x4cf   :  { %3043 = vmatpush.msrb.mxu3 %v10893_v58  ;;  %2941 = vmatpush.msra.mxu2 %v10894_v22  ;;  %v10908_v58 = vld [vmem:[#allocation153_spill] sm:$0xff]  ;;  %v10909_v22 = vld [vmem:[#allocation154_spill] sm:$0xff] }
 0x4d0   :  { %3004 = vmatpush.msra.mxu1 %v10895_v38  ;;  %2902 = vmatpush.msrb.mxu0 %v10896_v21  ;;  %v10910_v38 = vld [vmem:[#allocation155_spill] sm:$0xff]  ;;  %v10911_v21 = vld [vmem:[#allocation156_spill] sm:$0xff] }
 0x4d1   :  { %3044 = vmatpush.msrb.mxu3 %v10897_v62  ;;  %2942 = vmatpush.msra.mxu2 %v10898_v6  ;;  %v10912_v62 = vld [vmem:[#allocation157_spill] sm:$0xff]  ;;  %v10913_v6 = vld [vmem:[#allocation158_spill] sm:$0xff] }
 0x4d2   :  { %3005 = vmatpush.msra.mxu1 %v10899_v20  ;;  %2903 = vmatpush.msrb.mxu0 %v10900_v49  ;;  %v10914_v20 = vld [vmem:[#allocation159_spill] sm:$0xff]  ;;  %v10915_v49 = vld [vmem:[#allocation160_spill] sm:$0xff] }
 0x4d3   :  { %3045 = vmatpush.msrb.mxu3 %v10901_v32  ;;  %2943 = vmatpush.msra.mxu2 %v10902_v14  ;;  %v10916_v32 = vld [vmem:[#allocation161_spill] sm:$0xff]  ;;  %v10917_v14 = vld [vmem:[#allocation162_spill] sm:$0xff] }
 0x4d4   :  { %2904 = vmatpush.msrb.mxu0 %v10903_v42  ;;  %v10918_v42 = vld [vmem:[#allocation163_spill] sm:$0xff] }
 0x4d5   :  { %2944 = vmatpush.msra.mxu2 %v10904_v55  ;;  %v10919_v55 = vld [vmem:[#allocation164_spill] sm:$0xff] }
 0x4d6   :  { %2905 = vmatpush.msrb.mxu0 %v10905_v25  ;;  %v10920_v25 = vld [vmem:[#allocation165_spill] sm:$0xff] }
 0x4d7   :  { %2945 = vmatpush.msra.mxu2 %v10906_v60  ;;  %v10921_v60 = vld [vmem:[#allocation166_spill] sm:$0xff] }
 0x4d8   :  { %2970 = vmatpush.msra.mxu0 %v10907_v51  ;;  %v10922_v51 = vld [vmem:[#allocation167_spill] sm:$0xff] }
 0x4d9   :  { %3010 = vmatpush.msrb.mxu2 %v10908_v58  ;;  %v10923_v58 = vld [vmem:[#allocation168_spill] sm:$0xff] }
 0x4da   :  { %2971 = vmatpush.msra.mxu0 %v10909_v22  ;;  %v10924_v22 = vld [vmem:[#allocation169_spill] sm:$0xff] }
 0x4db   :  { %3011 = vmatpush.msrb.mxu2 %v10910_v38  ;;  %v10925_v38 = vld [vmem:[#allocation170_spill] sm:$0xff] }
 0x4dc   :  { %2972 = vmatpush.msra.mxu0 %v10911_v21  ;;  %v10926_v21 = vld [vmem:[#allocation171_spill] sm:$0xff] }
 0x4dd   :  { %3012 = vmatpush.msrb.mxu2 %v10912_v62  ;;  %v10927_v62 = vld [vmem:[#allocation172_spill] sm:$0xff] }
 0x4de   :  { %2973 = vmatpush.msra.mxu0 %v10913_v6  ;;  %v10928_v6 = vld [vmem:[#allocation173_spill] sm:$0xff] }
 0x4df   :  { %3013 = vmatpush.msrb.mxu2 %v10914_v20  ;;  %v10929_v20 = vld [vmem:[#allocation51_spill] sm:$0xff] }
 0x4e0   :  { %2974 = vmatpush.msra.mxu0 %v10915_v49  ;;  %v10930_v49 = vld [vmem:[#allocation20_spill] sm:$0xff] }
 0x4e1   :  { %3014 = vmatpush.msrb.mxu2 %v10916_v32  ;;  %v10931_v32 = vld [vmem:[#allocation43_spill] sm:$0xff] }
 0x4e2   :  { %2975 = vmatpush.msra.mxu0 %v10917_v14  ;;  %v10932_v14 = vld [vmem:[#allocation52_spill] sm:$0xff] }
 0x4e3   :  { %3015 = vmatpush.msrb.mxu2 %v10918_v42  ;;  %v10933_v42 = vld [vmem:[#allocation21_spill] sm:$0xff] }
 0x4e4   :  { %2976 = vmatpush.msra.mxu0 %v10919_v55  ;;  %v10934_v55 = vld [vmem:[#allocation53_spill] sm:$0xff] }
 0x4e5   :  { %3016 = vmatpush.msrb.mxu2 %v10920_v25  ;;  %v10935_v25 = vld [vmem:[#allocation54_spill] sm:$0xff] }
 0x4e6   :  { %2977 = vmatpush.msra.mxu0 %v10921_v60  ;;  %v10936_v60 = vld [vmem:[#allocation22_spill] sm:$0xff] }
 0x4e7   :  { %3017 = vmatpush.msrb.mxu2 %v10922_v51  ;;  %v10937_v51 = vld [vmem:[#allocation55_spill] sm:$0xff] }
 0x4e8   :  { %2978 = vmatpush.msra.mxu0 %v10923_v58  ;;  %v10938_v58 = vld [vmem:[#allocation56_spill] sm:$0xff] }
 0x4e9   :  { %3018 = vmatpush.msrb.mxu2 %v10924_v22  ;;  %v2472_v22 = vpop.f32.mrf.mxu1 }
 0x4ea   :  { %2979 = vmatpush.msra.mxu0 %v10925_v38 }
 0x4eb   :  { %3019 = vmatpush.msrb.mxu2 %v10926_v21  ;;  %v10939_v21 = vld [vmem:[#allocation39_spill] sm:$0xff] }
 0x4ec   :  { %2980 = vmatpush.msra.mxu0 %v10927_v62 }
 0x4ed   :  { %3020 = vmatpush.msrb.mxu2 %v10928_v6 }
 0x4ee   :  { %2981 = vmatpush.msra.mxu0 %v10929_v20 }
 0x4ef   :  { %3021 = vmatpush.msrb.mxu2 %v10930_v49 }
 0x4f0   :  { %2982 = vmatpush.msra.mxu0 %v10931_v32  ;;  %v2512_v32 = vpop.f32.mrf.mxu3 }
 0x4f1   :  { %3022 = vmatpush.msrb.mxu2 %v10932_v14  ;;  %v2552_v6 = vpop.f32.mrf.mxu1 }
 0x4f2   :  { %2983 = vmatpush.msra.mxu0 %v10933_v42  ;;  %v10940_v42 = vld [vmem:[#allocation50_spill] sm:$0xff] }
 0x4f3   :  { %3023 = vmatpush.msrb.mxu2 %v10934_v55 }
 0x4f4   :  { %2984 = vmatpush.msra.mxu0 %v10935_v25 }
 0x4f5   :  { %3024 = vmatpush.msrb.mxu2 %v10936_v60 }
 0x4f6   :  { %2985 = vmatpush.msra.mxu0 %v10937_v51 }
 0x4f7   :  { %3025 = vmatpush.msrb.mxu2 %v10938_v58 }
 0x4f8   :  { %v2592_v58 = vpop.f32.mrf.mxu3 }
 0x500   :  { %v2452_v38 = vpop.f32.mrf.mxu0 }
 0x501   :  { %v2453_v62 = vadd.f32 %v2452_v38, %v10939_v21 }
 0x502   :  { %v2695_v25 = vpop.f32.mrf.mxu1 }
 0x503   :  { %v2473_v20 = vadd.f32 %v2472_v22, %v2453_v62 }
 0x505   :  { %v4131_v49 = vmul.f32 -1.442695, %v2473_v20 }
 0x506   :  { %v2492_v14 = vpop.f32.mrf.mxu2 }
 0x507   :  { %4322 = vpow2.f32 %v4131_v49  ;;  %v2493_v55 = vadd.f32 %v2492_v14, %v10940_v42 }
 0x509   :  { %v2513_v11 = vadd.f32 %v2512_v32, %v2493_v55 }
 0x50b   :  { %v4132_v34 = vmul.f32 -1.442695, %v2513_v11  ;;  %v2532_v62 = vpop.f32.mrf.mxu0  ;;  %v2735_v11 = vpop.f32.mrf.mxu3 }
 0x50c   :  { %v2533_v32 = vadd.f32 %v2532_v62, %v6394_v45 }
 0x50d   :  { %v4323_v60 = vpop.eup %4322  ;;  %4324 = vpow2.f32 %v4132_v34  ;;  %v2780_v20 = vpop.f32.mrf.mxu1 }
 0x50e   :  { %v2598_v51 = vadd.f32 1.0, %v4323_v60  ;;  %v2781_v34 = vadd.f32 %v2780_v20, %v2695_v25  ;;  %v2553_v60 = vadd.f32 %v2552_v6, %v2533_v32 }
 0x510   :  { %4326 = vrcp.f32 %v2598_v51  ;;  %vm2604_vm13 = vweird.f32 %v2598_v51  ;;  %v2608_v35 = vand.u32 2147483647, %v2598_v51 }
 0x512   :  { %v2572_v37 = vpop.f32.mrf.mxu2  ;;  %vm2609_vm3 = vcmp.eq.f32.partialorder %v2608_v35, 8.507059e+37 }
 0x513   :  { %v2573_v0 = vadd.f32 %v2572_v37, %v10941_v28  ;;  %v4325_v38 = vpop.eup %4324  ;;  %v2824_v37 = vadd.f32 %v2781_v34, %v10942_v29 }
 0x514   :  { %v2617_v22 = vadd.f32 1.0, %v4325_v38  ;;  %v2610_v38 = vand.u32 2147483648, %v2598_v51  ;;  %v2820_v32 = vpop.f32.mrf.mxu3 }
 0x515   :  { %v2593_v21 = vadd.f32 %v2592_v58, %v2573_v0 }
 0x516   :  { %v4327_v49 = vpop.eup %4326  ;;  %4328 = vrcp.f32 %v2617_v22  ;;  %v2629_v62 = vand.u32 2147483648, %v2617_v22  ;;  %v2627_v20 = vand.u32 2147483647, %v2617_v22  ;;  %vm2623_vm2 = vweird.f32 %v2617_v22 }
 0x517   :  { %v4133_v13 = vmul.f32 -1.442695, %v2593_v21  ;;  %v2600_v14 = vmul.f32 %v4327_v49, %v2598_v51  ;;  %vm2605_vm12 = vweird.f32 %v4327_v49  ;;  %v2821_v51 = vadd.f32 %v2820_v32, %v2735_v11 }
 0x518   :  { %vm2606_vm14 = vmor %vm2604_vm13, %vm2605_vm12  ;;  %v2630_v34 = vor.u32 1.1754944e-38, %v2629_v62  ;;  %vm2628_vm5 = vcmp.eq.f32.partialorder %v2627_v20, 8.507059e+37 }
 0x519   :  { %4330 = vpow2.f32 %v4133_v13  ;;  %v2601_v55 = vsub.f32 1.0, %v2600_v14  ;;  %v4139_v13 = vmul.f32 -1.442695, %v2824_v37  ;;  %v2611_v14 = vor.u32 1.1754944e-38, %v2610_v38 }
 0x51a   :  { %4332 = vtanh.f32 %v2553_v60  ;;  %v2826_v35 = vadd.f32 %v2821_v51, %v10270_v61  ;;  %v8507_v51 = vld [vmem:[#allocation7 + $0x1f8] sm:$0xff] }
 0x51b   :  { %v2602_v42 = vmul.f32 %v4327_v49, %v2601_v55 }
 0x51c   :  { %v4329_v18 = vpop.eup %4328  ;;  %v4140_v11 = vmul.f32 -1.442695, %v2826_v35  ;;  %v8521_v35 = vld [vmem:[#allocation7 + $0x1b8] sm:$0xff] }
 0x51d   :  { %v2619_v0 = vmul.f32 %v4329_v18, %v2617_v22  ;;  %v2603_v58 = vadd.f32 %v4327_v49, %v2602_v42  ;;  %vm2624_vm15 = vweird.f32 %v4329_v18  ;;  %10943 = vst [vmem:[#allocation65_spill] sm:$0xff] %v8521_v35 }
 0x51e   :  { %vm2625_vm4 = vmor %vm2623_vm2, %vm2624_vm15 }
 0x51f   :  { %v4331_v28 = vpop.eup %4330  ;;  %v2620_v3 = vsub.f32 1.0, %v2619_v0  ;;  %v2607_v6 = vsel %vm2606_vm14, %v4327_v49, %v2603_v58 }
 0x520   :  { %v2637_v21 = vadd.f32 1.0, %v4331_v28  ;;  %v2612_v28 = vsel %vm2609_vm3, %v2611_v14, %v2607_v6  ;;  %v4333_v55 = vpop.eup %4332 }
 0x521   :  { %v2621_v25 = vmul.f32 %v4329_v18, %v2620_v3  ;;  %v2654_v29 = vmul.f32 %v4333_v55, %v2612_v28 }
 0x522   :  { %4334 = vrcp.f32 %v2637_v21  ;;  %vm2643_vm7 = vweird.f32 %v2637_v21 }
 0x523   :  { %v2622_v42 = vadd.f32 %v4329_v18, %v2621_v25  ;;  %4336 = vpow2.f32 %v4139_v13  ;;  %v2675_v58 = vpop.f32.mrf.mxu0  ;;  %v2647_v13 = vand.u32 2147483647, %v2637_v21 }
 0x525   :  { %v2626_v0 = vsel %vm2625_vm4, %v4329_v18, %v2622_v42  ;;  %v2649_v18 = vand.u32 2147483648, %v2637_v21  ;;  %vm2648_vm9 = vcmp.eq.f32.partialorder %v2647_v13, 8.507059e+37  ;;  %v8531_v13 = vld [vmem:[#allocation7 + $0x198] sm:$0xff] }
 0x526   :  { %v2631_v37 = vsel %vm2628_vm5, %v2630_v34, %v2626_v0  ;;  %10945 = vst [vmem:[#allocation67_spill] sm:$0xff] %v8531_v13 }
 0x527   :  { %v2653_v3 = vmul.f32 %v2631_v37, %v8120_v15  ;;  %v2650_v14 = vor.u32 1.1754944e-38, %v2649_v18  ;;  %v8528_v18 = vld [vmem:[#allocation7 + $0x188] sm:$0xff] }
 0x528   :  { %v4335_v60 = vpop.eup %4334  ;;  %10944 = vst [vmem:[#allocation66_spill] sm:$0xff] %v8528_v18 }
 0x529   :  { %v2639_v49 = vmul.f32 %v4335_v60, %v2637_v21  ;;  %v8496_v38 = vadd.f32 %v2654_v29, %v2653_v3  ;;  %v4337_v25 = vpop.eup %4336  ;;  %vm2644_vm6 = vweird.f32 %v4335_v60  ;;  %v8504_v21 = vld [vmem:[#allocation7 + $0x1e8] sm:$0xff] }
 0x52a   :  { %v8500_v20 = vadd.f32 1.0, %v4337_v25  ;;  %vm2645_vm8 = vmor %vm2643_vm7, %vm2644_vm6  ;;  %v2715_v37 = vpop.f32.mrf.mxu2  ;;  %v8510_v3 = vld [vmem:[#allocation7 + $0x1c8] sm:$0xff] }
 0x52b   :  { %v2640_v22 = vsub.f32 1.0, %v2639_v49  ;;  %4338 = vtanh.f32 %v8496_v38  ;;  %v8513_v49 = vld [vmem:[#allocation7 + $0x1d8] sm:$0xff] }
 0x52c   :  { %4340 = vpow2.f32 %v4140_v11  ;;  %vm2855_vm11 = vweird.f32 %v8500_v20 }
 0x52d   :  { %v2641_v62 = vmul.f32 %v4335_v60, %v2640_v22  ;;  %4342 = vrcp.f32 %v8500_v20  ;;  %v8518_v22 = vld [vmem:[#allocation7 + $0x1a8] sm:$0xff] }
 0x52f   :  { %v2642_v6 = vadd.f32 %v4335_v60, %v2641_v62 }
 0x531   :  { %v2646_v15 = vsel %vm2645_vm8, %v4335_v60, %v2642_v6  ;;  %v4339_v32 = vpop.eup %4338  ;;  %v8534_v6 = vld [vmem:[#allocation7 + $0x168] sm:$0xff] }
 0x532   :  { %v2651_v34 = vsel %vm2648_vm9, %v2650_v14, %v2646_v15  ;;  %v4341_v60 = vpop.eup %4340  ;;  %10946 = vst [vmem:[#allocation68_spill] sm:$0xff] %v8534_v6  ;;  %v8537_v15 = vld [vmem:[#allocation7 + $0x178] sm:$0xff] }
 0x533   :  { %v2760_v29 = vpop.f32.mrf.mxu0  ;;  %v2657_v28 = vmul.f32 %v4339_v32, %v2651_v34  ;;  %v8526_v62 = vadd.f32 1.0, %v4341_v60  ;;  %10947 = vst [vmem:[#allocation69_spill] sm:$0xff] %v8537_v15  ;;  %v8546_v34 = vld [vmem:[#allocation7 + $0x158] sm:$0xff] }
 0x534   :  { %v2761_v42 = vadd.f32 %v2760_v29, %v2675_v58  ;;  %v8516_v58 = vpop.eup %4342  ;;  %10949 = vst [vmem:[#allocation71_spill] sm:$0xff] %v8546_v34 }
 0x535   :  { %2926 = vmatmul.f32.vlgmr.msrb.gmra.mxu1 %v2657_v28  ;;  %2966 = vmatmul.f32.vlgmr.msra.gmra.mxu3 %v2657_v28  ;;  %v2851_v25 = vmul.f32 %v8516_v58, %v8500_v20  ;;  %vm2856_vm10 = vweird.f32 %v8516_v58  ;;  %vm2875_vm5 = vweird.f32 %v8526_v62 }
 0x536   :  { %v2823_v55 = vadd.f32 %v2761_v42, %v10271_v46  ;;  %3133 = vmatpush.msrb.mxu1 %v8504_v21  ;;  %3173 = vmatpush.msra.mxu3 %v8507_v51  ;;  %v8543_v42 = vld [vmem:[#allocation7 + $0x148] sm:$0xff]  ;;  %vm8594_vm12 = vmor %vm2855_vm11, %vm2856_vm10 }
 0x537   :  { %v2852_v29 = vsub.f32 1.0, %v2851_v25  ;;  %10948 = vst [vmem:[#allocation70_spill] sm:$0xff] %v8543_v42  ;;  %v8557_v25 = vld [vmem:[#allocation7 + $0x108] sm:$0xff] }
 0x538   :  { %v4138_v0 = vmul.f32 -1.442695, %v2823_v55  ;;  %3134 = vmatpush.msrb.mxu1 %v8510_v3  ;;  %3174 = vmatpush.msra.mxu3 %v8513_v49  ;;  %v8553_v55 = vld [vmem:[#allocation7 + $0x138] sm:$0xff]  ;;  %10952 = vst [vmem:[#allocation74_spill] sm:$0xff] %v8557_v25 }
 0x539   :  { %10951 = vst [vmem:[#allocation73_spill] sm:$0xff] %v8553_v55  ;;  %v2853_v60 = vmul.f32 %v8516_v58, %v2852_v29 }
 0x53a   :  { %4344 = vpow2.f32 %v4138_v0  ;;  %3135 = vmatpush.msrb.mxu1 %v8518_v22  ;;  %3175 = vmatpush.msra.mxu3 %v8521_v35  ;;  %v2800_v32 = vpop.f32.mrf.mxu2 }
 0x53b   :  { %4346 = vrcp.f32 %v8526_v62  ;;  %v2801_v0 = vadd.f32 %v2800_v32, %v2715_v37 }
 0x53c   :  { %3136 = vmatpush.msrb.mxu1 %v8528_v18  ;;  %3176 = vmatpush.msra.mxu3 %v8531_v13 }
 0x53d   :  { %3006 = vmatmul.f32.vlgmr.msra.gmra.mxu1 %v2657_v28  ;;  %3046 = vmatmul.f32.vlgmr.msrb.gmra.mxu3 %v2657_v28  ;;  %v8550_v28 = vld [vmem:[#allocation7 + $0x128] sm:$0xff]  ;;  %v2825_v29 = vadd.f32 %v2801_v0, %v10790_v43  ;;  %v2859_v43 = vand.u32 2147483647, %v8500_v20 }
 0x53e   :  { %3137 = vmatpush.msrb.mxu1 %v8534_v6  ;;  %3177 = vmatpush.msra.mxu3 %v8537_v15  ;;  %10950 = vst [vmem:[#allocation72_spill] sm:$0xff] %v8550_v28  ;;  %v8586_v15 = vld [vmem:[#allocation7 + $0xa8] sm:$0xff] }
 0x53f   :  { %10958 = vst [vmem:[#allocation80_spill] sm:$0xff] %v8586_v15  ;;  %v8603_v6 = vld [vmem:[#allocation7 + $0x88] sm:$0xff]  ;;  %vm2860_vm15 = vcmp.eq.f32.partialorder %v2859_v43, 8.507059e+37 }
 0x540   :  { %v4345_v11 = vpop.eup %4344  ;;  %3138 = vmatpush.msrb.mxu1 %v8543_v42  ;;  %3178 = vmatpush.msra.mxu3 %v8546_v34  ;;  %v8565_v42 = vld [vmem:[#allocation7 + $0xe8] sm:$0xff] }
 0x541   :  { %v8540_v14 = vadd.f32 1.0, %v4345_v11  ;;  %v8560_v11 = vld [vmem:[#allocation7 + $0x118] sm:$0xff]  ;;  %v8563_v34 = vpop.eup %4346  ;;  %10954 = vst [vmem:[#allocation76_spill] sm:$0xff] %v8565_v42 }
 0x542   :  { %3139 = vmatpush.msrb.mxu1 %v8550_v28  ;;  %3179 = vmatpush.msra.mxu3 %v8553_v55  ;;  %10953 = vst [vmem:[#allocation75_spill] sm:$0xff] %v8560_v11  ;;  %v8568_v28 = vld [vmem:[#allocation7 + $0xf8] sm:$0xff]  ;;  %vm2876_vm4 = vweird.f32 %v8563_v34 }
 0x543   :  { %4348 = vrcp.f32 %v8540_v14  ;;  %10955 = vst [vmem:[#allocation77_spill] sm:$0xff] %v8568_v28  ;;  %v8578_v55 = vld [vmem:[#allocation7 + $0xd8] sm:$0xff]  ;;  %vm2836_vm14 = vweird.f32 %v8540_v14  ;;  %vm2877_vm6 = vmor %vm2875_vm5, %vm2876_vm4 }
 0x544   :  { %3140 = vmatpush.msrb.mxu1 %v8557_v25  ;;  %3180 = vmatpush.msra.mxu3 %v8560_v11  ;;  %v2854_v25 = vadd.f32 %v8516_v58, %v2853_v60  ;;  %v8575_v11 = vld [vmem:[#allocation7 + $0xc8] sm:$0xff]  ;;  %10957 = vst [vmem:[#allocation79_spill] sm:$0xff] %v8578_v55  ;;  %v8589_v60 = vld [vmem:[#allocation7 + $0xb8] sm:$0xff]  ;;  %4350 = vtanh.f32 %v2825_v29 }
 0x545   :  { %10956 = vst [vmem:[#allocation78_spill] sm:$0xff] %v8575_v11  ;;  %v8610_v29 = vld [vmem:[#allocation7 + $0x68] sm:$0xff] }
 0x546   :  { %3141 = vmatpush.msrb.mxu1 %v8565_v42  ;;  %3181 = vmatpush.msra.mxu3 %v8568_v28  ;;  %v2861_v42 = vand.u32 2147483648, %v8500_v20  ;;  %v2871_v28 = vmul.f32 %v8563_v34, %v8526_v62  ;;  %10959 = vst [vmem:[#allocation81_spill] sm:$0xff] %v8589_v60  ;;  %v2840_v20 = vand.u32 2147483647, %v8540_v14 }
 0x547   :  { %10963 = vst [vmem:[#allocation83_spill] sm:$0xff] %v8610_v29 }
 0x548   :  { %3142 = vmatpush.msrb.mxu1 %v8575_v11  ;;  %3182 = vmatpush.msra.mxu3 %v8578_v55  ;;  %v2842_v11 = vand.u32 2147483648, %v8540_v14  ;;  %v2862_v13 = vor.u32 1.1754944e-38, %v2861_v42  ;;  %v2872_v18 = vsub.f32 1.0, %v2871_v28  ;;  %v8613_v55 = vld [vmem:[#allocation7 + $0x78] sm:$0xff]  ;;  %vm2841_vm3 = vcmp.eq.f32.partialorder %v2840_v20, 8.507059e+37  ;;  %v8617_v42 = vld [vmem:[#allocation7 + $0x48] sm:$0xff] }
 0x549   :  { %v4349_v37 = vpop.eup %4348  ;;  %10964 = vst [vmem:[#allocation84_spill] sm:$0xff] %v8613_v55  ;;  %v2881_v20 = vand.u32 2147483648, %v8526_v62 }
 0x54a   :  { %v2832_v32 = vmul.f32 %v4349_v37, %v8540_v14  ;;  %3143 = vmatpush.msrb.mxu1 %v8586_v15  ;;  %3183 = vmatpush.msra.mxu3 %v8589_v60  ;;  %vm2837_vm13 = vweird.f32 %v4349_v37  ;;  %v2858_v15 = vsel %vm8594_vm12, %v8516_v58, %v2854_v25  ;;  %v8606_v60 = vld [vmem:[#allocation7 + $0x98] sm:$0xff]  ;;  %v2843_v58 = vor.u32 1.1754944e-38, %v2842_v11  ;;  %v4351_v43 = vpop.eup %4350 }
 0x54b   :  { %10962 = vst [vmem:[#allocation82_spill] sm:$0xff] %v8606_v60  ;;  %vm2838_vm2 = vmor %vm2836_vm14, %vm2837_vm13  ;;  %v2863_v25 = vsel %vm2860_vm15, %v2862_v13, %v2858_v15  ;;  %v8620_v14 = vld [vmem:[#allocation7 + $0x58] sm:$0xff]  ;;  %v2873_v28 = vmul.f32 %v8563_v34, %v2872_v18  ;;  %v8633_v15 = vld [vmem:[#allocation7 + $0x8] sm:$0xff] }
 0x54c   :  { %v2833_v0 = vsub.f32 1.0, %v2832_v32  ;;  %3144 = vmatpush.msrb.mxu1 %v8603_v6  ;;  %3184 = vmatpush.msra.mxu3 %v8606_v60  ;;  %v8625_v60 = vld [vmem:[#allocation7 + $0x28] sm:$0xff]  ;;  %v8636_v11 = vld [vmem:[#allocation7 + $0x18] sm:$0xff] }
 0x54d   :  { %v8641_v18 = vld [vmem:[#allocation5 + $0xe8] sm:$0xff] }
 0x54e   :  { %v2834_v32 = vmul.f32 %v4349_v37, %v2833_v0  ;;  %3145 = vmatpush.msrb.mxu1 %v8610_v29  ;;  %3185 = vmatpush.msra.mxu3 %v8613_v55  ;;  %v2885_v55 = vmul.f32 %v2863_v25, %v8180_v19  ;;  %v2874_v19 = vadd.f32 %v8563_v34, %v2873_v28  ;;  %v8664_v28 = vld [vmem:[#allocation5 + $0x88] sm:$0xff] }
 0x550   :  { %v2835_v35 = vadd.f32 %v4349_v37, %v2834_v32  ;;  %3146 = vmatpush.msrb.mxu1 %v8617_v42  ;;  %3186 = vmatpush.msra.mxu3 %v8620_v14  ;;  %v2878_v25 = vsel %vm2877_vm6, %v8563_v34, %v2874_v19 }
 0x552   :  { %v2839_v0 = vsel %vm2838_vm2, %v4349_v37, %v2835_v35  ;;  %3147 = vmatpush.msrb.mxu1 %v8625_v60  ;;  %v8628_v35 = vld [vmem:[#allocation7 + $0x38] sm:$0xff] }
 0x553   :  { %v2844_v32 = vsel %vm2841_vm3, %v2843_v58, %v2839_v0  ;;  %3187 = vmatpush.msra.mxu3 %v8628_v35  ;;  %v8644_v37 = vld [vmem:[#allocation5 + $0xf8] sm:$0xff]  ;;  %v8658_v0 = vld [vmem:[#allocation5 + $0xa8] sm:$0xff] }
 0x554   :  { %v2886_v29 = vmul.f32 %v4351_v43, %v2844_v32  ;;  %3148 = vmatpush.msrb.mxu1 %v8633_v15  ;;  %v8654_v58 = vld [vmem:[#allocation5 + $0xd8] sm:$0xff]  ;;  %10967 = vst [vmem:[#allocation88_spill] sm:$0xff] %v8658_v0 }
 0x555   :  { %3188 = vmatpush.msra.mxu3 %v8636_v11  ;;  %10966 = vst [vmem:[#allocation86_spill] sm:$0xff] %v8654_v58  ;;  %v8661_v43 = vld [vmem:[#allocation5 + $0xb8] sm:$0xff] }
 0x556   :  { %v8631_v13 = vadd.f32 %v2886_v29, %v2885_v55  ;;  %3226 = vmatpush.msra.mxu1 %v8641_v18  ;;  %v2879_v29 = vand.u32 2147483647, %v8526_v62  ;;  %v8651_v55 = vld [vmem:[#allocation5 + $0xc8] sm:$0xff]  ;;  %v2882_v62 = vor.u32 1.1754944e-38, %v2881_v20  ;;  %v8667_v32 = vld [vmem:[#allocation5 + $0x98] sm:$0xff] }
 0x557   :  { %3266 = vmatpush.msrb.mxu3 %v8644_v37  ;;  %10965 = vst [vmem:[#allocation85_spill] sm:$0xff] %v8651_v55  ;;  %v8685_v20 = vld [vmem:[#allocation5 + $0x48] sm:$0xff] }
 0x558   :  { %4352 = vtanh.f32 %v8631_v13  ;;  %3227 = vmatpush.msra.mxu1 %v8651_v55  ;;  %vm2880_vm7 = vcmp.eq.f32.partialorder %v2879_v29, 8.507059e+37  ;;  %v8672_v55 = vld [vmem:[#allocation5 + $0x68] sm:$0xff]  ;;  %v8689_v29 = vld [vmem:[#allocation5 + $0x58] sm:$0xff] }
 0x559   :  { %3267 = vmatpush.msrb.mxu3 %v8654_v58  ;;  %v2883_v34 = vsel %vm2880_vm7, %v2882_v62, %v2878_v25  ;;  %v8695_v25 = vld [vmem:[#allocation2 + $0x8] sm:$0xff]  ;;  %v8707_v62 = vld [vmem:[#allocation5 + $0x8] sm:$0xff] }
 0x55a   :  { %3228 = vmatpush.msra.mxu1 %v8658_v0  ;;  %v8675_v0 = vld [vmem:[#allocation5 + $0x78] sm:$0xff] }
 0x55b   :  { %3268 = vmatpush.msrb.mxu3 %v8661_v43 }
 0x55c   :  { %3229 = vmatpush.msra.mxu1 %v8664_v28 }
 0x55d   :  { %3269 = vmatpush.msrb.mxu3 %v8667_v32 }
 0x55e   :  { %v4353_v58 = vpop.eup %4352  ;;  %3230 = vmatpush.msra.mxu1 %v8672_v55 }
 0x55f   :  { %v8670_v19 = vmul.f32 %v4353_v58, %v2883_v34  ;;  %3270 = vmatpush.msrb.mxu3 %v8675_v0  ;;  %v8692_v58 = vld [vmem:[#allocation2] sm:$0xff]  ;;  %v8711_v34 = vld [vmem:[#allocation5 + $0x18] sm:$0xff] }
 0x560   :  { %3231 = vmatpush.msra.mxu1 %v8685_v20 }
 0x561   :  { %2906 = vmatmul.f32.vlgmr.msrb.gmra.mxu0 %v8670_v19  ;;  %2946 = vmatmul.f32.vlgmr.msra.gmra.mxu2 %v8670_v19 }
 0x562   :  { %3113 = vmatpush.msrb.mxu0 %v8205_v31  ;;  %3149 = vmatmul.f32.vlgmr.msrb.gmra.mxu1 %v8670_v19  ;;  %v3193_v31 = vrot.slane %v8692_v58, 6 }
 0x563   :  { %3153 = vmatpush.msra.mxu2 %v8209_v59  ;;  %3189 = vmatmul.f32.vlgmr.msra.gmra.mxu3 %v8670_v19  ;;  %v3194_v59 = vrot.slane %v8695_v25, 5 }
 0x564   :  { %3114 = vmatpush.msrb.mxu0 %v8213_v40  ;;  %3271 = vmatpush.msrb.mxu3 %v8689_v29  ;;  %v8699_v40 = vld [vmem:[#allocation5 + $0x28] sm:$0xff] }
 0x565   :  { %3154 = vmatpush.msra.mxu2 %v8219_v10  ;;  %3232 = vmatpush.msra.mxu1 %v8699_v40  ;;  %v8703_v10 = vld [vmem:[#allocation5 + $0x38] sm:$0xff] }
 0x566   :  { %3115 = vmatpush.msrb.mxu0 %v8223_v50  ;;  %3272 = vmatpush.msrb.mxu3 %v8703_v10  ;;  %v8715_v50 = vsel %vm446_vm0, %v3194_v59, %v3193_v31  ;;  %v8827_v31 = vld [vmem:[#allocation10 + $0x260] sm:$0xff]  ;;  %v8830_v59 = vld [vmem:[#allocation10 + $0x268] sm:$0xff] }
 0x567   :  { %3155 = vmatpush.msra.mxu2 %v8227_v9  ;;  %3233 = vmatpush.msra.mxu1 %v8707_v62  ;;  %v8727_v9 = vld [vmem:[#allocation10 + $0x3e0] sm:$0xff]  ;;  %10990 = vst [vmem:[#allocation103_spill] sm:$0xff] %v8827_v31 }
 0x568   :  { %3116 = vmatpush.msrb.mxu0 %v8231_v63  ;;  %3273 = vmatpush.msrb.mxu3 %v8711_v34  ;;  %v8730_v63 = vld [vmem:[#allocation10 + $0x3e8] sm:$0xff]  ;;  %10991 = vst [vmem:[#allocation106_spill] sm:$0xff] %v8830_v59 }
 0x569   :  { %3156 = vmatpush.msra.mxu2 %v8238_v53  ;;  %2986 = vmatmul.f32.vlgmr.msra.gmra.mxu0 %v8670_v19  ;;  %v8735_v53 = vld [vmem:[#allocation10 + $0x3c0] sm:$0xff] }
 0x56a   :  { %3026 = vmatmul.f32.vlgmr.msrb.gmra.mxu2 %v8670_v19  ;;  %3117 = vmatpush.msrb.mxu0 %v8243_v17  ;;  %v8738_v17 = vld [vmem:[#allocation10 + $0x3c8] sm:$0xff] }
 0x56b   :  { %3157 = vmatpush.msra.mxu2 %v8246_v52  ;;  %4145 = vmatmul.msk.f32.vlgmr.msra.gmra.mxu1 %vm448_vm1, %v8715_v50  ;;  %v8743_v52 = vld [vmem:[#allocation10 + $0x3a0] sm:$0xff] }
 0x56c   :  { %4147 = vmatmul.msk.f32.vlgmr.msrb.gmra.mxu3 %vm448_vm1, %v8715_v50  ;;  %3118 = vmatpush.msrb.mxu0 %v8253_v12  ;;  %v8746_v12 = vld [vmem:[#allocation10 + $0x3a8] sm:$0xff] }
 0x56d   :  { %3158 = vmatpush.msra.mxu2 %v8256_v57  ;;  %3365 = vmatpush.msrb.mxu1 %v8727_v9  ;;  %v8751_v57 = vld [vmem:[#allocation10 + $0x380] sm:$0xff] }
 0x56e   :  { %3405 = vmatpush.msra.mxu3 %v8730_v63  ;;  %3119 = vmatpush.msrb.mxu0 %v8260_v5  ;;  %v8754_v5 = vld [vmem:[#allocation10 + $0x388] sm:$0xff] }
 0x56f   :  { %3159 = vmatpush.msra.mxu2 %v8264_v36  ;;  %3366 = vmatpush.msrb.mxu1 %v8735_v53  ;;  %10968 = vst [vmem:[#allocation87_spill] sm:$0xff] %v8754_v5  ;;  %v8759_v36 = vld [vmem:[#allocation10 + $0x360] sm:$0xff] }
 0x570   :  { %3406 = vmatpush.msra.mxu3 %v8738_v17  ;;  %3120 = vmatpush.msrb.mxu0 %v8268_v4  ;;  %10969 = vst [vmem:[#allocation89_spill] sm:$0xff] %v8759_v36  ;;  %v8762_v4 = vld [vmem:[#allocation10 + $0x368] sm:$0xff] }
 0x571   :  { %3160 = vmatpush.msra.mxu2 %v8272_v47  ;;  %3367 = vmatpush.msrb.mxu1 %v8743_v52  ;;  %10970 = vst [vmem:[#allocation91_spill] sm:$0xff] %v8762_v4  ;;  %v8767_v47 = vld [vmem:[#allocation10 + $0x340] sm:$0xff] }
 0x572   :  { %3407 = vmatpush.msra.mxu3 %v8746_v12  ;;  %3121 = vmatpush.msrb.mxu0 %v8276_v33  ;;  %10971 = vst [vmem:[#allocation90_spill] sm:$0xff] %v8767_v47  ;;  %v8770_v33 = vld [vmem:[#allocation10 + $0x348] sm:$0xff] }
 0x573   :  { %3161 = vmatpush.msra.mxu2 %v8280_v2  ;;  %3368 = vmatpush.msrb.mxu1 %v8751_v57  ;;  %10972 = vst [vmem:[#allocation92_spill] sm:$0xff] %v8770_v33  ;;  %v8775_v2 = vld [vmem:[#allocation10 + $0x320] sm:$0xff] }
 0x574   :  { %3408 = vmatpush.msra.mxu3 %v8754_v5  ;;  %3122 = vmatpush.msrb.mxu0 %v8284_v8  ;;  %10973 = vst [vmem:[#allocation94_spill] sm:$0xff] %v8775_v2  ;;  %v8778_v8 = vld [vmem:[#allocation10 + $0x328] sm:$0xff] }
 0x575   :  { %3162 = vmatpush.msra.mxu2 %v8288_v1  ;;  %3369 = vmatpush.msrb.mxu1 %v8759_v36  ;;  %10974 = vst [vmem:[#allocation93_spill] sm:$0xff] %v8778_v8  ;;  %v8783_v1 = vld [vmem:[#allocation10 + $0x300] sm:$0xff] }
 0x576   :  { %3409 = vmatpush.msra.mxu3 %v8762_v4  ;;  %3123 = vmatpush.msrb.mxu0 %v8292_v7  ;;  %10975 = vst [vmem:[#allocation95_spill] sm:$0xff] %v8783_v1  ;;  %v8786_v7 = vld [vmem:[#allocation10 + $0x308] sm:$0xff] }
 0x577   :  { %3163 = vmatpush.msra.mxu2 %v8296_v44  ;;  %3370 = vmatpush.msrb.mxu1 %v8767_v47  ;;  %10976 = vst [vmem:[#allocation97_spill] sm:$0xff] %v8786_v7  ;;  %v8791_v44 = vld [vmem:[#allocation10 + $0x2e0] sm:$0xff] }
 0x578   :  { %3410 = vmatpush.msra.mxu3 %v8770_v33  ;;  %3124 = vmatpush.msrb.mxu0 %v8300_v56  ;;  %10977 = vst [vmem:[#allocation98_spill] sm:$0xff] %v8791_v44  ;;  %v8794_v56 = vld [vmem:[#allocation10 + $0x2e8] sm:$0xff] }
 0x579   :  { %3164 = vmatpush.msra.mxu2 %v8304_v26  ;;  %3371 = vmatpush.msrb.mxu1 %v8775_v2  ;;  %10978 = vst [vmem:[#allocation96_spill] sm:$0xff] %v8794_v56  ;;  %v8799_v26 = vld [vmem:[#allocation10 + $0x2c0] sm:$0xff] }
 0x57a   :  { %3411 = vmatpush.msra.mxu3 %v8778_v8  ;;  %3125 = vmatpush.msrb.mxu0 %v8308_v16  ;;  %10979 = vst [vmem:[#allocation100_spill] sm:$0xff] %v8799_v26  ;;  %v8802_v16 = vld [vmem:[#allocation10 + $0x2c8] sm:$0xff] }
 0x57b   :  { %3165 = vmatpush.msra.mxu2 %v8312_v54  ;;  %3372 = vmatpush.msrb.mxu1 %v8783_v1  ;;  %10980 = vst [vmem:[#allocation101_spill] sm:$0xff] %v8802_v16  ;;  %v10981_v54 = vld [vmem:[#allocation24_spill] sm:$0xff]  ;;  %v11106_v8 = vld [vmem:[#allocation41_spill] sm:$0xff] }
 0x57c   :  { %3412 = vmatpush.msra.mxu3 %v8786_v7  ;;  %3126 = vmatpush.msrb.mxu0 %v8316_v48  ;;  %v8811_v48 = vld [vmem:[#allocation10 + $0x2a0] sm:$0xff] }
 0x57d   :  { %3166 = vmatpush.msra.mxu2 %v8320_v23  ;;  %3373 = vmatpush.msrb.mxu1 %v8791_v44  ;;  %10982 = vst [vmem:[#allocation99_spill] sm:$0xff] %v8811_v48  ;;  %v8814_v23 = vld [vmem:[#allocation10 + $0x2a8] sm:$0xff] }
 0x57e   :  { %3413 = vmatpush.msra.mxu3 %v8794_v56  ;;  %3127 = vmatpush.msrb.mxu0 %v8324_v27  ;;  %10983 = vst [vmem:[#allocation104_spill] sm:$0xff] %v8814_v23  ;;  %v10984_v27 = vld [vmem:[#allocation57_spill] sm:$0xff] }
 0x57f   :  { %3167 = vmatpush.msra.mxu2 %v8328_v30  ;;  %3374 = vmatpush.msrb.mxu1 %v8799_v26  ;;  %v10985_v30 = vld [vmem:[#allocation26_spill] sm:$0xff] }
 0x580   :  { %3414 = vmatpush.msra.mxu3 %v8802_v16  ;;  %3128 = vmatpush.msrb.mxu0 %v8332_v39  ;;  %v8819_v39 = vld [vmem:[#allocation10 + $0x280] sm:$0xff]  ;;  %v11105_v16 = vld [vmem:[#allocation50_spill] sm:$0xff] }
 0x581   :  { %3168 = vmatpush.msra.mxu2 %v8336_v41  ;;  %3129 = vmatmul.f32.vlgmr.msrb.gmra.mxu0 %v8670_v19  ;;  %10986 = vst [vmem:[#allocation105_spill] sm:$0xff] %v8819_v39  ;;  %v8822_v41 = vld [vmem:[#allocation10 + $0x288] sm:$0xff] }
 0x582   :  { %3169 = vmatmul.f32.vlgmr.msra.gmra.mxu2 %v8670_v19  ;;  %3206 = vmatpush.msra.mxu0 %v8341_v24  ;;  %10987 = vst [vmem:[#allocation102_spill] sm:$0xff] %v8822_v41  ;;  %v10988_v24 = vld [vmem:[#allocation58_spill] sm:$0xff]  ;;  %v10989_v19 = vld [vmem:[#allocation59_spill] sm:$0xff] }
 0x583   :  { %3246 = vmatpush.msrb.mxu2 %v10981_v54  ;;  %3375 = vmatpush.msrb.mxu1 %v8811_v48  ;;  %v10992_v54 = vld [vmem:[#allocation60_spill] sm:$0xff] }
 0x584   :  { %3415 = vmatpush.msra.mxu3 %v8814_v23  ;;  %3207 = vmatpush.msra.mxu0 %v10984_v27  ;;  %v8834_v27 = vld [vmem:[#allocation5 + $0x90] sm:$0xff] }
 0x585   :  { %3247 = vmatpush.msrb.mxu2 %v10985_v30  ;;  %3376 = vmatpush.msrb.mxu1 %v8819_v39  ;;  %10993 = vst [vmem:[#allocation108_spill] sm:$0xff] %v8834_v27  ;;  %v8837_v30 = vld [vmem:[#allocation10 + $0x240] sm:$0xff] }
 0x586   :  { %3416 = vmatpush.msra.mxu3 %v8822_v41  ;;  %3208 = vmatpush.msra.mxu0 %v10988_v24  ;;  %10994 = vst [vmem:[#allocation109_spill] sm:$0xff] %v8837_v30  ;;  %v8840_v24 = vld [vmem:[#allocation10 + $0x248] sm:$0xff] }
 0x587   :  { %3248 = vmatpush.msrb.mxu2 %v10989_v19  ;;  %3377 = vmatpush.msrb.mxu1 %v8827_v31  ;;  %10995 = vst [vmem:[#allocation112_spill] sm:$0xff] %v8840_v24  ;;  %v10996_v19 = vld [vmem:[#allocation61_spill] sm:$0xff] }
 0x588   :  { %3417 = vmatpush.msra.mxu3 %v8830_v59  ;;  %3209 = vmatpush.msra.mxu0 %v10992_v54  ;;  %v8844_v31 = vld [vmem:[#allocation5 + $0x70] sm:$0xff]  ;;  %v8847_v59 = vld [vmem:[#allocation10 + $0x220] sm:$0xff] }
 0x589   :  { %3249 = vmatpush.msrb.mxu2 %v8834_v27  ;;  %3378 = vmatpush.msrb.mxu1 %v8837_v30  ;;  %10997 = vst [vmem:[#allocation107_spill] sm:$0xff] %v8844_v31  ;;  %v8850_v54 = vld [vmem:[#allocation10 + $0x228] sm:$0xff]  ;;  %v11000_v27 = vld [vmem:[#allocation62_spill] sm:$0xff] }
 0x58a   :  { %3418 = vmatpush.msra.mxu3 %v8840_v24  ;;  %3210 = vmatpush.msra.mxu0 %v10996_v19  ;;  %10998 = vst [vmem:[#allocation110_spill] sm:$0xff] %v8847_v59  ;;  %v8854_v30 = vld [vmem:[#allocation5 + $0x50] sm:$0xff]  ;;  %v8857_v24 = vld [vmem:[#allocation10 + $0x200] sm:$0xff] }
 0x58b   :  { %3250 = vmatpush.msrb.mxu2 %v8844_v31  ;;  %3379 = vmatpush.msrb.mxu1 %v8847_v59  ;;  %10999 = vst [vmem:[#allocation115_spill] sm:$0xff] %v8850_v54  ;;  %v8860_v19 = vld [vmem:[#allocation10 + $0x208] sm:$0xff]  ;;  %v11004_v31 = vld [vmem:[#allocation63_spill] sm:$0xff] }
 0x58c   :  { %3419 = vmatpush.msra.mxu3 %v8850_v54  ;;  %3211 = vmatpush.msra.mxu0 %v11000_v27  ;;  %11001 = vst [vmem:[#allocation113_spill] sm:$0xff] %v8854_v30  ;;  %v8864_v59 = vld [vmem:[#allocation5 + $0x30] sm:$0xff]  ;;  %v8870_v27 = vld [vmem:[#allocation10 + $0x3f8] sm:$0xff] }
 0x58d   :  { %3251 = vmatpush.msrb.mxu2 %v8854_v30  ;;  %11002 = vst [vmem:[#allocation117_spill] sm:$0xff] %v8857_v24  ;;  %3380 = vmatpush.msrb.mxu1 %v8857_v24  ;;  %v8867_v54 = vld [vmem:[#allocation10 + $0x3f0] sm:$0xff]  ;;  %v11008_v30 = vld [vmem:[#allocation64_spill] sm:$0xff] }
 0x58e   :  { %11003 = vst [vmem:[#allocation111_spill] sm:$0xff] %v8860_v19  ;;  %3420 = vmatpush.msra.mxu3 %v8860_v19  ;;  %3212 = vmatpush.msra.mxu0 %v11004_v31  ;;  %v8874_v24 = vld [vmem:[#allocation5 + $0x10] sm:$0xff]  ;;  %v11104_v19 = vld [vmem:[#allocation39_spill] sm:$0xff] }
 0x58f   :  { %11005 = vst [vmem:[#allocation25_spill] sm:$0xff] %v8864_v59  ;;  %3252 = vmatpush.msrb.mxu2 %v8864_v59  ;;  %3445 = vmatpush.msra.mxu1 %v8867_v54  ;;  %v8881_v31 = vld [vmem:[#allocation10 + $0x3d0] sm:$0xff]  ;;  %v8884_v59 = vld [vmem:[#allocation10 + $0x3d8] sm:$0xff] }
 0x590   :  { %11006 = vst [vmem:[#allocation114_spill] sm:$0xff] %v8867_v54  ;;  %3485 = vmatpush.msrb.mxu3 %v8870_v27  ;;  %3213 = vmatpush.msra.mxu0 %v11008_v30  ;;  %v8890_v30 = vld [vmem:[#allocation10 + $0x1e8] sm:$0xff] }
 0x591   :  { %11007 = vst [vmem:[#allocation23_spill] sm:$0xff] %v8870_v27  ;;  %3253 = vmatpush.msrb.mxu2 %v8874_v24  ;;  %4144 = vmatmul.msk.f32.vlgmr.msra.gmra.mxu0 %vm448_vm1, %v8715_v50  ;;  %v8887_v27 = vld [vmem:[#allocation10 + $0x1e0] sm:$0xff] }
 0x592   :  { %11009 = vst [vmem:[#allocation118_spill] sm:$0xff] %v8874_v24  ;;  %4146 = vmatmul.msk.f32.vlgmr.msrb.gmra.mxu2 %vm448_vm1, %v8715_v50  ;;  %3446 = vmatpush.msra.mxu1 %v8881_v31  ;;  %v8893_v24 = vld [vmem:[#allocation10 + $0x3b0] sm:$0xff]  ;;  %v8896_v50 = vld [vmem:[#allocation10 + $0x3b8] sm:$0xff] }
 0x593   :  { %11010 = vst [vmem:[#allocation28_spill] sm:$0xff] %v8881_v31  ;;  %3486 = vmatpush.msrb.mxu3 %v8884_v59  ;;  %3345 = vmatpush.msrb.mxu0 %v8887_v27  ;;  %v8899_v31 = vld [vmem:[#allocation10 + $0x1c0] sm:$0xff] }
 0x594   :  { %11011 = vst [vmem:[#allocation36_spill] sm:$0xff] %v8884_v59  ;;  %3385 = vmatpush.msra.mxu2 %v8890_v30  ;;  %3447 = vmatpush.msra.mxu1 %v8893_v24  ;;  %v8902_v59 = vld [vmem:[#allocation10 + $0x1c8] sm:$0xff] }
 0x595   :  { %11012 = vst [vmem:[#allocation27_spill] sm:$0xff] %v8887_v27  ;;  %3487 = vmatpush.msrb.mxu3 %v8896_v50  ;;  %3346 = vmatpush.msrb.mxu0 %v8899_v31  ;;  %v8905_v27 = vld [vmem:[#allocation10 + $0x390] sm:$0xff] }
 0x596   :  { %11013 = vst [vmem:[#allocation34_spill] sm:$0xff] %v8890_v30  ;;  %3386 = vmatpush.msra.mxu2 %v8902_v59  ;;  %3448 = vmatpush.msra.mxu1 %v8905_v27  ;;  %v8908_v30 = vld [vmem:[#allocation10 + $0x398] sm:$0xff] }
 0x597   :  { %11014 = vst [vmem:[#allocation30_spill] sm:$0xff] %v8893_v24  ;;  %3488 = vmatpush.msrb.mxu3 %v8908_v30  ;;  %v8911_v24 = vld [vmem:[#allocation10 + $0x1a0] sm:$0xff] }
 0x598   :  { %11015 = vst [vmem:[#allocation40_spill] sm:$0xff] %v8896_v50  ;;  %3347 = vmatpush.msrb.mxu0 %v8911_v24  ;;  %v8914_v50 = vld [vmem:[#allocation10 + $0x1a8] sm:$0xff] }
 0x599   :  { %11016 = vst [vmem:[#allocation29_spill] sm:$0xff] %v8899_v31  ;;  %3387 = vmatpush.msra.mxu2 %v8914_v50  ;;  %v8917_v31 = vld [vmem:[#allocation10 + $0x370] sm:$0xff] }
 0x59a   :  { %11017 = vst [vmem:[#allocation38_spill] sm:$0xff] %v8902_v59  ;;  %3449 = vmatpush.msra.mxu1 %v8917_v31  ;;  %v8920_v59 = vld [vmem:[#allocation10 + $0x378] sm:$0xff] }
 0x59b   :  { %11018 = vst [vmem:[#allocation32_spill] sm:$0xff] %v8905_v27  ;;  %3489 = vmatpush.msrb.mxu3 %v8920_v59  ;;  %v8923_v27 = vld [vmem:[#allocation10 + $0x180] sm:$0xff] }
 0x59c   :  { %11019 = vst [vmem:[#allocation44_spill] sm:$0xff] %v8908_v30  ;;  %3348 = vmatpush.msrb.mxu0 %v8923_v27  ;;  %v8926_v30 = vld [vmem:[#allocation10 + $0x188] sm:$0xff] }
 0x59d   :  { %11020 = vst [vmem:[#allocation31_spill] sm:$0xff] %v8911_v24  ;;  %3388 = vmatpush.msra.mxu2 %v8926_v30  ;;  %v8929_v24 = vld [vmem:[#allocation10 + $0x350] sm:$0xff] }
 0x59e   :  { %11021 = vst [vmem:[#allocation42_spill] sm:$0xff] %v8914_v50  ;;  %3450 = vmatpush.msra.mxu1 %v8929_v24  ;;  %v8932_v50 = vld [vmem:[#allocation10 + $0x358] sm:$0xff] }
 0x59f   :  { %11022 = vst [vmem:[#allocation35_spill] sm:$0xff] %v8917_v31  ;;  %3490 = vmatpush.msrb.mxu3 %v8932_v50  ;;  %v8935_v31 = vld [vmem:[#allocation10 + $0x160] sm:$0xff] }
 0x5a0   :  { %11023 = vst [vmem:[#allocation46_spill] sm:$0xff] %v8920_v59  ;;  %3349 = vmatpush.msrb.mxu0 %v8935_v31  ;;  %v8938_v59 = vld [vmem:[#allocation10 + $0x168] sm:$0xff] }
 0x5a1   :  { %11024 = vst [vmem:[#allocation33_spill] sm:$0xff] %v8923_v27  ;;  %3389 = vmatpush.msra.mxu2 %v8938_v59  ;;  %v8941_v27 = vld [vmem:[#allocation10 + $0x330] sm:$0xff] }
 0x5a2   :  { %11025 = vst [vmem:[#allocation45_spill] sm:$0xff] %v8926_v30  ;;  %3451 = vmatpush.msra.mxu1 %v8941_v27  ;;  %v8944_v30 = vld [vmem:[#allocation10 + $0x338] sm:$0xff] }
 0x5a3   :  { %11026 = vst [vmem:[#allocation120_spill] sm:$0xff] %v8929_v24  ;;  %3491 = vmatpush.msrb.mxu3 %v8944_v30  ;;  %v8947_v24 = vld [vmem:[#allocation10 + $0x140] sm:$0xff] }
 0x5a4   :  { %11027 = vst [vmem:[#allocation48_spill] sm:$0xff] %v8932_v50  ;;  %3350 = vmatpush.msrb.mxu0 %v8947_v24  ;;  %v8950_v50 = vld [vmem:[#allocation10 + $0x148] sm:$0xff] }
 0x5a5   :  { %11028 = vst [vmem:[#allocation37_spill] sm:$0xff] %v8935_v31  ;;  %3390 = vmatpush.msra.mxu2 %v8950_v50  ;;  %v8953_v31 = vld [vmem:[#allocation10 + $0x310] sm:$0xff] }
 0x5a6   :  { %11029 = vst [vmem:[#allocation47_spill] sm:$0xff] %v8938_v59  ;;  %3452 = vmatpush.msra.mxu1 %v8953_v31  ;;  %v8956_v59 = vld [vmem:[#allocation10 + $0x318] sm:$0xff] }
 0x5a7   :  { %11030 = vst [vmem:[#allocation124_spill] sm:$0xff] %v8941_v27  ;;  %3492 = vmatpush.msrb.mxu3 %v8956_v59  ;;  %v8959_v27 = vld [vmem:[#allocation10 + $0x120] sm:$0xff] }
 0x5a8   :  { %11031 = vst [vmem:[#allocation121_spill] sm:$0xff] %v8944_v30  ;;  %3351 = vmatpush.msrb.mxu0 %v8959_v27  ;;  %v8962_v30 = vld [vmem:[#allocation10 + $0x128] sm:$0xff] }
 0x5a9   :  { %11032 = vst [vmem:[#allocation122_spill] sm:$0xff] %v8947_v24  ;;  %3391 = vmatpush.msra.mxu2 %v8962_v30  ;;  %v8965_v24 = vld [vmem:[#allocation10 + $0x2f0] sm:$0xff] }
 0x5aa   :  { %11033 = vst [vmem:[#allocation49_spill] sm:$0xff] %v8950_v50  ;;  %3453 = vmatpush.msra.mxu1 %v8965_v24  ;;  %v8968_v50 = vld [vmem:[#allocation10 + $0x2f8] sm:$0xff] }
 0x5ab   :  { %11034 = vst [vmem:[#allocation128_spill] sm:$0xff] %v8953_v31  ;;  %3493 = vmatpush.msrb.mxu3 %v8968_v50  ;;  %v8971_v31 = vld [vmem:[#allocation10 + $0x100] sm:$0xff] }
 0x5ac   :  { %11035 = vst [vmem:[#allocation125_spill] sm:$0xff] %v8956_v59  ;;  %3352 = vmatpush.msrb.mxu0 %v8971_v31  ;;  %v8974_v59 = vld [vmem:[#allocation10 + $0x108] sm:$0xff] }
 0x5ad   :  { %11036 = vst [vmem:[#allocation126_spill] sm:$0xff] %v8959_v27  ;;  %3392 = vmatpush.msra.mxu2 %v8974_v59  ;;  %v8977_v27 = vld [vmem:[#allocation10 + $0x2d0] sm:$0xff] }
 0x5ae   :  { %11037 = vst [vmem:[#allocation123_spill] sm:$0xff] %v8962_v30  ;;  %3454 = vmatpush.msra.mxu1 %v8977_v27  ;;  %v8980_v30 = vld [vmem:[#allocation10 + $0x2d8] sm:$0xff] }
 0x5af   :  { %11038 = vst [vmem:[#allocation132_spill] sm:$0xff] %v8965_v24  ;;  %3494 = vmatpush.msrb.mxu3 %v8980_v30  ;;  %v8983_v24 = vld [vmem:[#allocation10 + $0xe0] sm:$0xff] }
 0x5b0   :  { %11039 = vst [vmem:[#allocation129_spill] sm:$0xff] %v8968_v50  ;;  %3353 = vmatpush.msrb.mxu0 %v8983_v24  ;;  %v8986_v50 = vld [vmem:[#allocation10 + $0xe8] sm:$0xff] }
 0x5b1   :  { %11040 = vst [vmem:[#allocation130_spill] sm:$0xff] %v8971_v31  ;;  %3393 = vmatpush.msra.mxu2 %v8986_v50  ;;  %v8989_v31 = vld [vmem:[#allocation10 + $0x2b0] sm:$0xff] }
 0x5b2   :  { %11041 = vst [vmem:[#allocation127_spill] sm:$0xff] %v8974_v59  ;;  %3455 = vmatpush.msra.mxu1 %v8989_v31  ;;  %v8992_v59 = vld [vmem:[#allocation10 + $0x2b8] sm:$0xff] }
 0x5b3   :  { %11042 = vst [vmem:[#allocation136_spill] sm:$0xff] %v8977_v27  ;;  %3495 = vmatpush.msrb.mxu3 %v8992_v59  ;;  %v8995_v27 = vld [vmem:[#allocation10 + $0xc0] sm:$0xff] }
 0x5b4   :  { %11043 = vst [vmem:[#allocation133_spill] sm:$0xff] %v8980_v30  ;;  %3354 = vmatpush.msrb.mxu0 %v8995_v27  ;;  %v8998_v30 = vld [vmem:[#allocation10 + $0xc8] sm:$0xff] }
 0x5b5   :  { %11044 = vst [vmem:[#allocation134_spill] sm:$0xff] %v8983_v24  ;;  %3394 = vmatpush.msra.mxu2 %v8998_v30  ;;  %v9001_v24 = vld [vmem:[#allocation10 + $0x290] sm:$0xff] }
 0x5b6   :  { %11045 = vst [vmem:[#allocation131_spill] sm:$0xff] %v8986_v50  ;;  %3456 = vmatpush.msra.mxu1 %v9001_v24  ;;  %v9004_v50 = vld [vmem:[#allocation10 + $0x298] sm:$0xff] }
 0x5b7   :  { %11046 = vst [vmem:[#allocation138_spill] sm:$0xff] %v8989_v31  ;;  %3496 = vmatpush.msrb.mxu3 %v9004_v50  ;;  %v9007_v31 = vld [vmem:[#allocation10 + $0xa0] sm:$0xff] }
 0x5b8   :  { %11047 = vst [vmem:[#allocation137_spill] sm:$0xff] %v8992_v59  ;;  %3355 = vmatpush.msrb.mxu0 %v9007_v31  ;;  %v9010_v59 = vld [vmem:[#allocation10 + $0xa8] sm:$0xff]  ;;  %v2967_v48 = vpop.f32.mrf.mxu3 }
 0x5b9   :  { %11048 = vst [vmem:[#allocation139_spill] sm:$0xff] %v8995_v27  ;;  %3395 = vmatpush.msra.mxu2 %v9010_v59  ;;  %v9013_v27 = vld [vmem:[#allocation10 + $0x270] sm:$0xff] }
 0x5ba   :  { %11049 = vst [vmem:[#allocation135_spill] sm:$0xff] %v8998_v30  ;;  %3457 = vmatpush.msra.mxu1 %v9013_v27  ;;  %v9016_v30 = vld [vmem:[#allocation10 + $0x278] sm:$0xff] }
 0x5bb   :  { %11050 = vst [vmem:[#allocation142_spill] sm:$0xff] %v9001_v24  ;;  %3497 = vmatpush.msrb.mxu3 %v9016_v30  ;;  %v9019_v24 = vld [vmem:[#allocation10 + $0x80] sm:$0xff] }
 0x5bc   :  { %11051 = vst [vmem:[#allocation140_spill] sm:$0xff] %v9004_v50  ;;  %3356 = vmatpush.msrb.mxu0 %v9019_v24  ;;  %v9022_v50 = vld [vmem:[#allocation10 + $0x88] sm:$0xff] }
 0x5bd   :  { %11052 = vst [vmem:[#allocation143_spill] sm:$0xff] %v9007_v31  ;;  %3396 = vmatpush.msra.mxu2 %v9022_v50  ;;  %v9025_v31 = vld [vmem:[#allocation10 + $0x250] sm:$0xff] }
 0x5be   :  { %11053 = vst [vmem:[#allocation141_spill] sm:$0xff] %v9010_v59  ;;  %3458 = vmatpush.msra.mxu1 %v9025_v31  ;;  %v9028_v59 = vld [vmem:[#allocation10 + $0x258] sm:$0xff] }
 0x5bf   :  { %11054 = vst [vmem:[#allocation146_spill] sm:$0xff] %v9013_v27  ;;  %3498 = vmatpush.msrb.mxu3 %v9028_v59  ;;  %v9031_v27 = vld [vmem:[#allocation10 + $0x60] sm:$0xff] }
 0x5c0   :  { %11055 = vst [vmem:[#allocation144_spill] sm:$0xff] %v9016_v30  ;;  %3357 = vmatpush.msrb.mxu0 %v9031_v27  ;;  %v9034_v30 = vld [vmem:[#allocation10 + $0x68] sm:$0xff] }
 0x5c1   :  { %11056 = vst [vmem:[#allocation147_spill] sm:$0xff] %v9019_v24  ;;  %3397 = vmatpush.msra.mxu2 %v9034_v30  ;;  %v9037_v24 = vld [vmem:[#allocation10 + $0x230] sm:$0xff] }
 0x5c2   :  { %11057 = vst [vmem:[#allocation145_spill] sm:$0xff] %v9022_v50  ;;  %3459 = vmatpush.msra.mxu1 %v9037_v24  ;;  %v9040_v50 = vld [vmem:[#allocation10 + $0x238] sm:$0xff] }
 0x5c3   :  { %11058 = vst [vmem:[#allocation148_spill] sm:$0xff] %v9025_v31  ;;  %3499 = vmatpush.msrb.mxu3 %v9040_v50  ;;  %v9043_v31 = vld [vmem:[#allocation10 + $0x40] sm:$0xff] }
 0x5c4   :  { %11059 = vst [vmem:[#allocation149_spill] sm:$0xff] %v9028_v59  ;;  %3358 = vmatpush.msrb.mxu0 %v9043_v31  ;;  %v9046_v59 = vld [vmem:[#allocation10 + $0x48] sm:$0xff] }
 0x5c5   :  { %11060 = vst [vmem:[#allocation150_spill] sm:$0xff] %v9031_v27  ;;  %3398 = vmatpush.msra.mxu2 %v9046_v59  ;;  %v9049_v27 = vld [vmem:[#allocation10 + $0x210] sm:$0xff] }
 0x5c6   :  { %11061 = vst [vmem:[#allocation151_spill] sm:$0xff] %v9034_v30  ;;  %3460 = vmatpush.msra.mxu1 %v9049_v27  ;;  %v9052_v30 = vld [vmem:[#allocation10 + $0x218] sm:$0xff] }
 0x5c7   :  { %11062 = vst [vmem:[#allocation152_spill] sm:$0xff] %v9037_v24  ;;  %3500 = vmatpush.msrb.mxu3 %v9052_v30  ;;  %v9055_v24 = vld [vmem:[#allocation10 + $0x20] sm:$0xff] }
 0x5c8   :  { %11063 = vst [vmem:[#allocation153_spill] sm:$0xff] %v9040_v50  ;;  %3359 = vmatpush.msrb.mxu0 %v9055_v24  ;;  %v9058_v50 = vld [vmem:[#allocation10 + $0x28] sm:$0xff] }
 0x5c9   :  { %11064 = vst [vmem:[#allocation154_spill] sm:$0xff] %v9043_v31  ;;  %3399 = vmatpush.msra.mxu2 %v9058_v50  ;;  %v9061_v31 = vld [vmem:[#allocation10] sm:$0xff] }
 0x5ca   :  { %11065 = vst [vmem:[#allocation155_spill] sm:$0xff] %v9046_v59  ;;  %3360 = vmatpush.msrb.mxu0 %v9061_v31  ;;  %v9064_v59 = vld [vmem:[#allocation10 + $0x8] sm:$0xff] }
 0x5cb   :  { %11066 = vst [vmem:[#allocation156_spill] sm:$0xff] %v9049_v27  ;;  %3400 = vmatpush.msra.mxu2 %v9064_v59  ;;  %v9067_v27 = vld [vmem:[#allocation10 + $0x1f0] sm:$0xff] }
 0x5cc   :  { %11067 = vst [vmem:[#allocation157_spill] sm:$0xff] %v9052_v30  ;;  %3425 = vmatpush.msra.mxu0 %v9067_v27  ;;  %v9070_v30 = vld [vmem:[#allocation10 + $0x1f8] sm:$0xff] }
 0x5cd   :  { %11068 = vst [vmem:[#allocation158_spill] sm:$0xff] %v9055_v24  ;;  %3465 = vmatpush.msrb.mxu2 %v9070_v30  ;;  %v9073_v24 = vld [vmem:[#allocation10 + $0x1d0] sm:$0xff] }
 0x5ce   :  { %11069 = vst [vmem:[#allocation159_spill] sm:$0xff] %v9058_v50  ;;  %3426 = vmatpush.msra.mxu0 %v9073_v24  ;;  %v9076_v50 = vld [vmem:[#allocation10 + $0x1d8] sm:$0xff] }
 0x5cf   :  { %11070 = vst [vmem:[#allocation160_spill] sm:$0xff] %v9061_v31  ;;  %3466 = vmatpush.msrb.mxu2 %v9076_v50  ;;  %v9079_v31 = vld [vmem:[#allocation10 + $0x1b0] sm:$0xff] }
 0x5d0   :  { %11071 = vst [vmem:[#allocation161_spill] sm:$0xff] %v9064_v59  ;;  %3427 = vmatpush.msra.mxu0 %v9079_v31  ;;  %v9082_v59 = vld [vmem:[#allocation10 + $0x1b8] sm:$0xff] }
 0x5d1   :  { %11072 = vst [vmem:[#allocation162_spill] sm:$0xff] %v9067_v27  ;;  %3467 = vmatpush.msrb.mxu2 %v9082_v59  ;;  %v9085_v27 = vld [vmem:[#allocation10 + $0x190] sm:$0xff] }
 0x5d2   :  { %11073 = vst [vmem:[#allocation163_spill] sm:$0xff] %v9070_v30  ;;  %3428 = vmatpush.msra.mxu0 %v9085_v27  ;;  %v9088_v30 = vld [vmem:[#allocation10 + $0x198] sm:$0xff] }
 0x5d3   :  { %11074 = vst [vmem:[#allocation164_spill] sm:$0xff] %v9073_v24  ;;  %3468 = vmatpush.msrb.mxu2 %v9088_v30  ;;  %v9091_v24 = vld [vmem:[#allocation10 + $0x170] sm:$0xff] }
 0x5d4   :  { %11075 = vst [vmem:[#allocation165_spill] sm:$0xff] %v9076_v50  ;;  %3429 = vmatpush.msra.mxu0 %v9091_v24  ;;  %v9094_v50 = vld [vmem:[#allocation10 + $0x178] sm:$0xff] }
 0x5d5   :  { %11076 = vst [vmem:[#allocation166_spill] sm:$0xff] %v9079_v31  ;;  %3469 = vmatpush.msrb.mxu2 %v9094_v50  ;;  %v9097_v31 = vld [vmem:[#allocation10 + $0x150] sm:$0xff] }
 0x5d6   :  { %11077 = vst [vmem:[#allocation167_spill] sm:$0xff] %v9082_v59  ;;  %3430 = vmatpush.msra.mxu0 %v9097_v31  ;;  %v9100_v59 = vld [vmem:[#allocation10 + $0x158] sm:$0xff] }
 0x5d7   :  { %11078 = vst [vmem:[#allocation168_spill] sm:$0xff] %v9085_v27  ;;  %3470 = vmatpush.msrb.mxu2 %v9100_v59  ;;  %v9103_v27 = vld [vmem:[#allocation10 + $0x130] sm:$0xff] }
 0x5d8   :  { %11079 = vst [vmem:[#allocation169_spill] sm:$0xff] %v9088_v30  ;;  %3431 = vmatpush.msra.mxu0 %v9103_v27  ;;  %v9106_v30 = vld [vmem:[#allocation10 + $0x138] sm:$0xff] }
 0x5d9   :  { %11080 = vst [vmem:[#allocation170_spill] sm:$0xff] %v9091_v24  ;;  %3471 = vmatpush.msrb.mxu2 %v9106_v30  ;;  %v9109_v24 = vld [vmem:[#allocation10 + $0x110] sm:$0xff] }
 0x5da   :  { %11081 = vst [vmem:[#allocation171_spill] sm:$0xff] %v9094_v50  ;;  %3432 = vmatpush.msra.mxu0 %v9109_v24  ;;  %v9112_v50 = vld [vmem:[#allocation10 + $0x118] sm:$0xff] }
 0x5db   :  { %11082 = vst [vmem:[#allocation172_spill] sm:$0xff] %v9097_v31  ;;  %3472 = vmatpush.msrb.mxu2 %v9112_v50  ;;  %v9115_v31 = vld [vmem:[#allocation10 + $0xf0] sm:$0xff] }
 0x5dc   :  { %11083 = vst [vmem:[#allocation173_spill] sm:$0xff] %v9100_v59  ;;  %3433 = vmatpush.msra.mxu0 %v9115_v31  ;;  %v9118_v59 = vld [vmem:[#allocation10 + $0xf8] sm:$0xff] }
 0x5dd   :  { %11084 = vst [vmem:[#allocation51_spill] sm:$0xff] %v9103_v27  ;;  %3473 = vmatpush.msrb.mxu2 %v9118_v59  ;;  %v9121_v27 = vld [vmem:[#allocation10 + $0xd0] sm:$0xff] }
 0x5de   :  { %11085 = vst [vmem:[#allocation20_spill] sm:$0xff] %v9106_v30  ;;  %3434 = vmatpush.msra.mxu0 %v9121_v27  ;;  %v9124_v30 = vld [vmem:[#allocation10 + $0xd8] sm:$0xff]  ;;  %v2907_v54 = vpop.f32.mrf.mxu0 }
 0x5df   :  { %11086 = vst [vmem:[#allocation43_spill] sm:$0xff] %v9109_v24  ;;  %3474 = vmatpush.msrb.mxu2 %v9124_v30  ;;  %v9127_v24 = vld [vmem:[#allocation10 + $0xb0] sm:$0xff] }
 0x5e0   :  { %11087 = vst [vmem:[#allocation52_spill] sm:$0xff] %v9112_v50  ;;  %3435 = vmatpush.msra.mxu0 %v9127_v24  ;;  %v9130_v50 = vld [vmem:[#allocation10 + $0xb8] sm:$0xff] }
 0x5e1   :  { %11088 = vst [vmem:[#allocation21_spill] sm:$0xff] %v9115_v31  ;;  %3475 = vmatpush.msrb.mxu2 %v9130_v50  ;;  %v9133_v31 = vld [vmem:[#allocation10 + $0x90] sm:$0xff] }
 0x5e2   :  { %11089 = vst [vmem:[#allocation53_spill] sm:$0xff] %v9118_v59  ;;  %3436 = vmatpush.msra.mxu0 %v9133_v31  ;;  %v9136_v59 = vld [vmem:[#allocation10 + $0x98] sm:$0xff] }
 0x5e3   :  { %11090 = vst [vmem:[#allocation54_spill] sm:$0xff] %v9121_v27  ;;  %3476 = vmatpush.msrb.mxu2 %v9136_v59  ;;  %v9139_v27 = vld [vmem:[#allocation10 + $0x70] sm:$0xff] }
 0x5e4   :  { %11091 = vst [vmem:[#allocation22_spill] sm:$0xff] %v9124_v30  ;;  %3437 = vmatpush.msra.mxu0 %v9139_v27  ;;  %v9142_v30 = vld [vmem:[#allocation10 + $0x78] sm:$0xff] }
 0x5e5   :  { %11092 = vst [vmem:[#allocation55_spill] sm:$0xff] %v9127_v24  ;;  %3477 = vmatpush.msrb.mxu2 %v9142_v30  ;;  %v9145_v24 = vld [vmem:[#allocation10 + $0x50] sm:$0xff] }
 0x5e6   :  { %11093 = vst [vmem:[#allocation56_spill] sm:$0xff] %v9130_v50  ;;  %3438 = vmatpush.msra.mxu0 %v9145_v24  ;;  %v9148_v50 = vld [vmem:[#allocation10 + $0x58] sm:$0xff] }
 0x5e7   :  { %11094 = vst [vmem:[#allocation24_spill] sm:$0xff] %v9133_v31  ;;  %3478 = vmatpush.msrb.mxu2 %v9148_v50  ;;  %v9151_v31 = vld [vmem:[#allocation10 + $0x30] sm:$0xff] }
 0x5e8   :  { %11095 = vst [vmem:[#allocation57_spill] sm:$0xff] %v9136_v59  ;;  %3439 = vmatpush.msra.mxu0 %v9151_v31  ;;  %v9154_v59 = vld [vmem:[#allocation10 + $0x38] sm:$0xff] }
 0x5e9   :  { %11096 = vst [vmem:[#allocation26_spill] sm:$0xff] %v9139_v27  ;;  %3479 = vmatpush.msrb.mxu2 %v9154_v59  ;;  %v9157_v27 = vld [vmem:[#allocation10 + $0x10] sm:$0xff] }
 0x5ea   :  { %11097 = vst [vmem:[#allocation58_spill] sm:$0xff] %v9142_v30  ;;  %3440 = vmatpush.msra.mxu0 %v9157_v27  ;;  %v9160_v30 = vld [vmem:[#allocation10 + $0x18] sm:$0xff] }
 0x5eb   :  { %11098 = vst [vmem:[#allocation59_spill] sm:$0xff] %v9145_v24  ;;  %3480 = vmatpush.msrb.mxu2 %v9160_v30  ;;  %v2927_v24 = vpop.f32.mrf.mxu1 }
 0x5ec   :  { %11099 = vst [vmem:[#allocation60_spill] sm:$0xff] %v9148_v50  ;;  %v2908_v50 = vadd.f32 %v2907_v54, %v11104_v19 }
 0x5ed   :  { %11100 = vst [vmem:[#allocation61_spill] sm:$0xff] %v9151_v31  ;;  %v2947_v31 = vpop.f32.mrf.mxu2 }
 0x5ee   :  { %11101 = vst [vmem:[#allocation62_spill] sm:$0xff] %v9154_v59  ;;  %v2928_v41 = vadd.f32 %v2927_v24, %v2908_v50  ;;  %v2948_v59 = vadd.f32 %v2947_v31, %v11105_v16 }
 0x5ef   :  { %11102 = vst [vmem:[#allocation63_spill] sm:$0xff] %v9157_v27 }
 0x5f0   :  { %11103 = vst [vmem:[#allocation64_spill] sm:$0xff] %v9160_v30  ;;  %v4141_v23 = vmul.f32 -1.442695, %v2928_v41  ;;  %v2968_v26 = vadd.f32 %v2967_v48, %v2948_v59  ;;  %v3047_v30 = vpop.f32.mrf.mxu3  ;;  %v2987_v41 = vpop.f32.mrf.mxu0 }
 0x5f1   :  { %v2988_v48 = vadd.f32 %v2987_v41, %v6394_v45 }
 0x5f2   :  { %4354 = vpow2.f32 %v4141_v23  ;;  %v4142_v56 = vmul.f32 -1.442695, %v2968_v26 }
 0x5f3   :  { %v3007_v39 = vpop.f32.mrf.mxu1 }
 0x5f4   :  { %4356 = vpow2.f32 %v4142_v56  ;;  %v3008_v31 = vadd.f32 %v3007_v39, %v2988_v48 }
 0x5f5   :  { %v3027_v1 = vpop.f32.mrf.mxu2 }
 0x5f6   :  { %v3028_v2 = vadd.f32 %v3027_v1, %v11106_v8 }
 0x5f8   :  { %v4355_v44 = vpop.eup %4354  ;;  %v3048_v24 = vadd.f32 %v3047_v30, %v3028_v2  ;;  %v3190_v56 = vpop.f32.mrf.mxu3  ;;  %v11107_v30 = vld [vmem:[#allocation116_spill] sm:$0xff] }
 0x5f9   :  { %v3053_v7 = vadd.f32 1.0, %v4355_v44 }
 0x5fa   :  { %v4357_v54 = vpop.eup %4356  ;;  %v4143_v19 = vmul.f32 -1.442695, %v3048_v24 }
 0x5fb   :  { %v3150_v27 = vpop.f32.mrf.mxu1  ;;  %4358 = vrcp.f32 %v3053_v7  ;;  %v3072_v50 = vadd.f32 1.0, %v4357_v54  ;;  %v3065_v2 = vand.u32 2147483648, %v3053_v7  ;;  %vm3059_vm9 = vweird.f32 %v3053_v7 }
 0x5fc   :  { %v3063_v5 = vand.u32 2147483647, %v3053_v7 }
 0x5fd   :  { %4360 = vrcp.f32 %v3072_v50  ;;  %v3084_v41 = vand.u32 2147483648, %v3072_v50  ;;  %vm3078_vm12 = vweird.f32 %v3072_v50 }
 0x5fe   :  { %4362 = vpow2.f32 %v4143_v19  ;;  %vm3064_vm13 = vcmp.eq.f32.partialorder %v3063_v5, 8.507059e+37  ;;  %v3130_v5 = vpop.f32.mrf.mxu0 }
 0x5ff   :  { %4364 = vtanh.f32 %v3008_v31 }
 0x601   :  { %v4359_v33 = vpop.eup %4358 }
 0x602   :  { %v3055_v23 = vmul.f32 %v4359_v33, %v3053_v7  ;;  %vm3060_vm8 = vweird.f32 %v4359_v33 }
 0x603   :  { %v3235_v26 = vpop.f32.mrf.mxu1  ;;  %v4361_v47 = vpop.eup %4360  ;;  %vm3061_vm10 = vmor %vm3059_vm9, %vm3060_vm8 }
 0x604   :  { %v3056_v59 = vsub.f32 1.0, %v3055_v23  ;;  %v3236_v44 = vadd.f32 %v3235_v26, %v3150_v27  ;;  %v4363_v4 = vpop.eup %4362  ;;  %v3074_v1 = vmul.f32 %v4361_v47, %v3072_v50  ;;  %vm3079_vm11 = vweird.f32 %v4361_v47  ;;  %v3275_v26 = vpop.f32.mrf.mxu3 }
 0x605   :  { %v3092_v24 = vadd.f32 1.0, %v4363_v4  ;;  %v3082_v27 = vand.u32 2147483647, %v3072_v50  ;;  %v3066_v23 = vor.u32 1.1754944e-38, %v3065_v2  ;;  %vm3080_vm14 = vmor %vm3078_vm12, %vm3079_vm11 }
 0x606   :  { %v3057_v16 = vmul.f32 %v4359_v33, %v3056_v59  ;;  %v3279_v54 = vadd.f32 %v3236_v44, %v11107_v30  ;;  %v3075_v36 = vsub.f32 1.0, %v3074_v1  ;;  %v3085_v59 = vor.u32 1.1754944e-38, %v3084_v41  ;;  %v4365_v44 = vpop.eup %4364 }
 0x607   :  { %4366 = vrcp.f32 %v3092_v24  ;;  %vm3083_vm15 = vcmp.eq.f32.partialorder %v3082_v27, 8.507059e+37  ;;  %v3276_v30 = vadd.f32 %v3275_v26, %v3190_v56  ;;  %vm3098_vm3 = vweird.f32 %v3092_v24 }
 0x608   :  { %v3058_v8 = vadd.f32 %v4359_v33, %v3057_v16  ;;  %v3076_v19 = vmul.f32 %v4361_v47, %v3075_v36  ;;  %v4149_v48 = vmul.f32 -1.442695, %v3279_v54 }
 0x609   :  { %v3281_v54 = vadd.f32 %v3276_v30, %v10270_v61 }
 0x60a   :  { %v3062_v39 = vsel %vm3061_vm10, %v4359_v33, %v3058_v8  ;;  %v3077_v16 = vadd.f32 %v4361_v47, %v3076_v19  ;;  %4368 = vpow2.f32 %v4149_v48  ;;  %v3104_v19 = vand.u32 2147483648, %v3092_v24 }
 0x60b   :  { %v3067_v4 = vsel %vm3064_vm13, %v3066_v23, %v3062_v39  ;;  %v3102_v39 = vand.u32 2147483647, %v3092_v24  ;;  %v4150_v56 = vmul.f32 -1.442695, %v3281_v54  ;;  %v11113_v54 = vld [vmem:[#allocation70_spill] sm:$0xff] }
 0x60c   :  { %v3081_v1 = vsel %vm3080_vm14, %v4361_v47, %v3077_v16  ;;  %v3109_v33 = vmul.f32 %v4365_v44, %v3067_v4  ;;  %v3105_v48 = vor.u32 1.1754944e-38, %v3104_v19 }
 0x60d   :  { %v4367_v7 = vpop.eup %4366  ;;  %v3086_v31 = vsel %vm3083_vm15, %v3085_v59, %v3081_v1  ;;  %vm3103_vm5 = vcmp.eq.f32.partialorder %v3102_v39, 8.507059e+37  ;;  %v11116_v39 = vld [vmem:[#allocation73_spill] sm:$0xff] }
 0x60e   :  { %v3108_v36 = vmul.f32 %v3086_v31, %v8496_v38  ;;  %v3094_v8 = vmul.f32 %v4367_v7, %v3092_v24  ;;  %vm3099_vm2 = vweird.f32 %v4367_v7  ;;  %v3215_v26 = vpop.f32.mrf.mxu0 }
 0x60f   :  { %vm3100_vm4 = vmor %vm3098_vm3, %vm3099_vm2  ;;  %v3216_v30 = vadd.f32 %v3215_v26, %v3130_v5  ;;  %v11120_v26 = vld [vmem:[#allocation77_spill] sm:$0xff] }
 0x610   :  { %v9169_v2 = vadd.f32 %v3109_v33, %v3108_v36  ;;  %v3095_v50 = vsub.f32 1.0, %v3094_v8  ;;  %v4369_v47 = vpop.eup %4368  ;;  %v11108_v36 = vld [vmem:[#allocation65_spill] sm:$0xff]  ;;  %v11109_v33 = vld [vmem:[#allocation66_spill] sm:$0xff]  ;;  %v11110_v8 = vld [vmem:[#allocation67_spill] sm:$0xff] }
 0x611   :  { %v9173_v38 = vadd.f32 1.0, %v4369_v47  ;;  %v3278_v44 = vadd.f32 %v3216_v30, %v10271_v46  ;;  %v11115_v47 = vld [vmem:[#allocation72_spill] sm:$0xff] }
 0x612   :  { %4370 = vtanh.f32 %v9169_v2  ;;  %v3096_v41 = vmul.f32 %v4367_v7, %v3095_v50 }
 0x613   :  { %4372 = vpow2.f32 %v4150_v56  ;;  %v4148_v24 = vmul.f32 -1.442695, %v3278_v44  ;;  %v11117_v56 = vld [vmem:[#allocation74_spill] sm:$0xff]  ;;  %vm3310_vm7 = vweird.f32 %v9173_v38 }
 0x614   :  { %v3097_v27 = vadd.f32 %v4367_v7, %v3096_v41  ;;  %4374 = vrcp.f32 %v9173_v38 }
 0x615   :  { %4376 = vpow2.f32 %v4148_v24  ;;  %v11122_v24 = vld [vmem:[#allocation78_spill] sm:$0xff] }
 0x616   :  { %v3101_v23 = vsel %vm3100_vm4, %v4367_v7, %v3097_v27  ;;  %v3170_v7 = vpop.f32.mrf.mxu2 }
 0x617   :  { %v3106_v59 = vsel %vm3103_vm5, %v3105_v48, %v3101_v23  ;;  %v11118_v23 = vld [vmem:[#allocation75_spill] sm:$0xff] }
 0x618   :  { %v4371_v16 = vpop.eup %4370 }
 0x619   :  { %v3112_v4 = vmul.f32 %v4371_v16, %v3106_v59  ;;  %v4373_v1 = vpop.eup %4372  ;;  %v11119_v16 = vld [vmem:[#allocation76_spill] sm:$0xff] }
 0x61a   :  { %v4375_v31 = vpop.eup %4374 }
 0x61b   :  { %3381 = vmatmul.f32.vlgmr.msrb.gmra.mxu1 %v3112_v4  ;;  %3421 = vmatmul.f32.vlgmr.msra.gmra.mxu3 %v3112_v4  ;;  %v4377_v50 = vpop.eup %4376  ;;  %vm3311_vm6 = vweird.f32 %v4375_v31 }
 0x61c   :  { %3588 = vmatpush.msrb.mxu1 %v8504_v21  ;;  %3628 = vmatpush.msra.mxu3 %v8507_v51  ;;  %v3306_v21 = vmul.f32 %v4375_v31, %v9173_v38  ;;  %v9186_v51 = vadd.f32 1.0, %v4373_v1  ;;  %v3285_v5 = vadd.f32 1.0, %v4377_v50  ;;  %v11123_v1 = vld [vmem:[#allocation79_spill] sm:$0xff]  ;;  %v3314_v50 = vand.u32 2147483647, %v9173_v38  ;;  %vm9211_vm8 = vmor %vm3310_vm7, %vm3311_vm6 }
 0x61e   :  { %3589 = vmatpush.msrb.mxu1 %v8510_v3  ;;  %3629 = vmatpush.msra.mxu3 %v8513_v49  ;;  %v11111_v3 = vld [vmem:[#allocation68_spill] sm:$0xff]  ;;  %v11112_v49 = vld [vmem:[#allocation69_spill] sm:$0xff]  ;;  %v3307_v41 = vsub.f32 1.0, %v3306_v21  ;;  %4378 = vrcp.f32 %v9186_v51  ;;  %v3255_v19 = vpop.f32.mrf.mxu2  ;;  %vm3291_vm10 = vweird.f32 %v3285_v5  ;;  %vm3315_vm11 = vcmp.eq.f32.partialorder %v3314_v50, 8.507059e+37 }
 0x61f   :  { %4380 = vrcp.f32 %v3285_v5  ;;  %v3256_v27 = vadd.f32 %v3255_v19, %v3170_v7  ;;  %v11124_v21 = vld [vmem:[#allocation80_spill] sm:$0xff]  ;;  %vm3330_vm15 = vweird.f32 %v9186_v51  ;;  %v11135_v50 = vld [vmem:[#allocation89_spill] sm:$0xff] }
 0x620   :  { %3590 = vmatpush.msrb.mxu1 %v8518_v22  ;;  %3630 = vmatpush.msra.mxu3 %v11108_v36  ;;  %v11114_v22 = vld [vmem:[#allocation71_spill] sm:$0xff]  ;;  %v3308_v48 = vmul.f32 %v4375_v31, %v3307_v41  ;;  %v11128_v41 = vld [vmem:[#allocation82_spill] sm:$0xff] }
 0x622   :  { %3591 = vmatpush.msrb.mxu1 %v11109_v33  ;;  %3631 = vmatpush.msra.mxu3 %v11110_v8  ;;  %v3309_v36 = vadd.f32 %v4375_v31, %v3308_v48  ;;  %v3316_v33 = vand.u32 2147483648, %v9173_v38  ;;  %v11130_v38 = vld [vmem:[#allocation84_spill] sm:$0xff] }
 0x623   :  { %3461 = vmatmul.f32.vlgmr.msra.gmra.mxu1 %v3112_v4  ;;  %3501 = vmatmul.f32.vlgmr.msrb.gmra.mxu3 %v3112_v4  ;;  %v11121_v4 = vld [vmem:[#allocation119_spill] sm:$0xff] }
 0x624   :  { %3592 = vmatpush.msrb.mxu1 %v11111_v3  ;;  %3632 = vmatpush.msra.mxu3 %v11112_v49  ;;  %v9199_v59 = vpop.eup %4378  ;;  %v3280_v44 = vadd.f32 %v3256_v27, %v11121_v4  ;;  %v11125_v3 = vld [vmem:[#allocation81_spill] sm:$0xff]  ;;  %v3317_v27 = vor.u32 1.1754944e-38, %v3316_v33 }
 0x625   :  { %v4381_v30 = vpop.eup %4380  ;;  %v3326_v8 = vmul.f32 %v9199_v59, %v9186_v51  ;;  %vm3331_vm14 = vweird.f32 %v9199_v59  ;;  %v5125_v33 = vld [vmem:[#allocation7 + $0x130] sm:$0xff] }
 0x626   :  { %3593 = vmatpush.msrb.mxu1 %v11113_v54  ;;  %3633 = vmatpush.msra.mxu3 %v11114_v22  ;;  %v3287_v7 = vmul.f32 %v4381_v30, %v3285_v5  ;;  %v3297_v22 = vand.u32 2147483648, %v3285_v5  ;;  %4382 = vtanh.f32 %v3280_v44  ;;  %vm3292_vm9 = vweird.f32 %v4381_v30  ;;  %vm3332_vm2 = vmor %vm3330_vm15, %vm3331_vm14  ;;  %v11136_v54 = vld [vmem:[#allocation91_spill] sm:$0xff] }
 0x627   :  { %vm3293_vm12 = vmor %vm3291_vm10, %vm3292_vm9 }
 0x628   :  { %3594 = vmatpush.msrb.mxu1 %v11115_v47  ;;  %3634 = vmatpush.msra.mxu3 %v11116_v39  ;;  %v3288_v49 = vsub.f32 1.0, %v3287_v7  ;;  %v3295_v47 = vand.u32 2147483647, %v3285_v5  ;;  %v3313_v39 = vsel %vm9211_vm8, %v4375_v31, %v3309_v36  ;;  %v5118_v36 = vld [vmem:[#allocation7 + $0x180] sm:$0xff] }
 0x62a   :  { %3595 = vmatpush.msrb.mxu1 %v11117_v56  ;;  %3635 = vmatpush.msra.mxu3 %v11118_v23  ;;  %v3289_v19 = vmul.f32 %v4381_v30, %v3288_v49  ;;  %v3327_v56 = vsub.f32 1.0, %v3326_v8  ;;  %v11129_v23 = vld [vmem:[#allocation83_spill] sm:$0xff]  ;;  %vm3296_vm13 = vcmp.eq.f32.partialorder %v3295_v47, 8.507059e+37  ;;  %v5135_v47 = vld [vmem:[#allocation7 + $0x90] sm:$0xff] }
 0x62b   :  { %v5126_v8 = vld [vmem:[#allocation7 + $0x100] sm:$0xff] }
 0x62c   :  { %3596 = vmatpush.msrb.mxu1 %v11119_v16  ;;  %3636 = vmatpush.msra.mxu3 %v11120_v26  ;;  %v3290_v48 = vadd.f32 %v4381_v30, %v3289_v19  ;;  %v3298_v16 = vor.u32 1.1754944e-38, %v3297_v22  ;;  %v4383_v44 = vpop.eup %4382  ;;  %v3328_v31 = vmul.f32 %v9199_v59, %v3327_v56  ;;  %v11134_v49 = vld [vmem:[#allocation87_spill] sm:$0xff]  ;;  %v11137_v22 = vld [vmem:[#allocation90_spill] sm:$0xff] }
 0x62d   :  { %v11139_v19 = vld [vmem:[#allocation94_spill] sm:$0xff]  ;;  %v11141_v56 = vld [vmem:[#allocation95_spill] sm:$0xff] }
 0x62e   :  { %3597 = vmatpush.msrb.mxu1 %v11122_v24  ;;  %3637 = vmatpush.msra.mxu3 %v11123_v1  ;;  %v3294_v26 = vsel %vm3293_vm12, %v4381_v30, %v3290_v48  ;;  %v5138_v48 = vld [vmem:[#allocation7 + $0x40] sm:$0xff] }
 0x62f   :  { %v3299_v24 = vsel %vm3296_vm13, %v3298_v16, %v3294_v26  ;;  %v11143_v16 = vld [vmem:[#allocation98_spill] sm:$0xff]  ;;  %v11144_v26 = vld [vmem:[#allocation96_spill] sm:$0xff] }
 0x630   :  { %3598 = vmatpush.msrb.mxu1 %v11124_v21  ;;  %3638 = vmatpush.msra.mxu3 %v11125_v3  ;;  %v3341_v1 = vmul.f32 %v4383_v44, %v3299_v24  ;;  %v5127_v21 = vld [vmem:[#allocation7 + $0x110] sm:$0xff]  ;;  %v5128_v3 = vld [vmem:[#allocation7 + $0xe0] sm:$0xff] }
 0x631   :  { %v5140_v44 = vld [vmem:[#allocation7 + $0x20] sm:$0xff]  ;;  %v5141_v24 = vld [vmem:[#allocation7 + $0x30] sm:$0xff] }
 0x632   :  { %3599 = vmatpush.msrb.mxu1 %v8603_v6  ;;  %3639 = vmatpush.msra.mxu3 %v11128_v41  ;;  %v3318_v6 = vsel %vm3315_vm11, %v3317_v27, %v3313_v39  ;;  %v11138_v41 = vld [vmem:[#allocation92_spill] sm:$0xff]  ;;  %v11140_v39 = vld [vmem:[#allocation93_spill] sm:$0xff]  ;;  %v5136_v27 = vld [vmem:[#allocation7 + $0x60] sm:$0xff] }
 0x633   :  { %v3340_v5 = vmul.f32 %v3318_v6, %v8631_v13  ;;  %v11132_v13 = vld [vmem:[#allocation86_spill] sm:$0xff]  ;;  %v5139_v6 = vld [vmem:[#allocation7 + $0x50] sm:$0xff] }
 0x634   :  { %3600 = vmatpush.msrb.mxu1 %v11129_v23  ;;  %3640 = vmatpush.msra.mxu3 %v11130_v38  ;;  %v5137_v23 = vld [vmem:[#allocation7 + $0x70] sm:$0xff] }
 0x635   :  { %v11142_v38 = vld [vmem:[#allocation97_spill] sm:$0xff] }
 0x636   :  { %3601 = vmatpush.msrb.mxu1 %v8617_v42  ;;  %3641 = vmatpush.msra.mxu3 %v8620_v14  ;;  %v9229_v42 = vadd.f32 %v3341_v1, %v3340_v5  ;;  %v3329_v14 = vadd.f32 %v9199_v59, %v3328_v31  ;;  %v11145_v31 = vld [vmem:[#allocation100_spill] sm:$0xff]  ;;  %v11146_v5 = vld [vmem:[#allocation101_spill] sm:$0xff]  ;;  %v5142_v1 = vld [vmem:[#allocation7] sm:$0xff] }
 0x638   :  { %3602 = vmatpush.msrb.mxu1 %v8625_v60  ;;  %3642 = vmatpush.msra.mxu3 %v8628_v35  ;;  %v3336_v60 = vand.u32 2147483648, %v9186_v51  ;;  %4384 = vtanh.f32 %v9229_v42  ;;  %v11131_v35 = vld [vmem:[#allocation85_spill] sm:$0xff] }
 0x63a   :  { %3603 = vmatpush.msrb.mxu1 %v8633_v15  ;;  %3643 = vmatpush.msra.mxu3 %v8636_v11  ;;  %v3334_v15 = vand.u32 2147483647, %v9186_v51  ;;  %v11133_v11 = vld [vmem:[#allocation88_spill] sm:$0xff] }
 0x63c   :  { %3681 = vmatpush.msra.mxu1 %v8641_v18  ;;  %3721 = vmatpush.msrb.mxu3 %v8644_v37  ;;  %v3333_v18 = vsel %vm3332_vm2, %v9199_v59, %v3329_v14  ;;  %v3337_v37 = vor.u32 1.1754944e-38, %v3336_v60  ;;  %vm3335_vm3 = vcmp.eq.f32.partialorder %v3334_v15, 8.507059e+37  ;;  %v5117_v59 = vld [vmem:[#allocation7 + $0x1b0] sm:$0xff]  ;;  %v11147_v14 = vld [vmem:[#allocation99_spill] sm:$0xff] }
 0x63d   :  { %v5143_v60 = vld [vmem:[#allocation7 + $0x10] sm:$0xff] }
 0x63e   :  { %3682 = vmatpush.msra.mxu1 %v11131_v35  ;;  %3722 = vmatpush.msrb.mxu3 %v11132_v13  ;;  %v4385_v30 = vpop.eup %4384  ;;  %v3338_v7 = vsel %vm3335_vm3, %v3337_v37, %v3333_v18  ;;  %v5144_v35 = vld [vmem:[#allocation5 + $0xe0] sm:$0xff]  ;;  %v5145_v13 = vld [vmem:[#allocation5 + $0xf0] sm:$0xff] }
 0x63f   :  { %v9248_v51 = vmul.f32 %v4385_v30, %v3338_v7  ;;  %v11148_v15 = vld [vmem:[#allocation104_spill] sm:$0xff]  ;;  %v11149_v18 = vld [vmem:[#allocation105_spill] sm:$0xff]  ;;  %v11150_v30 = vld [vmem:[#allocation102_spill] sm:$0xff] }
 0x640   :  { %3683 = vmatpush.msra.mxu1 %v11133_v11  ;;  %3723 = vmatpush.msrb.mxu3 %v8661_v43  ;;  %v5112_v43 = vld [vmem:[#allocation7 + $0x1e0] sm:$0xff]  ;;  %v5147_v37 = vld [vmem:[#allocation5 + $0xd0] sm:$0xff] }
 0x641   :  { %3361 = vmatmul.f32.vlgmr.msrb.gmra.mxu0 %v9248_v51  ;;  %3401 = vmatmul.f32.vlgmr.msra.gmra.mxu2 %v9248_v51  ;;  %v5146_v11 = vld [vmem:[#allocation5 + $0xc0] sm:$0xff] }
 0x642   :  { %3684 = vmatpush.msra.mxu1 %v8664_v28  ;;  %3724 = vmatpush.msrb.mxu3 %v8667_v32  ;;  %v5113_v28 = vld [vmem:[#allocation7 + $0x1f0] sm:$0xff]  ;;  %v3649_v32 = vrot.slane %v8695_v25, 6  ;;  %v5120_v25 = vld [vmem:[#allocation7 + $0x160] sm:$0xff] }
 0x643   :  { %3568 = vmatpush.msrb.mxu0 %v5112_v43  ;;  %3604 = vmatmul.f32.vlgmr.msrb.gmra.mxu1 %v9248_v51  ;;  %v5148_v7 = vld [vmem:[#allocation5 + $0xa0] sm:$0xff] }
 0x644   :  { %3685 = vmatpush.msra.mxu1 %v8672_v55  ;;  %3725 = vmatpush.msrb.mxu3 %v8675_v0  ;;  %v5114_v55 = vld [vmem:[#allocation7 + $0x1c0] sm:$0xff]  ;;  %v3648_v0 = vrot.slane %v8692_v58, 7  ;;  %v5119_v58 = vld [vmem:[#allocation7 + $0x190] sm:$0xff] }
 0x645   :  { %3608 = vmatpush.msra.mxu2 %v5113_v28  ;;  %3644 = vmatmul.f32.vlgmr.msra.gmra.mxu3 %v9248_v51  ;;  %v11151_v43 = vld [vmem:[#allocation103_spill] sm:$0xff]  ;;  %v5149_v28 = vld [vmem:[#allocation5 + $0xb0] sm:$0xff] }
 0x646   :  { %3686 = vmatpush.msra.mxu1 %v8685_v20  ;;  %3726 = vmatpush.msrb.mxu3 %v8689_v29  ;;  %v5115_v20 = vld [vmem:[#allocation7 + $0x1d0] sm:$0xff]  ;;  %v5116_v29 = vld [vmem:[#allocation7 + $0x1a0] sm:$0xff] }
 0x647   :  { %3569 = vmatpush.msrb.mxu0 %v5114_v55  ;;  %3609 = vmatpush.msra.mxu2 %v5115_v20  ;;  %v5150_v55 = vld [vmem:[#allocation5 + $0x80] sm:$0xff]  ;;  %v11155_v20 = vld [vmem:[#allocation112_spill] sm:$0xff] }
 0x648   :  { %3687 = vmatpush.msra.mxu1 %v8699_v40  ;;  %3727 = vmatpush.msrb.mxu3 %v8703_v10  ;;  %v9263_v40 = vsel %vm446_vm0, %v3649_v32, %v3648_v0  ;;  %v5121_v10 = vld [vmem:[#allocation7 + $0x170] sm:$0xff] }
 0x649   :  { %3570 = vmatpush.msrb.mxu0 %v5116_v29  ;;  %3610 = vmatpush.msra.mxu2 %v5117_v59  ;;  %v11153_v0 = vld [vmem:[#allocation109_spill] sm:$0xff]  ;;  %v11154_v32 = vld [vmem:[#allocation108_spill] sm:$0xff]  ;;  %v5151_v29 = vld [vmem:[#allocation5 + $0x60] sm:$0xff] }
 0x64a   :  { %3688 = vmatpush.msra.mxu1 %v8707_v62  ;;  %3728 = vmatpush.msrb.mxu3 %v8711_v34  ;;  %v5122_v62 = vld [vmem:[#allocation7 + $0x140] sm:$0xff]  ;;  %v5123_v34 = vld [vmem:[#allocation7 + $0x150] sm:$0xff] }
 0x64b   :  { %3571 = vmatpush.msrb.mxu0 %v5118_v36  ;;  %3611 = vmatpush.msra.mxu2 %v5119_v58  ;;  %v11156_v59 = vld [vmem:[#allocation110_spill] sm:$0xff]  ;;  %v11157_v36 = vld [vmem:[#allocation107_spill] sm:$0xff] }
 0x64c   :  { %3820 = vmatpush.msrb.mxu1 %v8727_v9  ;;  %3441 = vmatmul.f32.vlgmr.msra.gmra.mxu0 %v9248_v51  ;;  %v5124_v9 = vld [vmem:[#allocation7 + $0x120] sm:$0xff] }
 0x64d   :  { %3481 = vmatmul.f32.vlgmr.msrb.gmra.mxu2 %v9248_v51  ;;  %3572 = vmatpush.msrb.mxu0 %v5120_v25  ;;  %v11158_v58 = vld [vmem:[#allocation115_spill] sm:$0xff] }
 0x64e   :  { %3612 = vmatpush.msra.mxu2 %v5121_v10  ;;  %4155 = vmatmul.msk.f32.vlgmr.msra.gmra.mxu1 %vm448_vm1, %v9263_v40  ;;  %v5152_v25 = vld [vmem:[#allocation5 + $0x40] sm:$0xff]  ;;  %v11159_v10 = vld [vmem:[#allocation117_spill] sm:$0xff] }
 0x64f   :  { %4157 = vmatmul.msk.f32.vlgmr.msrb.gmra.mxu3 %vm448_vm1, %v9263_v40  ;;  %3573 = vmatpush.msrb.mxu0 %v5122_v62  ;;  %v11160_v62 = vld [vmem:[#allocation113_spill] sm:$0xff] }
 0x650   :  { %3613 = vmatpush.msra.mxu2 %v5123_v34  ;;  %3860 = vmatpush.msra.mxu3 %v8730_v63  ;;  %v5129_v63 = vld [vmem:[#allocation7 + $0xf0] sm:$0xff]  ;;  %v11161_v34 = vld [vmem:[#allocation111_spill] sm:$0xff] }
 0x651   :  { %3574 = vmatpush.msrb.mxu0 %v5124_v9  ;;  %3821 = vmatpush.msrb.mxu1 %v8735_v53  ;;  %v5130_v53 = vld [vmem:[#allocation7 + $0xc0] sm:$0xff] }
 0x652   :  { %3614 = vmatpush.msra.mxu2 %v5125_v33  ;;  %3861 = vmatpush.msra.mxu3 %v8738_v17  ;;  %v5131_v17 = vld [vmem:[#allocation7 + $0xd0] sm:$0xff]  ;;  %v5153_v9 = vld [vmem:[#allocation5 + $0x20] sm:$0xff] }
 0x653   :  { %3575 = vmatpush.msrb.mxu0 %v5126_v8  ;;  %3822 = vmatpush.msrb.mxu1 %v8743_v52  ;;  %v5132_v52 = vld [vmem:[#allocation7 + $0xa0] sm:$0xff]  ;;  %v11163_v8 = vld [vmem:[#allocation25_spill] sm:$0xff] }
 0x654   :  { %3615 = vmatpush.msra.mxu2 %v5127_v21  ;;  %3862 = vmatpush.msra.mxu3 %v8746_v12  ;;  %v5133_v12 = vld [vmem:[#allocation7 + $0xb0] sm:$0xff]  ;;  %v11162_v33 = vld [vmem:[#allocation114_spill] sm:$0xff]  ;;  %v11164_v21 = vld [vmem:[#allocation23_spill] sm:$0xff] }
 0x655   :  { %3576 = vmatpush.msrb.mxu0 %v5128_v3  ;;  %3823 = vmatpush.msrb.mxu1 %v8751_v57  ;;  %v5134_v57 = vld [vmem:[#allocation7 + $0x80] sm:$0xff] }
 0x656   :  { %3616 = vmatpush.msra.mxu2 %v5129_v63  ;;  %3863 = vmatpush.msra.mxu3 %v11134_v49  ;;  %v5154_v3 = vld [vmem:[#allocation5] sm:$0xff]  ;;  %v11165_v63 = vld [vmem:[#allocation28_spill] sm:$0xff] }
 0x657   :  { %3577 = vmatpush.msrb.mxu0 %v5130_v53  ;;  %3824 = vmatpush.msrb.mxu1 %v11135_v50  ;;  %v11166_v49 = vld [vmem:[#allocation118_spill] sm:$0xff]  ;;  %v11167_v53 = vld [vmem:[#allocation36_spill] sm:$0xff] }
 0x658   :  { %3617 = vmatpush.msra.mxu2 %v5131_v17  ;;  %3864 = vmatpush.msra.mxu3 %v11136_v54  ;;  %v11168_v50 = vld [vmem:[#allocation30_spill] sm:$0xff]  ;;  %v11169_v17 = vld [vmem:[#allocation27_spill] sm:$0xff]  ;;  %v11170_v54 = vld [vmem:[#allocation40_spill] sm:$0xff] }
 0x659   :  { %3578 = vmatpush.msrb.mxu0 %v5132_v52  ;;  %3825 = vmatpush.msrb.mxu1 %v11137_v22  ;;  %v11171_v52 = vld [vmem:[#allocation34_spill] sm:$0xff]  ;;  %v11172_v22 = vld [vmem:[#allocation32_spill] sm:$0xff] }
 0x65a   :  { %3618 = vmatpush.msra.mxu2 %v5133_v12  ;;  %3865 = vmatpush.msra.mxu3 %v11138_v41  ;;  %v11173_v12 = vld [vmem:[#allocation29_spill] sm:$0xff]  ;;  %v11174_v41 = vld [vmem:[#allocation44_spill] sm:$0xff] }
 0x65b   :  { %3579 = vmatpush.msrb.mxu0 %v5134_v57  ;;  %3826 = vmatpush.msrb.mxu1 %v11139_v19  ;;  %v11175_v57 = vld [vmem:[#allocation38_spill] sm:$0xff]  ;;  %v11176_v19 = vld [vmem:[#allocation35_spill] sm:$0xff] }
 0x65c   :  { %3619 = vmatpush.msra.mxu2 %v5135_v47  ;;  %3866 = vmatpush.msra.mxu3 %v11140_v39  ;;  %v11178_v47 = vld [vmem:[#allocation46_spill] sm:$0xff] }
 0x65d   :  { %3580 = vmatpush.msrb.mxu0 %v5136_v27  ;;  %3827 = vmatpush.msrb.mxu1 %v11141_v56  ;;  %v11179_v39 = vld [vmem:[#allocation42_spill] sm:$0xff]  ;;  %v11180_v27 = vld [vmem:[#allocation120_spill] sm:$0xff]  ;;  %v11181_v56 = vld [vmem:[#allocation33_spill] sm:$0xff] }
 0x65e   :  { %3620 = vmatpush.msra.mxu2 %v5137_v23  ;;  %3867 = vmatpush.msra.mxu3 %v11142_v38  ;;  %v11182_v23 = vld [vmem:[#allocation48_spill] sm:$0xff]  ;;  %v11183_v38 = vld [vmem:[#allocation45_spill] sm:$0xff] }
 0x65f   :  { %3581 = vmatpush.msrb.mxu0 %v5138_v48  ;;  %3828 = vmatpush.msrb.mxu1 %v11143_v16  ;;  %v11184_v48 = vld [vmem:[#allocation124_spill] sm:$0xff]  ;;  %v11185_v16 = vld [vmem:[#allocation37_spill] sm:$0xff] }
 0x660   :  { %3621 = vmatpush.msra.mxu2 %v5139_v6  ;;  %3868 = vmatpush.msra.mxu3 %v11144_v26  ;;  %v11186_v6 = vld [vmem:[#allocation121_spill] sm:$0xff]  ;;  %v11187_v26 = vld [vmem:[#allocation47_spill] sm:$0xff] }
 0x661   :  { %3582 = vmatpush.msrb.mxu0 %v5140_v44  ;;  %3829 = vmatpush.msrb.mxu1 %v11145_v31  ;;  %v11188_v44 = vld [vmem:[#allocation128_spill] sm:$0xff]  ;;  %v11189_v31 = vld [vmem:[#allocation122_spill] sm:$0xff] }
 0x662   :  { %3622 = vmatpush.msra.mxu2 %v5141_v24  ;;  %3869 = vmatpush.msra.mxu3 %v11146_v5  ;;  %v11190_v24 = vld [vmem:[#allocation125_spill] sm:$0xff] }
 0x663   :  { %3583 = vmatpush.msrb.mxu0 %v5142_v1  ;;  %3830 = vmatpush.msrb.mxu1 %v11147_v14  ;;  %v11191_v5 = vld [vmem:[#allocation49_spill] sm:$0xff]  ;;  %v11192_v1 = vld [vmem:[#allocation132_spill] sm:$0xff]  ;;  %v11193_v14 = vld [vmem:[#allocation126_spill] sm:$0xff] }
 0x664   :  { %3623 = vmatpush.msra.mxu2 %v5143_v60  ;;  %3584 = vmatmul.f32.vlgmr.msrb.gmra.mxu0 %v9248_v51  ;;  %v11194_v60 = vld [vmem:[#allocation129_spill] sm:$0xff] }
 0x665   :  { %3624 = vmatmul.f32.vlgmr.msra.gmra.mxu2 %v9248_v51  ;;  %3661 = vmatpush.msra.mxu0 %v5144_v35  ;;  %v11152_v51 = vld [vmem:[#allocation106_spill] sm:$0xff]  ;;  %v11195_v35 = vld [vmem:[#allocation123_spill] sm:$0xff] }
 0x666   :  { %3701 = vmatpush.msrb.mxu2 %v5145_v13  ;;  %3870 = vmatpush.msra.mxu3 %v11148_v15  ;;  %v11196_v13 = vld [vmem:[#allocation136_spill] sm:$0xff]  ;;  %v11197_v15 = vld [vmem:[#allocation130_spill] sm:$0xff] }
 0x667   :  { %3662 = vmatpush.msra.mxu0 %v5146_v11  ;;  %3831 = vmatpush.msrb.mxu1 %v11149_v18  ;;  %v11198_v11 = vld [vmem:[#allocation133_spill] sm:$0xff]  ;;  %v11199_v18 = vld [vmem:[#allocation127_spill] sm:$0xff] }
 0x668   :  { %3702 = vmatpush.msrb.mxu2 %v5147_v37  ;;  %3871 = vmatpush.msra.mxu3 %v11150_v30  ;;  %v11200_v37 = vld [vmem:[#allocation138_spill] sm:$0xff] }
 0x669   :  { %3663 = vmatpush.msra.mxu0 %v5148_v7  ;;  %3832 = vmatpush.msrb.mxu1 %v11151_v43  ;;  %v11201_v30 = vld [vmem:[#allocation134_spill] sm:$0xff]  ;;  %v11202_v7 = vld [vmem:[#allocation137_spill] sm:$0xff]  ;;  %v11203_v43 = vld [vmem:[#allocation131_spill] sm:$0xff] }
 0x66a   :  { %3703 = vmatpush.msrb.mxu2 %v5149_v28  ;;  %3872 = vmatpush.msra.mxu3 %v11152_v51  ;;  %v11204_v28 = vld [vmem:[#allocation142_spill] sm:$0xff]  ;;  %v11205_v51 = vld [vmem:[#allocation139_spill] sm:$0xff] }
 0x66b   :  { %3664 = vmatpush.msra.mxu0 %v5150_v55  ;;  %3833 = vmatpush.msrb.mxu1 %v11153_v0  ;;  %v11206_v55 = vld [vmem:[#allocation140_spill] sm:$0xff]  ;;  %v11207_v0 = vld [vmem:[#allocation135_spill] sm:$0xff] }
 0x66c   :  { %3704 = vmatpush.msrb.mxu2 %v11154_v32  ;;  %3873 = vmatpush.msra.mxu3 %v11155_v20  ;;  %v11208_v32 = vld [vmem:[#allocation146_spill] sm:$0xff]  ;;  %v11209_v20 = vld [vmem:[#allocation143_spill] sm:$0xff] }
 0x66d   :  { %3665 = vmatpush.msra.mxu0 %v5151_v29  ;;  %3834 = vmatpush.msrb.mxu1 %v11156_v59  ;;  %v11210_v29 = vld [vmem:[#allocation144_spill] sm:$0xff]  ;;  %v11211_v59 = vld [vmem:[#allocation141_spill] sm:$0xff] }
 0x66e   :  { %3705 = vmatpush.msrb.mxu2 %v11157_v36  ;;  %3874 = vmatpush.msra.mxu3 %v11158_v58  ;;  %v11212_v36 = vld [vmem:[#allocation148_spill] sm:$0xff]  ;;  %v11213_v58 = vld [vmem:[#allocation147_spill] sm:$0xff] }
 0x66f   :  { %3666 = vmatpush.msra.mxu0 %v5152_v25  ;;  %3835 = vmatpush.msrb.mxu1 %v11159_v10  ;;  %v11214_v25 = vld [vmem:[#allocation149_spill] sm:$0xff] }
 0x670   :  { %3706 = vmatpush.msrb.mxu2 %v11160_v62  ;;  %3875 = vmatpush.msra.mxu3 %v11161_v34  ;;  %v11215_v10 = vld [vmem:[#allocation145_spill] sm:$0xff]  ;;  %v11216_v62 = vld [vmem:[#allocation152_spill] sm:$0xff]  ;;  %v11217_v34 = vld [vmem:[#allocation150_spill] sm:$0xff] }
 0x671   :  { %3667 = vmatpush.msra.mxu0 %v5153_v9  ;;  %3900 = vmatpush.msra.mxu1 %v11162_v33  ;;  %v11218_v9 = vld [vmem:[#allocation153_spill] sm:$0xff]  ;;  %v11219_v33 = vld [vmem:[#allocation151_spill] sm:$0xff] }
 0x672   :  { %3707 = vmatpush.msrb.mxu2 %v11163_v8  ;;  %3940 = vmatpush.msrb.mxu3 %v11164_v21  ;;  %v11220_v8 = vld [vmem:[#allocation156_spill] sm:$0xff]  ;;  %v11221_v21 = vld [vmem:[#allocation154_spill] sm:$0xff] }
 0x673   :  { %3668 = vmatpush.msra.mxu0 %v5154_v3  ;;  %3901 = vmatpush.msra.mxu1 %v11165_v63  ;;  %v11222_v3 = vld [vmem:[#allocation157_spill] sm:$0xff]  ;;  %v11223_v63 = vld [vmem:[#allocation155_spill] sm:$0xff] }
 0x674   :  { %3708 = vmatpush.msrb.mxu2 %v11166_v49  ;;  %4154 = vmatmul.msk.f32.vlgmr.msra.gmra.mxu0 %vm448_vm1, %v9263_v40  ;;  %v11224_v49 = vld [vmem:[#allocation158_spill] sm:$0xff] }
 0x675   :  { %4156 = vmatmul.msk.f32.vlgmr.msrb.gmra.mxu2 %vm448_vm1, %v9263_v40  ;;  %3941 = vmatpush.msrb.mxu3 %v11167_v53  ;;  %v11177_v40 = vld [vmem:[#allocation31_spill] sm:$0xff] }
 0x676   :  { %3902 = vmatpush.msra.mxu1 %v11168_v50  ;;  %3800 = vmatpush.msrb.mxu0 %v11169_v17  ;;  %v11225_v53 = vld [vmem:[#allocation159_spill] sm:$0xff]  ;;  %v11226_v50 = vld [vmem:[#allocation160_spill] sm:$0xff]  ;;  %v11227_v17 = vld [vmem:[#allocation161_spill] sm:$0xff] }
 0x677   :  { %3942 = vmatpush.msrb.mxu3 %v11170_v54  ;;  %3840 = vmatpush.msra.mxu2 %v11171_v52  ;;  %v11228_v54 = vld [vmem:[#allocation162_spill] sm:$0xff]  ;;  %v11229_v52 = vld [vmem:[#allocation163_spill] sm:$0xff] }
 0x678   :  { %3903 = vmatpush.msra.mxu1 %v11172_v22  ;;  %3801 = vmatpush.msrb.mxu0 %v11173_v12  ;;  %v11230_v22 = vld [vmem:[#allocation164_spill] sm:$0xff]  ;;  %v11231_v12 = vld [vmem:[#allocation165_spill] sm:$0xff] }
 0x679   :  { %3943 = vmatpush.msrb.mxu3 %v11174_v41  ;;  %3841 = vmatpush.msra.mxu2 %v11175_v57  ;;  %v11232_v41 = vld [vmem:[#allocation166_spill] sm:$0xff]  ;;  %v11233_v57 = vld [vmem:[#allocation167_spill] sm:$0xff] }
 0x67a   :  { %3904 = vmatpush.msra.mxu1 %v11176_v19  ;;  %3802 = vmatpush.msrb.mxu0 %v11177_v40  ;;  %v11234_v19 = vld [vmem:[#allocation168_spill] sm:$0xff]  ;;  %v11235_v40 = vld [vmem:[#allocation169_spill] sm:$0xff] }
 0x67b   :  { %3944 = vmatpush.msrb.mxu3 %v11178_v47  ;;  %3842 = vmatpush.msra.mxu2 %v11179_v39  ;;  %v11236_v47 = vld [vmem:[#allocation170_spill] sm:$0xff]  ;;  %v11237_v39 = vld [vmem:[#allocation171_spill] sm:$0xff] }
 0x67c   :  { %3905 = vmatpush.msra.mxu1 %v11180_v27  ;;  %3803 = vmatpush.msrb.mxu0 %v11181_v56  ;;  %v11238_v27 = vld [vmem:[#allocation172_spill] sm:$0xff]  ;;  %v11239_v56 = vld [vmem:[#allocation173_spill] sm:$0xff] }
 0x67d   :  { %3945 = vmatpush.msrb.mxu3 %v11182_v23  ;;  %3843 = vmatpush.msra.mxu2 %v11183_v38  ;;  %v11240_v23 = vld [vmem:[#allocation51_spill] sm:$0xff]  ;;  %v11241_v38 = vld [vmem:[#allocation20_spill] sm:$0xff] }
 0x67e   :  { %3906 = vmatpush.msra.mxu1 %v11184_v48  ;;  %3804 = vmatpush.msrb.mxu0 %v11185_v16  ;;  %v11242_v48 = vld [vmem:[#allocation43_spill] sm:$0xff]  ;;  %v11243_v16 = vld [vmem:[#allocation52_spill] sm:$0xff] }
 0x67f   :  { %3946 = vmatpush.msrb.mxu3 %v11186_v6  ;;  %3844 = vmatpush.msra.mxu2 %v11187_v26  ;;  %v11244_v6 = vld [vmem:[#allocation21_spill] sm:$0xff] }
 0x680   :  { %3907 = vmatpush.msra.mxu1 %v11188_v44  ;;  %3805 = vmatpush.msrb.mxu0 %v11189_v31  ;;  %v11245_v26 = vld [vmem:[#allocation53_spill] sm:$0xff]  ;;  %v11246_v44 = vld [vmem:[#allocation54_spill] sm:$0xff] }
 0x681   :  { %3947 = vmatpush.msrb.mxu3 %v11190_v24  ;;  %3845 = vmatpush.msra.mxu2 %v11191_v5  ;;  %v11247_v31 = vld [vmem:[#allocation22_spill] sm:$0xff]  ;;  %v11248_v24 = vld [vmem:[#allocation55_spill] sm:$0xff]  ;;  %v11249_v5 = vld [vmem:[#allocation56_spill] sm:$0xff] }
 0x682   :  { %3908 = vmatpush.msra.mxu1 %v11192_v1  ;;  %3806 = vmatpush.msrb.mxu0 %v11193_v14  ;;  %v11250_v1 = vld [vmem:[#allocation24_spill] sm:$0xff]  ;;  %v11251_v14 = vld [vmem:[#allocation57_spill] sm:$0xff] }
 0x683   :  { %3948 = vmatpush.msrb.mxu3 %v11194_v60  ;;  %3846 = vmatpush.msra.mxu2 %v11195_v35  ;;  %v11252_v60 = vld [vmem:[#allocation26_spill] sm:$0xff] }
 0x684   :  { %3909 = vmatpush.msra.mxu1 %v11196_v13  ;;  %3807 = vmatpush.msrb.mxu0 %v11197_v15  ;;  %v11253_v35 = vld [vmem:[#allocation58_spill] sm:$0xff]  ;;  %v11254_v13 = vld [vmem:[#allocation59_spill] sm:$0xff]  ;;  %v11255_v15 = vld [vmem:[#allocation60_spill] sm:$0xff] }
 0x685   :  { %3949 = vmatpush.msrb.mxu3 %v11198_v11  ;;  %3847 = vmatpush.msra.mxu2 %v11199_v18  ;;  %v11256_v11 = vld [vmem:[#allocation61_spill] sm:$0xff]  ;;  %v11257_v18 = vld [vmem:[#allocation62_spill] sm:$0xff] }
 0x686   :  { %3910 = vmatpush.msra.mxu1 %v11200_v37  ;;  %3808 = vmatpush.msrb.mxu0 %v11201_v30  ;;  %v11258_v37 = vld [vmem:[#allocation63_spill] sm:$0xff]  ;;  %v11259_v30 = vld [vmem:[#allocation64_spill] sm:$0xff] }
 0x687   :  { %3950 = vmatpush.msrb.mxu3 %v11202_v7  ;;  %3848 = vmatpush.msra.mxu2 %v11203_v43 }
 0x688   :  { %3911 = vmatpush.msra.mxu1 %v11204_v28  ;;  %3809 = vmatpush.msrb.mxu0 %v11205_v51  ;;  %v11260_v28 = vld [vmem:[#allocation39_spill] sm:$0xff] }
 0x689   :  { %3951 = vmatpush.msrb.mxu3 %v11206_v55  ;;  %3849 = vmatpush.msra.mxu2 %v11207_v0 }
 0x68a   :  { %3912 = vmatpush.msra.mxu1 %v11208_v32  ;;  %3810 = vmatpush.msrb.mxu0 %v11209_v20 }
 0x68b   :  { %3952 = vmatpush.msrb.mxu3 %v11210_v29  ;;  %3850 = vmatpush.msra.mxu2 %v11211_v59  ;;  %v11261_v59 = vld [vmem:[#allocation50_spill] sm:$0xff] }
 0x68c   :  { %3913 = vmatpush.msra.mxu1 %v11212_v36  ;;  %3811 = vmatpush.msrb.mxu0 %v11213_v58 }
 0x68d   :  { %3953 = vmatpush.msrb.mxu3 %v11214_v25  ;;  %3851 = vmatpush.msra.mxu2 %v11215_v10 }
 0x68e   :  { %3914 = vmatpush.msra.mxu1 %v11216_v62  ;;  %3812 = vmatpush.msrb.mxu0 %v11217_v34 }
 0x68f   :  { %3954 = vmatpush.msrb.mxu3 %v11218_v9  ;;  %3852 = vmatpush.msra.mxu2 %v11219_v33 }
 0x690   :  { %3915 = vmatpush.msra.mxu1 %v11220_v8  ;;  %3813 = vmatpush.msrb.mxu0 %v11221_v21  ;;  %v11262_v8 = vld [vmem:[#allocation41_spill] sm:$0xff] }
 0x691   :  { %3955 = vmatpush.msrb.mxu3 %v11222_v3  ;;  %3853 = vmatpush.msra.mxu2 %v11223_v63 }
 0x692   :  { %3814 = vmatpush.msrb.mxu0 %v11224_v49 }
 0x693   :  { %3854 = vmatpush.msra.mxu2 %v11225_v53 }
 0x694   :  { %3815 = vmatpush.msrb.mxu0 %v11226_v50 }
 0x695   :  { %3855 = vmatpush.msra.mxu2 %v11227_v17 }
 0x696   :  { %3880 = vmatpush.msra.mxu0 %v11228_v54 }
 0x697   :  { %3920 = vmatpush.msrb.mxu2 %v11229_v52 }
 0x698   :  { %3881 = vmatpush.msra.mxu0 %v11230_v22  ;;  %v3382_v7 = vpop.f32.mrf.mxu1 }
 0x699   :  { %3921 = vmatpush.msrb.mxu2 %v11231_v12 }
 0x69a   :  { %3882 = vmatpush.msra.mxu0 %v11232_v41 }
 0x69b   :  { %3922 = vmatpush.msrb.mxu2 %v11233_v57 }
 0x69c   :  { %3883 = vmatpush.msra.mxu0 %v11234_v19 }
 0x69d   :  { %3923 = vmatpush.msrb.mxu2 %v11235_v40 }
 0x69e   :  { %3884 = vmatpush.msra.mxu0 %v11236_v47  ;;  %v3422_v20 = vpop.f32.mrf.mxu3 }
 0x69f   :  { %3924 = vmatpush.msrb.mxu2 %v11237_v39  ;;  %v11263_v39 = vld [vmem:[#allocation116_spill] sm:$0xff] }
 0x6a0   :  { %3885 = vmatpush.msra.mxu0 %v11238_v27  ;;  %v3462_v55 = vpop.f32.mrf.mxu1 }
 0x6a1   :  { %3925 = vmatpush.msrb.mxu2 %v11239_v56 }
 0x6a2   :  { %3886 = vmatpush.msra.mxu0 %v11240_v23 }
 0x6a3   :  { %3926 = vmatpush.msrb.mxu2 %v11241_v38 }
 0x6a4   :  { %3887 = vmatpush.msra.mxu0 %v11242_v48 }
 0x6a5   :  { %3927 = vmatpush.msrb.mxu2 %v11243_v16 }
 0x6a6   :  { %3888 = vmatpush.msra.mxu0 %v11244_v6  ;;  %v3502_v33 = vpop.f32.mrf.mxu3 }
 0x6a7   :  { %3928 = vmatpush.msrb.mxu2 %v11245_v26 }
 0x6a8   :  { %3889 = vmatpush.msra.mxu0 %v11246_v44 }
 0x6a9   :  { %3929 = vmatpush.msrb.mxu2 %v11247_v31 }
 0x6aa   :  { %3890 = vmatpush.msra.mxu0 %v11248_v24 }
 0x6ab   :  { %3930 = vmatpush.msrb.mxu2 %v11249_v5 }
 0x6ac   :  { %3891 = vmatpush.msra.mxu0 %v11250_v1 }
 0x6ad   :  { %3931 = vmatpush.msrb.mxu2 %v11251_v14 }
 0x6ae   :  { %3892 = vmatpush.msra.mxu0 %v11252_v60 }
 0x6af   :  { %3932 = vmatpush.msrb.mxu2 %v11253_v35 }
 0x6b0   :  { %3893 = vmatpush.msra.mxu0 %v11254_v13 }
 0x6b1   :  { %3933 = vmatpush.msrb.mxu2 %v11255_v15 }
 0x6b2   :  { %3894 = vmatpush.msra.mxu0 %v11256_v11 }
 0x6b3   :  { %3934 = vmatpush.msrb.mxu2 %v11257_v18 }
 0x6b4   :  { %3895 = vmatpush.msra.mxu0 %v11258_v37 }
 0x6b5   :  { %3935 = vmatpush.msrb.mxu2 %v11259_v30 }
 0x6be   :  { %v3362_v43 = vpop.f32.mrf.mxu0 }
 0x6bf   :  { %v3363_v51 = vadd.f32 %v3362_v43, %v11260_v28 }
 0x6c0   :  { %v3605_v25 = vpop.f32.mrf.mxu1 }
 0x6c1   :  { %v3383_v0 = vadd.f32 %v3382_v7, %v3363_v51 }
 0x6c3   :  { %v4151_v32 = vmul.f32 -1.442695, %v3383_v0 }
 0x6c4   :  { %v3402_v29 = vpop.f32.mrf.mxu2 }
 0x6c5   :  { %4386 = vpow2.f32 %v4151_v32  ;;  %v3403_v36 = vadd.f32 %v3402_v29, %v11261_v59 }
 0x6c7   :  { %v3423_v58 = vadd.f32 %v3422_v20, %v3403_v36 }
 0x6c8   :  { %v3645_v12 = vpop.f32.mrf.mxu3 }
 0x6c9   :  { %v4152_v10 = vmul.f32 -1.442695, %v3423_v58  ;;  %v3442_v53 = vpop.f32.mrf.mxu0 }
 0x6ca   :  { %v3443_v22 = vadd.f32 %v3442_v53, %v6394_v45 }
 0x6cb   :  { %v4387_v62 = vpop.eup %4386  ;;  %4388 = vpow2.f32 %v4152_v10  ;;  %v3690_v50 = vpop.f32.mrf.mxu1 }
 0x6cc   :  { %v3508_v34 = vadd.f32 1.0, %v4387_v62  ;;  %v3691_v41 = vadd.f32 %v3690_v50, %v3605_v25  ;;  %v3463_v19 = vadd.f32 %v3462_v55, %v3443_v22 }
 0x6ce   :  { %4390 = vrcp.f32 %v3508_v34  ;;  %v3734_v27 = vadd.f32 %v3691_v41, %v11263_v39  ;;  %v3520_v48 = vand.u32 2147483648, %v3508_v34  ;;  %vm3514_vm1 = vweird.f32 %v3508_v34 }
 0x6cf   :  { %v3518_v26 = vand.u32 2147483647, %v3508_v34 }
 0x6d0   :  { %v3482_v9 = vpop.f32.mrf.mxu2  ;;  %v4159_v31 = vmul.f32 -1.442695, %v3734_v27  ;;  %v3521_v14 = vor.u32 1.1754944e-38, %v3520_v48 }
 0x6d1   :  { %v3483_v21 = vadd.f32 %v3482_v9, %v11262_v8  ;;  %v4389_v3 = vpop.eup %4388  ;;  %vm3519_vm7 = vcmp.eq.f32.partialorder %v3518_v26, 8.507059e+37 }
 0x6d2   :  { %v3527_v49 = vadd.f32 1.0, %v4389_v3  ;;  %v3730_v60 = vpop.f32.mrf.mxu3 }
 0x6d3   :  { %v3503_v63 = vadd.f32 %v3502_v33, %v3483_v21  ;;  %v3731_v37 = vadd.f32 %v3730_v60, %v3645_v12 }
 0x6d4   :  { %v4391_v54 = vpop.eup %4390  ;;  %4392 = vrcp.f32 %v3527_v49  ;;  %v3539_v44 = vand.u32 2147483648, %v3527_v49  ;;  %v3537_v1 = vand.u32 2147483647, %v3527_v49  ;;  %vm3533_vm6 = vweird.f32 %v3527_v49 }
 0x6d5   :  { %v4153_v17 = vmul.f32 -1.442695, %v3503_v63  ;;  %v3510_v52 = vmul.f32 %v4391_v54, %v3508_v34  ;;  %vm3515_vm0 = vweird.f32 %v4391_v54  ;;  %v3736_v29 = vadd.f32 %v3731_v37, %v10270_v61 }
 0x6d6   :  { %vm3516_vm4 = vmor %vm3514_vm1, %vm3515_vm0  ;;  %v3540_v13 = vor.u32 1.1754944e-38, %v3539_v44  ;;  %vm3538_vm9 = vcmp.eq.f32.partialorder %v3537_v1, 8.507059e+37 }
 0x6d7   :  { %4394 = vpow2.f32 %v4153_v17  ;;  %v3511_v57 = vsub.f32 1.0, %v3510_v52  ;;  %v4160_v62 = vmul.f32 -1.442695, %v3736_v29 }
 0x6d8   :  { %4396 = vtanh.f32 %v3463_v19 }
 0x6d9   :  { %v3512_v40 = vmul.f32 %v4391_v54, %v3511_v57 }
 0x6da   :  { %v4393_v47 = vpop.eup %4392 }
 0x6db   :  { %v3529_v23 = vmul.f32 %v4393_v47, %v3527_v49  ;;  %v3513_v38 = vadd.f32 %v4391_v54, %v3512_v40  ;;  %vm3534_vm5 = vweird.f32 %v4393_v47 }
 0x6dc   :  { %vm3535_vm8 = vmor %vm3533_vm6, %vm3534_vm5 }
 0x6dd   :  { %v4395_v56 = vpop.eup %4394  ;;  %v3530_v6 = vsub.f32 1.0, %v3529_v23  ;;  %v3517_v5 = vsel %vm3516_vm4, %v4391_v54, %v3513_v38 }
 0x6de   :  { %v3547_v16 = vadd.f32 1.0, %v4395_v56  ;;  %v3522_v15 = vsel %vm3519_vm7, %v3521_v14, %v3517_v5  ;;  %v4397_v11 = vpop.eup %4396 }
 0x6df   :  { %v3531_v24 = vmul.f32 %v4393_v47, %v3530_v6  ;;  %v3564_v51 = vmul.f32 %v4397_v11, %v3522_v15 }
 0x6e0   :  { %4398 = vrcp.f32 %v3547_v16  ;;  %v3559_v25 = vand.u32 2147483648, %v3547_v16  ;;  %v3557_v10 = vand.u32 2147483647, %v3547_v16  ;;  %vm3553_vm11 = vweird.f32 %v3547_v16 }
 0x6e1   :  { %v3532_v35 = vadd.f32 %v4393_v47, %v3531_v24  ;;  %4400 = vpow2.f32 %v4159_v31  ;;  %v3585_v0 = vpop.f32.mrf.mxu0 }
 0x6e2   :  { %v3560_v33 = vor.u32 1.1754944e-38, %v3559_v25  ;;  %vm3558_vm13 = vcmp.eq.f32.partialorder %v3557_v10, 8.507059e+37  ;;  %v4037_v25 = vld [vmem:[#allocation13 + $0x70] sm:$0xff]  ;;  %v4036_v10 = vld [vmem:[#allocation13 + $0x68] sm:$0xff] }
 0x6e3   :  { %v3536_v18 = vsel %vm3535_vm8, %v4393_v47, %v3532_v35 }
 0x6e4   :  { %v3541_v7 = vsel %vm3538_vm9, %v3540_v13, %v3536_v18 }
 0x6e5   :  { %v3563_v43 = vmul.f32 %v3541_v7, %v9169_v2 }
 0x6e6   :  { %v4399_v30 = vpop.eup %4398 }
 0x6e7   :  { %v3549_v55 = vmul.f32 %v4399_v30, %v3547_v16  ;;  %v9416_v32 = vadd.f32 %v3564_v51, %v3563_v43  ;;  %v4401_v36 = vpop.eup %4400  ;;  %vm3554_vm10 = vweird.f32 %v4399_v30 }
 0x6e8   :  { %v3759_v9 = vadd.f32 1.0, %v4401_v36  ;;  %vm3555_vm12 = vmor %vm3553_vm11, %vm3554_vm10  ;;  %v3625_v54 = vpop.f32.mrf.mxu2 }
 0x6e9   :  { %v3550_v20 = vsub.f32 1.0, %v3549_v55  ;;  %4402 = vtanh.f32 %v9416_v32 }
 0x6ea   :  { %4404 = vpow2.f32 %v4160_v62  ;;  %v3771_v48 = vand.u32 2147483648, %v3759_v9  ;;  %vm3765_vm15 = vweird.f32 %v3759_v9  ;;  %v3769_v26 = vand.u32 2147483647, %v3759_v9 }
 0x6eb   :  { %v3551_v58 = vmul.f32 %v4399_v30, %v3550_v20  ;;  %4406 = vrcp.f32 %v3759_v9 }
 0x6ec   :  { %v3772_v1 = vor.u32 1.1754944e-38, %v3771_v48  ;;  %vm3770_vm1 = vcmp.eq.f32.partialorder %v3769_v26, 8.507059e+37  ;;  %v4024_v48 = vld [vmem:[#allocation13 + $0x8] sm:$0xff]  ;;  %v4023_v26 = vld [vmem:[#allocation13] sm:$0xff] }
 0x6ed   :  { %v3552_v34 = vadd.f32 %v4399_v30, %v3551_v58 }
 0x6ef   :  { %v3556_v2 = vsel %vm3555_vm12, %v4399_v30, %v3552_v34  ;;  %v4403_v3 = vpop.eup %4402  ;;  %v4035_v34 = vld [vmem:[#allocation13 + $0x60] sm:$0xff] }
 0x6f0   :  { %v3561_v61 = vsel %vm3558_vm13, %v3560_v33, %v3556_v2  ;;  %v4405_v17 = vpop.eup %4404  ;;  %v4034_v33 = vld [vmem:[#allocation13 + $0x58] sm:$0xff] }
 0x6f1   :  { %v3670_v21 = vpop.f32.mrf.mxu0  ;;  %v3567_v49 = vmul.f32 %v4403_v3, %v3561_v61  ;;  %v4407_v52 = vpop.eup %4406  ;;  %v3779_v12 = vadd.f32 1.0, %v4405_v17  ;;  %v4033_v3 = vld [vmem:[#allocation13 + $0x50] sm:$0xff]  ;;  %v4031_v17 = vld [vmem:[#allocation13 + $0x40] sm:$0xff] }
 0x6f2   :  { %v3671_v63 = vadd.f32 %v3670_v21, %v3585_v0  ;;  %v3761_v22 = vmul.f32 %v4407_v52, %v3759_v9  ;;  %vm3766_vm14 = vweird.f32 %v4407_v52 }
 0x6f3   :  { %3836 = vmatmul.f32.vlgmr.msrb.gmra.mxu1 %v3567_v49  ;;  %3876 = vmatmul.f32.vlgmr.msra.gmra.mxu3 %v3567_v49  ;;  %vm3767_vm2 = vmor %vm3765_vm15, %vm3766_vm14  ;;  %v3791_v51 = vand.u32 2147483648, %v3779_v12  ;;  %vm3785_vm7 = vweird.f32 %v3779_v12  ;;  %v3789_v55 = vand.u32 2147483647, %v3779_v12 }
 0x6f4   :  { %v3733_v53 = vadd.f32 %v3671_v63, %v10271_v46  ;;  %v3762_v19 = vsub.f32 1.0, %v3761_v22  ;;  %v4029_v22 = vld [vmem:[#allocation13 + $0x30] sm:$0xff] }
 0x6f5   :  { %v3792_v20 = vor.u32 1.1754944e-38, %v3791_v51  ;;  %vm3790_vm9 = vcmp.eq.f32.partialorder %v3789_v55, 8.507059e+37 }
 0x6f6   :  { %v4158_v50 = vmul.f32 -1.442695, %v3733_v53  ;;  %v3763_v39 = vmul.f32 %v4407_v52, %v3762_v19  ;;  %v4032_v53 = vld [vmem:[#allocation13 + $0x48] sm:$0xff] }
 0x6f8   :  { %4408 = vpow2.f32 %v4158_v50  ;;  %v3710_v40 = vpop.f32.mrf.mxu2  ;;  %v3764_v38 = vadd.f32 %v4407_v52, %v3763_v39 }
 0x6f9   :  { %4410 = vrcp.f32 %v3779_v12  ;;  %v3711_v47 = vadd.f32 %v3710_v40, %v3625_v54  ;;  %v4027_v40 = vld [vmem:[#allocation13 + $0x20] sm:$0xff] }
 0x6fa   :  { %v3768_v5 = vsel %vm3767_vm2, %v4407_v52, %v3764_v38  ;;  %v4030_v52 = vld [vmem:[#allocation13 + $0x38] sm:$0xff] }
 0x6fb   :  { %3916 = vmatmul.f32.vlgmr.msra.gmra.mxu1 %v3567_v49  ;;  %3956 = vmatmul.f32.vlgmr.msrb.gmra.mxu3 %v3567_v49  ;;  %v3735_v56 = vadd.f32 %v3711_v47, %v11121_v4  ;;  %v3773_v35 = vsel %vm3770_vm1, %v3772_v1, %v3768_v5 }
 0x6fc   :  { %v3795_v37 = vmul.f32 %v3773_v35, %v9229_v42  ;;  %v4038_v42 = vld [vmem:[#allocation13 + $0x78] sm:$0xff] }
 0x6fe   :  { %v4409_v41 = vpop.eup %4408 }
 0x6ff   :  { %v3740_v57 = vadd.f32 1.0, %v4409_v41  ;;  %v4411_v46 = vpop.eup %4410 }
 0x700   :  { %v3781_v16 = vmul.f32 %v4411_v46, %v3779_v12  ;;  %vm3786_vm6 = vweird.f32 %v4411_v46  ;;  %v4028_v12 = vld [vmem:[#allocation13 + $0x28] sm:$0xff] }
 0x701   :  { %4412 = vrcp.f32 %v3740_v57  ;;  %v3752_v44 = vand.u32 2147483648, %v3740_v57  ;;  %v3750_v24 = vand.u32 2147483647, %v3740_v57  ;;  %vm3746_vm0 = vweird.f32 %v3740_v57  ;;  %vm3787_vm8 = vmor %vm3785_vm7, %vm3786_vm6 }
 0x702   :  { %4414 = vtanh.f32 %v3735_v56  ;;  %v3782_v14 = vsub.f32 1.0, %v3781_v16 }
 0x703   :  { %v3753_v4 = vor.u32 1.1754944e-38, %v3752_v44  ;;  %vm3751_vm5 = vcmp.eq.f32.partialorder %v3750_v24, 8.507059e+37 }
 0x704   :  { %v3783_v11 = vmul.f32 %v4411_v46, %v3782_v14 }
 0x706   :  { %v3784_v43 = vadd.f32 %v4411_v46, %v3783_v11 }
 0x707   :  { %v4413_v27 = vpop.eup %4412 }
 0x708   :  { %v3742_v23 = vmul.f32 %v4413_v27, %v3740_v57  ;;  %vm3747_vm3 = vweird.f32 %v4413_v27  ;;  %v4415_v15 = vpop.eup %4414  ;;  %v3788_v0 = vsel %vm3787_vm8, %v4411_v46, %v3784_v43 }
 0x709   :  { %vm3748_vm4 = vmor %vm3746_vm0, %vm3747_vm3  ;;  %v3793_v36 = vsel %vm3790_vm9, %v3792_v20, %v3788_v0 }
 0x70a   :  { %v3743_v6 = vsub.f32 1.0, %v3742_v23 }
 0x70c   :  { %v3744_v31 = vmul.f32 %v4413_v27, %v3743_v6 }
 0x70e   :  { %v3745_v60 = vadd.f32 %v4413_v27, %v3744_v31 }
 0x710   :  { %v3749_v13 = vsel %vm3748_vm4, %v4413_v27, %v3745_v60  ;;  %v4025_v27 = vld [vmem:[#allocation13 + $0x10] sm:$0xff] }
 0x711   :  { %v3754_v18 = vsel %vm3751_vm5, %v3753_v4, %v3749_v13 }
 0x712   :  { %v3796_v30 = vmul.f32 %v4415_v15, %v3754_v18 }
 0x714   :  { %v3797_v7 = vadd.f32 %v3796_v30, %v3795_v37 }
 0x716   :  { %4416 = vtanh.f32 %v3797_v7 }
 0x71c   :  { %v4417_v29 = vpop.eup %4416 }
 0x71d   :  { %v3799_v58 = vmul.f32 %v4417_v29, %v3793_v36 }
 0x71f   :  { %3816 = vmatmul.f32.vlgmr.msrb.gmra.mxu0 %v3799_v58  ;;  %3856 = vmatmul.f32.vlgmr.msra.gmra.mxu2 %v3799_v58 }
 0x720   :  { %4043 = vmatpush.msrb.mxu0 %v4038_v42 }
 0x722   :  { %4044 = vmatpush.msrb.mxu0 %v4037_v25 }
 0x724   :  { %4045 = vmatpush.msrb.mxu0 %v4036_v10 }
 0x726   :  { %4046 = vmatpush.msrb.mxu0 %v4035_v34 }
 0x727   :  { %3896 = vmatmul.f32.vlgmr.msra.gmra.mxu0 %v3799_v58  ;;  %3936 = vmatmul.f32.vlgmr.msrb.gmra.mxu2 %v3799_v58 }
 0x728   :  { %4047 = vmatpush.msrb.mxu0 %v4034_v33 }
 0x72a   :  { %4048 = vmatpush.msrb.mxu0 %v4033_v3 }
 0x72c   :  { %4049 = vmatpush.msrb.mxu0 %v4032_v53 }
 0x72e   :  { %4050 = vmatpush.msrb.mxu0 %v4031_v17 }
 0x730   :  { %4051 = vmatpush.msrb.mxu0 %v4030_v52 }
 0x732   :  { %4052 = vmatpush.msrb.mxu0 %v4029_v22 }
 0x734   :  { %4053 = vmatpush.msrb.mxu0 %v4028_v12 }
 0x736   :  { %4054 = vmatpush.msrb.mxu0 %v4027_v40 }
 0x770   :  { %v3837_v2 = vpop.f32.mrf.mxu1 }
 0x776   :  { %v3877_v61 = vpop.f32.mrf.mxu3 }
 0x778   :  { %v3917_v5 = vpop.f32.mrf.mxu1 }
 0x77e   :  { %v3957_v39 = vpop.f32.mrf.mxu3 }
 0x79c   :  { %v3817_v62 = vpop.f32.mrf.mxu0 }
 0x79d   :  { %v3818_v9 = vadd.f32 %v3817_v62, %v11260_v28 }
 0x79f   :  { %v3838_v21 = vadd.f32 %v3837_v2, %v3818_v9 }
 0x7a1   :  { %v4161_v63 = vmul.f32 -1.442695, %v3838_v21 }
 0x7a2   :  { %v3857_v49 = vpop.f32.mrf.mxu2 }
 0x7a3   :  { %4418 = vpow2.f32 %v4161_v63  ;;  %v3858_v50 = vadd.f32 %v3857_v49, %v11261_v59  ;;  %v4026_v59 = vld [vmem:[#allocation13 + $0x18] sm:$0xff] }
 0x7a4   :  { %4055 = vmatpush.msrb.mxu0 %v4026_v59  ;;  %v3897_v16 = vpop.f32.mrf.mxu0 }
 0x7a5   :  { %v3878_v54 = vadd.f32 %v3877_v61, %v3858_v50 }
 0x7a6   :  { %4056 = vmatpush.msrb.mxu0 %v4025_v27 }
 0x7a7   :  { %v4162_v28 = vmul.f32 -1.442695, %v3878_v54 }
 0x7a8   :  { %4057 = vmatpush.msrb.mxu0 %v4024_v48 }
 0x7a9   :  { %v4419_v41 = vpop.eup %4418  ;;  %4420 = vpow2.f32 %v4162_v28 }
 0x7aa   :  { %v3963_v57 = vadd.f32 1.0, %v4419_v41  ;;  %v3937_v19 = vpop.f32.mrf.mxu2  ;;  %4058 = vmatpush.msrb.mxu0 %v4023_v26 }
 0x7ab   :  { %v3938_v47 = vadd.f32 %v3937_v19, %v11262_v8  ;;  %v3898_v8 = vadd.f32 %v3897_v16, %v6394_v45 }
 0x7ac   :  { %4422 = vrcp.f32 %v3963_v57  ;;  %v3975_v15 = vand.u32 2147483648, %v3963_v57  ;;  %vm3969_vm11 = vweird.f32 %v3963_v57  ;;  %v3973_v18 = vand.u32 2147483647, %v3963_v57 }
 0x7ad   :  { %v3958_v46 = vadd.f32 %v3957_v39, %v3938_v47  ;;  %v3918_v60 = vadd.f32 %v3917_v5, %v3898_v8 }
 0x7ae   :  { %v3976_v43 = vor.u32 1.1754944e-38, %v3975_v15  ;;  %vm3974_vm15 = vcmp.eq.f32.partialorder %v3973_v18, 8.507059e+37 }
 0x7af   :  { %v4421_v56 = vpop.eup %4420  ;;  %v4163_v23 = vmul.f32 -1.442695, %v3958_v46 }
 0x7b0   :  { %v3982_v38 = vadd.f32 1.0, %v4421_v56 }
 0x7b1   :  { %4424 = vpow2.f32 %v4163_v23 }
 0x7b2   :  { %v4423_v6 = vpop.eup %4422  ;;  %4426 = vrcp.f32 %v3982_v38  ;;  %v3994_v37 = vand.u32 2147483648, %v3982_v38  ;;  %v3992_v7 = vand.u32 2147483647, %v3982_v38  ;;  %vm3988_vm14 = vweird.f32 %v3982_v38 }
 0x7b3   :  { %v3965_v44 = vmul.f32 %v4423_v6, %v3963_v57  ;;  %vm3970_vm10 = vweird.f32 %v4423_v6 }
 0x7b4   :  { %vm3971_vm12 = vmor %vm3969_vm11, %vm3970_vm10  ;;  %v3995_v0 = vor.u32 1.1754944e-38, %v3994_v37  ;;  %vm3993_vm3 = vcmp.eq.f32.partialorder %v3992_v7, 8.507059e+37 }
 0x7b5   :  { %v3966_v31 = vsub.f32 1.0, %v3965_v44 }
 0x7b7   :  { %v4425_v24 = vpop.eup %4424  ;;  %v3967_v1 = vmul.f32 %v4423_v6, %v3966_v31 }
 0x7b8   :  { %v4427_v14 = vpop.eup %4426  ;;  %v4002_v4 = vadd.f32 1.0, %v4425_v24 }
 0x7b9   :  { %v3984_v35 = vmul.f32 %v4427_v14, %v3982_v38  ;;  %v3968_v13 = vadd.f32 %v4423_v6, %v3967_v1  ;;  %vm3989_vm13 = vweird.f32 %v4427_v14 }
 0x7ba   :  { %4428 = vrcp.f32 %v4002_v4  ;;  %vm3990_vm2 = vmor %vm3988_vm14, %vm3989_vm13  ;;  %v4014_v2 = vand.u32 2147483648, %v4002_v4  ;;  %vm4008_vm1 = vweird.f32 %v4002_v4  ;;  %v4012_v21 = vand.u32 2147483647, %v4002_v4 }
 0x7bb   :  { %v3985_v11 = vsub.f32 1.0, %v3984_v35  ;;  %4430 = vtanh.f32 %v3918_v60  ;;  %v3972_v30 = vsel %vm3971_vm12, %v4423_v6, %v3968_v13 }
 0x7bc   :  { %v3977_v20 = vsel %vm3974_vm15, %v3976_v43, %v3972_v30  ;;  %v4015_v63 = vor.u32 1.1754944e-38, %v4014_v2  ;;  %vm4013_vm5 = vcmp.eq.f32.partialorder %v4012_v21, 8.507059e+37 }
 0x7bd   :  { %v3986_v45 = vmul.f32 %v4427_v14, %v3985_v11 }
 0x7bf   :  { %v3987_v51 = vadd.f32 %v4427_v14, %v3986_v45 }
 0x7c0   :  { %v4429_v55 = vpop.eup %4428 }
 0x7c1   :  { %v3991_v29 = vsel %vm3990_vm2, %v4427_v14, %v3987_v51  ;;  %v4004_v36 = vmul.f32 %v4429_v55, %v4002_v4  ;;  %v4431_v58 = vpop.eup %4430  ;;  %vm4009_vm0 = vweird.f32 %v4429_v55 }
 0x7c2   :  { %v3996_v42 = vsel %vm3993_vm3, %v3995_v0, %v3991_v29  ;;  %v4019_v10 = vmul.f32 %v4431_v58, %v3977_v20  ;;  %vm4010_vm4 = vmor %vm4008_vm1, %vm4009_vm0 }
 0x7c3   :  { %v4018_v25 = vmul.f32 %v3996_v42, %v9416_v32  ;;  %v4005_v62 = vsub.f32 1.0, %v4004_v36  ;;  %v4177_v32 = vld [vmem:[%s9441_s7] ss:$0 sm:$0xff] }
 0x7c5   :  { %v4020_v34 = vadd.f32 %v4019_v10, %v4018_v25  ;;  %v4006_v9 = vmul.f32 %v4429_v55, %v4005_v62 }
 0x7c7   :  { %4432 = vtanh.f32 %v4020_v34  ;;  %v4007_v33 = vadd.f32 %v4429_v55, %v4006_v9 }
 0x7c9   :  { %v4011_v3 = vsel %vm4010_vm4, %v4429_v55, %v4007_v33 }
 0x7ca   :  { %v4016_v49 = vsel %vm4013_vm5, %v4015_v63, %v4011_v3 }
 0x7cd   :  { %v4433_v61 = vpop.eup %4432 }
 0x7ce   :  { %v4022_v53 = vmul.f32 %v4433_v61, %v4016_v49 }
 0x7d0   :  { %4059 = vmatmul.f32.vlgmr.msrb.gmra.mxu0 %v4022_v53 }
 0x84d   :  { %v4060_v50 = vpop.f32.mrf.mxu0 }
 0x84e   :  { %v4061_v17 = vadd.f32 %v4177_v32, %v4060_v50 }
 0x850   :  { %4063 = vst [vmem:[#allocation14] sm:$0x3] %v4061_v17 }
 0x851   :  { %4074 = dma.vmem_to_hbm [thread:$0]  %s4070_s14, 32, %s4072_s20, [#allocation4]  }
 0x852   :  { %5355 = dma.done.wait [#allocation4], 32  }
 0x853   :  { %5356 = vsyncadd [#allocation4], 4294967264 }
 0x854   :  { %4079 = vsyncpa [#allocation3], 1 }
 0x855   :  { %4080 = vsyncpa [#allocation6], 1 }
 0x856   :  { %4081 = vsyncpa [#allocation9], 1 }
 0x857   :  { %4082 = vsyncpa [#allocation12], 1 }
 0x858   :  { %4083 = vsyncpa [#allocation4], 1 }

</bundles_post_ra>
